<compile_context>
chip_gen: v7x
topology: tpu7x:2x2x1
jax: 0.10.0
libtpu: 0.0.40
codegen_flags: <defaults>
</compile_context>

<pallas_src>
import functools

import jax
import jax.numpy as jnp
import numpy as np
from jax.experimental import pallas as pl
from jax.experimental.pallas import tpu as pltpu

EPS = 1e-5  # InstanceNorm2d default eps


# ----------------------------- kernel helpers ------------------------------

def _shifted_cols(a, H, W, C, dtype):
    """Reflect-pad `a` (H, W, C) by 1 and return the three W-shifted column
    sets, flattened to ((H+2)*W, C) and cast to the MXU dtype.

    cols[dw] flat row (r*W + j) == reflect_pad(a)[r, j + dw]  for r in [0, H+2).
    """
    ah = jnp.concatenate([a[1:2], a, a[H - 2:H - 1]], axis=0)        # reflect rows
    c0 = jnp.concatenate([ah[:, 1:2], ah[:, :W - 1]], axis=1)        # padded cols 0..W-1
    c1 = ah                                                          # padded cols 1..W
    c2 = jnp.concatenate([ah[:, 1:], ah[:, W - 2:W - 1]], axis=1)    # padded cols 2..W+1
    return tuple(c.reshape((H + 2) * W, C).astype(dtype) for c in (c0, c1, c2))


def _instance_norm(y, H, W):
    """Per-channel normalization over the flattened spatial axis (biased var),
    single pass (sum and sum-of-squares). y: (H*W, C) f32."""
    inv_n = 1.0 / float(H * W)
    mean = jnp.sum(y, axis=0, keepdims=True) * inv_n
    ex2 = jnp.sum(y * y, axis=0, keepdims=True) * inv_n
    var = ex2 - mean * mean
    return (y - mean) * jax.lax.rsqrt(var + EPS)


# ------------------------------- fused kernel --------------------------------

def resnet_block_kernel(x_ref, w1_ref, b1_ref, w2_ref, b2_ref, o_ref, acc_ref,
                        *, mxu_dtype):
    # x_ref: (1, H, W, C); w*_ref: (3, 3, C, C) HWIO (mxu_dtype); b*_ref: (1, C) f32
    # acc_ref: VMEM (H*W, C) f32 scratch reused by both convolutions.
    _, H, W, C = x_ref.shape
    x = x_ref[0].astype(jnp.float32)                     # residual input (f32)

    def conv3x3(cols, w, b):
        # VALID 3x3 conv over the reflect-padded tile -> (H*W, C) f32 in acc_ref.
        acc_ref[...] = jnp.broadcast_to(b.astype(jnp.float32), (H * W, C))
        for dh in range(3):
            for dw in range(3):
                patch = cols[dw][dh * W: dh * W + H * W]          # (H*W, C), aligned slice
                acc_ref[...] += jnp.dot(patch, w[dh, dw],
                                        preferred_element_type=jnp.float32)
        return acc_ref[...]

    w1 = w1_ref[...]
    w2 = w2_ref[...]

    # conv1 + InstanceNorm + ReLU (entirely in VMEM)
    h = _instance_norm(conv3x3(_shifted_cols(x, H, W, C, mxu_dtype), w1, b1_ref[...]),
                       H, W)
    h = jnp.maximum(h, 0.0).reshape(H, W, C)
    # TODO(synk): dropout branch omitted (use_dropout=False in this config).

    # in-VMEM reflect pad of h, conv2 + InstanceNorm + residual add
    z = _instance_norm(conv3x3(_shifted_cols(h, H, W, C, mxu_dtype), w2, b2_ref[...]),
                       H, W)
    o_ref[0] = (x + z.reshape(H, W, C)).astype(o_ref.dtype)


# ------------------------------- wrapper ------------------------------------

@functools.partial(jax.jit, static_argnames=("mxu_dtype",))
def resnet_block_forward(x_nchw, w1, b1, w2, b2, *, mxu_dtype=jnp.bfloat16):
    """x_nchw: (N, C, H, W) f32; w*: (3,3,C,C) HWIO; b*: (1,C).
    mxu_dtype: dtype of the matmul inputs (bf16 = native MXU rate; f32 for
    tight-tolerance verification). Accumulation / IN / residual are f32."""
    N, C, H, W = x_nchw.shape
    assert H >= 2 and W >= 2, "reflect pad of 1 needs spatial dims >= 2"
    x = jnp.transpose(x_nchw, (0, 2, 3, 1))              # -> NHWC
    w1c = w1.astype(mxu_dtype)
    w2c = w2.astype(mxu_dtype)

    wbytes = jnp.dtype(mxu_dtype).itemsize
    flops = int(N * 2 * (2 * 9 * H * W * C * C))          # two 3x3 convs
    bytes_accessed = int(2 * N * H * W * C * 4             # x in + out
                         + 2 * 9 * C * C * wbytes          # weights
                         + 2 * C * 4)                      # biases

    kernel = functools.partial(resnet_block_kernel, mxu_dtype=mxu_dtype)

    out = pl.pallas_call(
        kernel,
        out_shape=jax.ShapeDtypeStruct((N, H, W, C), x.dtype),
        grid=(N,),
        in_specs=[
            pl.BlockSpec((1, H, W, C), lambda n: (n, 0, 0, 0)),
            pl.BlockSpec((3, 3, C, C), lambda n: (0, 0, 0, 0)),
            pl.BlockSpec((1, C), lambda n: (0, 0)),
            pl.BlockSpec((3, 3, C, C), lambda n: (0, 0, 0, 0)),
            pl.BlockSpec((1, C), lambda n: (0, 0)),
        ],
        out_specs=pl.BlockSpec((1, H, W, C), lambda n: (n, 0, 0, 0)),
        scratch_shapes=[pltpu.VMEM((H * W, C), jnp.float32)],
        compiler_params=pltpu.CompilerParams(
            dimension_semantics=("parallel",),             # batch across TCs
            vmem_limit_bytes=64 * 1024 * 1024,             # above 16/32 MiB defaults
        ),
        cost_estimate=pl.CostEstimate(
            flops=flops, transcendentals=2 * N * C, bytes_accessed=bytes_accessed),
    )(x, w1c, b1, w2c, b2)

    return jnp.transpose(out, (0, 3, 1, 2))               # back to NCHW


# ------------------------------ reference -----------------------------------

def reference_forward(x_nchw, w1, b1, w2, b2):
    x = jnp.transpose(x_nchw, (0, 2, 3, 1))

    def conv(a, w, b):
        a = jnp.pad(a, ((0, 0), (1, 1), (1, 1), (0, 0)), mode="reflect")
        y = jax.lax.conv_general_dilated(
            a, w, window_strides=(1, 1), padding="VALID",
            dimension_numbers=("NHWC", "HWIO", "NHWC"))
        return y + b.reshape(1, 1, 1, -1)

    def inorm(y):
        m = jnp.mean(y, axis=(1, 2), keepdims=True)
        v = jnp.mean((y - m) ** 2, axis=(1, 2), keepdims=True)
        return (y - m) * jax.lax.rsqrt(v + EPS)

    h = jnp.maximum(inorm(conv(x, w1, b1)), 0.0)
    z = inorm(conv(h, w2, b2))
    return jnp.transpose(x + z, (0, 3, 1, 2))


# --------------------------------- main --------------------------------------

if __name__ == "__main__":
    # ResnetBlock(dim=4, padding_type='reflect', norm_layer=InstanceNorm2d,
    #             use_dropout=False, use_bias=True)
    N, C, H, W = 2, 4, 16, 16
    key = jax.random.PRNGKey(0)
    kx, kw1, kb1, kw2, kb2 = jax.random.split(key, 5)

    x = jax.random.normal(kx, (N, C, H, W), jnp.float32)
    # Conv weights in HWIO layout (3, 3, Cin, Cout); deterministic synthetic init.
    w1 = 0.1 * jax.random.normal(kw1, (3, 3, C, C), jnp.float32)
    b1 = 0.1 * jax.random.normal(kb1, (1, C), jnp.float32)
    w2 = 0.1 * jax.random.normal(kw2, (3, 3, C, C), jnp.float32)
    b2 = 0.1 * jax.random.normal(kb2, (1, C), jnp.float32)

    ref = jax.block_until_ready(reference_forward(x, w1, b1, w2, b2))

    # Structural correctness: f32-MXU path vs f32 reference, tight tolerance.
    out_f32 = jax.block_until_ready(
        resnet_block_forward(x, w1, b1, w2, b2, mxu_dtype=jnp.float32))
    assert out_f32.shape == (N, C, H, W), out_f32.shape
    np.testing.assert_allclose(np.asarray(out_f32), np.asarray(ref),
                               atol=1e-4, rtol=1e-4)

    # Performance config: bf16 MXU inputs (f32 accumulation / IN / residual);
    # tolerance widened to accommodate bf16 rounding of matmul inputs.
    out_bf16 = jax.block_until_ready(
        resnet_block_forward(x, w1, b1, w2, b2, mxu_dtype=jnp.bfloat16))
    assert out_bf16.shape == (N, C, H, W), out_bf16.shape
    np.testing.assert_allclose(np.asarray(out_bf16), np.asarray(ref),
                               atol=3e-2, rtol=3e-2)

    print("KERNEL_OK")
</pallas_src>

<mosaic_0001>
module attributes {stable_mosaic.version = 11 : i64} {
  func.func @resnet_block_kernel(%arg0: i32, %arg1: memref<1x16x16x4xf32, #tpu.memory_space<vmem>>, %arg2: memref<3x3x4x4xf32, #tpu.memory_space<vmem>>, %arg3: memref<1x4xf32, #tpu.memory_space<vmem>>, %arg4: memref<3x3x4x4xf32, #tpu.memory_space<vmem>>, %arg5: memref<1x4xf32, #tpu.memory_space<vmem>>, %arg6: memref<1x16x16x4xf32, #tpu.memory_space<vmem>>, %arg7: memref<256x4xf32, #tpu.memory_space<vmem>>) attributes {dimension_semantics = [#tpu.dimension_semantics<parallel>], iteration_bounds = array<i64: 2>, scalar_prefetch = 0 : i64, scratch_operands = 1 : i64, tpu.core_type = #tpu.core_type<tc>, window_params = [{transform_indices = @transform_0, window_bounds = array<i64: 1, 16, 16, 4>}, {pipeline_mode = #tpu.pipeline_mode<synchronous>, transform_indices = @transform_1, window_bounds = array<i64: 3, 3, 4, 4>}, {pipeline_mode = #tpu.pipeline_mode<synchronous>, transform_indices = @transform_2, window_bounds = array<i64: 1, 4>}, {pipeline_mode = #tpu.pipeline_mode<synchronous>, transform_indices = @transform_3, window_bounds = array<i64: 3, 3, 4, 4>}, {pipeline_mode = #tpu.pipeline_mode<synchronous>, transform_indices = @transform_4, window_bounds = array<i64: 1, 4>}, {transform_indices = @transform_5, window_bounds = array<i64: 1, 16, 16, 4>}]} {
    %c0 = arith.constant 0 : index
    %c0_0 = arith.constant 0 : index
    %c0_1 = arith.constant 0 : index
    %c0_2 = arith.constant 0 : index
    %0 = vector.load %arg1[%c0, %c0_0, %c0_1, %c0_2] : memref<1x16x16x4xf32, #tpu.memory_space<vmem>>, vector<1x16x16x4xf32>
    %1 = vector.shape_cast %0 : vector<1x16x16x4xf32> to vector<16x16x4xf32>
    %c0_3 = arith.constant 0 : index
    %c0_4 = arith.constant 0 : index
    %c0_5 = arith.constant 0 : index
    %c0_6 = arith.constant 0 : index
    %2 = vector.load %arg2[%c0_3, %c0_4, %c0_5, %c0_6] : memref<3x3x4x4xf32, #tpu.memory_space<vmem>>, vector<3x3x4x4xf32>
    %c0_7 = arith.constant 0 : index
    %c0_8 = arith.constant 0 : index
    %c0_9 = arith.constant 0 : index
    %c0_10 = arith.constant 0 : index
    %3 = vector.load %arg4[%c0_7, %c0_8, %c0_9, %c0_10] : memref<3x3x4x4xf32, #tpu.memory_space<vmem>>, vector<3x3x4x4xf32>
    %4 = vector.extract_strided_slice %1 {offsets = [1, 0, 0], sizes = [1, 16, 4], strides = [1, 1, 1]} : vector<16x16x4xf32> to vector<1x16x4xf32>
    %5 = vector.extract_strided_slice %1 {offsets = [14, 0, 0], sizes = [1, 16, 4], strides = [1, 1, 1]} : vector<16x16x4xf32> to vector<1x16x4xf32>
    %6 = tpu.concatenate %4, %1, %5 in 0 : vector<1x16x4xf32>, vector<16x16x4xf32>, vector<1x16x4xf32> -> vector<18x16x4xf32>
    %7 = vector.extract_strided_slice %6 {offsets = [0, 1, 0], sizes = [18, 1, 4], strides = [1, 1, 1]} : vector<18x16x4xf32> to vector<18x1x4xf32>
    %8 = vector.extract_strided_slice %6 {offsets = [0, 0, 0], sizes = [18, 15, 4], strides = [1, 1, 1]} : vector<18x16x4xf32> to vector<18x15x4xf32>
    %9 = tpu.concatenate %7, %8 in 1 : vector<18x1x4xf32>, vector<18x15x4xf32> -> vector<18x16x4xf32>
    %10 = vector.extract_strided_slice %6 {offsets = [0, 1, 0], sizes = [18, 15, 4], strides = [1, 1, 1]} : vector<18x16x4xf32> to vector<18x15x4xf32>
    %11 = vector.extract_strided_slice %6 {offsets = [0, 14, 0], sizes = [18, 1, 4], strides = [1, 1, 1]} : vector<18x16x4xf32> to vector<18x1x4xf32>
    %12 = tpu.concatenate %10, %11 in 1 : vector<18x15x4xf32>, vector<18x1x4xf32> -> vector<18x16x4xf32>
    %13 = vector.shape_cast %9 : vector<18x16x4xf32> to vector<288x4xf32>
    %14 = vector.shape_cast %6 : vector<18x16x4xf32> to vector<288x4xf32>
    %15 = vector.shape_cast %12 : vector<18x16x4xf32> to vector<288x4xf32>
    %c0_11 = arith.constant 0 : index
    %c0_12 = arith.constant 0 : index
    %16 = vector.load %arg3[%c0_11, %c0_12] : memref<1x4xf32, #tpu.memory_space<vmem>>, vector<1x4xf32>
    %17 = vector.shape_cast %16 : vector<1x4xf32> to vector<1x4xf32>
    %18 = vector.broadcast %17 : vector<1x4xf32> to vector<256x4xf32>
    %c0_13 = arith.constant 0 : index
    %c0_14 = arith.constant 0 : index
    %19 = vector.load %arg7[%c0_13, %c0_14] : memref<256x4xf32, #tpu.memory_space<vmem>>, vector<256x4xf32>
    tpu.vector_store %arg7[%c0_13, %c0_14], %18 {strides = array<i32>} : memref<256x4xf32, #tpu.memory_space<vmem>>, vector<256x4xf32>,
    %20 = vector.extract_strided_slice %13 {offsets = [0, 0], sizes = [256, 4], strides = [1, 1]} : vector<288x4xf32> to vector<256x4xf32>
    %c0_15 = arith.constant 0 : index
    %c0_16 = arith.constant 0 : index
    %21 = vector.load %arg7[%c0_15, %c0_16] : memref<256x4xf32, #tpu.memory_space<vmem>>, vector<256x4xf32>
    %22 = vector.extract_strided_slice %2 {offsets = [0, 0, 0, 0], sizes = [1, 1, 4, 4], strides = [1, 1, 1, 1]} : vector<3x3x4x4xf32> to vector<1x1x4x4xf32>
    %23 = vector.shape_cast %22 : vector<1x1x4x4xf32> to vector<4x4xf32>
    %cst = arith.constant dense<0.000000e+00> : vector<256x4xf32>
    %24 = tpu.matmul %20, %23, %cst {dimension_numbers = #tpu.dot_dimension_numbers<[1], [0], [0], [1], [0, 0, 1, 1], [], []>} : vector<256x4xf32>, vector<4x4xf32>, vector<256x4xf32> -> vector<256x4xf32>
    %25 = arith.addf %21, %24 : vector<256x4xf32>
    %c0_17 = arith.constant 0 : index
    %c0_18 = arith.constant 0 : index
    %26 = vector.load %arg7[%c0_17, %c0_18] : memref<256x4xf32, #tpu.memory_space<vmem>>, vector<256x4xf32>
    tpu.vector_store %arg7[%c0_17, %c0_18], %25 {strides = array<i32>} : memref<256x4xf32, #tpu.memory_space<vmem>>, vector<256x4xf32>,
    %27 = vector.extract_strided_slice %14 {offsets = [0, 0], sizes = [256, 4], strides = [1, 1]} : vector<288x4xf32> to vector<256x4xf32>
    %c0_19 = arith.constant 0 : index
    %c0_20 = arith.constant 0 : index
    %28 = vector.load %arg7[%c0_19, %c0_20] : memref<256x4xf32, #tpu.memory_space<vmem>>, vector<256x4xf32>
    %29 = vector.extract_strided_slice %2 {offsets = [0, 1, 0, 0], sizes = [1, 1, 4, 4], strides = [1, 1, 1, 1]} : vector<3x3x4x4xf32> to vector<1x1x4x4xf32>
    %30 = vector.shape_cast %29 : vector<1x1x4x4xf32> to vector<4x4xf32>
    %cst_21 = arith.constant dense<0.000000e+00> : vector<256x4xf32>
    %31 = tpu.matmul %27, %30, %cst_21 {dimension_numbers = #tpu.dot_dimension_numbers<[1], [0], [0], [1], [0, 0, 1, 1], [], []>} : vector<256x4xf32>, vector<4x4xf32>, vector<256x4xf32> -> vector<256x4xf32>
    %32 = arith.addf %28, %31 : vector<256x4xf32>
    %c0_22 = arith.constant 0 : index
    %c0_23 = arith.constant 0 : index
    %33 = vector.load %arg7[%c0_22, %c0_23] : memref<256x4xf32, #tpu.memory_space<vmem>>, vector<256x4xf32>
    tpu.vector_store %arg7[%c0_22, %c0_23], %32 {strides = array<i32>} : memref<256x4xf32, #tpu.memory_space<vmem>>, vector<256x4xf32>,
    %34 = vector.extract_strided_slice %15 {offsets = [0, 0], sizes = [256, 4], strides = [1, 1]} : vector<288x4xf32> to vector<256x4xf32>
    %c0_24 = arith.constant 0 : index
    %c0_25 = arith.constant 0 : index
    %35 = vector.load %arg7[%c0_24, %c0_25] : memref<256x4xf32, #tpu.memory_space<vmem>>, vector<256x4xf32>
    %36 = vector.extract_strided_slice %2 {offsets = [0, 2, 0, 0], sizes = [1, 1, 4, 4], strides = [1, 1, 1, 1]} : vector<3x3x4x4xf32> to vector<1x1x4x4xf32>
    %37 = vector.shape_cast %36 : vector<1x1x4x4xf32> to vector<4x4xf32>
    %cst_26 = arith.constant dense<0.000000e+00> : vector<256x4xf32>
    %38 = tpu.matmul %34, %37, %cst_26 {dimension_numbers = #tpu.dot_dimension_numbers<[1], [0], [0], [1], [0, 0, 1, 1], [], []>} : vector<256x4xf32>, vector<4x4xf32>, vector<256x4xf32> -> vector<256x4xf32>
    %39 = arith.addf %35, %38 : vector<256x4xf32>
    %c0_27 = arith.constant 0 : index
    %c0_28 = arith.constant 0 : index
    %40 = vector.load %arg7[%c0_27, %c0_28] : memref<256x4xf32, #tpu.memory_space<vmem>>, vector<256x4xf32>
    tpu.vector_store %arg7[%c0_27, %c0_28], %39 {strides = array<i32>} : memref<256x4xf32, #tpu.memory_space<vmem>>, vector<256x4xf32>,
    %41 = vector.extract_strided_slice %13 {offsets = [16, 0], sizes = [256, 4], strides = [1, 1]} : vector<288x4xf32> to vector<256x4xf32>
    %c0_29 = arith.constant 0 : index
    %c0_30 = arith.constant 0 : index
    %42 = vector.load %arg7[%c0_29, %c0_30] : memref<256x4xf32, #tpu.memory_space<vmem>>, vector<256x4xf32>
    %43 = vector.extract_strided_slice %2 {offsets = [1, 0, 0, 0], sizes = [1, 1, 4, 4], strides = [1, 1, 1, 1]} : vector<3x3x4x4xf32> to vector<1x1x4x4xf32>
    %44 = vector.shape_cast %43 : vector<1x1x4x4xf32> to vector<4x4xf32>
    %cst_31 = arith.constant dense<0.000000e+00> : vector<256x4xf32>
    %45 = tpu.matmul %41, %44, %cst_31 {dimension_numbers = #tpu.dot_dimension_numbers<[1], [0], [0], [1], [0, 0, 1, 1], [], []>} : vector<256x4xf32>, vector<4x4xf32>, vector<256x4xf32> -> vector<256x4xf32>
    %46 = arith.addf %42, %45 : vector<256x4xf32>
    %c0_32 = arith.constant 0 : index
    %c0_33 = arith.constant 0 : index
    %47 = vector.load %arg7[%c0_32, %c0_33] : memref<256x4xf32, #tpu.memory_space<vmem>>, vector<256x4xf32>
    tpu.vector_store %arg7[%c0_32, %c0_33], %46 {strides = array<i32>} : memref<256x4xf32, #tpu.memory_space<vmem>>, vector<256x4xf32>,
    %48 = vector.extract_strided_slice %14 {offsets = [16, 0], sizes = [256, 4], strides = [1, 1]} : vector<288x4xf32> to vector<256x4xf32>
    %c0_34 = arith.constant 0 : index
    %c0_35 = arith.constant 0 : index
    %49 = vector.load %arg7[%c0_34, %c0_35] : memref<256x4xf32, #tpu.memory_space<vmem>>, vector<256x4xf32>
    %50 = vector.extract_strided_slice %2 {offsets = [1, 1, 0, 0], sizes = [1, 1, 4, 4], strides = [1, 1, 1, 1]} : vector<3x3x4x4xf32> to vector<1x1x4x4xf32>
    %51 = vector.shape_cast %50 : vector<1x1x4x4xf32> to vector<4x4xf32>
    %cst_36 = arith.constant dense<0.000000e+00> : vector<256x4xf32>
    %52 = tpu.matmul %48, %51, %cst_36 {dimension_numbers = #tpu.dot_dimension_numbers<[1], [0], [0], [1], [0, 0, 1, 1], [], []>} : vector<256x4xf32>, vector<4x4xf32>, vector<256x4xf32> -> vector<256x4xf32>
    %53 = arith.addf %49, %52 : vector<256x4xf32>
    %c0_37 = arith.constant 0 : index
    %c0_38 = arith.constant 0 : index
    %54 = vector.load %arg7[%c0_37, %c0_38] : memref<256x4xf32, #tpu.memory_space<vmem>>, vector<256x4xf32>
    tpu.vector_store %arg7[%c0_37, %c0_38], %53 {strides = array<i32>} : memref<256x4xf32, #tpu.memory_space<vmem>>, vector<256x4xf32>,
    %55 = vector.extract_strided_slice %15 {offsets = [16, 0], sizes = [256, 4], strides = [1, 1]} : vector<288x4xf32> to vector<256x4xf32>
    %c0_39 = arith.constant 0 : index
    %c0_40 = arith.constant 0 : index
    %56 = vector.load %arg7[%c0_39, %c0_40] : memref<256x4xf32, #tpu.memory_space<vmem>>, vector<256x4xf32>
    %57 = vector.extract_strided_slice %2 {offsets = [1, 2, 0, 0], sizes = [1, 1, 4, 4], strides = [1, 1, 1, 1]} : vector<3x3x4x4xf32> to vector<1x1x4x4xf32>
    %58 = vector.shape_cast %57 : vector<1x1x4x4xf32> to vector<4x4xf32>
    %cst_41 = arith.constant dense<0.000000e+00> : vector<256x4xf32>
    %59 = tpu.matmul %55, %58, %cst_41 {dimension_numbers = #tpu.dot_dimension_numbers<[1], [0], [0], [1], [0, 0, 1, 1], [], []>} : vector<256x4xf32>, vector<4x4xf32>, vector<256x4xf32> -> vector<256x4xf32>
    %60 = arith.addf %56, %59 : vector<256x4xf32>
    %c0_42 = arith.constant 0 : index
    %c0_43 = arith.constant 0 : index
    %61 = vector.load %arg7[%c0_42, %c0_43] : memref<256x4xf32, #tpu.memory_space<vmem>>, vector<256x4xf32>
    tpu.vector_store %arg7[%c0_42, %c0_43], %60 {strides = array<i32>} : memref<256x4xf32, #tpu.memory_space<vmem>>, vector<256x4xf32>,
    %62 = vector.extract_strided_slice %13 {offsets = [32, 0], sizes = [256, 4], strides = [1, 1]} : vector<288x4xf32> to vector<256x4xf32>
    %c0_44 = arith.constant 0 : index
    %c0_45 = arith.constant 0 : index
    %63 = vector.load %arg7[%c0_44, %c0_45] : memref<256x4xf32, #tpu.memory_space<vmem>>, vector<256x4xf32>
    %64 = vector.extract_strided_slice %2 {offsets = [2, 0, 0, 0], sizes = [1, 1, 4, 4], strides = [1, 1, 1, 1]} : vector<3x3x4x4xf32> to vector<1x1x4x4xf32>
    %65 = vector.shape_cast %64 : vector<1x1x4x4xf32> to vector<4x4xf32>
    %cst_46 = arith.constant dense<0.000000e+00> : vector<256x4xf32>
    %66 = tpu.matmul %62, %65, %cst_46 {dimension_numbers = #tpu.dot_dimension_numbers<[1], [0], [0], [1], [0, 0, 1, 1], [], []>} : vector<256x4xf32>, vector<4x4xf32>, vector<256x4xf32> -> vector<256x4xf32>
    %67 = arith.addf %63, %66 : vector<256x4xf32>
    %c0_47 = arith.constant 0 : index
    %c0_48 = arith.constant 0 : index
    %68 = vector.load %arg7[%c0_47, %c0_48] : memref<256x4xf32, #tpu.memory_space<vmem>>, vector<256x4xf32>
    tpu.vector_store %arg7[%c0_47, %c0_48], %67 {strides = array<i32>} : memref<256x4xf32, #tpu.memory_space<vmem>>, vector<256x4xf32>,
    %69 = vector.extract_strided_slice %14 {offsets = [32, 0], sizes = [256, 4], strides = [1, 1]} : vector<288x4xf32> to vector<256x4xf32>
    %c0_49 = arith.constant 0 : index
    %c0_50 = arith.constant 0 : index
    %70 = vector.load %arg7[%c0_49, %c0_50] : memref<256x4xf32, #tpu.memory_space<vmem>>, vector<256x4xf32>
    %71 = vector.extract_strided_slice %2 {offsets = [2, 1, 0, 0], sizes = [1, 1, 4, 4], strides = [1, 1, 1, 1]} : vector<3x3x4x4xf32> to vector<1x1x4x4xf32>
    %72 = vector.shape_cast %71 : vector<1x1x4x4xf32> to vector<4x4xf32>
    %cst_51 = arith.constant dense<0.000000e+00> : vector<256x4xf32>
    %73 = tpu.matmul %69, %72, %cst_51 {dimension_numbers = #tpu.dot_dimension_numbers<[1], [0], [0], [1], [0, 0, 1, 1], [], []>} : vector<256x4xf32>, vector<4x4xf32>, vector<256x4xf32> -> vector<256x4xf32>
    %74 = arith.addf %70, %73 : vector<256x4xf32>
    %c0_52 = arith.constant 0 : index
    %c0_53 = arith.constant 0 : index
    %75 = vector.load %arg7[%c0_52, %c0_53] : memref<256x4xf32, #tpu.memory_space<vmem>>, vector<256x4xf32>
    tpu.vector_store %arg7[%c0_52, %c0_53], %74 {strides = array<i32>} : memref<256x4xf32, #tpu.memory_space<vmem>>, vector<256x4xf32>,
    %76 = vector.extract_strided_slice %15 {offsets = [32, 0], sizes = [256, 4], strides = [1, 1]} : vector<288x4xf32> to vector<256x4xf32>
    %c0_54 = arith.constant 0 : index
    %c0_55 = arith.constant 0 : index
    %77 = vector.load %arg7[%c0_54, %c0_55] : memref<256x4xf32, #tpu.memory_space<vmem>>, vector<256x4xf32>
    %78 = vector.extract_strided_slice %2 {offsets = [2, 2, 0, 0], sizes = [1, 1, 4, 4], strides = [1, 1, 1, 1]} : vector<3x3x4x4xf32> to vector<1x1x4x4xf32>
    %79 = vector.shape_cast %78 : vector<1x1x4x4xf32> to vector<4x4xf32>
    %cst_56 = arith.constant dense<0.000000e+00> : vector<256x4xf32>
    %80 = tpu.matmul %76, %79, %cst_56 {dimension_numbers = #tpu.dot_dimension_numbers<[1], [0], [0], [1], [0, 0, 1, 1], [], []>} : vector<256x4xf32>, vector<4x4xf32>, vector<256x4xf32> -> vector<256x4xf32>
    %81 = arith.addf %77, %80 : vector<256x4xf32>
    %c0_57 = arith.constant 0 : index
    %c0_58 = arith.constant 0 : index
    %82 = vector.load %arg7[%c0_57, %c0_58] : memref<256x4xf32, #tpu.memory_space<vmem>>, vector<256x4xf32>
    tpu.vector_store %arg7[%c0_57, %c0_58], %81 {strides = array<i32>} : memref<256x4xf32, #tpu.memory_space<vmem>>, vector<256x4xf32>,
    %c0_59 = arith.constant 0 : index
    %c0_60 = arith.constant 0 : index
    %83 = vector.load %arg7[%c0_59, %c0_60] : memref<256x4xf32, #tpu.memory_space<vmem>>, vector<256x4xf32>
    %cst_61 = arith.constant dense<0.000000e+00> : vector<4xf32>
    %84 = vector.multi_reduction <add>, %83, %cst_61 [0] : vector<256x4xf32> to vector<4xf32>
    %85 = vector.shape_cast %84 : vector<4xf32> to vector<1x4xf32>
    %cst_62 = arith.constant 3.906250e-03 : f32
    %86 = vector.broadcast %cst_62 : f32 to vector<1x4xf32>
    %87 = arith.mulf %85, %86 : vector<1x4xf32>
    %88 = arith.mulf %83, %83 : vector<256x4xf32>
    %cst_63 = arith.constant dense<0.000000e+00> : vector<4xf32>
    %89 = vector.multi_reduction <add>, %88, %cst_63 [0] : vector<256x4xf32> to vector<4xf32>
    %90 = vector.shape_cast %89 : vector<4xf32> to vector<1x4xf32>
    %cst_64 = arith.constant 3.906250e-03 : f32
    %91 = vector.broadcast %cst_64 : f32 to vector<1x4xf32>
    %92 = arith.mulf %90, %91 : vector<1x4xf32>
    %93 = arith.mulf %87, %87 : vector<1x4xf32>
    %94 = arith.subf %92, %93 : vector<1x4xf32>
    %95 = vector.broadcast %87 : vector<1x4xf32> to vector<256x4xf32>
    %96 = arith.subf %83, %95 : vector<256x4xf32>
    %cst_65 = arith.constant 9.99999974E-6 : f32
    %97 = vector.broadcast %cst_65 : f32 to vector<1x4xf32>
    %98 = arith.addf %94, %97 : vector<1x4xf32>
    %99 = math.rsqrt %98 : vector<1x4xf32>
    %100 = vector.broadcast %99 : vector<1x4xf32> to vector<256x4xf32>
    %101 = arith.mulf %96, %100 : vector<256x4xf32>
    %cst_66 = arith.constant 0.000000e+00 : f32
    %102 = vector.broadcast %cst_66 : f32 to vector<256x4xf32>
    %103 = arith.maximumf %101, %102 : vector<256x4xf32>
    %104 = vector.shape_cast %103 : vector<256x4xf32> to vector<16x16x4xf32>
    %105 = vector.extract_strided_slice %104 {offsets = [1, 0, 0], sizes = [1, 16, 4], strides = [1, 1, 1]} : vector<16x16x4xf32> to vector<1x16x4xf32>
    %106 = vector.extract_strided_slice %104 {offsets = [14, 0, 0], sizes = [1, 16, 4], strides = [1, 1, 1]} : vector<16x16x4xf32> to vector<1x16x4xf32>
    %107 = tpu.concatenate %105, %104, %106 in 0 : vector<1x16x4xf32>, vector<16x16x4xf32>, vector<1x16x4xf32> -> vector<18x16x4xf32>
    %108 = vector.extract_strided_slice %107 {offsets = [0, 1, 0], sizes = [18, 1, 4], strides = [1, 1, 1]} : vector<18x16x4xf32> to vector<18x1x4xf32>
    %109 = vector.extract_strided_slice %107 {offsets = [0, 0, 0], sizes = [18, 15, 4], strides = [1, 1, 1]} : vector<18x16x4xf32> to vector<18x15x4xf32>
    %110 = tpu.concatenate %108, %109 in 1 : vector<18x1x4xf32>, vector<18x15x4xf32> -> vector<18x16x4xf32>
    %111 = vector.extract_strided_slice %107 {offsets = [0, 1, 0], sizes = [18, 15, 4], strides = [1, 1, 1]} : vector<18x16x4xf32> to vector<18x15x4xf32>
    %112 = vector.extract_strided_slice %107 {offsets = [0, 14, 0], sizes = [18, 1, 4], strides = [1, 1, 1]} : vector<18x16x4xf32> to vector<18x1x4xf32>
    %113 = tpu.concatenate %111, %112 in 1 : vector<18x15x4xf32>, vector<18x1x4xf32> -> vector<18x16x4xf32>
    %114 = vector.shape_cast %110 : vector<18x16x4xf32> to vector<288x4xf32>
    %115 = vector.shape_cast %107 : vector<18x16x4xf32> to vector<288x4xf32>
    %116 = vector.shape_cast %113 : vector<18x16x4xf32> to vector<288x4xf32>
    %c0_67 = arith.constant 0 : index
    %c0_68 = arith.constant 0 : index
    %117 = vector.load %arg5[%c0_67, %c0_68] : memref<1x4xf32, #tpu.memory_space<vmem>>, vector<1x4xf32>
    %118 = vector.shape_cast %117 : vector<1x4xf32> to vector<1x4xf32>
    %119 = vector.broadcast %118 : vector<1x4xf32> to vector<256x4xf32>
    %c0_69 = arith.constant 0 : index
    %c0_70 = arith.constant 0 : index
    %120 = vector.load %arg7[%c0_69, %c0_70] : memref<256x4xf32, #tpu.memory_space<vmem>>, vector<256x4xf32>
    tpu.vector_store %arg7[%c0_69, %c0_70], %119 {strides = array<i32>} : memref<256x4xf32, #tpu.memory_space<vmem>>, vector<256x4xf32>,
    %121 = vector.extract_strided_slice %114 {offsets = [0, 0], sizes = [256, 4], strides = [1, 1]} : vector<288x4xf32> to vector<256x4xf32>
    %c0_71 = arith.constant 0 : index
    %c0_72 = arith.constant 0 : index
    %122 = vector.load %arg7[%c0_71, %c0_72] : memref<256x4xf32, #tpu.memory_space<vmem>>, vector<256x4xf32>
    %123 = vector.extract_strided_slice %3 {offsets = [0, 0, 0, 0], sizes = [1, 1, 4, 4], strides = [1, 1, 1, 1]} : vector<3x3x4x4xf32> to vector<1x1x4x4xf32>
    %124 = vector.shape_cast %123 : vector<1x1x4x4xf32> to vector<4x4xf32>
    %cst_73 = arith.constant dense<0.000000e+00> : vector<256x4xf32>
    %125 = tpu.matmul %121, %124, %cst_73 {dimension_numbers = #tpu.dot_dimension_numbers<[1], [0], [0], [1], [0, 0, 1, 1], [], []>} : vector<256x4xf32>, vector<4x4xf32>, vector<256x4xf32> -> vector<256x4xf32>
    %126 = arith.addf %122, %125 : vector<256x4xf32>
    %c0_74 = arith.constant 0 : index
    %c0_75 = arith.constant 0 : index
    %127 = vector.load %arg7[%c0_74, %c0_75] : memref<256x4xf32, #tpu.memory_space<vmem>>, vector<256x4xf32>
    tpu.vector_store %arg7[%c0_74, %c0_75], %126 {strides = array<i32>} : memref<256x4xf32, #tpu.memory_space<vmem>>, vector<256x4xf32>,
    %128 = vector.extract_strided_slice %115 {offsets = [0, 0], sizes = [256, 4], strides = [1, 1]} : vector<288x4xf32> to vector<256x4xf32>
    %c0_76 = arith.constant 0 : index
    %c0_77 = arith.constant 0 : index
    %129 = vector.load %arg7[%c0_76, %c0_77] : memref<256x4xf32, #tpu.memory_space<vmem>>, vector<256x4xf32>
    %130 = vector.extract_strided_slice %3 {offsets = [0, 1, 0, 0], sizes = [1, 1, 4, 4], strides = [1, 1, 1, 1]} : vector<3x3x4x4xf32> to vector<1x1x4x4xf32>
    %131 = vector.shape_cast %130 : vector<1x1x4x4xf32> to vector<4x4xf32>
    %cst_78 = arith.constant dense<0.000000e+00> : vector<256x4xf32>
    %132 = tpu.matmul %128, %131, %cst_78 {dimension_numbers = #tpu.dot_dimension_numbers<[1], [0], [0], [1], [0, 0, 1, 1], [], []>} : vector<256x4xf32>, vector<4x4xf32>, vector<256x4xf32> -> vector<256x4xf32>
    %133 = arith.addf %129, %132 : vector<256x4xf32>
    %c0_79 = arith.constant 0 : index
    %c0_80 = arith.constant 0 : index
    %134 = vector.load %arg7[%c0_79, %c0_80] : memref<256x4xf32, #tpu.memory_space<vmem>>, vector<256x4xf32>
    tpu.vector_store %arg7[%c0_79, %c0_80], %133 {strides = array<i32>} : memref<256x4xf32, #tpu.memory_space<vmem>>, vector<256x4xf32>,
    %135 = vector.extract_strided_slice %116 {offsets = [0, 0], sizes = [256, 4], strides = [1, 1]} : vector<288x4xf32> to vector<256x4xf32>
    %c0_81 = arith.constant 0 : index
    %c0_82 = arith.constant 0 : index
    %136 = vector.load %arg7[%c0_81, %c0_82] : memref<256x4xf32, #tpu.memory_space<vmem>>, vector<256x4xf32>
    %137 = vector.extract_strided_slice %3 {offsets = [0, 2, 0, 0], sizes = [1, 1, 4, 4], strides = [1, 1, 1, 1]} : vector<3x3x4x4xf32> to vector<1x1x4x4xf32>
    %138 = vector.shape_cast %137 : vector<1x1x4x4xf32> to vector<4x4xf32>
    %cst_83 = arith.constant dense<0.000000e+00> : vector<256x4xf32>
    %139 = tpu.matmul %135, %138, %cst_83 {dimension_numbers = #tpu.dot_dimension_numbers<[1], [0], [0], [1], [0, 0, 1, 1], [], []>} : vector<256x4xf32>, vector<4x4xf32>, vector<256x4xf32> -> vector<256x4xf32>
    %140 = arith.addf %136, %139 : vector<256x4xf32>
    %c0_84 = arith.constant 0 : index
    %c0_85 = arith.constant 0 : index
    %141 = vector.load %arg7[%c0_84, %c0_85] : memref<256x4xf32, #tpu.memory_space<vmem>>, vector<256x4xf32>
    tpu.vector_store %arg7[%c0_84, %c0_85], %140 {strides = array<i32>} : memref<256x4xf32, #tpu.memory_space<vmem>>, vector<256x4xf32>,
    %142 = vector.extract_strided_slice %114 {offsets = [16, 0], sizes = [256, 4], strides = [1, 1]} : vector<288x4xf32> to vector<256x4xf32>
    %c0_86 = arith.constant 0 : index
    %c0_87 = arith.constant 0 : index
    %143 = vector.load %arg7[%c0_86, %c0_87] : memref<256x4xf32, #tpu.memory_space<vmem>>, vector<256x4xf32>
    %144 = vector.extract_strided_slice %3 {offsets = [1, 0, 0, 0], sizes = [1, 1, 4, 4], strides = [1, 1, 1, 1]} : vector<3x3x4x4xf32> to vector<1x1x4x4xf32>
    %145 = vector.shape_cast %144 : vector<1x1x4x4xf32> to vector<4x4xf32>
    %cst_88 = arith.constant dense<0.000000e+00> : vector<256x4xf32>
    %146 = tpu.matmul %142, %145, %cst_88 {dimension_numbers = #tpu.dot_dimension_numbers<[1], [0], [0], [1], [0, 0, 1, 1], [], []>} : vector<256x4xf32>, vector<4x4xf32>, vector<256x4xf32> -> vector<256x4xf32>
    %147 = arith.addf %143, %146 : vector<256x4xf32>
    %c0_89 = arith.constant 0 : index
    %c0_90 = arith.constant 0 : index
    %148 = vector.load %arg7[%c0_89, %c0_90] : memref<256x4xf32, #tpu.memory_space<vmem>>, vector<256x4xf32>
    tpu.vector_store %arg7[%c0_89, %c0_90], %147 {strides = array<i32>} : memref<256x4xf32, #tpu.memory_space<vmem>>, vector<256x4xf32>,
    %149 = vector.extract_strided_slice %115 {offsets = [16, 0], sizes = [256, 4], strides = [1, 1]} : vector<288x4xf32> to vector<256x4xf32>
    %c0_91 = arith.constant 0 : index
    %c0_92 = arith.constant 0 : index
    %150 = vector.load %arg7[%c0_91, %c0_92] : memref<256x4xf32, #tpu.memory_space<vmem>>, vector<256x4xf32>
    %151 = vector.extract_strided_slice %3 {offsets = [1, 1, 0, 0], sizes = [1, 1, 4, 4], strides = [1, 1, 1, 1]} : vector<3x3x4x4xf32> to vector<1x1x4x4xf32>
    %152 = vector.shape_cast %151 : vector<1x1x4x4xf32> to vector<4x4xf32>
    %cst_93 = arith.constant dense<0.000000e+00> : vector<256x4xf32>
    %153 = tpu.matmul %149, %152, %cst_93 {dimension_numbers = #tpu.dot_dimension_numbers<[1], [0], [0], [1], [0, 0, 1, 1], [], []>} : vector<256x4xf32>, vector<4x4xf32>, vector<256x4xf32> -> vector<256x4xf32>
    %154 = arith.addf %150, %153 : vector<256x4xf32>
    %c0_94 = arith.constant 0 : index
    %c0_95 = arith.constant 0 : index
    %155 = vector.load %arg7[%c0_94, %c0_95] : memref<256x4xf32, #tpu.memory_space<vmem>>, vector<256x4xf32>
    tpu.vector_store %arg7[%c0_94, %c0_95], %154 {strides = array<i32>} : memref<256x4xf32, #tpu.memory_space<vmem>>, vector<256x4xf32>,
    %156 = vector.extract_strided_slice %116 {offsets = [16, 0], sizes = [256, 4], strides = [1, 1]} : vector<288x4xf32> to vector<256x4xf32>
    %c0_96 = arith.constant 0 : index
    %c0_97 = arith.constant 0 : index
    %157 = vector.load %arg7[%c0_96, %c0_97] : memref<256x4xf32, #tpu.memory_space<vmem>>, vector<256x4xf32>
    %158 = vector.extract_strided_slice %3 {offsets = [1, 2, 0, 0], sizes = [1, 1, 4, 4], strides = [1, 1, 1, 1]} : vector<3x3x4x4xf32> to vector<1x1x4x4xf32>
    %159 = vector.shape_cast %158 : vector<1x1x4x4xf32> to vector<4x4xf32>
    %cst_98 = arith.constant dense<0.000000e+00> : vector<256x4xf32>
    %160 = tpu.matmul %156, %159, %cst_98 {dimension_numbers = #tpu.dot_dimension_numbers<[1], [0], [0], [1], [0, 0, 1, 1], [], []>} : vector<256x4xf32>, vector<4x4xf32>, vector<256x4xf32> -> vector<256x4xf32>
    %161 = arith.addf %157, %160 : vector<256x4xf32>
    %c0_99 = arith.constant 0 : index
    %c0_100 = arith.constant 0 : index
    %162 = vector.load %arg7[%c0_99, %c0_100] : memref<256x4xf32, #tpu.memory_space<vmem>>, vector<256x4xf32>
    tpu.vector_store %arg7[%c0_99, %c0_100], %161 {strides = array<i32>} : memref<256x4xf32, #tpu.memory_space<vmem>>, vector<256x4xf32>,
    %163 = vector.extract_strided_slice %114 {offsets = [32, 0], sizes = [256, 4], strides = [1, 1]} : vector<288x4xf32> to vector<256x4xf32>
    %c0_101 = arith.constant 0 : index
    %c0_102 = arith.constant 0 : index
    %164 = vector.load %arg7[%c0_101, %c0_102] : memref<256x4xf32, #tpu.memory_space<vmem>>, vector<256x4xf32>
    %165 = vector.extract_strided_slice %3 {offsets = [2, 0, 0, 0], sizes = [1, 1, 4, 4], strides = [1, 1, 1, 1]} : vector<3x3x4x4xf32> to vector<1x1x4x4xf32>
    %166 = vector.shape_cast %165 : vector<1x1x4x4xf32> to vector<4x4xf32>
    %cst_103 = arith.constant dense<0.000000e+00> : vector<256x4xf32>
    %167 = tpu.matmul %163, %166, %cst_103 {dimension_numbers = #tpu.dot_dimension_numbers<[1], [0], [0], [1], [0, 0, 1, 1], [], []>} : vector<256x4xf32>, vector<4x4xf32>, vector<256x4xf32> -> vector<256x4xf32>
    %168 = arith.addf %164, %167 : vector<256x4xf32>
    %c0_104 = arith.constant 0 : index
    %c0_105 = arith.constant 0 : index
    %169 = vector.load %arg7[%c0_104, %c0_105] : memref<256x4xf32, #tpu.memory_space<vmem>>, vector<256x4xf32>
    tpu.vector_store %arg7[%c0_104, %c0_105], %168 {strides = array<i32>} : memref<256x4xf32, #tpu.memory_space<vmem>>, vector<256x4xf32>,
    %170 = vector.extract_strided_slice %115 {offsets = [32, 0], sizes = [256, 4], strides = [1, 1]} : vector<288x4xf32> to vector<256x4xf32>
    %c0_106 = arith.constant 0 : index
    %c0_107 = arith.constant 0 : index
    %171 = vector.load %arg7[%c0_106, %c0_107] : memref<256x4xf32, #tpu.memory_space<vmem>>, vector<256x4xf32>
    %172 = vector.extract_strided_slice %3 {offsets = [2, 1, 0, 0], sizes = [1, 1, 4, 4], strides = [1, 1, 1, 1]} : vector<3x3x4x4xf32> to vector<1x1x4x4xf32>
    %173 = vector.shape_cast %172 : vector<1x1x4x4xf32> to vector<4x4xf32>
    %cst_108 = arith.constant dense<0.000000e+00> : vector<256x4xf32>
    %174 = tpu.matmul %170, %173, %cst_108 {dimension_numbers = #tpu.dot_dimension_numbers<[1], [0], [0], [1], [0, 0, 1, 1], [], []>} : vector<256x4xf32>, vector<4x4xf32>, vector<256x4xf32> -> vector<256x4xf32>
    %175 = arith.addf %171, %174 : vector<256x4xf32>
    %c0_109 = arith.constant 0 : index
    %c0_110 = arith.constant 0 : index
    %176 = vector.load %arg7[%c0_109, %c0_110] : memref<256x4xf32, #tpu.memory_space<vmem>>, vector<256x4xf32>
    tpu.vector_store %arg7[%c0_109, %c0_110], %175 {strides = array<i32>} : memref<256x4xf32, #tpu.memory_space<vmem>>, vector<256x4xf32>,
    %177 = vector.extract_strided_slice %116 {offsets = [32, 0], sizes = [256, 4], strides = [1, 1]} : vector<288x4xf32> to vector<256x4xf32>
    %c0_111 = arith.constant 0 : index
    %c0_112 = arith.constant 0 : index
    %178 = vector.load %arg7[%c0_111, %c0_112] : memref<256x4xf32, #tpu.memory_space<vmem>>, vector<256x4xf32>
    %179 = vector.extract_strided_slice %3 {offsets = [2, 2, 0, 0], sizes = [1, 1, 4, 4], strides = [1, 1, 1, 1]} : vector<3x3x4x4xf32> to vector<1x1x4x4xf32>
    %180 = vector.shape_cast %179 : vector<1x1x4x4xf32> to vector<4x4xf32>
    %cst_113 = arith.constant dense<0.000000e+00> : vector<256x4xf32>
    %181 = tpu.matmul %177, %180, %cst_113 {dimension_numbers = #tpu.dot_dimension_numbers<[1], [0], [0], [1], [0, 0, 1, 1], [], []>} : vector<256x4xf32>, vector<4x4xf32>, vector<256x4xf32> -> vector<256x4xf32>
    %182 = arith.addf %178, %181 : vector<256x4xf32>
    %c0_114 = arith.constant 0 : index
    %c0_115 = arith.constant 0 : index
    %183 = vector.load %arg7[%c0_114, %c0_115] : memref<256x4xf32, #tpu.memory_space<vmem>>, vector<256x4xf32>
    tpu.vector_store %arg7[%c0_114, %c0_115], %182 {strides = array<i32>} : memref<256x4xf32, #tpu.memory_space<vmem>>, vector<256x4xf32>,
    %c0_116 = arith.constant 0 : index
    %c0_117 = arith.constant 0 : index
    %184 = vector.load %arg7[%c0_116, %c0_117] : memref<256x4xf32, #tpu.memory_space<vmem>>, vector<256x4xf32>
    %cst_118 = arith.constant dense<0.000000e+00> : vector<4xf32>
    %185 = vector.multi_reduction <add>, %184, %cst_118 [0] : vector<256x4xf32> to vector<4xf32>
    %186 = vector.shape_cast %185 : vector<4xf32> to vector<1x4xf32>
    %cst_119 = arith.constant 3.906250e-03 : f32
    %187 = vector.broadcast %cst_119 : f32 to vector<1x4xf32>
    %188 = arith.mulf %186, %187 : vector<1x4xf32>
    %189 = arith.mulf %184, %184 : vector<256x4xf32>
    %cst_120 = arith.constant dense<0.000000e+00> : vector<4xf32>
    %190 = vector.multi_reduction <add>, %189, %cst_120 [0] : vector<256x4xf32> to vector<4xf32>
    %191 = vector.shape_cast %190 : vector<4xf32> to vector<1x4xf32>
    %cst_121 = arith.constant 3.906250e-03 : f32
    %192 = vector.broadcast %cst_121 : f32 to vector<1x4xf32>
    %193 = arith.mulf %191, %192 : vector<1x4xf32>
    %194 = arith.mulf %188, %188 : vector<1x4xf32>
    %195 = arith.subf %193, %194 : vector<1x4xf32>
    %196 = vector.broadcast %188 : vector<1x4xf32> to vector<256x4xf32>
    %197 = arith.subf %184, %196 : vector<256x4xf32>
    %cst_122 = arith.constant 9.99999974E-6 : f32
    %198 = vector.broadcast %cst_122 : f32 to vector<1x4xf32>
    %199 = arith.addf %195, %198 : vector<1x4xf32>
    %200 = math.rsqrt %199 : vector<1x4xf32>
    %201 = vector.broadcast %200 : vector<1x4xf32> to vector<256x4xf32>
    %202 = arith.mulf %197, %201 : vector<256x4xf32>
    %203 = vector.shape_cast %202 : vector<256x4xf32> to vector<16x16x4xf32>
    %204 = arith.addf %1, %203 : vector<16x16x4xf32>
    %c0_123 = arith.constant 0 : index
    %c0_124 = arith.constant 0 : index
    %c0_125 = arith.constant 0 : index
    %c0_126 = arith.constant 0 : index
    %205 = vector.load %arg6[%c0_123, %c0_124, %c0_125, %c0_126] : memref<1x16x16x4xf32, #tpu.memory_space<vmem>>, vector<1x16x16x4xf32>
    %206 = vector.shape_cast %205 : vector<1x16x16x4xf32> to vector<16x16x4xf32>
    %207 = vector.shape_cast %204 : vector<16x16x4xf32> to vector<1x16x16x4xf32>
    tpu.vector_store %arg6[%c0_123, %c0_124, %c0_125, %c0_126], %207 {strides = array<i32>} : memref<1x16x16x4xf32, #tpu.memory_space<vmem>>, vector<1x16x16x4xf32>,
    return
  }
  func.func @transform_0(%arg0: i32) -> (i32, i32, i32, i32) {
    %c0_i32 = arith.constant 0 : i32
    %c0_i32_0 = arith.constant 0 : i32
    %c0_i32_1 = arith.constant 0 : i32
    %c0_i32_2 = arith.constant 0 : i32
    return %arg0, %c0_i32, %c0_i32_0, %c0_i32_1 : i32, i32, i32, i32
  }
  func.func @transform_1(%arg0: i32) -> (i32, i32, i32, i32) {
    %c0_i32 = arith.constant 0 : i32
    %c0_i32_0 = arith.constant 0 : i32
    %c0_i32_1 = arith.constant 0 : i32
    %c0_i32_2 = arith.constant 0 : i32
    %c0_i32_3 = arith.constant 0 : i32
    return %c0_i32, %c0_i32_0, %c0_i32_1, %c0_i32_2 : i32, i32, i32, i32
  }
  func.func @transform_2(%arg0: i32) -> (i32, i32) {
    %c0_i32 = arith.constant 0 : i32
    %c0_i32_0 = arith.constant 0 : i32
    %c0_i32_1 = arith.constant 0 : i32
    return %c0_i32, %c0_i32_0 : i32, i32
  }
  func.func @transform_3(%arg0: i32) -> (i32, i32, i32, i32) {
    %c0_i32 = arith.constant 0 : i32
    %c0_i32_0 = arith.constant 0 : i32
    %c0_i32_1 = arith.constant 0 : i32
    %c0_i32_2 = arith.constant 0 : i32
    %c0_i32_3 = arith.constant 0 : i32
    return %c0_i32, %c0_i32_0, %c0_i32_1, %c0_i32_2 : i32, i32, i32, i32
  }
  func.func @transform_4(%arg0: i32) -> (i32, i32) {
    %c0_i32 = arith.constant 0 : i32
    %c0_i32_0 = arith.constant 0 : i32
    %c0_i32_1 = arith.constant 0 : i32
    return %c0_i32, %c0_i32_0 : i32, i32
  }
  func.func @transform_5(%arg0: i32) -> (i32, i32, i32, i32) {
    %c0_i32 = arith.constant 0 : i32
    %c0_i32_0 = arith.constant 0 : i32
    %c0_i32_1 = arith.constant 0 : i32
    %c0_i32_2 = arith.constant 0 : i32
    return %arg0, %c0_i32, %c0_i32_0, %c0_i32_1 : i32, i32, i32, i32
  }
}

</mosaic_0001>

<bundles_post_ra>
// kernel: resnet_block_forward.1
= control target key start
LH: loop header
LB: loop body
LE: loop exit
PB: predicated region body
PF: predicated region fallthrough
CT: control target
= control target key end

     0   :  { %10 = vsyncpa [#allocation4], 0  ;;  %s14335_s0 = inlined_call_operand.hbm [shape: f32[2,16,16,4], index: 0, kind: input, shape index: {}]   ;;  %s14336_s1 = inlined_call_operand.hbm [shape: f32[3,3,4,4], index: 1, kind: input, shape index: {}]   ;;  %s14337_s2 = inlined_call_operand.hbm [shape: f32[1,4], index: 2, kind: input, shape index: {}]   ;;  %s14338_s3 = inlined_call_operand.hbm [shape: f32[3,3,4,4], index: 3, kind: input, shape index: {}]   ;;  %s14339_s4 = inlined_call_operand.hbm [shape: f32[1,4], index: 4, kind: input, shape index: {}]   ;;  %s14340_s5 = inlined_call_operand.hbm [shape: f32[2,16,16,4], index: 5, kind: output, shape index: {}]  }
   0x1   :  { %12 = vsyncpa [#allocation4 + $0x1], 0 }
   0x2   :  { %13 = vsyncpa [#allocation7], 0 }
   0x3   :  { %14 = vsyncpa [#allocation10], 0 }
   0x4   :  { %15 = vsyncpa [#allocation5], 0 }
   0x5   :  { %17 = vsyncpa [#allocation5 + $0x1], 0  ;;  %s10425_s18 = smov 0   ;;  %s10427_s19 = smov 0  }
   0x6   :  { %s10429_s20 = smov 0   ;;  %s10431_s21 = smov 0  }
   0x7 LB: > { %s10446_s22 = sadd.s32 4294967295, %s10381_s21   ;;  %s7922_s23 = sadd.s32 4294967294, %s10381_s21   ;;  %s10381_s21 = sphi %s10431_s21, %s14758_s21   ;;  %s10377_s20 = sphi %s10429_s20, %s14757_s20   ;;  %s10373_s19 = sphi %s10427_s19, %s14756_s19   ;;  %s10369_s18 = sphi %s10425_s18, %s14755_s18  }
   0x8   : > { %p43_p0 = scmp.ne.s32.totalorder %s10373_s19, %s10369_s18  ;;  %p14341_p1 = scmp.eq.s32.totalorder %s10446_s22, 0 }
   0x9   : > { %p157_p3 = scmp.eq.s32.totalorder %s7922_s23, 1  ;;  %p7923_p5 = scmp.ge.s32.totalorder %s10381_s21, 1 }
   0xa   : > { %p10455_p4 = por %p14341_p1, %p43_p0  ;;  %p164_p7 = scmp.lt.s32.totalorder %s10381_s21, 3 }
   0xb   : > { %p10460_p6 = por %p157_p3, %p43_p0  ;;  %s10383_s27 = smov [#allocation6]  }
   0xc   : > { %s14506_s24 = scalar_select %p10455_p4, 1, 0 }
   0xd   : > { %s14507_s25 = scalar_select %p10460_p6, 1, 0 }
   0xe   : > { %p10465_p8 = pnand %p7923_p5, %p164_p7  ;;  %s176_s28 = sshll.u32 %s10383_s27, 4  ;;  %s10469_s28 = int_to_ptr.vmem [resolvable:$true] %s176_s28 }
   0xf   : > { %s10384_s30 = smov [#allocation9]   ;;  %s10385_s7 = smov [#allocation8]  }
  0x10   : > { %s14508_s26 = scalar_select %p10465_p8, 1, 0 }
  0x11   : > { %p10056_p9 = pneg %p10465_p8  ;;  %s200_s6 = sshll.u32 %s10384_s30, 4  ;;  %s10480_s6 = int_to_ptr.vmem [resolvable:$true] %s200_s6 }
  0x12   : > { %s10482_s8 = sshll.u32 %s10385_s7, 4  ;;  %s10165_s11 = scalar_lea.hbm %s14336_s1, 576  ;;  %s191_s8 = int_to_ptr.vmem [resolvable:$true] %s10482_s8 }
  0x13   : > { %p10476_p11 = pnand %p10056_p9, %p14341_p1  ;;  %p10166_p12 = scmp.ne.s32.totalorder %s14336_s1, %s10165_s11 }
  0x14   : > { %p10172_p5 = scmp.lt.u32.totalorder %s10165_s11, %s14336_s1 }
  0x15   : > { %p10492_p13 = pneg %p10476_p11 }
  0x17   : > { %p10168_p0 = pnand %p10492_p13, %p10166_p12 }
  0x19   : > { %p10169_p3 = pneg %p10168_p0 }
  0x1b   : > { %p10174_p7 = pnand %p10172_p5, %p10169_p3 }
  0x1d   : > { %10177 = shalt.err (!%p10174_p7)
}
  0x1e   : > { %s10178_s17 = scalar_lea.vmem %s10469_s28, 576  ;;  %p10186_p2 = scmp.lt.s32.totalorder %s10469_s28, %s10469_s28 }
  0x1f   : > { %p10179_p9 = scmp.ne.s32.totalorder %s10469_s28, %s10178_s17  ;;  %p10187_p6 = scmp.lt.s32.totalorder %s10178_s17, %s10178_s17 }
  0x21   : > { %p10181_p10 = pnand %p10179_p9, %p10492_p13  ;;  %p10188_p12 = por %p10187_p6, %p10186_p2 }
  0x23   : > { %p10182_p1 = pneg %p10181_p10 }
  0x25   : > { %p10189_p0 = pnand %p10188_p12, %p10182_p1 }
  0x27   : > { %10192 = shalt.err (!%p10189_p0)
}
  0x28   : > { %s10386_s23 = smov 64   ;;  %s10387_s27 = smov 4  }
  0x29   : > { %10059 = dma.hbm_to_vmem [thread:$0]  (!%p10476_p11), %s14336_s1, 576, %s10469_s28, [#allocation7], %s10386_s23, %s10386_s23, %s10387_s27  }
  0x2a   : > { %s10193_s11 = scalar_lea.hbm %s14338_s3, 576 }
  0x2b   : > { %p10194_p2 = scmp.ne.s32.totalorder %s14338_s3, %s10193_s11  ;;  %p10200_p10 = scmp.lt.u32.totalorder %s10193_s11, %s14338_s3 }
  0x2d   : > { %p10196_p1 = pnand %p10194_p2, %p10492_p13 }
  0x2f   : > { %p10197_p6 = pneg %p10196_p1 }
  0x31   : > { %p10202_p3 = pnand %p10200_p10, %p10197_p6 }
  0x33   : > { %10205 = shalt.err (!%p10202_p3)
}
  0x34   : > { %s10206_s28 = scalar_lea.vmem %s10480_s6, 576  ;;  %p10214_p12 = scmp.lt.s32.totalorder %s10480_s6, %s10480_s6 }
  0x35   : > { %p10207_p5 = scmp.ne.s32.totalorder %s10480_s6, %s10206_s28  ;;  %p10215_p0 = scmp.lt.s32.totalorder %s10206_s28, %s10206_s28 }
  0x37   : > { %p10209_p7 = pnand %p10207_p5, %p10492_p13  ;;  %p10216_p2 = por %p10215_p0, %p10214_p12 }
  0x39   : > { %p10210_p9 = pneg %p10209_p7 }
  0x3b   : > { %p10217_p1 = pnand %p10216_p2, %p10210_p9 }
  0x3d   : > { %10220 = shalt.err (!%p10217_p1)
}
  0x3e   : > { %10065 = dma.hbm_to_vmem [thread:$0]  (!%p10476_p11), %s14338_s3, 576, %s10480_s6, [#allocation10], %s10386_s23, %s10386_s23, %s10387_s27  }
  0x3f   : > { %s10221_s10 = scalar_lea.hbm %s14337_s2, 16 }
  0x40   : > { %p10222_p6 = scmp.ne.s32.totalorder %s14337_s2, %s10221_s10  ;;  %p10228_p5 = scmp.lt.u32.totalorder %s10221_s10, %s14337_s2 }
  0x42   : > { %p10224_p10 = pnand %p10222_p6, %p10492_p13 }
  0x44   : > { %p10225_p3 = pneg %p10224_p10 }
  0x46   : > { %p10230_p7 = pnand %p10228_p5, %p10225_p3 }
  0x48   : > { %10233 = shalt.err (!%p10230_p7)
}
  0x49   : > { %s10234_s16 = scalar_lea.vmem %s191_s8, 16  ;;  %s10241_s6 = scalar_lea.vmem %s191_s8, 32 }
  0x4a   : > { %p10235_p9 = scmp.ne.s32.totalorder %s191_s8, %s10234_s16  ;;  %p10242_p2 = scmp.lt.s32.totalorder %s191_s8, %s191_s8 }
  0x4b   : > { %p10243_p1 = scmp.lt.s32.totalorder %s10241_s6, %s10234_s16 }
  0x4c   : > { %p10237_p12 = pnand %p10235_p9, %p10492_p13 }
  0x4d   : > { %p10244_p4 = por %p10243_p1, %p10242_p2 }
  0x4e   : > { %p10238_p0 = pneg %p10237_p12 }
  0x50   : > { %p10245_p8 = pnand %p10244_p4, %p10238_p0 }
  0x52   : > { %10248 = shalt.err (!%p10245_p8)
}
  0x53   : > { %10062 = dma.hbm_to_vmem [thread:$0]  (!%p10476_p11), %s14337_s2, 16, %s191_s8, [#allocation7]  }
  0x54   : > { %s10388_s28 = smov [#allocation11]   ;;  %s10249_s9 = scalar_lea.hbm %s14339_s4, 16 }
  0x55   : > { %s214_s17 = sshll.u32 %s10388_s28, 4  ;;  %p10250_p6 = scmp.ne.s32.totalorder %s14339_s4, %s10249_s9  ;;  %s215_s17 = int_to_ptr.vmem [resolvable:$true] %s214_s17 }
  0x56   : > { %p10256_p10 = scmp.lt.u32.totalorder %s10249_s9, %s14339_s4 }
  0x57   : > { %p10252_p4 = pnand %p10250_p6, %p10492_p13 }
  0x59   : > { %p10253_p8 = pneg %p10252_p4 }
  0x5b   : > { %p10258_p3 = pnand %p10256_p10, %p10253_p8 }
  0x5d   : > { %10261 = shalt.err (!%p10258_p3)
}
  0x5e   : > { %s10262_s8 = scalar_lea.vmem %s215_s17, 16  ;;  %s10269_s15 = scalar_lea.vmem %s215_s17, 32 }
  0x5f   : > { %p10263_p5 = scmp.ne.s32.totalorder %s215_s17, %s10262_s8  ;;  %p10270_p12 = scmp.lt.s32.totalorder %s215_s17, %s215_s17 }
  0x60   : > { %p10271_p0 = scmp.lt.s32.totalorder %s10269_s15, %s10262_s8 }
  0x61   : > { %p10265_p7 = pnand %p10263_p5, %p10492_p13 }
  0x62   : > { %p10272_p2 = por %p10271_p0, %p10270_p12 }
  0x63   : > { %p10266_p9 = pneg %p10265_p7 }
  0x65   : > { %p10273_p1 = pnand %p10272_p2, %p10266_p9 }
  0x67   : > { %10276 = shalt.err (!%p10273_p1)
}
  0x68   : > { %10068 = dma.hbm_to_vmem [thread:$0]  (!%p10476_p11), %s14339_s4, 16, %s215_s17, [#allocation10]  }
  0x69   : > { %s10574_s14 = sadd.s32 1, %s10381_s21   ;;  %s30_s23 = sadd.s32 1, %s10377_s20 }
  0x6a   : > { %s27_s29 = ssub.s32 %s10381_s21, %s10574_s14  ;;  %p37_p13 = scmp.ne.s32.totalorder %s10377_s20, %s10373_s19 }
  0x6b   : > { %p28_p6 = scmp.eq.s32.totalorder %s27_s29, 0  ;;  %p38_p4 = scmp.eq.s32.totalorder %s10381_s21, 0 }
  0x6c   : > { %p14511_p8 = scmp.eq.s32.totalorder %s10446_s22, 1  ;;  %p10081_p3 = scmp.lt.s32.totalorder %s10381_s21, 2 }
  0x6d   : > { %s10590_s28 = scalar_select %p28_p6, %s10377_s20, %s30_s23  }
  0x6e   : > { %p10584_p10 = por %p14511_p8, %p37_p13  ;;  %p39_p5 = por %p38_p4, %p37_p13 }
  0x6f   : > { %s225_s30 = sand.u32 1, %s10377_s20   ;;  %s8540_s17 = sshll.u32 %s10381_s21, 12 }
  0x70   : > { %s7929_s7 = sshll.u32 %s225_s30, 8  ;;  %s10597_s11 = scalar_lea.hbm %s14335_s0, %s8540_s17 }
  0x71   : > { %s229_s12 = scalar_lea.vmem [#allocation3], %s7929_s7  ;;  %p10601_p11 = pnand %p10081_p3, %p39_p5 }
  0x72   : > { %s236_s13 = sshll.u32 %s229_s12, 4  ;;  %s10605_s15 = scalar_lea.sflag [#allocation4], %s225_s30  ;;  %s10599_s13 = int_to_ptr.vmem [resolvable:$true] %s236_s13 }
  0x73   : > { %s10277_s16 = scalar_lea.hbm %s10597_s11, 4096  ;;  %p10279_p9 = pneg %p10601_p11 }
  0x74   : > { %p10278_p7 = scmp.ne.s32.totalorder %s10597_s11, %s10277_s16  ;;  %s10282_s29 = scalar_lea.hbm %s14335_s0, 8192 }
  0x75   : > { %p10283_p2 = scmp.lt.u32.totalorder %s10597_s11, %s14335_s0  ;;  %p10284_p1 = scmp.lt.u32.totalorder %s10282_s29, %s10277_s16 }
  0x76   : > { %p10280_p12 = pnand %p10279_p9, %p10278_p7  ;;  %p10286_p6 = scmp.lt.u32.totalorder %s10277_s16, %s10597_s11 }
  0x77   : > { %p10285_p13 = por %p10284_p1, %p10283_p2 }
  0x78   : > { %p10281_p0 = pneg %p10280_p12 }
  0x79   : > { %p10287_p4 = por %p10286_p6, %p10285_p13 }
  0x7b   : > { %p10288_p8 = pnand %p10287_p4, %p10281_p0 }
  0x7d   : > { %10291 = shalt.err (!%p10288_p8)
}
  0x7e   : > { %s10292_s30 = scalar_lea.vmem %s10599_s13, 4096  ;;  %s10389_s9 = smov [#allocation3]  }
  0x7f   : > { %p10293_p3 = scmp.ne.s32.totalorder %s10599_s13, %s10292_s30  ;;  %s10297_s10 = sshll.u32 %s10389_s9, 4  ;;  %s10298_s10 = int_to_ptr.vmem [resolvable:$false] %s10297_s10 }
  0x80   : > { %s10299_s12 = scalar_lea.vmem %s10298_s10, 8192  ;;  %p10300_p12 = scmp.lt.s32.totalorder %s10599_s13, %s10298_s10 }
  0x81   : > { %p10295_p5 = pnand %p10293_p3, %p10279_p9  ;;  %p10301_p2 = scmp.lt.s32.totalorder %s10299_s12, %s10292_s30 }
  0x83   : > { %p10296_p7 = pneg %p10295_p5  ;;  %p10302_p1 = por %p10301_p2, %p10300_p12 }
  0x85   : > { %p10303_p13 = pnand %p10302_p1, %p10296_p7 }
  0x87   : > { %10306 = shalt.err (!%p10303_p13)
}
  0x88   : > { %s10390_s16 = smov 128   ;;  %s10391_s6 = smov 8  }
  0x89   : > { %10072 = dma.hbm_to_vmem [thread:$0]  (!%p10601_p11), %s10597_s11, 4096, %s10599_s13, %s10605_s15, %s10390_s16, %s10390_s16, %s10391_s6  }
  0x8a   : > { %p14514_p9 = scmp.ne.s32.totalorder %s14508_s26, 0 }
  0x8c   : > { %248 = sbr.rel (%p14514_p9) target bundleno = 1371 (0x55b), region = 40 }
  0x93   : > { %s10636_s23 = sand.u32 1, %s10373_s19   ;;  %p14515_p0 = scmp.ne.s32.totalorder %s14506_s24, 0 }
  0x94   : > { %s7933_s29 = sshll.u32 %s10636_s23, 8  ;;  %s251_s7 = scalar_lea.sflag [#allocation4], %s10636_s23 }
  0x95   : > { %s10642_s17 = scalar_lea.vmem [#allocation3], %s7933_s29 }
  0x96   : > { %10352 = dma.done.wait (%p14515_p0), %s251_s7, 4096  }
  0x97   : > { %10354 = vsyncadd (%p14515_p0), %s251_s7, 4294963200  ;;  %p14516_p11 = scmp.eq.s32.totalorder %s10446_s22, 0 }
  0x99   : > { %10356 = dma.done.wait (%p14516_p11), [#allocation7], 592   ;;  %p14517_p6 = pmov %p14516_p11 }
  0x9b   : > { %10358 = vsyncadd (%p14517_p6), [#allocation7], 4294966704  ;;  %p14518_p4 = pmov %p14517_p6 }
  0x9d   : > { %10360 = dma.done.wait (%p14518_p4), [#allocation10], 592   ;;  %p14519_p8 = pmov %p14518_p4 }
  0x9e   : > { %vm720_vm0 = vcmask 1043456   ;;  %vm411_vm1 = vcmask 1040384   ;;  %v329_v0 = vld [vmem:[#allocation6] sm:$0xf]  ;;  %v10657_v1 = vld [vmem:[%s10642_s17 + $0x10] sm:$0xff]  ;;  %vm580_vm2 = vcmask 31744  }
  0x9f   : > { %10362 = vsyncadd (%p14519_p8), [#allocation10], 4294966704  ;;  %14520 = vst [vmem:[#allocation17_spill] sm:$0xff] %v10657_v1  ;;  %v331_v2 = vld [vmem:[#allocation6 + $0x8] sm:$0xf]  ;;  %9136 = vmatprep.subr.msk.mxu0 %vm720_vm0, %v329_v0  ;;  %v14368_v3 = vrot.slane %v10657_v1, 1  ;;  %9188 = vmatprep.mubr.msk.f32.mxu1 %vm580_vm2, %v10657_v1 }
  0xa0   : > { %v412_v4 = vrot.slane %v10657_v1, 7  ;;  %v10663_v5 = vld [vmem:[%s10642_s17 + $0x18] sm:$0xff]  ;;  %v10666_v6 = vld [vmem:[%s10642_s17] sm:$0xff]  ;;  %v10669_v7 = vld [vmem:[%s10642_s17 + $0x8] sm:$0xff]  ;;  %9137 = vmatpush3.msk.msra.mxu0 %vm720_vm0, %v329_v0  ;;  %vm492_vm3 = vcmask 1046528   ;;  %s14147_s24 = scalar_lea.vmem [#allocation12], %s7933_s29 }
  0xa1   : > { %14521 = vst [vmem:[#allocation18_spill] sm:$0xff] %v10663_v5  ;;  %v14365_v8 = vrot.slane %v10663_v5, 7  ;;  %v14364_v9 = vrot.slane %v10666_v6, 1  ;;  %v415_v10 = vrot.slane %v10666_v6, 7  ;;  %v14363_v11 = vrot.slane %v10669_v7, 7  ;;  %9236 = vmatprep.subr.msk.mxu0 %vm720_vm0, %v331_v2  ;;  %v10699_v16 = vld [vmem:[%s10642_s17 + $0x20] sm:$0xff] }
  0xa2   : > { %v330_v12 = vld [vmem:[#allocation6 + $0x4] sm:$0xf]  ;;  %v10681_v13 = vsel %vm411_vm1, %v14368_v3, %v412_v4  ;;  %v14362_v18 = vrot.slane %v10699_v16, 1  ;;  %v418_v19 = vrot.slane %v10699_v16, 7  ;;  %v10716_v20 = vld [vmem:[%s10642_s17 + $0x28] sm:$0xff]  ;;  %v10721_v21 = vld [vmem:[%s10642_s17 + $0x30] sm:$0xff] }
  0xa3   : > { %14522 = vst [vmem:[#allocation19_spill] sm:$0xff] %v10681_v13  ;;  %9186 = vmatprep.subr.msk.mxu1 %vm720_vm0, %v330_v12  ;;  %9138 = vmatprep.mubr.msk.f32.mxu0 %vm580_vm2, %v10681_v13  ;;  %v10690_v14 = vsel %vm411_vm1, %v412_v4, %v14365_v8  ;;  %v10695_v15 = vsel %vm411_vm1, %v14364_v9, %v415_v10  ;;  %v14361_v22 = vrot.slane %v10716_v20, 7  ;;  %v14358_v24 = vrot.slane %v10721_v21, 1  ;;  %v10740_v26 = vld [vmem:[%s10642_s17 + $0x38] sm:$0xff]  ;;  %v332_v27 = vld [vmem:[#allocation6 + $0xc] sm:$0xf] }
  0xa4   : > { %14523 = vst [vmem:[#allocation20_spill] sm:$0xff] %v10690_v14  ;;  %9187 = vmatpush3.msk.msra.mxu1 %vm720_vm0, %v330_v12  ;;  %9139 = vmatmul.mubr.msk.f32.vlgmr.msra.gmra.mrb[0].mxu0 %vm580_vm2, %v10690_v14  ;;  %v10711_v17 = vsel %vm411_vm1, %v415_v10, %v14363_v11  ;;  %v10735_v23 = vsel %vm411_vm1, %v14362_v18, %v418_v19  ;;  %v421_v25 = vrot.slane %v10721_v21, 7  ;;  %v10743_v28 = vld [vmem:[%s10642_s17 + $0x40] sm:$0xff]  ;;  %v10750_v29 = vld [vmem:[#allocation6 + $0x10] sm:$0xf]  ;;  %v14357_v31 = vrot.slane %v10740_v26, 7 }
  0xa5   : > { %9189 = vmatmul.mubr.msk.f32.vlgmr.msra.gmra.mrb[0].mxu1 %vm580_vm2, %v10663_v5  ;;  %9237 = vmatpush3.msk.msra.mxu0 %vm720_vm0, %v331_v2  ;;  %14524 = vst [vmem:[#allocation21_spill] sm:$0xff] %v10735_v23  ;;  %v10757_v30 = vsel %vm411_vm1, %v418_v19, %v14361_v22  ;;  %v10762_v32 = vld [vmem:[#allocation6 + $0x14] sm:$0xf]  ;;  %v14356_v34 = vrot.slane %v10743_v28, 1  ;;  %v424_v35 = vrot.slane %v10743_v28, 7  ;;  %v10772_v36 = vld [vmem:[%s10642_s17 + $0x48] sm:$0xff] }
  0xa6   : > { %9141 = vmatprep.mubr.msk.f32.mxu0 %vm580_vm2, %v10695_v15  ;;  %9191 = vmatprep.mubr.msk.f32.mxu1 %vm580_vm2, %v10666_v6  ;;  %14525 = vst [vmem:[#allocation22_spill] sm:$0xff] %v10757_v30  ;;  %v10767_v33 = vsel %vm411_vm1, %v14358_v24, %v421_v25  ;;  %v10778_v37 = vld [vmem:[%s10642_s17 + $0x50] sm:$0xff]  ;;  %v10791_v38 = vsel %vm411_vm1, %v421_v25, %v14357_v31  ;;  %v14355_v39 = vrot.slane %v10772_v36, 7  ;;  %v10804_v43 = vld [vmem:[%s10642_s17 + $0x58] sm:$0xff]  ;;  %v10807_v44 = vld [vmem:[%s10642_s17 + $0x60] sm:$0xff]  ;;  %s8541_s26 = sshll.u32 %s10446_s22, 12 }
  0xa7   : > { %9286 = vmatprep.subr.msk.mxu1 %vm720_vm0, %v332_v27  ;;  %14526 = vst [vmem:[#allocation23_spill] sm:$0xff] %v10767_v33  ;;  %9336 = vmatprep.subr.msk.mxu0 %vm720_vm0, %v10750_v29  ;;  %14527 = vst [vmem:[#allocation24_spill] sm:$0xff] %v10791_v38  ;;  %v10799_v40 = vsel %vm411_vm1, %v14356_v34, %v424_v35  ;;  %v14352_v41 = vrot.slane %v10778_v37, 1  ;;  %v427_v42 = vrot.slane %v10778_v37, 7  ;;  %v14351_v46 = vrot.slane %v10804_v43, 7  ;;  %v10831_v50 = vld [vmem:[%s10642_s17 + $0x68] sm:$0xff]  ;;  %s14255_s15 = scalar_lea.hbm %s14340_s5, %s8541_s26 }
  0xa8   : > { %9142 = vmatmul.mubr.msk.f32.gmra.mrb[2].mxu0 %vm580_vm2, %v10711_v17  ;;  %9287 = vmatpush3.msk.msra.mxu1 %vm720_vm0, %v332_v27  ;;  %14528 = vst [vmem:[#allocation25_spill] sm:$0xff] %v10799_v40  ;;  %v10818_v45 = vsel %vm411_vm1, %v424_v35, %v14355_v39  ;;  %v14350_v48 = vrot.slane %v10807_v44, 1  ;;  %v430_v49 = vrot.slane %v10807_v44, 7  ;;  %v10834_v51 = vld [vmem:[%s10642_s17 + $0x70] sm:$0xff]  ;;  %v14349_v53 = vrot.slane %v10831_v50, 7  ;;  %v10858_v57 = vld [vmem:[%s10642_s17 + $0x78] sm:$0xff] }
  0xa9   : > { %9192 = vmatmul.mubr.msk.f32.gmra.mrb[2].mxu1 %vm580_vm2, %v10669_v7  ;;  %9144 = vmatprep.mubr.msk.f32.mxu0 %vm580_vm2, %v10681_v13  ;;  %14529 = vst [vmem:[#allocation26_spill] sm:$0xff] %v10818_v45  ;;  %v10826_v47 = vsel %vm411_vm1, %v14352_v41, %v427_v42  ;;  %v10845_v52 = vsel %vm411_vm1, %v427_v42, %v14351_v46  ;;  %v14346_v55 = vrot.slane %v10834_v51, 1  ;;  %v433_v56 = vrot.slane %v10834_v51, 7  ;;  %v10861_v58 = vld [vmem:[%s10642_s17 + $0x80] sm:$0xff]  ;;  %v10885_v0 = vld [vmem:[%s10642_s17 + $0x88] sm:$0xff]  ;;  %v10888_v2 = vld [vmem:[%s10642_s17 + $0x90] sm:$0xff] }
  0xaa   : > { %9194 = vmatprep.mubr.msk.f32.mxu1 %vm580_vm2, %v10657_v1  ;;  %9386 = vmatprep.subr.msk.mxu1 %vm720_vm0, %v10762_v32  ;;  %14530 = vst [vmem:[#allocation27_spill] sm:$0xff] %v10826_v47  ;;  %14531 = vst [vmem:[#allocation28_spill] sm:$0xff] %v10845_v52  ;;  %v10853_v54 = vsel %vm411_vm1, %v14350_v48, %v430_v49  ;;  %v10872_v59 = vsel %vm411_vm1, %v430_v49, %v14349_v53  ;;  %v14345_v60 = vrot.slane %v10858_v57, 7  ;;  %v10912_v27 = vld [vmem:[%s10642_s17 + $0x98] sm:$0xff]  ;;  %v10915_v35 = vld [vmem:[%s10642_s17 + $0xa0] sm:$0xff]  ;;  %s7811_s11 = sshll.u32 %s14147_s24, 4  ;;  %s14259_s11 = int_to_ptr.vmem [resolvable:$true] %s7811_s11 }
  0xab   : > { %14532 = vst [vmem:[#allocation29_spill] sm:$0xff] %v10853_v54  ;;  %14533 = vst [vmem:[#allocation30_spill] sm:$0xff] %v10872_v59  ;;  %v10880_v61 = vsel %vm411_vm1, %v14346_v55, %v433_v56  ;;  %v14344_v62 = vrot.slane %v10861_v58, 1  ;;  %v436_v63 = vrot.slane %v10861_v58, 7  ;;  %v14348_v10 = vrot.slane %v10885_v0, 7  ;;  %v10939_v55 = vld [vmem:[%s10642_s17 + $0xa8] sm:$0xff] }
  0xac   : > { %9145 = vmatmul.mubr.msk.f32.gmra.mrb[4].mxu0 %vm580_vm2, %v10690_v14  ;;  %14534 = vst [vmem:[#allocation31_spill] sm:$0xff] %v10880_v61  ;;  %v10899_v4 = vsel %vm411_vm1, %v433_v56, %v14345_v60  ;;  %v14347_v19 = vrot.slane %v10888_v2, 1  ;;  %v439_v25 = vrot.slane %v10888_v2, 7  ;;  %v14354_v49 = vrot.slane %v10912_v27, 7  ;;  %v10966_v41 = vld [vmem:[%s10642_s17 + $0xb8] sm:$0xff]  ;;  %v10993_v24 = vld [vmem:[%s10642_s17 + $0xc8] sm:$0xff] }
  0xad   : > { %9195 = vmatmul.mubr.msk.f32.gmra.mrb[4].mxu1 %vm580_vm2, %v10663_v5  ;;  %9147 = vmatprep.mubr.msk.f32.mxu0 %vm580_vm2, %v10735_v23  ;;  %14535 = vst [vmem:[#allocation32_spill] sm:$0xff] %v10899_v4  ;;  %v10907_v12 = vsel %vm411_vm1, %v14344_v62, %v436_v63  ;;  %v10926_v42 = vsel %vm411_vm1, %v436_v63, %v14348_v10  ;;  %v14353_v62 = vrot.slane %v10915_v35, 1  ;;  %v442_v60 = vrot.slane %v10915_v35, 7  ;;  %v10942_v63 = vld [vmem:[%s10642_s17 + $0xb0] sm:$0xff]  ;;  %v11020_v9 = vld [vmem:[%s10642_s17 + $0xd8] sm:$0xff]  ;;  %v11023_v8 = vld [vmem:[%s10642_s17 + $0xe0] sm:$0xff] }
  0xae   : > { %9197 = vmatprep.mubr.msk.f32.mxu1 %vm580_vm2, %v10699_v16  ;;  %14536 = vst [vmem:[#allocation33_spill] sm:$0xff] %v10907_v12  ;;  %14537 = vst [vmem:[#allocation34_spill] sm:$0xff] %v10926_v42  ;;  %v10934_v56 = vsel %vm411_vm1, %v14347_v19, %v439_v25  ;;  %v10953_v19 = vsel %vm411_vm1, %v439_v25, %v14354_v49  ;;  %v14360_v10 = vrot.slane %v10939_v55, 7  ;;  %v14359_v48 = vrot.slane %v10942_v63, 1  ;;  %v10969_v25 = vld [vmem:[%s10642_s17 + $0xc0] sm:$0xff]  ;;  %s7798_s22 = scalar_lea.sflag [#allocation5], %s10636_s23 }
  0xaf   : > { %14538 = vst [vmem:[#allocation35_spill] sm:$0xff] %v10934_v56  ;;  %14539 = vst [vmem:[#allocation36_spill] sm:$0xff] %v10953_v19  ;;  %v10961_v53 = vsel %vm411_vm1, %v14353_v62, %v442_v60  ;;  %v445_v46 = vrot.slane %v10942_v63, 7  ;;  %v14367_v49 = vrot.slane %v10966_v41, 7  ;;  %v14366_v34 = vrot.slane %v10969_v25, 1  ;;  %s10307_s30 = scalar_lea.vmem %s14259_s11, 4096 }
  0xb0   : > { %9148 = vmatmul.mubr.msk.f32.gmra.mrb[6].mxu0 %vm580_vm2, %v10757_v30  ;;  %14540 = vst [vmem:[#allocation37_spill] sm:$0xff] %v10961_v53  ;;  %14541 = vst [vmem:[#allocation38_spill] sm:$0xff] %v10969_v25  ;;  %v10980_v62 = vsel %vm411_vm1, %v442_v60, %v14360_v10  ;;  %v448_v31 = vrot.slane %v10969_v25, 7  ;;  %v10996_v60 = vld [vmem:[%s10642_s17 + $0xd0] sm:$0xff]  ;;  %v14374_v10 = vrot.slane %v10993_v24, 7  ;;  %v14377_v3 = vrot.slane %v11023_v8, 1  ;;  %p10308_p3 = scmp.ne.s32.totalorder %s14259_s11, %s10307_s30 }
  0xb1   : > { %9198 = vmatmul.mubr.msk.f32.gmra.mrb[6].mxu1 %vm580_vm2, %v10716_v20  ;;  %9150 = vmatprep.mubr.msk.f32.mxu0 %vm580_vm2, %v10767_v33  ;;  %14542 = vst [vmem:[#allocation39_spill] sm:$0xff] %v10980_v62  ;;  %v10988_v39 = vsel %vm411_vm1, %v14359_v48, %v445_v46  ;;  %14544 = vst [vmem:[#allocation41_spill] sm:$0xff] %v10996_v60  ;;  %v11007_v48 = vsel %vm411_vm1, %v445_v46, %v14367_v49  ;;  %v14373_v18 = vrot.slane %v10996_v60, 1  ;;  %s10392_s9 = smov [#allocation12]  }
  0xb2   : > { %9200 = vmatprep.mubr.msk.f32.mxu1 %vm580_vm2, %v10721_v21  ;;  %14543 = vst [vmem:[#allocation40_spill] sm:$0xff] %v10988_v39  ;;  %14545 = vst [vmem:[#allocation42_spill] sm:$0xff] %v11007_v48  ;;  %v11015_v22 = vsel %vm411_vm1, %v14366_v34, %v448_v31  ;;  %v451_v11 = vrot.slane %v10996_v60, 7  ;;  %v11034_v46 = vsel %vm411_vm1, %v448_v31, %v14374_v10  ;;  %v14378_v34 = vrot.slane %v11020_v9, 7  ;;  %p10309_p5 = pnand %p10308_p3, %p10584_p10  ;;  %s10311_s10 = sshll.u32 %s10392_s9, 4  ;;  %s10312_s10 = int_to_ptr.vmem [resolvable:$false] %s10311_s10 }
  0xb3   : > { %14546 = vst [vmem:[#allocation43_spill] sm:$0xff] %v11015_v22  ;;  %14547 = vst [vmem:[#allocation44_spill] sm:$0xff] %v11034_v46  ;;  %s10313_s12 = scalar_lea.vmem %s10312_s10, 8192  ;;  %p10314_p12 = scmp.lt.s32.totalorder %s14259_s11, %s10312_s10 }
  0xb4   : > { %9151 = vmatmul.mubr.msk.f32.gmra.mrb[8].mxu0 %vm580_vm2, %v10791_v38  ;;  %v11042_v49 = vsel %vm411_vm1, %v14373_v18, %v451_v11  ;;  %v11058_v31 = vsel %vm411_vm1, %v451_v11, %v14378_v34  ;;  %p10310_p7 = pneg %p10309_p5  ;;  %p10315_p2 = scmp.lt.s32.totalorder %s10313_s12, %s10307_s30 }
  0xb5   : > { %9201 = vmatmul.mubr.msk.f32.gmra.mrb[8].mxu1 %vm580_vm2, %v10740_v26  ;;  %9153 = vmatprep.mubr.msk.f32.mxu0 %vm580_vm2, %v10799_v40  ;;  %14548 = vst [vmem:[#allocation45_spill] sm:$0xff] %v11042_v49  ;;  %14549 = vst [vmem:[#allocation46_spill] sm:$0xff] %v11058_v31 }
  0xb6   : > { %9203 = vmatprep.mubr.msk.f32.mxu1 %vm580_vm2, %v10743_v28  ;;  %p10316_p1 = por %p10315_p2, %p10314_p12 }
  0xb8   : > { %9154 = vmatmul.mubr.msk.f32.gmra.mrb[10].mxu0 %vm580_vm2, %v10818_v45  ;;  %p10317_p13 = pnand %p10316_p1, %p10310_p7 }
  0xb9   : > { %9204 = vmatmul.mubr.msk.f32.gmra.mrb[10].mxu1 %vm580_vm2, %v10772_v36  ;;  %9156 = vmatprep.mubr.msk.f32.mxu0 %vm580_vm2, %v10826_v47 }
  0xba   : > { %9206 = vmatprep.mubr.msk.f32.mxu1 %vm580_vm2, %v10778_v37 }
  0xbc   : > { %9157 = vmatmul.mubr.msk.f32.gmra.mrb[12].mxu0 %vm580_vm2, %v10845_v52 }
  0xbd   : > { %9207 = vmatmul.mubr.msk.f32.gmra.mrb[12].mxu1 %vm580_vm2, %v10804_v43  ;;  %9159 = vmatprep.mubr.msk.f32.mxu0 %vm580_vm2, %v10853_v54 }
  0xbe   : > { %9209 = vmatprep.mubr.msk.f32.mxu1 %vm580_vm2, %v10807_v44 }
  0xc0   : > { %9160 = vmatmul.mubr.msk.f32.gmra.mrb[14].mxu0 %vm580_vm2, %v10872_v59 }
  0xc1   : > { %9210 = vmatmul.mubr.msk.f32.gmra.mrb[14].mxu1 %vm580_vm2, %v10831_v50  ;;  %9162 = vmatprep.mubr.msk.f32.mxu0 %vm580_vm2, %v10880_v61 }
  0xc2   : > { %9212 = vmatprep.mubr.msk.f32.mxu1 %vm580_vm2, %v10834_v51 }
  0xc4   : > { %9163 = vmatmul.mubr.msk.f32.gmra.mrb[16].mxu0 %vm580_vm2, %v10899_v4 }
  0xc5   : > { %9213 = vmatmul.mubr.msk.f32.gmra.mrb[16].mxu1 %vm580_vm2, %v10858_v57  ;;  %9165 = vmatprep.mubr.msk.f32.mxu0 %vm580_vm2, %v10907_v12 }
  0xc6   : > { %9215 = vmatprep.mubr.msk.f32.mxu1 %vm580_vm2, %v10861_v58 }
  0xc8   : > { %9166 = vmatmul.mubr.msk.f32.gmra.mrb[18].mxu0 %vm580_vm2, %v10926_v42 }
  0xc9   : > { %9216 = vmatmul.mubr.msk.f32.gmra.mrb[18].mxu1 %vm580_vm2, %v10885_v0  ;;  %9168 = vmatprep.mubr.msk.f32.mxu0 %vm580_vm2, %v10934_v56 }
  0xca   : > { %9218 = vmatprep.mubr.msk.f32.mxu1 %vm580_vm2, %v10888_v2 }
  0xcc   : > { %9169 = vmatmul.mubr.msk.f32.gmra.mrb[20].mxu0 %vm580_vm2, %v10953_v19 }
  0xcd   : > { %9219 = vmatmul.mubr.msk.f32.gmra.mrb[20].mxu1 %vm580_vm2, %v10912_v27  ;;  %9171 = vmatprep.mubr.msk.f32.mxu0 %vm580_vm2, %v10961_v53 }
  0xce   : > { %9221 = vmatprep.mubr.msk.f32.mxu1 %vm580_vm2, %v10915_v35 }
  0xd0   : > { %9172 = vmatmul.mubr.msk.f32.gmra.mrb[22].mxu0 %vm580_vm2, %v10980_v62 }
  0xd1   : > { %9222 = vmatmul.mubr.msk.f32.gmra.mrb[22].mxu1 %vm580_vm2, %v10939_v55  ;;  %9174 = vmatprep.mubr.msk.f32.mxu0 %vm580_vm2, %v10988_v39 }
  0xd2   : > { %9224 = vmatprep.mubr.msk.f32.mxu1 %vm580_vm2, %v10942_v63 }
  0xd4   : > { %9175 = vmatmul.mubr.msk.f32.gmra.mrb[24].mxu0 %vm580_vm2, %v11007_v48  ;;  %v454_v48 = vrot.slane %v11023_v8, 7 }
  0xd5   : > { %9225 = vmatmul.mubr.msk.f32.gmra.mrb[24].mxu1 %vm580_vm2, %v10966_v41  ;;  %9177 = vmatprep.mubr.msk.f32.mxu0 %vm580_vm2, %v11015_v22  ;;  %v11047_v22 = vld [vmem:[%s10642_s17 + $0xe8] sm:$0xff] }
  0xd6   : > { %9227 = vmatprep.mubr.msk.f32.mxu1 %vm580_vm2, %v10969_v25  ;;  %v14381_v18 = vrot.slane %v11047_v22, 7  ;;  %v11066_v10 = vsel %vm411_vm1, %v14377_v3, %v454_v48  ;;  %v14551_v3 = vrot.slane %v10657_v1, 1 }
  0xd8   : > { %9178 = vmatmul.mubr.msk.f32.gmra.mrb[26].mxu0 %vm580_vm2, %v11034_v46  ;;  %v493_v46 = vrot.slane %v10663_v5, 1  ;;  %v11078_v11 = vsel %vm411_vm1, %v454_v48, %v14381_v18  ;;  %v14552_v48 = vrot.slane %v10663_v5, 7  ;;  %v11112_v5 = vld [vmem:[#allocation6 + $0x1c] sm:$0xf] }
  0xd9   : > { %9228 = vmatmul.mubr.msk.f32.gmra.mrb[26].mxu1 %vm580_vm2, %v10993_v24  ;;  %9180 = vmatprep.mubr.msk.f32.mxu0 %vm580_vm2, %v11042_v49  ;;  %14550 = vst [vmem:[#allocation47_spill] sm:$0xff] %v11078_v11 }
  0xda   : > { %9230 = vmatprep.mubr.msk.f32.mxu1 %vm580_vm2, %v10996_v60  ;;  %v11085_v34 = vsel %vm492_vm3, %v14551_v3, %v493_v46  ;;  %v11097_v18 = vsel %vm492_vm3, %v493_v46, %v14552_v48  ;;  %v14553_v3 = vrot.slane %v10666_v6, 1  ;;  %v497_v48 = vrot.slane %v10716_v20, 1 }
  0xdc   : > { %9181 = vmatmul.mubr.msk.f32.gmra.mrb[28].mxu0 %vm580_vm2, %v11058_v31  ;;  %v495_v31 = vrot.slane %v10669_v7, 1 }
  0xdd   : > { %9231 = vmatmul.mubr.msk.f32.gmra.mrb[28].mxu1 %vm580_vm2, %v11020_v9  ;;  %9183 = vmatprep.mubr.msk.f32.mxu0 %vm580_vm2, %v11066_v10 }
  0xde   : > { %9233 = vmatprep.mubr.msk.f32.mxu1 %vm580_vm2, %v11023_v8  ;;  %v11104_v1 = vsel %vm492_vm3, %v14553_v3, %v495_v31 }
  0xe0   : > { %9184 = vmatmul.mubr.msk.f32.gmra.mrb[30].mxu0 %vm580_vm2, %v11078_v11  ;;  %v11110_v11 = vld [vmem:[#allocation6 + $0x18] sm:$0xf] }
  0xe1   : > { %9234 = vmatmul.mubr.msk.f32.gmra.mrb[30].mxu1 %vm580_vm2, %v11047_v22  ;;  %9238 = vmatprep.mubr.msk.f32.mxu0 %vm580_vm2, %v11085_v34 }
  0xe2   : > { %9288 = vmatprep.mubr.msk.f32.mxu1 %vm580_vm2, %v10695_v15  ;;  %v14554_v15 = vrot.slane %v10669_v7, 7 }
  0xe4   : > { %9239 = vmatmul.mubr.msk.f32.vlgmr.msra.gmra.mrb[32].mxu0 %vm580_vm2, %v11097_v18  ;;  %v11121_v46 = vsel %vm492_vm3, %v495_v31, %v14554_v15  ;;  %v14556_v31 = vrot.slane %v10716_v20, 7  ;;  %v14557_v15 = vrot.slane %v10721_v21, 1 }
  0xe5   : > { %9289 = vmatmul.mubr.msk.f32.vlgmr.msra.gmra.mrb[32].mxu1 %vm580_vm2, %v10711_v17  ;;  %9337 = vmatpush3.msk.msra.mxu0 %vm720_vm0, %v10750_v29  ;;  %v14555_v17 = vrot.slane %v10699_v16, 1 }
  0xe6   : > { %9241 = vmatprep.mubr.msk.f32.mxu0 %vm580_vm2, %v11104_v1  ;;  %9291 = vmatprep.mubr.msk.f32.mxu1 %vm580_vm2, %v10681_v13  ;;  %v11155_v3 = vsel %vm492_vm3, %v497_v48, %v14556_v31  ;;  %v519_v13 = vrot.slane %v11020_v9, 1 }
  0xe7   : > { %9387 = vmatpush3.msk.msra.mxu1 %vm720_vm0, %v10762_v32  ;;  %9436 = vmatprep.subr.msk.mxu0 %vm720_vm0, %v11110_v11  ;;  %v11143_v29 = vsel %vm492_vm3, %v14555_v17, %v497_v48  ;;  %v499_v32 = vrot.slane %v10740_v26, 1  ;;  %v14558_v48 = vrot.slane %v10740_v26, 7 }
  0xe8   : > { %9486 = vmatprep.subr.msk.mxu1 %vm720_vm0, %v11112_v5  ;;  %9242 = vmatmul.mubr.msk.f32.gmra.mrb[34].mxu0 %vm580_vm2, %v11121_v46 }
  0xe9   : > { %9292 = vmatmul.mubr.msk.f32.gmra.mrb[34].mxu1 %vm580_vm2, %v10690_v14  ;;  %9244 = vmatprep.mubr.msk.f32.mxu0 %vm580_vm2, %v11085_v34  ;;  %v11162_v17 = vsel %vm492_vm3, %v14557_v15, %v499_v32  ;;  %v7939_v14 = vld [vmem:[#allocation8] ss:$0 sm:$0xff]  ;;  %v11206_v31 = vsel %vm492_vm3, %v499_v32, %v14558_v48  ;;  %v14559_v15 = vrot.slane %v10743_v28, 1  ;;  %v14561_v48 = vrot.slane %v10778_v37, 1 }
  0xea   : > { %9294 = vmatprep.mubr.msk.f32.mxu1 %vm580_vm2, %v10735_v23  ;;  %v501_v23 = vrot.slane %v10772_v36, 1  ;;  %582 = vst.msk [vmem:[#allocation2 + $0x8] sm:$0xff] %vm580_vm2, %v7939_v14  ;;  %581 = vst.msk [vmem:[#allocation2] sm:$0xff] %vm580_vm2, %v7939_v14 }
  0xeb   : > { %583 = vst.msk [vmem:[#allocation2 + $0x10] sm:$0xff] %vm580_vm2, %v7939_v14  ;;  %584 = vst.msk [vmem:[#allocation2 + $0x18] sm:$0xff] %vm580_vm2, %v7939_v14 }
  0xec   : > { %9245 = vmatmul.mubr.msk.f32.gmra.mrb[36].mxu0 %vm580_vm2, %v11097_v18  ;;  %585 = vst.msk [vmem:[#allocation2 + $0x20] sm:$0xff] %vm580_vm2, %v7939_v14  ;;  %586 = vst.msk [vmem:[#allocation2 + $0x28] sm:$0xff] %vm580_vm2, %v7939_v14 }
  0xed   : > { %9295 = vmatmul.mubr.msk.f32.gmra.mrb[36].mxu1 %vm580_vm2, %v10757_v30  ;;  %9247 = vmatprep.mubr.msk.f32.mxu0 %vm580_vm2, %v11143_v29  ;;  %587 = vst.msk [vmem:[#allocation2 + $0x30] sm:$0xff] %vm580_vm2, %v7939_v14  ;;  %588 = vst.msk [vmem:[#allocation2 + $0x38] sm:$0xff] %vm580_vm2, %v7939_v14 }
  0xee   : > { %9297 = vmatprep.mubr.msk.f32.mxu1 %vm580_vm2, %v10767_v33  ;;  %589 = vst.msk [vmem:[#allocation2 + $0x40] sm:$0xff] %vm580_vm2, %v7939_v14  ;;  %590 = vst.msk [vmem:[#allocation2 + $0x48] sm:$0xff] %vm580_vm2, %v7939_v14  ;;  %v503_v33 = vrot.slane %v10804_v43, 1 }
  0xef   : > { %591 = vst.msk [vmem:[#allocation2 + $0x50] sm:$0xff] %vm580_vm2, %v7939_v14  ;;  %592 = vst.msk [vmem:[#allocation2 + $0x58] sm:$0xff] %vm580_vm2, %v7939_v14 }
  0xf0   : > { %9248 = vmatmul.mubr.msk.f32.gmra.mrb[38].mxu0 %vm580_vm2, %v11155_v3  ;;  %593 = vst.msk [vmem:[#allocation2 + $0x60] sm:$0xff] %vm580_vm2, %v7939_v14  ;;  %594 = vst.msk [vmem:[#allocation2 + $0x68] sm:$0xff] %vm580_vm2, %v7939_v14 }
  0xf1   : > { %9298 = vmatmul.mubr.msk.f32.gmra.mrb[38].mxu1 %vm580_vm2, %v10791_v38  ;;  %595 = vst.msk [vmem:[#allocation2 + $0x70] sm:$0xff] %vm580_vm2, %v7939_v14  ;;  %596 = vst.msk [vmem:[#allocation2 + $0x78] sm:$0xff] %vm580_vm2, %v7939_v14  ;;  %9250 = vmatprep.mubr.msk.f32.mxu0 %vm580_vm2, %v11162_v17  ;;  %v11213_v38 = vsel %vm492_vm3, %v14559_v15, %v501_v23  ;;  %v11232_v15 = vsel %vm492_vm3, %v14561_v48, %v503_v33  ;;  %v14563_v48 = vrot.slane %v10807_v44, 1 }
  0xf2   : > { %597 = vst.msk [vmem:[#allocation2 + $0x80] sm:$0xff] %vm580_vm2, %v7939_v14  ;;  %598 = vst.msk [vmem:[#allocation2 + $0x88] sm:$0xff] %vm580_vm2, %v7939_v14  ;;  %9300 = vmatprep.mubr.msk.f32.mxu1 %vm580_vm2, %v10799_v40  ;;  %v505_v40 = vrot.slane %v10831_v50, 1 }
  0xf3   : > { %599 = vst.msk [vmem:[#allocation2 + $0x90] sm:$0xff] %vm580_vm2, %v7939_v14  ;;  %600 = vst.msk [vmem:[#allocation2 + $0x98] sm:$0xff] %vm580_vm2, %v7939_v14 }
  0xf4   : > { %601 = vst.msk [vmem:[#allocation2 + $0xa0] sm:$0xff] %vm580_vm2, %v7939_v14  ;;  %602 = vst.msk [vmem:[#allocation2 + $0xa8] sm:$0xff] %vm580_vm2, %v7939_v14  ;;  %9251 = vmatmul.mubr.msk.f32.gmra.mrb[40].mxu0 %vm580_vm2, %v11206_v31 }
  0xf5   : > { %603 = vst.msk [vmem:[#allocation2 + $0xb0] sm:$0xff] %vm580_vm2, %v7939_v14  ;;  %604 = vst.msk [vmem:[#allocation2 + $0xb8] sm:$0xff] %vm580_vm2, %v7939_v14  ;;  %9301 = vmatmul.mubr.msk.f32.gmra.mrb[40].mxu1 %vm580_vm2, %v10818_v45  ;;  %9253 = vmatprep.mubr.msk.f32.mxu0 %vm580_vm2, %v11213_v38  ;;  %v507_v45 = vrot.slane %v10858_v57, 1 }
  0xf6   : > { %605 = vst.msk [vmem:[#allocation2 + $0xc0] sm:$0xff] %vm580_vm2, %v7939_v14  ;;  %606 = vst.msk [vmem:[#allocation2 + $0xc8] sm:$0xff] %vm580_vm2, %v7939_v14  ;;  %9303 = vmatprep.mubr.msk.f32.mxu1 %vm580_vm2, %v10826_v47  ;;  %v11251_v47 = vsel %vm492_vm3, %v14563_v48, %v505_v40  ;;  %v14565_v48 = vrot.slane %v10834_v51, 1 }
  0xf7   : > { %607 = vst.msk [vmem:[#allocation2 + $0xd0] sm:$0xff] %vm580_vm2, %v7939_v14  ;;  %608 = vst.msk [vmem:[#allocation2 + $0xd8] sm:$0xff] %vm580_vm2, %v7939_v14 }
  0xf8   : > { %609 = vst.msk [vmem:[#allocation2 + $0xe0] sm:$0xff] %vm580_vm2, %v7939_v14  ;;  %610 = vst.msk [vmem:[#allocation2 + $0xe8] sm:$0xff] %vm580_vm2, %v7939_v14 }
  0xf9   : > { %611 = vst.msk [vmem:[#allocation2 + $0xf0] sm:$0xff] %vm580_vm2, %v7939_v14  ;;  %612 = vst.msk [vmem:[#allocation2 + $0xf8] sm:$0xff] %vm580_vm2, %v7939_v14  ;;  %v14560_v14 = vrot.slane %v10772_v36, 7  ;;  %9304 = vmatmul.mubr.msk.f32.gmra.mrb[42].mxu1 %vm580_vm2, %v10845_v52  ;;  %v509_v52 = vrot.slane %v10885_v0, 1 }
  0xfa   : > { %9306 = vmatprep.mubr.msk.f32.mxu1 %vm580_vm2, %v10853_v54  ;;  %v11270_v54 = vsel %vm492_vm3, %v14565_v48, %v507_v45  ;;  %v14567_v48 = vrot.slane %v10861_v58, 1 }
  0xfb   : > { %v11225_v32 = vsel %vm492_vm3, %v501_v23, %v14560_v14  ;;  %v14562_v23 = vrot.slane %v10804_v43, 7 }
  0xfc   : > { %9254 = vmatmul.mubr.msk.f32.gmra.mrb[42].mxu0 %vm580_vm2, %v11225_v32 }
  0xfd   : > { %9256 = vmatprep.mubr.msk.f32.mxu0 %vm580_vm2, %v11232_v15  ;;  %v11244_v14 = vsel %vm492_vm3, %v503_v33, %v14562_v23  ;;  %9307 = vmatmul.mubr.msk.f32.gmra.mrb[44].mxu1 %vm580_vm2, %v10872_v59  ;;  %v14564_v33 = vrot.slane %v10831_v50, 7  ;;  %v511_v59 = vrot.slane %v10912_v27, 1 }
  0xfe   : > { %9309 = vmatprep.mubr.msk.f32.mxu1 %vm580_vm2, %v10880_v61  ;;  %v11289_v61 = vsel %vm492_vm3, %v14567_v48, %v509_v52  ;;  %v14569_v48 = vrot.slane %v10888_v2, 1 }
  0xff   : > { %v11263_v23 = vsel %vm492_vm3, %v505_v40, %v14564_v33  ;;  %v14566_v40 = vrot.slane %v10858_v57, 7 }
 0x100   : > { %9257 = vmatmul.mubr.msk.f32.gmra.mrb[44].mxu0 %vm580_vm2, %v11244_v14 }
 0x101   : > { %9259 = vmatprep.mubr.msk.f32.mxu0 %vm580_vm2, %v11251_v47  ;;  %9310 = vmatmul.mubr.msk.f32.gmra.mrb[46].mxu1 %vm580_vm2, %v10899_v4  ;;  %v11282_v33 = vsel %vm492_vm3, %v507_v45, %v14566_v40  ;;  %v14568_v45 = vrot.slane %v10885_v0, 7  ;;  %v513_v4 = vrot.slane %v10939_v55, 1 }
 0x102   : > { %9312 = vmatprep.mubr.msk.f32.mxu1 %vm580_vm2, %v10907_v12  ;;  %v11308_v12 = vsel %vm492_vm3, %v14569_v48, %v511_v59  ;;  %v14571_v48 = vrot.slane %v10915_v35, 1 }
 0x103   : > { %v11301_v40 = vsel %vm492_vm3, %v509_v52, %v14568_v45  ;;  %v14570_v52 = vrot.slane %v10912_v27, 7 }
 0x104   : > { %9260 = vmatmul.mubr.msk.f32.gmra.mrb[46].mxu0 %vm580_vm2, %v11263_v23 }
 0x105   : > { %9262 = vmatprep.mubr.msk.f32.mxu0 %vm580_vm2, %v11270_v54  ;;  %9313 = vmatmul.mubr.msk.f32.gmra.mrb[48].mxu1 %vm580_vm2, %v10926_v42  ;;  %v11320_v45 = vsel %vm492_vm3, %v511_v59, %v14570_v52  ;;  %v515_v42 = vrot.slane %v10966_v41, 1  ;;  %v14572_v59 = vrot.slane %v10939_v55, 7 }
 0x106   : > { %9315 = vmatprep.mubr.msk.f32.mxu1 %vm580_vm2, %v10934_v56  ;;  %v11327_v56 = vsel %vm492_vm3, %v14571_v48, %v513_v4  ;;  %v14573_v48 = vrot.slane %v10942_v63, 1 }
 0x107   : > { %v11339_v52 = vsel %vm492_vm3, %v513_v4, %v14572_v59  ;;  %v14576_v4 = vrot.slane %v10966_v41, 7 }
 0x108   : > { %9263 = vmatmul.mubr.msk.f32.gmra.mrb[48].mxu0 %vm580_vm2, %v11282_v33 }
 0x109   : > { %9265 = vmatprep.mubr.msk.f32.mxu0 %vm580_vm2, %v11289_v61  ;;  %9316 = vmatmul.mubr.msk.f32.gmra.mrb[50].mxu1 %vm580_vm2, %v10953_v19  ;;  %v517_v19 = vrot.slane %v10993_v24, 1  ;;  %v11358_v59 = vsel %vm492_vm3, %v515_v42, %v14576_v4 }
 0x10a   : > { %9318 = vmatprep.mubr.msk.f32.mxu1 %vm580_vm2, %v10961_v53  ;;  %v11346_v53 = vsel %vm492_vm3, %v14573_v48, %v515_v42  ;;  %14577 = vst [vmem:[#allocation49_spill] sm:$0xff] %v11358_v59  ;;  %v14579_v48 = vrot.slane %v10969_v25, 1  ;;  %v14582_v42 = vrot.slane %v10993_v24, 7  ;;  %v521_v25 = vrot.slane %v11047_v22, 1 }
 0x10b   : > { %14574 = vst [vmem:[#allocation48_spill] sm:$0xff] %v11346_v53 }
 0x10c   : > { %9266 = vmatmul.mubr.msk.f32.gmra.mrb[50].mxu0 %vm580_vm2, %v11301_v40  ;;  %v11365_v30 = vsel %vm492_vm3, %v14579_v48, %v517_v19  ;;  %v11380_v4 = vsel %vm492_vm3, %v517_v19, %v14582_v42  ;;  %v14584_v48 = vrot.slane %v10996_v60, 1  ;;  %v14585_v19 = vld [vmem:[#allocation46_spill] sm:$0xff]  ;;  %v14586_v42 = vrot.slane %v11020_v9, 7 }
 0x10d   : > { %9268 = vmatprep.mubr.msk.f32.mxu0 %vm580_vm2, %v11308_v12  ;;  %9319 = vmatmul.mubr.msk.f32.gmra.mrb[52].mxu1 %vm580_vm2, %v10980_v62  ;;  %v14575_v62 = vld [vmem:[#allocation42_spill] sm:$0xff]  ;;  %14580 = vst [vmem:[#allocation50_spill] sm:$0xff] %v11365_v30  ;;  %14583 = vst [vmem:[#allocation51_spill] sm:$0xff] %v11380_v4 }
 0x10e   : > { %9321 = vmatprep.mubr.msk.f32.mxu1 %vm580_vm2, %v10988_v39  ;;  %v14578_v39 = vld [vmem:[#allocation43_spill] sm:$0xff] }
 0x110   : > { %9269 = vmatmul.mubr.msk.f32.gmra.mrb[52].mxu0 %vm580_vm2, %v11320_v45 }
 0x111   : > { %9271 = vmatprep.mubr.msk.f32.mxu0 %vm580_vm2, %v11327_v56  ;;  %9322 = vmatmul.mubr.msk.f32.gmra.mrb[54].mxu1 %vm580_vm2, %v14575_v62  ;;  %v11369_v62 = vld [vmem:[%s10642_s17 + $0xf0] sm:$0xff] }
 0x112   : > { %9324 = vmatprep.mubr.msk.f32.mxu1 %vm580_vm2, %v14578_v39  ;;  %v11387_v39 = vsel %vm492_vm3, %v14584_v48, %v519_v13  ;;  %v11404_v48 = vsel %vm492_vm3, %v519_v13, %v14586_v42  ;;  %v14591_v13 = vld [vmem:[#allocation47_spill] sm:$0xff]  ;;  %v14592_v42 = vrot.slane %v11047_v22, 7 }
 0x113   : > { %14587 = vst [vmem:[#allocation52_spill] sm:$0xff] %v11404_v48 }
 0x114   : > { %9272 = vmatmul.mubr.msk.f32.gmra.mrb[54].mxu0 %vm580_vm2, %v11339_v52 }
 0x115   : > { %9274 = vmatprep.mubr.msk.f32.mxu0 %vm580_vm2, %v11346_v53  ;;  %v14581_v53 = vld [vmem:[#allocation44_spill] sm:$0xff] }
 0x116   : > { %9325 = vmatmul.mubr.msk.f32.gmra.mrb[56].mxu1 %vm580_vm2, %v14581_v53  ;;  %v11428_v53 = vsel %vm492_vm3, %v521_v25, %v14592_v42  ;;  %v14602_v42 = vld [vmem:[#allocation41_spill] sm:$0xff] }
 0x117   : > { %9327 = vmatprep.mubr.msk.f32.mxu1 %vm580_vm2, %v11042_v49  ;;  %v14588_v49 = vrot.slane %v11023_v8, 1  ;;  %14593 = vst [vmem:[#allocation47_spill] sm:$0xff] %v11428_v53 }
 0x118   : > { %9275 = vmatmul.mubr.msk.f32.gmra.mrb[56].mxu0 %vm580_vm2, %v11358_v59  ;;  %v457_v59 = vrot.slane %v11369_v62, 7 }
 0x119   : > { %9277 = vmatprep.mubr.msk.f32.mxu0 %vm580_vm2, %v11365_v30  ;;  %v11393_v30 = vld [vmem:[%s10642_s17 + $0xf8] sm:$0xff]  ;;  %v11412_v60 = vsel %vm492_vm3, %v14588_v49, %v521_v25  ;;  %v11449_v25 = vld [vmem:[#allocation6 + $0x20] sm:$0xf] }
 0x11a   : > { %9328 = vmatmul.mubr.msk.f32.gmra.mrb[58].mxu1 %vm580_vm2, %v14585_v19  ;;  %14589 = vst [vmem:[#allocation53_spill] sm:$0xff] %v11412_v60  ;;  %v14590_v19 = vrot.slane %v11369_v62, 1  ;;  %v14594_v49 = vrot.slane %v11393_v30, 7 }
 0x11b   : > { %9330 = vmatprep.mubr.msk.f32.mxu1 %vm580_vm2, %v11066_v10 }
 0x11c   : > { %9278 = vmatmul.mubr.msk.f32.gmra.mrb[58].mxu0 %vm580_vm2, %v11380_v4  ;;  %v11417_v4 = vsel %vm411_vm1, %v14590_v19, %v457_v59  ;;  %v11435_v19 = vsel %vm411_vm1, %v457_v59, %v14594_v49  ;;  %v14595_v59 = vld [vmem:[#allocation17_spill] sm:$0xff]  ;;  %v523_v49 = vrot.slane %v11393_v30, 1 }
 0x11d   : > { %9280 = vmatprep.mubr.msk.f32.mxu0 %vm580_vm2, %v11387_v39 }
 0x11e   : > { %9331 = vmatmul.mubr.msk.f32.gmra.mrb[60].mxu1 %vm580_vm2, %v14591_v13 }
 0x11f   : > { %9333 = vmatprep.mubr.msk.f32.mxu1 %vm580_vm2, %v11417_v4 }
 0x120   : > { %9281 = vmatmul.mubr.msk.f32.gmra.mrb[60].mxu0 %vm580_vm2, %v11404_v48 }
 0x121   : > { %9283 = vmatprep.mubr.msk.f32.mxu0 %vm580_vm2, %v11412_v60 }
 0x122   : > { %9334 = vmatmul.mubr.msk.f32.gmra.mrb[62].mxu1 %vm580_vm2, %v11435_v19 }
 0x123   : > { %9388 = vmatprep.mubr.msk.f32.mxu1 %vm580_vm2, %v11104_v1  ;;  %v14596_v1 = vld [vmem:[#allocation18_spill] sm:$0xff] }
 0x124   : > { %9284 = vmatmul.mubr.msk.f32.gmra.mrb[62].mxu0 %vm580_vm2, %v11428_v53 }
 0x125   : > { %9338 = vmatprep.mubr.msk.f32.mxu0 %vm580_vm2, %v10666_v6  ;;  %v14598_v6 = vld [vmem:[#allocation49_spill] sm:$0xff] }
 0x126   : > { %9389 = vmatmul.mubr.msk.f32.vlgmr.msra.gmra.mrb[64].mxu1 %vm580_vm2, %v11121_v46  ;;  %v14601_v46 = vld [vmem:[#allocation51_spill] sm:$0xff] }
 0x127   : > { %9391 = vmatprep.mubr.msk.f32.mxu1 %vm580_vm2, %v11085_v34  ;;  %9487 = vmatpush3.msk.msra.mxu1 %vm720_vm0, %v11112_v5  ;;  %v14597_v5 = vld [vmem:[#allocation48_spill] sm:$0xff] }
 0x128   : > { %9339 = vmatmul.mubr.msk.f32.vlgmr.msra.gmra.mrb[64].mxu0 %vm580_vm2, %v10669_v7  ;;  %v14599_v7 = vld [vmem:[#allocation38_spill] sm:$0xff] }
 0x129   : > { %9437 = vmatpush3.msk.msra.mxu0 %vm720_vm0, %v11110_v11  ;;  %9341 = vmatprep.mubr.msk.f32.mxu0 %vm580_vm2, %v14595_v59  ;;  %v14600_v11 = vld [vmem:[#allocation50_spill] sm:$0xff] }
 0x12a   : > { %9536 = vmatprep.subr.msk.mxu0 %vm720_vm0, %v11449_v25  ;;  %9392 = vmatmul.mubr.msk.f32.gmra.mrb[66].mxu1 %vm580_vm2, %v11097_v18 }
 0x12b   : > { %9394 = vmatprep.mubr.msk.f32.mxu1 %vm580_vm2, %v11143_v29 }
 0x12c   : > { %9342 = vmatmul.mubr.msk.f32.gmra.mrb[66].mxu0 %vm580_vm2, %v14596_v1 }
 0x12d   : > { %9344 = vmatprep.mubr.msk.f32.mxu0 %vm580_vm2, %v10699_v16 }
 0x12e   : > { %9395 = vmatmul.mubr.msk.f32.gmra.mrb[68].mxu1 %vm580_vm2, %v11155_v3 }
 0x12f   : > { %9397 = vmatprep.mubr.msk.f32.mxu1 %vm580_vm2, %v11162_v17 }
 0x130   : > { %9345 = vmatmul.mubr.msk.f32.gmra.mrb[68].mxu0 %vm580_vm2, %v10716_v20 }
 0x131   : > { %9347 = vmatprep.mubr.msk.f32.mxu0 %vm580_vm2, %v10721_v21 }
 0x132   : > { %9398 = vmatmul.mubr.msk.f32.gmra.mrb[70].mxu1 %vm580_vm2, %v11206_v31 }
 0x133   : > { %9400 = vmatprep.mubr.msk.f32.mxu1 %vm580_vm2, %v11213_v38 }
 0x134   : > { %9348 = vmatmul.mubr.msk.f32.gmra.mrb[70].mxu0 %vm580_vm2, %v10740_v26 }
 0x135   : > { %9350 = vmatprep.mubr.msk.f32.mxu0 %vm580_vm2, %v10743_v28 }
 0x136   : > { %9401 = vmatmul.mubr.msk.f32.gmra.mrb[72].mxu1 %vm580_vm2, %v11225_v32 }
 0x137   : > { %9403 = vmatprep.mubr.msk.f32.mxu1 %vm580_vm2, %v11232_v15 }
 0x138   : > { %9351 = vmatmul.mubr.msk.f32.gmra.mrb[72].mxu0 %vm580_vm2, %v10772_v36 }
 0x139   : > { %9353 = vmatprep.mubr.msk.f32.mxu0 %vm580_vm2, %v10778_v37 }
 0x13a   : > { %9404 = vmatmul.mubr.msk.f32.gmra.mrb[74].mxu1 %vm580_vm2, %v11244_v14 }
 0x13b   : > { %9406 = vmatprep.mubr.msk.f32.mxu1 %vm580_vm2, %v11251_v47 }
 0x13c   : > { %9354 = vmatmul.mubr.msk.f32.gmra.mrb[74].mxu0 %vm580_vm2, %v10804_v43 }
 0x13d   : > { %9356 = vmatprep.mubr.msk.f32.mxu0 %vm580_vm2, %v10807_v44 }
 0x13e   : > { %9407 = vmatmul.mubr.msk.f32.gmra.mrb[76].mxu1 %vm580_vm2, %v11263_v23 }
 0x13f   : > { %9409 = vmatprep.mubr.msk.f32.mxu1 %vm580_vm2, %v11270_v54 }
 0x140   : > { %9357 = vmatmul.mubr.msk.f32.gmra.mrb[76].mxu0 %vm580_vm2, %v10831_v50 }
 0x141   : > { %9359 = vmatprep.mubr.msk.f32.mxu0 %vm580_vm2, %v10834_v51 }
 0x142   : > { %9410 = vmatmul.mubr.msk.f32.gmra.mrb[78].mxu1 %vm580_vm2, %v11282_v33 }
 0x143   : > { %9412 = vmatprep.mubr.msk.f32.mxu1 %vm580_vm2, %v11289_v61 }
 0x144   : > { %9360 = vmatmul.mubr.msk.f32.gmra.mrb[78].mxu0 %vm580_vm2, %v10858_v57 }
 0x145   : > { %9362 = vmatprep.mubr.msk.f32.mxu0 %vm580_vm2, %v10861_v58 }
 0x146   : > { %9413 = vmatmul.mubr.msk.f32.gmra.mrb[80].mxu1 %vm580_vm2, %v11301_v40 }
 0x147   : > { %9415 = vmatprep.mubr.msk.f32.mxu1 %vm580_vm2, %v11308_v12 }
 0x148   : > { %9363 = vmatmul.mubr.msk.f32.gmra.mrb[80].mxu0 %vm580_vm2, %v10885_v0 }
 0x149   : > { %9365 = vmatprep.mubr.msk.f32.mxu0 %vm580_vm2, %v10888_v2 }
 0x14a   : > { %9416 = vmatmul.mubr.msk.f32.gmra.mrb[82].mxu1 %vm580_vm2, %v11320_v45 }
 0x14b   : > { %9418 = vmatprep.mubr.msk.f32.mxu1 %vm580_vm2, %v11327_v56 }
 0x14c   : > { %9366 = vmatmul.mubr.msk.f32.gmra.mrb[82].mxu0 %vm580_vm2, %v10912_v27 }
 0x14d   : > { %9368 = vmatprep.mubr.msk.f32.mxu0 %vm580_vm2, %v10915_v35 }
 0x14e   : > { %9419 = vmatmul.mubr.msk.f32.gmra.mrb[84].mxu1 %vm580_vm2, %v11339_v52 }
 0x14f   : > { %9421 = vmatprep.mubr.msk.f32.mxu1 %vm580_vm2, %v14597_v5 }
 0x150   : > { %9369 = vmatmul.mubr.msk.f32.gmra.mrb[84].mxu0 %vm580_vm2, %v10939_v55 }
 0x151   : > { %9371 = vmatprep.mubr.msk.f32.mxu0 %vm580_vm2, %v10942_v63 }
 0x152   : > { %9422 = vmatmul.mubr.msk.f32.gmra.mrb[86].mxu1 %vm580_vm2, %v14598_v6 }
 0x153   : > { %9424 = vmatprep.mubr.msk.f32.mxu1 %vm580_vm2, %v14600_v11 }
 0x154   : > { %9372 = vmatmul.mubr.msk.f32.gmra.mrb[86].mxu0 %vm580_vm2, %v10966_v41 }
 0x155   : > { %9374 = vmatprep.mubr.msk.f32.mxu0 %vm580_vm2, %v14599_v7 }
 0x156   : > { %9425 = vmatmul.mubr.msk.f32.gmra.mrb[88].mxu1 %vm580_vm2, %v14601_v46  ;;  %v14603_v46 = vrot.slane %v11369_v62, 1 }
 0x157   : > { %9427 = vmatprep.mubr.msk.f32.mxu1 %vm580_vm2, %v11387_v39 }
 0x158   : > { %9375 = vmatmul.mubr.msk.f32.gmra.mrb[88].mxu0 %vm580_vm2, %v10993_v24  ;;  %v11569_v11 = vsel %vm492_vm3, %v14603_v46, %v523_v49  ;;  %v14605_v46 = vld [vmem:[#allocation19_spill] sm:$0xff] }
 0x159   : > { %9377 = vmatprep.mubr.msk.f32.mxu0 %vm580_vm2, %v14602_v42 }
 0x15a   : > { %9428 = vmatmul.mubr.msk.f32.gmra.mrb[90].mxu1 %vm580_vm2, %v11404_v48  ;;  %v14604_v48 = vrot.slane %v11393_v30, 7 }
 0x15b   : > { %9430 = vmatprep.mubr.msk.f32.mxu1 %vm580_vm2, %v11412_v60 }
 0x15c   : > { %9378 = vmatmul.mubr.msk.f32.gmra.mrb[90].mxu0 %vm580_vm2, %v11020_v9  ;;  %v11582_v60 = vsel %vm492_vm3, %v523_v49, %v14604_v48  ;;  %v14607_v48 = vld [vmem:[#allocation21_spill] sm:$0xff]  ;;  %v14608_v49 = vld [vmem:[#allocation22_spill] sm:$0xff] }
 0x15d   : > { %9380 = vmatprep.mubr.msk.f32.mxu0 %vm580_vm2, %v11023_v8 }
 0x15e   : > { %9431 = vmatmul.mubr.msk.f32.gmra.mrb[92].mxu1 %vm580_vm2, %v11428_v53  ;;  %v14606_v53 = vld [vmem:[#allocation20_spill] sm:$0xff] }
 0x15f   : > { %9433 = vmatprep.mubr.msk.f32.mxu1 %vm580_vm2, %v11569_v11 }
 0x160   : > { %9381 = vmatmul.mubr.msk.f32.gmra.mrb[92].mxu0 %vm580_vm2, %v11047_v22 }
 0x161   : > { %9383 = vmatprep.mubr.msk.f32.mxu0 %vm580_vm2, %v11369_v62 }
 0x162   : > { %9434 = vmatmul.mubr.msk.f32.gmra.mrb[94].mxu1 %vm580_vm2, %v11582_v60 }
 0x163   : > { %9488 = vmatprep.mubr.msk.f32.mxu1 %vm580_vm2, %v14595_v59  ;;  %v14609_v59 = vld [vmem:[#allocation23_spill] sm:$0xff] }
 0x164   : > { %9384 = vmatmul.mubr.msk.f32.gmra.mrb[94].mxu0 %vm580_vm2, %v11393_v30 }
 0x165   : > { %9438 = vmatprep.mubr.msk.f32.mxu0 %vm580_vm2, %v14605_v46 }
 0x166   : > { %9489 = vmatmul.mubr.msk.f32.vlgmr.msra.gmra.mrb[96].mxu1 %vm580_vm2, %v14596_v1 }
 0x167   : > { %9491 = vmatprep.mubr.msk.f32.mxu1 %vm580_vm2, %v10699_v16  ;;  %v14612_v16 = vld [vmem:[#allocation26_spill] sm:$0xff] }
 0x168   : > { %9439 = vmatmul.mubr.msk.f32.vlgmr.msra.gmra.mrb[96].mxu0 %vm580_vm2, %v14606_v53  ;;  %v14610_v53 = vld [vmem:[#allocation24_spill] sm:$0xff] }
 0x169   : > { %9537 = vmatpush3.msk.msra.mxu0 %vm720_vm0, %v11449_v25  ;;  %9441 = vmatprep.mubr.msk.f32.mxu0 %vm580_vm2, %v14607_v48  ;;  %v14611_v25 = vld [vmem:[#allocation25_spill] sm:$0xff] }
 0x16a   : > { %9492 = vmatmul.mubr.msk.f32.gmra.mrb[98].mxu1 %vm580_vm2, %v10716_v20  ;;  %v14613_v20 = vld [vmem:[#allocation27_spill] sm:$0xff] }
 0x16b   : > { %9494 = vmatprep.mubr.msk.f32.mxu1 %vm580_vm2, %v10721_v21  ;;  %v14614_v21 = vld [vmem:[#allocation28_spill] sm:$0xff] }
 0x16c   : > { %9442 = vmatmul.mubr.msk.f32.gmra.mrb[98].mxu0 %vm580_vm2, %v14608_v49 }
 0x16d   : > { %9444 = vmatprep.mubr.msk.f32.mxu0 %vm580_vm2, %v14609_v59  ;;  %v14616_v59 = vld [vmem:[#allocation30_spill] sm:$0xff] }
 0x16e   : > { %9495 = vmatmul.mubr.msk.f32.gmra.mrb[100].mxu1 %vm580_vm2, %v10740_v26  ;;  %v614_v26 = vld [vmem:[#allocation2 + $0x8] sm:$0xff] }
 0x16f   : > { %9497 = vmatprep.mubr.msk.f32.mxu1 %vm580_vm2, %v10743_v28  ;;  %v14615_v28 = vld [vmem:[#allocation29_spill] sm:$0xff] }
 0x170   : > { %9445 = vmatmul.mubr.msk.f32.gmra.mrb[100].mxu0 %vm580_vm2, %v14610_v53  ;;  %v616_v53 = vld [vmem:[#allocation2 + $0x18] sm:$0xff] }
 0x171   : > { %9447 = vmatprep.mubr.msk.f32.mxu0 %vm580_vm2, %v14611_v25  ;;  %v14617_v25 = vld [vmem:[#allocation31_spill] sm:$0xff] }
 0x172   : > { %9498 = vmatmul.mubr.msk.f32.gmra.mrb[102].mxu1 %vm580_vm2, %v10772_v36  ;;  %v613_v36 = vld [vmem:[#allocation2] sm:$0xff] }
 0x173   : > { %9500 = vmatprep.mubr.msk.f32.mxu1 %vm580_vm2, %v10778_v37 }
 0x174   : > { %9448 = vmatmul.mubr.msk.f32.gmra.mrb[102].mxu0 %vm580_vm2, %v14612_v16 }
 0x175   : > { %9450 = vmatprep.mubr.msk.f32.mxu0 %vm580_vm2, %v14613_v20 }
 0x176   : > { %9501 = vmatmul.mubr.msk.f32.gmra.mrb[104].mxu1 %vm580_vm2, %v10804_v43 }
 0x177   : > { %9503 = vmatprep.mubr.msk.f32.mxu1 %vm580_vm2, %v10807_v44  ;;  %v9140_v1 = vpop.f32.mrb[0].mxu0  ;;  %v615_v44 = vld [vmem:[#allocation2 + $0x10] sm:$0xff] }
 0x178   : > { %9451 = vmatmul.mubr.msk.f32.gmra.mrb[104].mxu0 %vm580_vm2, %v14614_v21  ;;  %v9190_v46 = vpop.f32.mrb[0].mxu1  ;;  %v950_v48 = vadd.f32 %v9140_v1, %v614_v26  ;;  %v790_v49 = vpop.f32.mrb[1].mxu0  ;;  %v618_v1 = vld [vmem:[#allocation2 + $0x28] sm:$0xff] }
 0x179   : > { %9453 = vmatprep.mubr.msk.f32.mxu0 %vm580_vm2, %v14615_v28  ;;  %v1174_v37 = vpop.f32.mrb[1].mxu1  ;;  %v949_v43 = vadd.f32 %v790_v49, %v613_v36  ;;  %v14618_v28 = vld [vmem:[#allocation32_spill] sm:$0xff]  ;;  %v14619_v49 = vld [vmem:[#allocation33_spill] sm:$0xff] }
 0x17a   : > { %9504 = vmatmul.mubr.msk.f32.gmra.mrb[106].mxu1 %vm580_vm2, %v10831_v50  ;;  %982 = vst.msk [vmem:[#allocation2 + $0x8] sm:$0xff] %vm580_vm2, %v950_v48 }
 0x17b   : > { %9506 = vmatprep.mubr.msk.f32.mxu1 %vm580_vm2, %v10834_v51  ;;  %981 = vst.msk [vmem:[#allocation2] sm:$0xff] %vm580_vm2, %v949_v43  ;;  %v9143_v16 = vpop.f32.mrb[2].mxu0  ;;  %v617_v51 = vld [vmem:[#allocation2 + $0x20] sm:$0xff] }
 0x17c   : > { %9454 = vmatmul.mubr.msk.f32.gmra.mrb[106].mxu0 %vm580_vm2, %v14616_v59  ;;  %v9193_v20 = vpop.f32.mrb[2].mxu1  ;;  %v952_v21 = vadd.f32 %v9143_v16, %v616_v53  ;;  %v800_v26 = vpop.f32.mrb[3].mxu0 }
 0x17d   : > { %9456 = vmatprep.mubr.msk.f32.mxu0 %vm580_vm2, %v14617_v25  ;;  %v1184_v50 = vpop.f32.mrb[3].mxu1  ;;  %v951_v36 = vadd.f32 %v800_v26, %v615_v44  ;;  %v14620_v25 = vld [vmem:[#allocation34_spill] sm:$0xff] }
 0x17e   : > { %9507 = vmatmul.mubr.msk.f32.gmra.mrb[108].mxu1 %vm580_vm2, %v10858_v57  ;;  %984 = vst.msk [vmem:[#allocation2 + $0x18] sm:$0xff] %vm580_vm2, %v952_v21  ;;  %v620_v26 = vld [vmem:[#allocation2 + $0x38] sm:$0xff] }
 0x17f   : > { %9509 = vmatprep.mubr.msk.f32.mxu1 %vm580_vm2, %v10861_v58  ;;  %983 = vst.msk [vmem:[#allocation2 + $0x10] sm:$0xff] %vm580_vm2, %v951_v36  ;;  %v9146_v48 = vpop.f32.mrb[4].mxu0  ;;  %v14621_v58 = vld [vmem:[#allocation35_spill] sm:$0xff]  ;;  %v619_v36 = vld [vmem:[#allocation2 + $0x30] sm:$0xff] }
 0x180   : > { %9457 = vmatmul.mubr.msk.f32.gmra.mrb[108].mxu0 %vm580_vm2, %v14618_v28  ;;  %v9196_v59 = vpop.f32.mrb[4].mxu1  ;;  %v954_v43 = vadd.f32 %v9146_v48, %v618_v1  ;;  %v810_v53 = vpop.f32.mrb[5].mxu0 }
 0x181   : > { %9459 = vmatprep.mubr.msk.f32.mxu0 %vm580_vm2, %v14619_v49  ;;  %v1194_v57 = vpop.f32.mrb[5].mxu1  ;;  %v953_v44 = vadd.f32 %v810_v53, %v617_v51  ;;  %v1014_v16 = vld [vmem:[#allocation2 + $0x8] sm:$0xff] }
 0x182   : > { %9510 = vmatmul.mubr.msk.f32.gmra.mrb[110].mxu1 %vm580_vm2, %v10885_v0  ;;  %986 = vst.msk [vmem:[#allocation2 + $0x28] sm:$0xff] %vm580_vm2, %v954_v43  ;;  %v1334_v21 = vadd.f32 %v9190_v46, %v1014_v16  ;;  %v1013_v28 = vld [vmem:[#allocation2] sm:$0xff]  ;;  %v622_v43 = vld [vmem:[#allocation2 + $0x48] sm:$0xff] }
 0x183   : > { %9512 = vmatprep.mubr.msk.f32.mxu1 %vm580_vm2, %v10888_v2  ;;  %985 = vst.msk [vmem:[#allocation2 + $0x20] sm:$0xff] %vm580_vm2, %v953_v44  ;;  %v1333_v1 = vadd.f32 %v1174_v37, %v1013_v28  ;;  %v9149_v49 = vpop.f32.mrb[6].mxu0  ;;  %v14622_v53 = vld [vmem:[#allocation36_spill] sm:$0xff]  ;;  %v14623_v44 = vld [vmem:[#allocation37_spill] sm:$0xff] }
 0x184   : > { %9460 = vmatmul.mubr.msk.f32.gmra.mrb[110].mxu0 %vm580_vm2, %v14620_v25  ;;  %v9199_v48 = vpop.f32.mrb[6].mxu1  ;;  %1366 = vst.msk [vmem:[#allocation2 + $0x8] sm:$0xff] %vm580_vm2, %v1334_v21  ;;  %v956_v0 = vadd.f32 %v9149_v49, %v620_v26  ;;  %v820_v51 = vpop.f32.mrb[7].mxu0  ;;  %v621_v26 = vld [vmem:[#allocation2 + $0x40] sm:$0xff] }
 0x185   : > { %9462 = vmatprep.mubr.msk.f32.mxu0 %vm580_vm2, %v14621_v58  ;;  %v1204_v25 = vpop.f32.mrb[7].mxu1  ;;  %1365 = vst.msk [vmem:[#allocation2] sm:$0xff] %vm580_vm2, %v1333_v1  ;;  %v955_v2 = vadd.f32 %v820_v51, %v619_v36  ;;  %v1016_v46 = vld [vmem:[#allocation2 + $0x18] sm:$0xff]  ;;  %v14625_v51 = vld [vmem:[#allocation40_spill] sm:$0xff] }
 0x186   : > { %9513 = vmatmul.mubr.msk.f32.gmra.mrb[112].mxu1 %vm580_vm2, %v10912_v27  ;;  %988 = vst.msk [vmem:[#allocation2 + $0x38] sm:$0xff] %vm580_vm2, %v956_v0  ;;  %v1336_v37 = vadd.f32 %v9193_v20, %v1016_v46  ;;  %v1015_v16 = vld [vmem:[#allocation2 + $0x10] sm:$0xff]  ;;  %v14624_v1 = vld [vmem:[#allocation39_spill] sm:$0xff] }
 0x187   : > { %9515 = vmatprep.mubr.msk.f32.mxu1 %vm580_vm2, %v10915_v35  ;;  %987 = vst.msk [vmem:[#allocation2 + $0x30] sm:$0xff] %vm580_vm2, %v955_v2  ;;  %v1335_v58 = vadd.f32 %v1184_v50, %v1015_v16  ;;  %v9152_v27 = vpop.f32.mrb[8].mxu0  ;;  %v624_v0 = vld [vmem:[#allocation2 + $0x58] sm:$0xff]  ;;  %v623_v2 = vld [vmem:[#allocation2 + $0x50] sm:$0xff] }
 0x188   : > { %9463 = vmatmul.mubr.msk.f32.gmra.mrb[112].mxu0 %vm580_vm2, %v14622_v53  ;;  %v9202_v21 = vpop.f32.mrb[8].mxu1  ;;  %1368 = vst.msk [vmem:[#allocation2 + $0x18] sm:$0xff] %vm580_vm2, %v1336_v37  ;;  %v958_v28 = vadd.f32 %v9152_v27, %v622_v43  ;;  %v830_v36 = vpop.f32.mrb[9].mxu0  ;;  %v14626_v16 = vld [vmem:[#allocation42_spill] sm:$0xff]  ;;  %v14627_v27 = vld [vmem:[#allocation43_spill] sm:$0xff] }
 0x189   : > { %9465 = vmatprep.mubr.msk.f32.mxu0 %vm580_vm2, %v14623_v44  ;;  %v1214_v49 = vpop.f32.mrb[9].mxu1  ;;  %1367 = vst.msk [vmem:[#allocation2 + $0x10] sm:$0xff] %vm580_vm2, %v1335_v58  ;;  %v957_v35 = vadd.f32 %v830_v36, %v621_v26  ;;  %v1018_v20 = vld [vmem:[#allocation2 + $0x28] sm:$0xff]  ;;  %v625_v36 = vld [vmem:[#allocation2 + $0x60] sm:$0xff] }
 0x18a   : > { %9516 = vmatmul.mubr.msk.f32.gmra.mrb[114].mxu1 %vm580_vm2, %v10939_v55  ;;  %990 = vst.msk [vmem:[#allocation2 + $0x48] sm:$0xff] %vm580_vm2, %v958_v28  ;;  %v1338_v50 = vadd.f32 %v9196_v59, %v1018_v20  ;;  %v1017_v53 = vld [vmem:[#allocation2 + $0x20] sm:$0xff]  ;;  %v626_v58 = vld [vmem:[#allocation2 + $0x68] sm:$0xff] }
 0x18b   : > { %9518 = vmatprep.mubr.msk.f32.mxu1 %vm580_vm2, %v10942_v63  ;;  %989 = vst.msk [vmem:[#allocation2 + $0x40] sm:$0xff] %vm580_vm2, %v957_v35  ;;  %v1337_v46 = vadd.f32 %v1194_v57, %v1017_v53  ;;  %v9155_v55 = vpop.f32.mrb[10].mxu0  ;;  %v628_v53 = vld [vmem:[#allocation2 + $0x78] sm:$0xff] }
 0x18c   : > { %9466 = vmatmul.mubr.msk.f32.gmra.mrb[114].mxu0 %vm580_vm2, %v14624_v1  ;;  %v9205_v43 = vpop.f32.mrb[10].mxu1  ;;  %1370 = vst.msk [vmem:[#allocation2 + $0x28] sm:$0xff] %vm580_vm2, %v1338_v50  ;;  %v960_v44 = vadd.f32 %v9155_v55, %v624_v0  ;;  %v840_v37 = vpop.f32.mrb[11].mxu0  ;;  %v627_v55 = vld [vmem:[#allocation2 + $0x70] sm:$0xff] }
 0x18d   : > { %9468 = vmatprep.mubr.msk.f32.mxu0 %vm580_vm2, %v14625_v51  ;;  %v1224_v26 = vpop.f32.mrb[11].mxu1  ;;  %1369 = vst.msk [vmem:[#allocation2 + $0x20] sm:$0xff] %vm580_vm2, %v1337_v46  ;;  %v959_v63 = vadd.f32 %v840_v37, %v623_v2  ;;  %v1020_v59 = vld [vmem:[#allocation2 + $0x38] sm:$0xff]  ;;  %v14628_v51 = vld [vmem:[#allocation44_spill] sm:$0xff]  ;;  %v14629_v2 = vld [vmem:[#allocation45_spill] sm:$0xff] }
 0x18e   : > { %9519 = vmatmul.mubr.msk.f32.gmra.mrb[116].mxu1 %vm580_vm2, %v10966_v41  ;;  %992 = vst.msk [vmem:[#allocation2 + $0x58] sm:$0xff] %vm580_vm2, %v960_v44  ;;  %v1340_v57 = vadd.f32 %v9199_v48, %v1020_v59  ;;  %v1019_v28 = vld [vmem:[#allocation2 + $0x30] sm:$0xff] }
 0x18f   : > { %9521 = vmatprep.mubr.msk.f32.mxu1 %vm580_vm2, %v14599_v7  ;;  %991 = vst.msk [vmem:[#allocation2 + $0x50] sm:$0xff] %vm580_vm2, %v959_v63  ;;  %v1339_v1 = vadd.f32 %v1204_v25, %v1019_v28  ;;  %v9158_v41 = vpop.f32.mrb[12].mxu0  ;;  %v14630_v59 = vld [vmem:[#allocation46_spill] sm:$0xff]  ;;  %v629_v28 = vld [vmem:[#allocation2 + $0x80] sm:$0xff] }
 0x190   : > { %9469 = vmatmul.mubr.msk.f32.gmra.mrb[116].mxu0 %vm580_vm2, %v14626_v16  ;;  %v9208_v35 = vpop.f32.mrb[12].mxu1  ;;  %1372 = vst.msk [vmem:[#allocation2 + $0x38] sm:$0xff] %vm580_vm2, %v1340_v57  ;;  %v962_v20 = vadd.f32 %v9158_v41, %v626_v58  ;;  %v850_v0 = vpop.f32.mrb[13].mxu0 }
 0x191   : > { %9471 = vmatprep.mubr.msk.f32.mxu0 %vm580_vm2, %v14627_v27  ;;  %v1234_v50 = vpop.f32.mrb[13].mxu1  ;;  %1371 = vst.msk [vmem:[#allocation2 + $0x30] sm:$0xff] %vm580_vm2, %v1339_v1  ;;  %v961_v7 = vadd.f32 %v850_v0, %v625_v36  ;;  %v1022_v48 = vld [vmem:[#allocation2 + $0x48] sm:$0xff] }
 0x192   : > { %9522 = vmatmul.mubr.msk.f32.gmra.mrb[118].mxu1 %vm580_vm2, %v10993_v24  ;;  %994 = vst.msk [vmem:[#allocation2 + $0x68] sm:$0xff] %vm580_vm2, %v962_v20  ;;  %v1342_v25 = vadd.f32 %v9202_v21, %v1022_v48  ;;  %v1021_v46 = vld [vmem:[#allocation2 + $0x40] sm:$0xff]  ;;  %v630_v27 = vld [vmem:[#allocation2 + $0x88] sm:$0xff] }
 0x193   : > { %9524 = vmatprep.mubr.msk.f32.mxu1 %vm580_vm2, %v14602_v42  ;;  %993 = vst.msk [vmem:[#allocation2 + $0x60] sm:$0xff] %vm580_vm2, %v961_v7  ;;  %v1341_v44 = vadd.f32 %v1214_v49, %v1021_v46  ;;  %v9161_v24 = vpop.f32.mrb[14].mxu0  ;;  %v632_v7 = vld [vmem:[#allocation2 + $0x98] sm:$0xff] }
 0x194   : > { %9472 = vmatmul.mubr.msk.f32.gmra.mrb[118].mxu0 %vm580_vm2, %v14628_v51  ;;  %v9211_v37 = vpop.f32.mrb[14].mxu1  ;;  %1374 = vst.msk [vmem:[#allocation2 + $0x48] sm:$0xff] %vm580_vm2, %v1342_v25  ;;  %v964_v16 = vadd.f32 %v9161_v24, %v628_v53  ;;  %v860_v63 = vpop.f32.mrb[15].mxu0  ;;  %v631_v53 = vld [vmem:[#allocation2 + $0x90] sm:$0xff]  ;;  %v634_v24 = vld [vmem:[#allocation2 + $0xa8] sm:$0xff] }
 0x195   : > { %9474 = vmatprep.mubr.msk.f32.mxu0 %vm580_vm2, %v14629_v2  ;;  %v1244_v58 = vpop.f32.mrb[15].mxu1  ;;  %1373 = vst.msk [vmem:[#allocation2 + $0x40] sm:$0xff] %vm580_vm2, %v1341_v44  ;;  %v963_v42 = vadd.f32 %v860_v63, %v627_v55  ;;  %v1024_v21 = vld [vmem:[#allocation2 + $0x58] sm:$0xff] }
 0x196   : > { %9525 = vmatmul.mubr.msk.f32.gmra.mrb[120].mxu1 %vm580_vm2, %v11020_v9  ;;  %996 = vst.msk [vmem:[#allocation2 + $0x78] sm:$0xff] %vm580_vm2, %v964_v16  ;;  %v1344_v49 = vadd.f32 %v9205_v43, %v1024_v21  ;;  %v1023_v57 = vld [vmem:[#allocation2 + $0x50] sm:$0xff] }
 0x197   : > { %9527 = vmatprep.mubr.msk.f32.mxu1 %vm580_vm2, %v11023_v8  ;;  %995 = vst.msk [vmem:[#allocation2 + $0x70] sm:$0xff] %vm580_vm2, %v963_v42  ;;  %v1343_v36 = vadd.f32 %v1224_v26, %v1023_v57  ;;  %v9164_v9 = vpop.f32.mrb[16].mxu0  ;;  %v635_v57 = vld [vmem:[#allocation2 + $0xb0] sm:$0xff] }
 0x198   : > { %9475 = vmatmul.mubr.msk.f32.gmra.mrb[120].mxu0 %vm580_vm2, %v14630_v59  ;;  %v9214_v1 = vpop.f32.mrb[16].mxu1  ;;  %1376 = vst.msk [vmem:[#allocation2 + $0x58] sm:$0xff] %vm580_vm2, %v1344_v49  ;;  %v966_v41 = vadd.f32 %v9164_v9, %v630_v27  ;;  %v870_v20 = vpop.f32.mrb[17].mxu0  ;;  %v636_v27 = vld [vmem:[#allocation2 + $0xb8] sm:$0xff] }
 0x199   : > { %9477 = vmatprep.mubr.msk.f32.mxu0 %vm580_vm2, %v11066_v10  ;;  %v1254_v0 = vpop.f32.mrb[17].mxu1  ;;  %1375 = vst.msk [vmem:[#allocation2 + $0x50] sm:$0xff] %vm580_vm2, %v1343_v36  ;;  %v965_v43 = vadd.f32 %v870_v20, %v629_v28  ;;  %v1026_v51 = vld [vmem:[#allocation2 + $0x68] sm:$0xff] }
 0x19a   : > { %9528 = vmatmul.mubr.msk.f32.gmra.mrb[122].mxu1 %vm580_vm2, %v11047_v22  ;;  %998 = vst.msk [vmem:[#allocation2 + $0x88] sm:$0xff] %vm580_vm2, %v966_v41  ;;  %v1346_v26 = vadd.f32 %v9208_v35, %v1026_v51  ;;  %v1025_v48 = vld [vmem:[#allocation2 + $0x60] sm:$0xff] }
 0x19b   : > { %9530 = vmatprep.mubr.msk.f32.mxu1 %vm580_vm2, %v11369_v62  ;;  %997 = vst.msk [vmem:[#allocation2 + $0x80] sm:$0xff] %vm580_vm2, %v965_v43  ;;  %v1345_v2 = vadd.f32 %v1234_v50, %v1025_v48  ;;  %v9167_v25 = vpop.f32.mrb[18].mxu0  ;;  %v637_v51 = vld [vmem:[#allocation2 + $0xc0] sm:$0xff] }
 0x19c   : > { %9478 = vmatmul.mubr.msk.f32.gmra.mrb[122].mxu0 %vm580_vm2, %v14591_v13  ;;  %v9217_v46 = vpop.f32.mrb[18].mxu1  ;;  %1378 = vst.msk [vmem:[#allocation2 + $0x68] sm:$0xff] %vm580_vm2, %v1346_v26  ;;  %v968_v55 = vadd.f32 %v9167_v25, %v632_v7  ;;  %v880_v44 = vpop.f32.mrb[19].mxu0 }
 0x19d   : > { %9480 = vmatprep.mubr.msk.f32.mxu0 %vm580_vm2, %v11417_v4  ;;  %v1264_v4 = vpop.f32.mrb[19].mxu1  ;;  %1377 = vst.msk [vmem:[#allocation2 + $0x60] sm:$0xff] %vm580_vm2, %v1345_v2  ;;  %v967_v62 = vadd.f32 %v880_v44, %v631_v53  ;;  %v1028_v35 = vld [vmem:[#allocation2 + $0x78] sm:$0xff] }
 0x19e   : > { %9531 = vmatmul.mubr.msk.f32.gmra.mrb[124].mxu1 %vm580_vm2, %v11393_v30  ;;  %1000 = vst.msk [vmem:[#allocation2 + $0x98] sm:$0xff] %vm580_vm2, %v968_v55  ;;  %v1348_v50 = vadd.f32 %v9211_v37, %v1028_v35  ;;  %v1027_v16 = vld [vmem:[#allocation2 + $0x70] sm:$0xff] }
 0x19f   : > { %9533 = vmatprep.mubr.msk.f32.mxu1 %vm580_vm2, %v11023_v8  ;;  %999 = vst.msk [vmem:[#allocation2 + $0x90] sm:$0xff] %vm580_vm2, %v967_v62  ;;  %v1347_v63 = vadd.f32 %v1244_v58, %v1027_v16  ;;  %v9170_v30 = vpop.f32.mrb[20].mxu0 }
 0x1a0   : > { %9481 = vmatmul.mubr.msk.f32.gmra.mrb[124].mxu0 %vm580_vm2, %v11435_v19  ;;  %v633_v19 = vld [vmem:[#allocation2 + $0xa0] sm:$0xff]  ;;  %v9220_v59 = vpop.f32.mrb[20].mxu1  ;;  %1380 = vst.msk [vmem:[#allocation2 + $0x78] sm:$0xff] %vm580_vm2, %v1348_v50  ;;  %v970_v42 = vadd.f32 %v9170_v30, %v634_v24  ;;  %v890_v21 = vpop.f32.mrb[21].mxu0 }
 0x1a1   : > { %9483 = vmatprep.mubr.msk.f32.mxu0 %vm580_vm2, %v11066_v10  ;;  %v1274_v10 = vpop.f32.mrb[21].mxu1  ;;  %1379 = vst.msk [vmem:[#allocation2 + $0x70] sm:$0xff] %vm580_vm2, %v1347_v63  ;;  %v969_v8 = vadd.f32 %v890_v21, %v633_v19  ;;  %v1030_v37 = vld [vmem:[#allocation2 + $0x88] sm:$0xff] }
 0x1a2   : > { %9534 = vmatmul.mubr.msk.f32.gmra.mrb[126].mxu1 %vm580_vm2, %v11047_v22  ;;  %1002 = vst.msk [vmem:[#allocation2 + $0xa8] sm:$0xff] %vm580_vm2, %v970_v42  ;;  %v1350_v58 = vadd.f32 %v9214_v1, %v1030_v37  ;;  %v1029_v49 = vld [vmem:[#allocation2 + $0x80] sm:$0xff]  ;;  %v638_v1 = vld [vmem:[#allocation2 + $0xc8] sm:$0xff] }
 0x1a3   : > { %1001 = vst.msk [vmem:[#allocation2 + $0xa0] sm:$0xff] %vm580_vm2, %v969_v8  ;;  %v9173_v28 = vpop.f32.mrb[22].mxu0  ;;  %v642_v63 = vld [vmem:[#allocation2 + $0xe8] sm:$0xff]  ;;  %v641_v42 = vld [vmem:[#allocation2 + $0xe0] sm:$0xff] }
 0x1a4   : > { %9484 = vmatmul.mubr.msk.f32.gmra.mrb[126].mxu0 %vm580_vm2, %v14591_v13  ;;  %v1349_v13 = vadd.f32 %v1254_v0, %v1029_v49  ;;  %v9223_v36 = vpop.f32.mrb[22].mxu1  ;;  %1382 = vst.msk [vmem:[#allocation2 + $0x88] sm:$0xff] %vm580_vm2, %v1350_v58  ;;  %v972_v22 = vadd.f32 %v9173_v28, %v636_v27  ;;  %v900_v9 = vpop.f32.mrb[23].mxu0  ;;  %v644_v49 = vld [vmem:[#allocation2 + $0xf8] sm:$0xff]  ;;  %v643_v28 = vld [vmem:[#allocation2 + $0xf0] sm:$0xff] }
 0x1a5   : > { %9538 = vmatprep.mubr.msk.f32.mxu0 %vm580_vm2, %v11085_v34  ;;  %v1284_v41 = vpop.f32.mrb[23].mxu1  ;;  %v971_v34 = vadd.f32 %v900_v9, %v635_v57  ;;  %v1032_v20 = vld [vmem:[#allocation2 + $0x98] sm:$0xff] }
 0x1a6   : > { %1381 = vst.msk [vmem:[#allocation2 + $0x80] sm:$0xff] %vm580_vm2, %v1349_v13  ;;  %1004 = vst.msk [vmem:[#allocation2 + $0xb8] sm:$0xff] %vm580_vm2, %v972_v22  ;;  %v1352_v0 = vadd.f32 %v9217_v46, %v1032_v20  ;;  %v1031_v43 = vld [vmem:[#allocation2 + $0x90] sm:$0xff]  ;;  %v640_v46 = vld [vmem:[#allocation2 + $0xd8] sm:$0xff] }
 0x1a7   : > { %1003 = vst.msk [vmem:[#allocation2 + $0xb0] sm:$0xff] %vm580_vm2, %v971_v34  ;;  %v1351_v7 = vadd.f32 %v1264_v4, %v1031_v43  ;;  %v9176_v26 = vpop.f32.mrb[24].mxu0  ;;  %v639_v4 = vld [vmem:[#allocation2 + $0xd0] sm:$0xff] }
 0x1a8   : > { %9539 = vmatmul.mubr.msk.f32.vlgmr.msra.gmra.mrb[128].mxu0 %vm580_vm2, %v11097_v18  ;;  %v9226_v48 = vpop.f32.mrb[24].mxu1  ;;  %1384 = vst.msk [vmem:[#allocation2 + $0x98] sm:$0xff] %vm580_vm2, %v1352_v0  ;;  %v974_v18 = vadd.f32 %v9176_v26, %v638_v1  ;;  %v910_v53 = vpop.f32.mrb[25].mxu0 }
 0x1a9   : > { %9541 = vmatprep.mubr.msk.f32.mxu0 %vm580_vm2, %v11143_v29  ;;  %v1294_v2 = vpop.f32.mrb[25].mxu1  ;;  %1383 = vst.msk [vmem:[#allocation2 + $0x90] sm:$0xff] %vm580_vm2, %v1351_v7  ;;  %v973_v29 = vadd.f32 %v910_v53, %v637_v51  ;;  %v1034_v25 = vld [vmem:[#allocation2 + $0xa8] sm:$0xff] }
 0x1aa   : > { %1006 = vst.msk [vmem:[#allocation2 + $0xc8] sm:$0xff] %vm580_vm2, %v974_v18  ;;  %v1354_v55 = vadd.f32 %v9220_v59, %v1034_v25  ;;  %v1033_v44 = vld [vmem:[#allocation2 + $0xa0] sm:$0xff]  ;;  %v1398_v51 = vld [vmem:[#allocation2 + $0x8] sm:$0xff] }
 0x1ab   : > { %1005 = vst.msk [vmem:[#allocation2 + $0xc0] sm:$0xff] %vm580_vm2, %v973_v29  ;;  %v1353_v62 = vadd.f32 %v1274_v10, %v1033_v44  ;;  %v9179_v35 = vpop.f32.mrb[26].mxu0 }
 0x1ac   : > { %9542 = vmatmul.mubr.msk.f32.gmra.mrb[130].mxu0 %vm580_vm2, %v11155_v3  ;;  %v9229_v24 = vpop.f32.mrb[26].mxu1  ;;  %1386 = vst.msk [vmem:[#allocation2 + $0xa8] sm:$0xff] %vm580_vm2, %v1354_v55  ;;  %v976_v3 = vadd.f32 %v9179_v35, %v640_v46  ;;  %v920_v50 = vpop.f32.mrb[27].mxu0  ;;  %v1400_v55 = vld [vmem:[#allocation2 + $0x18] sm:$0xff] }
 0x1ad   : > { %9544 = vmatprep.mubr.msk.f32.mxu0 %vm580_vm2, %v11162_v17  ;;  %v1304_v16 = vpop.f32.mrb[27].mxu1  ;;  %1385 = vst.msk [vmem:[#allocation2 + $0xa0] sm:$0xff] %vm580_vm2, %v1353_v62  ;;  %v975_v17 = vadd.f32 %v920_v50, %v639_v4  ;;  %v1036_v19 = vld [vmem:[#allocation2 + $0xb8] sm:$0xff]  ;;  %v1399_v62 = vld [vmem:[#allocation2 + $0x10] sm:$0xff] }
 0x1ae   : > { %1008 = vst.msk [vmem:[#allocation2 + $0xd8] sm:$0xff] %vm580_vm2, %v976_v3  ;;  %v1356_v30 = vadd.f32 %v9223_v36, %v1036_v19  ;;  %v1035_v59 = vld [vmem:[#allocation2 + $0xb0] sm:$0xff]  ;;  %v1402_v19 = vld [vmem:[#allocation2 + $0x28] sm:$0xff] }
 0x1af   : > { %1007 = vst.msk [vmem:[#allocation2 + $0xd0] sm:$0xff] %vm580_vm2, %v975_v17  ;;  %v1355_v21 = vadd.f32 %v1284_v41, %v1035_v59  ;;  %v9182_v10 = vpop.f32.mrb[28].mxu0  ;;  %v1401_v59 = vld [vmem:[#allocation2 + $0x20] sm:$0xff] }
 0x1b0   : > { %9545 = vmatmul.mubr.msk.f32.gmra.mrb[132].mxu0 %vm580_vm2, %v11206_v31  ;;  %v9232_v8 = vpop.f32.mrb[28].mxu1  ;;  %1388 = vst.msk [vmem:[#allocation2 + $0xb8] sm:$0xff] %vm580_vm2, %v1356_v30  ;;  %v978_v31 = vadd.f32 %v9182_v10, %v642_v63  ;;  %v930_v37 = vpop.f32.mrb[29].mxu0 }
 0x1b1   : > { %9547 = vmatprep.mubr.msk.f32.mxu0 %vm580_vm2, %v11213_v38  ;;  %v1314_v27 = vpop.f32.mrb[29].mxu1  ;;  %1387 = vst.msk [vmem:[#allocation2 + $0xb0] sm:$0xff] %vm580_vm2, %v1355_v21  ;;  %v977_v38 = vadd.f32 %v930_v37, %v641_v42  ;;  %v1038_v58 = vld [vmem:[#allocation2 + $0xc8] sm:$0xff] }
 0x1b2   : > { %1010 = vst.msk [vmem:[#allocation2 + $0xe8] sm:$0xff] %vm580_vm2, %v978_v31  ;;  %v1358_v57 = vadd.f32 %v9226_v48, %v1038_v58  ;;  %v1037_v13 = vld [vmem:[#allocation2 + $0xc0] sm:$0xff] }
 0x1b3   : > { %1009 = vst.msk [vmem:[#allocation2 + $0xe0] sm:$0xff] %vm580_vm2, %v977_v38  ;;  %v1357_v36 = vadd.f32 %v1294_v2, %v1037_v13  ;;  %v9185_v22 = vpop.f32.mrb[30].mxu0  ;;  %v1397_v48 = vld [vmem:[#allocation2] sm:$0xff] }
 0x1b4   : > { %9548 = vmatmul.mubr.msk.f32.gmra.mrb[134].mxu0 %vm580_vm2, %v11225_v32  ;;  %v9235_v9 = vpop.f32.mrb[30].mxu1  ;;  %1390 = vst.msk [vmem:[#allocation2 + $0xc8] sm:$0xff] %vm580_vm2, %v1358_v57  ;;  %v980_v32 = vadd.f32 %v9185_v22, %v644_v49  ;;  %v940_v41 = vpop.f32.mrb[31].mxu0  ;;  %v1403_v49 = vld [vmem:[#allocation2 + $0x30] sm:$0xff] }
 0x1b5   : > { %9550 = vmatprep.mubr.msk.f32.mxu0 %vm580_vm2, %v11232_v15  ;;  %v1324_v34 = vpop.f32.mrb[31].mxu1  ;;  %1389 = vst.msk [vmem:[#allocation2 + $0xc0] sm:$0xff] %vm580_vm2, %v1357_v36  ;;  %v979_v15 = vadd.f32 %v940_v41, %v643_v28  ;;  %v1040_v20 = vld [vmem:[#allocation2 + $0xd8] sm:$0xff] }
 0x1b6   : > { %1012 = vst.msk [vmem:[#allocation2 + $0xf8] sm:$0xff] %vm580_vm2, %v980_v32  ;;  %v1360_v1 = vadd.f32 %v9229_v24, %v1040_v20  ;;  %v1039_v0 = vld [vmem:[#allocation2 + $0xd0] sm:$0xff]  ;;  %v1406_v32 = vld [vmem:[#allocation2 + $0x48] sm:$0xff] }
 0x1b7   : > { %1011 = vst.msk [vmem:[#allocation2 + $0xf0] sm:$0xff] %vm580_vm2, %v979_v15  ;;  %v1359_v43 = vadd.f32 %v1304_v16, %v1039_v0  ;;  %v9240_v7 = vpop.f32.mrb[32].mxu0  ;;  %v1405_v15 = vld [vmem:[#allocation2 + $0x40] sm:$0xff] }
 0x1b8   : > { %9551 = vmatmul.mubr.msk.f32.gmra.mrb[136].mxu0 %vm580_vm2, %v11244_v14  ;;  %v9290_v26 = vpop.f32.mrb[32].mxu1  ;;  %1392 = vst.msk [vmem:[#allocation2 + $0xd8] sm:$0xff] %vm580_vm2, %v1360_v1  ;;  %v1733_v14 = vadd.f32 %v9240_v7, %v1398_v51  ;;  %v1573_v18 = vpop.f32.mrb[33].mxu0 }
 0x1b9   : > { %9553 = vmatprep.mubr.msk.f32.mxu0 %vm580_vm2, %v11251_v47  ;;  %v1902_v53 = vpop.f32.mrb[33].mxu1  ;;  %1391 = vst.msk [vmem:[#allocation2 + $0xd0] sm:$0xff] %vm580_vm2, %v1359_v43  ;;  %v1732_v47 = vadd.f32 %v1573_v18, %v1397_v48  ;;  %v1042_v2 = vld [vmem:[#allocation2 + $0xe8] sm:$0xff]  ;;  %v1407_v18 = vld [vmem:[#allocation2 + $0x50] sm:$0xff] }
 0x1ba   : > { %1765 = vst.msk [vmem:[#allocation2 + $0x8] sm:$0xff] %vm580_vm2, %v1733_v14  ;;  %v1362_v29 = vadd.f32 %v9232_v8, %v1042_v2  ;;  %v1041_v25 = vld [vmem:[#allocation2 + $0xe0] sm:$0xff] }
 0x1bb   : > { %1764 = vst.msk [vmem:[#allocation2] sm:$0xff] %vm580_vm2, %v1732_v47  ;;  %v1361_v46 = vadd.f32 %v1314_v27, %v1041_v25  ;;  %v9243_v44 = vpop.f32.mrb[34].mxu0  ;;  %v1404_v27 = vld [vmem:[#allocation2 + $0x38] sm:$0xff] }
 0x1bc   : > { %9554 = vmatmul.mubr.msk.f32.gmra.mrb[138].mxu0 %vm580_vm2, %v11263_v23  ;;  %v9293_v4 = vpop.f32.mrb[34].mxu1  ;;  %1394 = vst.msk [vmem:[#allocation2 + $0xe8] sm:$0xff] %vm580_vm2, %v1362_v29  ;;  %v1735_v23 = vadd.f32 %v9243_v44, %v1400_v55  ;;  %v1583_v35 = vpop.f32.mrb[35].mxu0  ;;  %v14631_v29 = vld [vmem:[#allocation50_spill] sm:$0xff]  ;;  %v1410_v44 = vld [vmem:[#allocation2 + $0x68] sm:$0xff] }
 0x1bd   : > { %9556 = vmatprep.mubr.msk.f32.mxu0 %vm580_vm2, %v11270_v54  ;;  %v1912_v24 = vpop.f32.mrb[35].mxu1  ;;  %1393 = vst.msk [vmem:[#allocation2 + $0xe0] sm:$0xff] %vm580_vm2, %v1361_v46  ;;  %v1734_v54 = vadd.f32 %v1583_v35, %v1399_v62  ;;  %v1044_v3 = vld [vmem:[#allocation2 + $0xf8] sm:$0xff]  ;;  %v1409_v62 = vld [vmem:[#allocation2 + $0x60] sm:$0xff] }
 0x1be   : > { %1767 = vst.msk [vmem:[#allocation2 + $0x18] sm:$0xff] %vm580_vm2, %v1735_v23  ;;  %v1364_v50 = vadd.f32 %v9235_v9, %v1044_v3  ;;  %v1043_v16 = vld [vmem:[#allocation2 + $0xf0] sm:$0xff] }
 0x1bf   : > { %1766 = vst.msk [vmem:[#allocation2 + $0x10] sm:$0xff] %vm580_vm2, %v1734_v54  ;;  %v1363_v17 = vadd.f32 %v1324_v34, %v1043_v16  ;;  %v9246_v63 = vpop.f32.mrb[36].mxu0 }
 0x1c0   : > { %9557 = vmatmul.mubr.msk.f32.gmra.mrb[140].mxu0 %vm580_vm2, %v11282_v33  ;;  %v9296_v30 = vpop.f32.mrb[36].mxu1  ;;  %1396 = vst.msk [vmem:[#allocation2 + $0xf8] sm:$0xff] %vm580_vm2, %v1364_v50  ;;  %v1737_v33 = vadd.f32 %v9246_v63, %v1402_v19  ;;  %v1593_v42 = vpop.f32.mrb[37].mxu0  ;;  %v1412_v63 = vld [vmem:[#allocation2 + $0x78] sm:$0xff] }
 0x1c1   : > { %9559 = vmatprep.mubr.msk.f32.mxu0 %vm580_vm2, %v11289_v61  ;;  %v1922_v21 = vpop.f32.mrb[37].mxu1  ;;  %1395 = vst.msk [vmem:[#allocation2 + $0xf0] sm:$0xff] %vm580_vm2, %v1363_v17  ;;  %v1736_v61 = vadd.f32 %v1593_v42, %v1401_v59  ;;  %v1797_v10 = vld [vmem:[#allocation2 + $0x8] sm:$0xff]  ;;  %v1411_v42 = vld [vmem:[#allocation2 + $0x70] sm:$0xff] }
 0x1c2   : > { %1769 = vst.msk [vmem:[#allocation2 + $0x28] sm:$0xff] %vm580_vm2, %v1737_v33  ;;  %v2062_v8 = vadd.f32 %v9290_v26, %v1797_v10  ;;  %v1796_v31 = vld [vmem:[#allocation2] sm:$0xff]  ;;  %v1408_v26 = vld [vmem:[#allocation2 + $0x58] sm:$0xff] }
 0x1c3   : > { %1768 = vst.msk [vmem:[#allocation2 + $0x20] sm:$0xff] %vm580_vm2, %v1736_v61  ;;  %v2061_v37 = vadd.f32 %v1902_v53, %v1796_v31  ;;  %v9249_v38 = vpop.f32.mrb[38].mxu0  ;;  %v14633_v61 = vld [vmem:[#allocation52_spill] sm:$0xff]  ;;  %v14634_v31 = vld [vmem:[#allocation53_spill] sm:$0xff] }
 0x1c4   : > { %9560 = vmatmul.mubr.msk.f32.gmra.mrb[142].mxu0 %vm580_vm2, %v11301_v40  ;;  %v9299_v58 = vpop.f32.mrb[38].mxu1  ;;  %2094 = vst.msk [vmem:[#allocation2 + $0x8] sm:$0xff] %vm580_vm2, %v2062_v8  ;;  %v1739_v40 = vadd.f32 %v9249_v38, %v1404_v27  ;;  %v1603_v57 = vpop.f32.mrb[39].mxu0 }
 0x1c5   : > { %9562 = vmatprep.mubr.msk.f32.mxu0 %vm580_vm2, %v11308_v12  ;;  %v1932_v13 = vpop.f32.mrb[39].mxu1  ;;  %2093 = vst.msk [vmem:[#allocation2] sm:$0xff] %vm580_vm2, %v2061_v37  ;;  %v1738_v12 = vadd.f32 %v1603_v57, %v1403_v49  ;;  %v1799_v28 = vld [vmem:[#allocation2 + $0x18] sm:$0xff] }
 0x1c6   : > { %1771 = vst.msk [vmem:[#allocation2 + $0x38] sm:$0xff] %vm580_vm2, %v1739_v40  ;;  %v2064_v36 = vadd.f32 %v9293_v4, %v1799_v28  ;;  %v1798_v22 = vld [vmem:[#allocation2 + $0x10] sm:$0xff]  ;;  %v14635_v28 = vld [vmem:[#allocation47_spill] sm:$0xff] }
 0x1c7   : > { %1770 = vst.msk [vmem:[#allocation2 + $0x30] sm:$0xff] %vm580_vm2, %v1738_v12  ;;  %v2063_v9 = vadd.f32 %v1912_v24, %v1798_v22  ;;  %v9252_v41 = vpop.f32.mrb[40].mxu0  ;;  %v14632_v24 = vld [vmem:[#allocation51_spill] sm:$0xff] }
 0x1c8   : > { %9563 = vmatmul.mubr.msk.f32.gmra.mrb[144].mxu0 %vm580_vm2, %v11320_v45  ;;  %v9302_v34 = vpop.f32.mrb[40].mxu1  ;;  %2096 = vst.msk [vmem:[#allocation2 + $0x18] sm:$0xff] %vm580_vm2, %v2064_v36  ;;  %v1741_v45 = vadd.f32 %v9252_v41, %v1406_v32  ;;  %v1613_v20 = vpop.f32.mrb[41].mxu0 }
 0x1c9   : > { %9565 = vmatprep.mubr.msk.f32.mxu0 %vm580_vm2, %v11327_v56  ;;  %v1942_v1 = vpop.f32.mrb[41].mxu1  ;;  %2095 = vst.msk [vmem:[#allocation2 + $0x10] sm:$0xff] %vm580_vm2, %v2063_v9  ;;  %v1740_v56 = vadd.f32 %v1613_v20, %v1405_v15  ;;  %v1801_v0 = vld [vmem:[#allocation2 + $0x28] sm:$0xff] }
 0x1ca   : > { %1773 = vst.msk [vmem:[#allocation2 + $0x48] sm:$0xff] %vm580_vm2, %v1741_v45  ;;  %v2066_v43 = vadd.f32 %v9296_v30, %v1801_v0  ;;  %v1800_v51 = vld [vmem:[#allocation2 + $0x20] sm:$0xff]  ;;  %v1416_v45 = vld [vmem:[#allocation2 + $0x98] sm:$0xff] }
 0x1cb   : > { %1772 = vst.msk [vmem:[#allocation2 + $0x40] sm:$0xff] %vm580_vm2, %v1740_v56  ;;  %v2065_v7 = vadd.f32 %v1922_v21, %v1800_v51  ;;  %v1415_v56 = vld [vmem:[#allocation2 + $0x90] sm:$0xff] }
 0x1cc   : > { %9566 = vmatmul.mubr.msk.f32.gmra.mrb[146].mxu0 %vm580_vm2, %v11339_v52  ;;  %v9305_v48 = vpop.f32.mrb[42].mxu1  ;;  %2098 = vst.msk [vmem:[#allocation2 + $0x28] sm:$0xff] %vm580_vm2, %v2066_v43 }
 0x1cd   : > { %9568 = vmatprep.mubr.msk.f32.mxu0 %vm580_vm2, %v14597_v5  ;;  %v1952_v47 = vpop.f32.mrb[43].mxu1  ;;  %2097 = vst.msk [vmem:[#allocation2 + $0x20] sm:$0xff] %vm580_vm2, %v2065_v7  ;;  %v1803_v2 = vld [vmem:[#allocation2 + $0x38] sm:$0xff] }
 0x1ce   : > { %v2068_v25 = vadd.f32 %v9299_v58, %v1803_v2  ;;  %v1802_v46 = vld [vmem:[#allocation2 + $0x30] sm:$0xff]  ;;  %v1414_v58 = vld [vmem:[#allocation2 + $0x88] sm:$0xff] }
 0x1cf   : > { %v9255_v14 = vpop.f32.mrb[42].mxu0  ;;  %v2067_v55 = vadd.f32 %v1932_v13, %v1802_v46  ;;  %v1413_v13 = vld [vmem:[#allocation2 + $0x80] sm:$0xff] }
 0x1d0   : > { %v1743_v52 = vadd.f32 %v9255_v14, %v1408_v26  ;;  %v1623_v53 = vpop.f32.mrb[43].mxu0  ;;  %9569 = vmatmul.mubr.msk.f32.gmra.mrb[148].mxu0 %vm580_vm2, %v14598_v6  ;;  %v9308_v23 = vpop.f32.mrb[44].mxu1  ;;  %2100 = vst.msk [vmem:[#allocation2 + $0x38] sm:$0xff] %vm580_vm2, %v2068_v25 }
 0x1d1   : > { %v1742_v5 = vadd.f32 %v1623_v53, %v1407_v18  ;;  %9571 = vmatprep.mubr.msk.f32.mxu0 %vm580_vm2, %v14631_v29  ;;  %v1962_v54 = vpop.f32.mrb[45].mxu1  ;;  %2099 = vst.msk [vmem:[#allocation2 + $0x30] sm:$0xff] %vm580_vm2, %v2067_v55  ;;  %v1805_v50 = vld [vmem:[#allocation2 + $0x48] sm:$0xff]  ;;  %v1417_v53 = vld [vmem:[#allocation2 + $0xa0] sm:$0xff] }
 0x1d2   : > { %1775 = vst.msk [vmem:[#allocation2 + $0x58] sm:$0xff] %vm580_vm2, %v1743_v52  ;;  %v2070_v16 = vadd.f32 %v9302_v34, %v1805_v50  ;;  %v1804_v17 = vld [vmem:[#allocation2 + $0x40] sm:$0xff] }
 0x1d3   : > { %1774 = vst.msk [vmem:[#allocation2 + $0x50] sm:$0xff] %vm580_vm2, %v1742_v5  ;;  %v9258_v4 = vpop.f32.mrb[44].mxu0  ;;  %v2069_v19 = vadd.f32 %v1942_v1, %v1804_v17 }
 0x1d4   : > { %v1745_v6 = vadd.f32 %v9258_v4, %v1410_v44  ;;  %v1633_v35 = vpop.f32.mrb[45].mxu0  ;;  %9572 = vmatmul.mubr.msk.f32.gmra.mrb[150].mxu0 %vm580_vm2, %v14632_v24  ;;  %v9311_v33 = vpop.f32.mrb[46].mxu1  ;;  %2102 = vst.msk [vmem:[#allocation2 + $0x48] sm:$0xff] %vm580_vm2, %v2070_v16  ;;  %v1420_v44 = vld [vmem:[#allocation2 + $0xb8] sm:$0xff] }
 0x1d5   : > { %v1744_v3 = vadd.f32 %v1633_v35, %v1409_v62  ;;  %9574 = vmatprep.mubr.msk.f32.mxu0 %vm580_vm2, %v11387_v39  ;;  %v1972_v10 = vpop.f32.mrb[47].mxu1  ;;  %2101 = vst.msk [vmem:[#allocation2 + $0x40] sm:$0xff] %vm580_vm2, %v2069_v19  ;;  %v1419_v62 = vld [vmem:[#allocation2 + $0xb0] sm:$0xff]  ;;  %v1422_v19 = vld [vmem:[#allocation2 + $0xc8] sm:$0xff] }
 0x1d6   : > { %1777 = vst.msk [vmem:[#allocation2 + $0x68] sm:$0xff] %vm580_vm2, %v1745_v6 }
 0x1d7   : > { %1776 = vst.msk [vmem:[#allocation2 + $0x60] sm:$0xff] %vm580_vm2, %v1744_v3  ;;  %v9261_v30 = vpop.f32.mrb[46].mxu0 }
 0x1d8   : > { %v1747_v59 = vadd.f32 %v9261_v30, %v1412_v63  ;;  %v1643_v21 = vpop.f32.mrb[47].mxu0  ;;  %9575 = vmatmul.mubr.msk.f32.gmra.mrb[152].mxu0 %vm580_vm2, %v14633_v61  ;;  %v9314_v49 = vpop.f32.mrb[48].mxu1 }
 0x1d9   : > { %v1746_v39 = vadd.f32 %v1643_v21, %v1411_v42  ;;  %v1807_v8 = vld [vmem:[#allocation2 + $0x58] sm:$0xff]  ;;  %9577 = vmatprep.mubr.msk.f32.mxu0 %vm580_vm2, %v14634_v31  ;;  %v1982_v36 = vpop.f32.mrb[49].mxu1 }
 0x1da   : > { %1779 = vst.msk [vmem:[#allocation2 + $0x78] sm:$0xff] %vm580_vm2, %v1747_v59  ;;  %v2072_v37 = vadd.f32 %v9305_v48, %v1807_v8  ;;  %v1806_v27 = vld [vmem:[#allocation2 + $0x50] sm:$0xff]  ;;  %v1418_v48 = vld [vmem:[#allocation2 + $0xa8] sm:$0xff]  ;;  %v1421_v59 = vld [vmem:[#allocation2 + $0xc0] sm:$0xff] }
 0x1db   : > { %1778 = vst.msk [vmem:[#allocation2 + $0x70] sm:$0xff] %vm580_vm2, %v1746_v39  ;;  %v2071_v38 = vadd.f32 %v1952_v47, %v1806_v27  ;;  %v9264_v40 = vpop.f32.mrb[48].mxu0 }
 0x1dc   : > { %2104 = vst.msk [vmem:[#allocation2 + $0x58] sm:$0xff] %vm580_vm2, %v2072_v37  ;;  %v1749_v57 = vadd.f32 %v9264_v40, %v1414_v58  ;;  %v1653_v12 = vpop.f32.mrb[49].mxu0  ;;  %9578 = vmatmul.mubr.msk.f32.gmra.mrb[154].mxu0 %vm580_vm2, %v14635_v28  ;;  %v9317_v20 = vpop.f32.mrb[50].mxu1  ;;  %v1424_v37 = vld [vmem:[#allocation2 + $0xd8] sm:$0xff]  ;;  %v1423_v40 = vld [vmem:[#allocation2 + $0xd0] sm:$0xff] }
 0x1dd   : > { %2103 = vst.msk [vmem:[#allocation2 + $0x50] sm:$0xff] %vm580_vm2, %v2071_v38  ;;  %v1748_v22 = vadd.f32 %v1653_v12, %v1413_v13  ;;  %v1809_v9 = vld [vmem:[#allocation2 + $0x68] sm:$0xff]  ;;  %9580 = vmatprep.mubr.msk.f32.mxu0 %vm580_vm2, %v11569_v11  ;;  %v1992_v43 = vpop.f32.mrb[51].mxu1 }
 0x1de   : > { %1781 = vst.msk [vmem:[#allocation2 + $0x88] sm:$0xff] %vm580_vm2, %v1749_v57  ;;  %v2074_v32 = vadd.f32 %v9308_v23, %v1809_v9  ;;  %v1808_v41 = vld [vmem:[#allocation2 + $0x60] sm:$0xff]  ;;  %v1426_v9 = vld [vmem:[#allocation2 + $0xe8] sm:$0xff] }
 0x1df   : > { %1780 = vst.msk [vmem:[#allocation2 + $0x80] sm:$0xff] %vm580_vm2, %v1748_v22  ;;  %v2073_v34 = vadd.f32 %v1962_v54, %v1808_v41  ;;  %v9267_v15 = vpop.f32.mrb[50].mxu0 }
 0x1e0   : > { %2106 = vst.msk [vmem:[#allocation2 + $0x68] sm:$0xff] %vm580_vm2, %v2074_v32  ;;  %v1751_v1 = vadd.f32 %v9267_v15, %v1416_v45  ;;  %v1663_v0 = vpop.f32.mrb[51].mxu0  ;;  %9581 = vmatmul.mubr.msk.f32.gmra.mrb[156].mxu0 %vm580_vm2, %v11582_v60  ;;  %v9320_v18 = vpop.f32.mrb[52].mxu1  ;;  %v1425_v45 = vld [vmem:[#allocation2 + $0xe0] sm:$0xff] }
 0x1e1   : > { %2105 = vst.msk [vmem:[#allocation2 + $0x60] sm:$0xff] %vm580_vm2, %v2073_v34  ;;  %v1750_v11 = vadd.f32 %v1663_v0, %v1415_v56  ;;  %v1811_v51 = vld [vmem:[#allocation2 + $0x78] sm:$0xff]  ;;  %9583 = vmatprep.mubr.msk.f32.mxu0 %vm580_vm2, %v14634_v31  ;;  %v2002_v5 = vpop.f32.mrb[53].mxu1 }
 0x1e2   : > { %1783 = vst.msk [vmem:[#allocation2 + $0x98] sm:$0xff] %vm580_vm2, %v1751_v1  ;;  %v2076_v7 = vadd.f32 %v9311_v33, %v1811_v51  ;;  %v1810_v26 = vld [vmem:[#allocation2 + $0x70] sm:$0xff]  ;;  %v1428_v51 = vld [vmem:[#allocation2 + $0xf8] sm:$0xff] }
 0x1e3   : > { %1782 = vst.msk [vmem:[#allocation2 + $0x90] sm:$0xff] %vm580_vm2, %v1750_v11  ;;  %v2075_v14 = vadd.f32 %v1972_v10, %v1810_v26  ;;  %v9270_v52 = vpop.f32.mrb[52].mxu0 }
 0x1e4   : > { %2108 = vst.msk [vmem:[#allocation2 + $0x78] sm:$0xff] %vm580_vm2, %v2076_v7  ;;  %v1753_v60 = vadd.f32 %v9270_v52, %v1418_v48  ;;  %v1673_v47 = vpop.f32.mrb[53].mxu0  ;;  %9584 = vmatmul.mubr.msk.f32.gmra.mrb[158].mxu0 %vm580_vm2, %v14635_v28  ;;  %v9323_v23 = vpop.f32.mrb[54].mxu1  ;;  %v1427_v48 = vld [vmem:[#allocation2 + $0xf0] sm:$0xff] }
 0x1e5   : > { %2107 = vst.msk [vmem:[#allocation2 + $0x70] sm:$0xff] %vm580_vm2, %v2075_v14  ;;  %v1752_v2 = vadd.f32 %v1673_v47, %v1417_v53  ;;  %v1813_v29 = vld [vmem:[#allocation2 + $0x88] sm:$0xff]  ;;  %v2012_v24 = vpop.f32.mrb[55].mxu1 }
 0x1e6   : > { %1785 = vst.msk [vmem:[#allocation2 + $0xa8] sm:$0xff] %vm580_vm2, %v1753_v60  ;;  %v2078_v25 = vadd.f32 %v9314_v49, %v1813_v29  ;;  %v1812_v46 = vld [vmem:[#allocation2 + $0x80] sm:$0xff]  ;;  %v2126_v29 = vld [vmem:[#allocation2 + $0x8] sm:$0xff] }
 0x1e7   : > { %1784 = vst.msk [vmem:[#allocation2 + $0xa0] sm:$0xff] %vm580_vm2, %v1752_v2  ;;  %v2077_v55 = vadd.f32 %v1982_v36, %v1812_v46  ;;  %v9273_v4 = vpop.f32.mrb[54].mxu0 }
 0x1e8   : > { %2110 = vst.msk [vmem:[#allocation2 + $0x88] sm:$0xff] %vm580_vm2, %v2078_v25  ;;  %v1755_v6 = vadd.f32 %v9273_v4, %v1420_v44  ;;  %v1683_v35 = vpop.f32.mrb[55].mxu0  ;;  %v2125_v44 = vld [vmem:[#allocation2] sm:$0xff] }
 0x1e9   : > { %2109 = vst.msk [vmem:[#allocation2 + $0x80] sm:$0xff] %vm580_vm2, %v2077_v55  ;;  %v1754_v54 = vadd.f32 %v1683_v35, %v1419_v62  ;;  %v1815_v3 = vld [vmem:[#allocation2 + $0x98] sm:$0xff]  ;;  %v9326_v30 = vpop.f32.mrb[56].mxu1 }
 0x1ea   : > { %1787 = vst.msk [vmem:[#allocation2 + $0xb8] sm:$0xff] %vm580_vm2, %v1755_v6  ;;  %v2080_v50 = vadd.f32 %v9317_v20, %v1815_v3  ;;  %v1814_v16 = vld [vmem:[#allocation2 + $0x90] sm:$0xff]  ;;  %v2022_v21 = vpop.f32.mrb[57].mxu1  ;;  %v2128_v3 = vld [vmem:[#allocation2 + $0x18] sm:$0xff] }
 0x1eb   : > { %1786 = vst.msk [vmem:[#allocation2 + $0xb0] sm:$0xff] %vm580_vm2, %v1754_v54  ;;  %v2079_v17 = vadd.f32 %v1992_v43, %v1814_v16  ;;  %v9276_v63 = vpop.f32.mrb[56].mxu0 }
 0x1ec   : > { %2112 = vst.msk [vmem:[#allocation2 + $0x98] sm:$0xff] %vm580_vm2, %v2080_v50  ;;  %v1757_v33 = vadd.f32 %v9276_v63, %v1422_v19  ;;  %v1693_v42 = vpop.f32.mrb[57].mxu0  ;;  %v2127_v19 = vld [vmem:[#allocation2 + $0x10] sm:$0xff] }
 0x1ed   : > { %2111 = vst.msk [vmem:[#allocation2 + $0x90] sm:$0xff] %vm580_vm2, %v2079_v17  ;;  %v1756_v61 = vadd.f32 %v1693_v42, %v1421_v59  ;;  %v1817_v10 = vld [vmem:[#allocation2 + $0xa8] sm:$0xff]  ;;  %v9329_v38 = vpop.f32.mrb[58].mxu1 }
 0x1ee   : > { %1789 = vst.msk [vmem:[#allocation2 + $0xc8] sm:$0xff] %vm580_vm2, %v1757_v33  ;;  %v2082_v39 = vadd.f32 %v9320_v18, %v1817_v10  ;;  %v1816_v8 = vld [vmem:[#allocation2 + $0xa0] sm:$0xff]  ;;  %v2032_v57 = vpop.f32.mrb[59].mxu1  ;;  %v2130_v10 = vld [vmem:[#allocation2 + $0x28] sm:$0xff] }
 0x1ef   : > { %1788 = vst.msk [vmem:[#allocation2 + $0xc0] sm:$0xff] %vm580_vm2, %v1756_v61  ;;  %v2081_v31 = vadd.f32 %v2002_v5, %v1816_v8  ;;  %v9279_v27 = vpop.f32.mrb[58].mxu0 }
 0x1f0   : > { %2114 = vst.msk [vmem:[#allocation2 + $0xa8] sm:$0xff] %vm580_vm2, %v2082_v39  ;;  %v1759_v58 = vadd.f32 %v9279_v27, %v1424_v37  ;;  %v1703_v49 = vpop.f32.mrb[59].mxu0  ;;  %v2129_v37 = vld [vmem:[#allocation2 + $0x20] sm:$0xff] }
 0x1f1   : > { %2113 = vst.msk [vmem:[#allocation2 + $0xa0] sm:$0xff] %vm580_vm2, %v2081_v31  ;;  %v1758_v13 = vadd.f32 %v1703_v49, %v1423_v40  ;;  %v1819_v12 = vld [vmem:[#allocation2 + $0xb8] sm:$0xff]  ;;  %v9332_v41 = vpop.f32.mrb[60].mxu1 }
 0x1f2   : > { %1791 = vst.msk [vmem:[#allocation2 + $0xd8] sm:$0xff] %vm580_vm2, %v1759_v58  ;;  %v2084_v28 = vadd.f32 %v9323_v23, %v1819_v12  ;;  %v1818_v36 = vld [vmem:[#allocation2 + $0xb0] sm:$0xff]  ;;  %v2042_v20 = vpop.f32.mrb[61].mxu1  ;;  %v2132_v12 = vld [vmem:[#allocation2 + $0x38] sm:$0xff] }
 0x1f3   : > { %1790 = vst.msk [vmem:[#allocation2 + $0xd0] sm:$0xff] %vm580_vm2, %v1758_v13  ;;  %v2083_v22 = vadd.f32 %v2012_v24, %v1818_v36  ;;  %v9282_v32 = vpop.f32.mrb[60].mxu0 }
 0x1f4   : > { %2116 = vst.msk [vmem:[#allocation2 + $0xb8] sm:$0xff] %vm580_vm2, %v2084_v28  ;;  %v1761_v34 = vadd.f32 %v9282_v32, %v1426_v9  ;;  %v1713_v15 = vpop.f32.mrb[61].mxu0  ;;  %v2131_v9 = vld [vmem:[#allocation2 + $0x30] sm:$0xff] }
 0x1f5   : > { %2115 = vst.msk [vmem:[#allocation2 + $0xb0] sm:$0xff] %vm580_vm2, %v2083_v22  ;;  %v1760_v1 = vadd.f32 %v1713_v15, %v1425_v45  ;;  %v1821_v56 = vld [vmem:[#allocation2 + $0xc8] sm:$0xff]  ;;  %v9335_v26 = vpop.f32.mrb[62].mxu1 }
 0x1f6   : > { %1793 = vst.msk [vmem:[#allocation2 + $0xe8] sm:$0xff] %vm580_vm2, %v1761_v34  ;;  %v2086_v0 = vadd.f32 %v9326_v30, %v1821_v56  ;;  %v1820_v43 = vld [vmem:[#allocation2 + $0xc0] sm:$0xff]  ;;  %v2052_v18 = vpop.f32.mrb[63].mxu1  ;;  %v2134_v56 = vld [vmem:[#allocation2 + $0x48] sm:$0xff] }
 0x1f7   : > { %1792 = vst.msk [vmem:[#allocation2 + $0xe0] sm:$0xff] %vm580_vm2, %v1760_v1  ;;  %v2085_v11 = vadd.f32 %v2022_v21, %v1820_v43  ;;  %v9285_v7 = vpop.f32.mrb[62].mxu0 }
 0x1f8   : > { %2118 = vst.msk [vmem:[#allocation2 + $0xc8] sm:$0xff] %vm580_vm2, %v2086_v0  ;;  %v1763_v14 = vadd.f32 %v9285_v7, %v1428_v51  ;;  %v1723_v52 = vpop.f32.mrb[63].mxu0  ;;  %v2133_v51 = vld [vmem:[#allocation2 + $0x40] sm:$0xff] }
 0x1f9   : > { %2117 = vst.msk [vmem:[#allocation2 + $0xc0] sm:$0xff] %vm580_vm2, %v2085_v11  ;;  %v1762_v60 = vadd.f32 %v1723_v52, %v1427_v48  ;;  %v1823_v53 = vld [vmem:[#allocation2 + $0xd8] sm:$0xff]  ;;  %v9390_v46 = vpop.f32.mrb[64].mxu1 }
 0x1fa   : > { %1795 = vst.msk [vmem:[#allocation2 + $0xf8] sm:$0xff] %vm580_vm2, %v1763_v14  ;;  %v2088_v47 = vadd.f32 %v9329_v38, %v1823_v53  ;;  %v1822_v5 = vld [vmem:[#allocation2 + $0xd0] sm:$0xff]  ;;  %v2559_v23 = vpop.f32.mrb[65].mxu1  ;;  %v2136_v53 = vld [vmem:[#allocation2 + $0x58] sm:$0xff] }
 0x1fb   : > { %1794 = vst.msk [vmem:[#allocation2 + $0xf0] sm:$0xff] %vm580_vm2, %v1762_v60  ;;  %v2087_v2 = vadd.f32 %v2032_v57, %v1822_v5  ;;  %v9340_v25 = vpop.f32.mrb[64].mxu0 }
 0x1fc   : > { %2120 = vst.msk [vmem:[#allocation2 + $0xd8] sm:$0xff] %vm580_vm2, %v2088_v47  ;;  %v2390_v55 = vadd.f32 %v9340_v25, %v2126_v29  ;;  %v2230_v4 = vpop.f32.mrb[65].mxu0  ;;  %v2135_v29 = vld [vmem:[#allocation2 + $0x50] sm:$0xff] }
 0x1fd   : > { %2119 = vst.msk [vmem:[#allocation2 + $0xd0] sm:$0xff] %vm580_vm2, %v2087_v2  ;;  %v2389_v6 = vadd.f32 %v2230_v4, %v2125_v44  ;;  %v1825_v62 = vld [vmem:[#allocation2 + $0xe8] sm:$0xff]  ;;  %v9393_v16 = vpop.f32.mrb[66].mxu1 }
 0x1fe   : > { %2422 = vst.msk [vmem:[#allocation2 + $0x8] sm:$0xff] %vm580_vm2, %v2390_v55  ;;  %v2090_v35 = vadd.f32 %v9332_v41, %v1825_v62  ;;  %v1824_v24 = vld [vmem:[#allocation2 + $0xe0] sm:$0xff]  ;;  %v2569_v30 = vpop.f32.mrb[67].mxu1  ;;  %v2138_v62 = vld [vmem:[#allocation2 + $0x68] sm:$0xff] }
 0x1ff   : > { %2421 = vst.msk [vmem:[#allocation2] sm:$0xff] %vm580_vm2, %v2389_v6  ;;  %v2089_v54 = vadd.f32 %v2042_v20, %v1824_v24  ;;  %v9343_v50 = vpop.f32.mrb[66].mxu0 }
 0x200   : > { %2122 = vst.msk [vmem:[#allocation2 + $0xe8] sm:$0xff] %vm580_vm2, %v2090_v35  ;;  %v2392_v17 = vadd.f32 %v9343_v50, %v2128_v3  ;;  %v2240_v63 = vpop.f32.mrb[67].mxu0  ;;  %v2137_v3 = vld [vmem:[#allocation2 + $0x60] sm:$0xff] }
 0x201   : > { %2121 = vst.msk [vmem:[#allocation2 + $0xe0] sm:$0xff] %vm580_vm2, %v2089_v54  ;;  %v2391_v33 = vadd.f32 %v2240_v63, %v2127_v19  ;;  %v1827_v59 = vld [vmem:[#allocation2 + $0xf8] sm:$0xff]  ;;  %v9396_v8 = vpop.f32.mrb[68].mxu1 }
 0x202   : > { %2424 = vst.msk [vmem:[#allocation2 + $0x18] sm:$0xff] %vm580_vm2, %v2392_v17  ;;  %v2092_v42 = vadd.f32 %v9335_v26, %v1827_v59  ;;  %v1826_v21 = vld [vmem:[#allocation2 + $0xf0] sm:$0xff]  ;;  %v2579_v38 = vpop.f32.mrb[69].mxu1  ;;  %v2140_v59 = vld [vmem:[#allocation2 + $0x78] sm:$0xff] }
 0x203   : > { %2423 = vst.msk [vmem:[#allocation2 + $0x10] sm:$0xff] %vm580_vm2, %v2391_v33  ;;  %v2091_v61 = vadd.f32 %v2052_v18, %v1826_v21  ;;  %v9346_v39 = vpop.f32.mrb[68].mxu0 }
 0x204   : > { %2124 = vst.msk [vmem:[#allocation2 + $0xf8] sm:$0xff] %vm580_vm2, %v2092_v42  ;;  %v2394_v31 = vadd.f32 %v9346_v39, %v2130_v10  ;;  %v2250_v27 = vpop.f32.mrb[69].mxu0  ;;  %v2139_v10 = vld [vmem:[#allocation2 + $0x70] sm:$0xff] }
 0x205   : > { %2123 = vst.msk [vmem:[#allocation2 + $0xf0] sm:$0xff] %vm580_vm2, %v2091_v61  ;;  %v2393_v58 = vadd.f32 %v2250_v27, %v2129_v37  ;;  %v2454_v40 = vld [vmem:[#allocation2 + $0x8] sm:$0xff]  ;;  %v9399_v36 = vpop.f32.mrb[70].mxu1 }
 0x206   : > { %2426 = vst.msk [vmem:[#allocation2 + $0x28] sm:$0xff] %vm580_vm2, %v2394_v31  ;;  %v2719_v49 = vadd.f32 %v9390_v46, %v2454_v40  ;;  %v2453_v57 = vld [vmem:[#allocation2] sm:$0xff]  ;;  %v2589_v41 = vpop.f32.mrb[71].mxu1  ;;  %v2142_v40 = vld [vmem:[#allocation2 + $0x88] sm:$0xff] }
 0x207   : > { %2425 = vst.msk [vmem:[#allocation2 + $0x20] sm:$0xff] %vm580_vm2, %v2393_v58  ;;  %v2718_v13 = vadd.f32 %v2559_v23, %v2453_v57  ;;  %v9349_v28 = vpop.f32.mrb[70].mxu0 }
 0x208   : > { %2751 = vst.msk [vmem:[#allocation2 + $0x8] sm:$0xff] %vm580_vm2, %v2719_v49  ;;  %v2396_v22 = vadd.f32 %v9349_v28, %v2132_v12  ;;  %v2260_v32 = vpop.f32.mrb[71].mxu0  ;;  %v2141_v12 = vld [vmem:[#allocation2 + $0x80] sm:$0xff] }
 0x209   : > { %2750 = vst.msk [vmem:[#allocation2] sm:$0xff] %vm580_vm2, %v2718_v13  ;;  %v2395_v34 = vadd.f32 %v2260_v32, %v2131_v9  ;;  %v2456_v45 = vld [vmem:[#allocation2 + $0x18] sm:$0xff]  ;;  %v9402_v43 = vpop.f32.mrb[72].mxu1 }
 0x20a   : > { %2428 = vst.msk [vmem:[#allocation2 + $0x38] sm:$0xff] %vm580_vm2, %v2396_v22  ;;  %v2721_v15 = vadd.f32 %v9393_v16, %v2456_v45  ;;  %v2455_v20 = vld [vmem:[#allocation2 + $0x10] sm:$0xff]  ;;  %v2599_v26 = vpop.f32.mrb[73].mxu1  ;;  %v2144_v45 = vld [vmem:[#allocation2 + $0x98] sm:$0xff] }
 0x20b   : > { %2427 = vst.msk [vmem:[#allocation2 + $0x30] sm:$0xff] %vm580_vm2, %v2395_v34  ;;  %v2720_v1 = vadd.f32 %v2569_v30, %v2455_v20  ;;  %v9352_v0 = vpop.f32.mrb[72].mxu0 }
 0x20c   : > { %2753 = vst.msk [vmem:[#allocation2 + $0x18] sm:$0xff] %vm580_vm2, %v2721_v15  ;;  %v2398_v11 = vadd.f32 %v9352_v0, %v2134_v56  ;;  %v2270_v7 = vpop.f32.mrb[73].mxu0  ;;  %v2143_v56 = vld [vmem:[#allocation2 + $0x90] sm:$0xff] }
 0x20d   : > { %2752 = vst.msk [vmem:[#allocation2 + $0x10] sm:$0xff] %vm580_vm2, %v2720_v1  ;;  %v2397_v14 = vadd.f32 %v2270_v7, %v2133_v51  ;;  %v2458_v48 = vld [vmem:[#allocation2 + $0x28] sm:$0xff]  ;;  %v9405_v5 = vpop.f32.mrb[74].mxu1 }
 0x20e   : > { %2430 = vst.msk [vmem:[#allocation2 + $0x48] sm:$0xff] %vm580_vm2, %v2398_v11  ;;  %v2723_v52 = vadd.f32 %v9396_v8, %v2458_v48  ;;  %v2457_v18 = vld [vmem:[#allocation2 + $0x20] sm:$0xff]  ;;  %v2609_v46 = vpop.f32.mrb[75].mxu1  ;;  %v2146_v48 = vld [vmem:[#allocation2 + $0xa8] sm:$0xff] }
 0x20f   : > { %2429 = vst.msk [vmem:[#allocation2 + $0x40] sm:$0xff] %vm580_vm2, %v2397_v14  ;;  %v2722_v60 = vadd.f32 %v2579_v38, %v2457_v18  ;;  %v9355_v47 = vpop.f32.mrb[74].mxu0 }
 0x210   : > { %2755 = vst.msk [vmem:[#allocation2 + $0x28] sm:$0xff] %vm580_vm2, %v2723_v52  ;;  %v2400_v2 = vadd.f32 %v9355_v47, %v2136_v53  ;;  %v2280_v25 = vpop.f32.mrb[75].mxu0  ;;  %v2145_v53 = vld [vmem:[#allocation2 + $0xa0] sm:$0xff] }
 0x211   : > { %2754 = vst.msk [vmem:[#allocation2 + $0x20] sm:$0xff] %vm580_vm2, %v2722_v60  ;;  %v2399_v55 = vadd.f32 %v2280_v25, %v2135_v29  ;;  %v2460_v44 = vld [vmem:[#allocation2 + $0x38] sm:$0xff]  ;;  %v9408_v24 = vpop.f32.mrb[76].mxu1 }
 0x212   : > { %2432 = vst.msk [vmem:[#allocation2 + $0x58] sm:$0xff] %vm580_vm2, %v2400_v2  ;;  %v2725_v4 = vadd.f32 %v9399_v36, %v2460_v44  ;;  %v2459_v23 = vld [vmem:[#allocation2 + $0x30] sm:$0xff]  ;;  %v2619_v16 = vpop.f32.mrb[77].mxu1  ;;  %v2148_v44 = vld [vmem:[#allocation2 + $0xb8] sm:$0xff] }
 0x213   : > { %2431 = vst.msk [vmem:[#allocation2 + $0x50] sm:$0xff] %vm580_vm2, %v2399_v55  ;;  %v2724_v6 = vadd.f32 %v2589_v41, %v2459_v23  ;;  %v9358_v35 = vpop.f32.mrb[76].mxu0 }
 0x214   : > { %2757 = vst.msk [vmem:[#allocation2 + $0x38] sm:$0xff] %vm580_vm2, %v2725_v4  ;;  %v2402_v54 = vadd.f32 %v9358_v35, %v2138_v62  ;;  %v2290_v50 = vpop.f32.mrb[77].mxu0  ;;  %v2147_v62 = vld [vmem:[#allocation2 + $0xb0] sm:$0xff] }
 0x215   : > { %2756 = vst.msk [vmem:[#allocation2 + $0x30] sm:$0xff] %vm580_vm2, %v2724_v6  ;;  %v2401_v17 = vadd.f32 %v2290_v50, %v2137_v3  ;;  %v2462_v19 = vld [vmem:[#allocation2 + $0x48] sm:$0xff]  ;;  %v9411_v21 = vpop.f32.mrb[78].mxu1 }
 0x216   : > { %2434 = vst.msk [vmem:[#allocation2 + $0x68] sm:$0xff] %vm580_vm2, %v2402_v54  ;;  %v2727_v63 = vadd.f32 %v9402_v43, %v2462_v19  ;;  %v2461_v30 = vld [vmem:[#allocation2 + $0x40] sm:$0xff]  ;;  %v2629_v8 = vpop.f32.mrb[79].mxu1  ;;  %v2150_v19 = vld [vmem:[#allocation2 + $0xc8] sm:$0xff] }
 0x217   : > { %2433 = vst.msk [vmem:[#allocation2 + $0x60] sm:$0xff] %vm580_vm2, %v2401_v17  ;;  %v2726_v33 = vadd.f32 %v2599_v26, %v2461_v30  ;;  %v9361_v42 = vpop.f32.mrb[78].mxu0 }
 0x218   : > { %2759 = vst.msk [vmem:[#allocation2 + $0x48] sm:$0xff] %vm580_vm2, %v2727_v63  ;;  %v2404_v61 = vadd.f32 %v9361_v42, %v2140_v59  ;;  %v2300_v39 = vpop.f32.mrb[79].mxu0  ;;  %v2149_v59 = vld [vmem:[#allocation2 + $0xc0] sm:$0xff] }
 0x219   : > { %2758 = vst.msk [vmem:[#allocation2 + $0x40] sm:$0xff] %vm580_vm2, %v2726_v33  ;;  %v2403_v31 = vadd.f32 %v2300_v39, %v2139_v10  ;;  %v2464_v37 = vld [vmem:[#allocation2 + $0x58] sm:$0xff]  ;;  %v9414_v57 = vpop.f32.mrb[80].mxu1 }
 0x21a   : > { %2436 = vst.msk [vmem:[#allocation2 + $0x78] sm:$0xff] %vm580_vm2, %v2404_v61  ;;  %v2729_v27 = vadd.f32 %v9405_v5, %v2464_v37  ;;  %v2463_v38 = vld [vmem:[#allocation2 + $0x50] sm:$0xff]  ;;  %v2639_v36 = vpop.f32.mrb[81].mxu1  ;;  %v2152_v37 = vld [vmem:[#allocation2 + $0xd8] sm:$0xff] }
 0x21b   : > { %2435 = vst.msk [vmem:[#allocation2 + $0x70] sm:$0xff] %vm580_vm2, %v2403_v31  ;;  %v2728_v58 = vadd.f32 %v2609_v46, %v2463_v38  ;;  %v9364_v49 = vpop.f32.mrb[80].mxu0 }
 0x21c   : > { %2761 = vst.msk [vmem:[#allocation2 + $0x58] sm:$0xff] %vm580_vm2, %v2729_v27  ;;  %v2406_v13 = vadd.f32 %v9364_v49, %v2142_v40  ;;  %v2310_v28 = vpop.f32.mrb[81].mxu0  ;;  %v2151_v40 = vld [vmem:[#allocation2 + $0xd0] sm:$0xff] }
 0x21d   : > { %2760 = vst.msk [vmem:[#allocation2 + $0x50] sm:$0xff] %vm580_vm2, %v2728_v58  ;;  %v2405_v22 = vadd.f32 %v2310_v28, %v2141_v12  ;;  %v2466_v9 = vld [vmem:[#allocation2 + $0x68] sm:$0xff]  ;;  %v9417_v20 = vpop.f32.mrb[82].mxu1 }
 0x21e   : > { %2438 = vst.msk [vmem:[#allocation2 + $0x88] sm:$0xff] %vm580_vm2, %v2406_v13  ;;  %v2731_v32 = vadd.f32 %v9408_v24, %v2466_v9  ;;  %v2465_v41 = vld [vmem:[#allocation2 + $0x60] sm:$0xff]  ;;  %v2649_v43 = vpop.f32.mrb[83].mxu1  ;;  %v2154_v9 = vld [vmem:[#allocation2 + $0xe8] sm:$0xff] }
 0x21f   : > { %2437 = vst.msk [vmem:[#allocation2 + $0x80] sm:$0xff] %vm580_vm2, %v2405_v22  ;;  %v2730_v34 = vadd.f32 %v2619_v16, %v2465_v41  ;;  %v9367_v15 = vpop.f32.mrb[82].mxu0 }
 0x220   : > { %2763 = vst.msk [vmem:[#allocation2 + $0x68] sm:$0xff] %vm580_vm2, %v2731_v32  ;;  %v2408_v1 = vadd.f32 %v9367_v15, %v2144_v45  ;;  %v2320_v0 = vpop.f32.mrb[83].mxu0  ;;  %v2153_v45 = vld [vmem:[#allocation2 + $0xe0] sm:$0xff] }
 0x221   : > { %2762 = vst.msk [vmem:[#allocation2 + $0x60] sm:$0xff] %vm580_vm2, %v2730_v34  ;;  %v2407_v11 = vadd.f32 %v2320_v0, %v2143_v56  ;;  %v2468_v51 = vld [vmem:[#allocation2 + $0x78] sm:$0xff]  ;;  %v9420_v18 = vpop.f32.mrb[84].mxu1 }
 0x222   : > { %2440 = vst.msk [vmem:[#allocation2 + $0x98] sm:$0xff] %vm580_vm2, %v2408_v1  ;;  %v2733_v7 = vadd.f32 %v9411_v21, %v2468_v51  ;;  %v2467_v26 = vld [vmem:[#allocation2 + $0x70] sm:$0xff]  ;;  %v2659_v5 = vpop.f32.mrb[85].mxu1  ;;  %v2156_v51 = vld [vmem:[#allocation2 + $0xf8] sm:$0xff] }
 0x223   : > { %2439 = vst.msk [vmem:[#allocation2 + $0x90] sm:$0xff] %vm580_vm2, %v2407_v11  ;;  %v2732_v14 = vadd.f32 %v2629_v8, %v2467_v26  ;;  %v9370_v52 = vpop.f32.mrb[84].mxu0 }
 0x224   : > { %2765 = vst.msk [vmem:[#allocation2 + $0x78] sm:$0xff] %vm580_vm2, %v2733_v7  ;;  %v2410_v60 = vadd.f32 %v9370_v52, %v2146_v48  ;;  %v2330_v47 = vpop.f32.mrb[85].mxu0  ;;  %v2155_v48 = vld [vmem:[#allocation2 + $0xf0] sm:$0xff] }
 0x225   : > { %2764 = vst.msk [vmem:[#allocation2 + $0x70] sm:$0xff] %vm580_vm2, %v2732_v14  ;;  %v2409_v2 = vadd.f32 %v2330_v47, %v2145_v53  ;;  %v2470_v29 = vld [vmem:[#allocation2 + $0x88] sm:$0xff]  ;;  %v9423_v23 = vpop.f32.mrb[86].mxu1 }
 0x226   : > { %2442 = vst.msk [vmem:[#allocation2 + $0xa8] sm:$0xff] %vm580_vm2, %v2410_v60  ;;  %v2735_v25 = vadd.f32 %v9414_v57, %v2470_v29  ;;  %v2469_v46 = vld [vmem:[#allocation2 + $0x80] sm:$0xff]  ;;  %v2669_v24 = vpop.f32.mrb[87].mxu1 }
 0x227   : > { %2441 = vst.msk [vmem:[#allocation2 + $0xa0] sm:$0xff] %vm580_vm2, %v2409_v2  ;;  %v2734_v55 = vadd.f32 %v2639_v36, %v2469_v46  ;;  %v9373_v4 = vpop.f32.mrb[86].mxu0  ;;  %v338_v47 = vld [vmem:[#allocation9] sm:$0xf] }
 0x228   : > { %2767 = vst.msk [vmem:[#allocation2 + $0x88] sm:$0xff] %vm580_vm2, %v2735_v25  ;;  %v2412_v6 = vadd.f32 %v9373_v4, %v2148_v44  ;;  %v2340_v35 = vpop.f32.mrb[87].mxu0  ;;  %9586 = vmatprep.subr.msk.mxu1 %vm720_vm0, %v338_v47  ;;  %v2783_v25 = vld [vmem:[#allocation2 + $0x8] sm:$0xff]  ;;  %v2782_v4 = vld [vmem:[#allocation2] sm:$0xff] }
 0x229   : > { %2766 = vst.msk [vmem:[#allocation2 + $0x80] sm:$0xff] %vm580_vm2, %v2734_v55  ;;  %v2411_v54 = vadd.f32 %v2340_v35, %v2147_v62  ;;  %v2472_v3 = vld [vmem:[#allocation2 + $0x98] sm:$0xff]  ;;  %v9426_v30 = vpop.f32.mrb[88].mxu1  ;;  %9587 = vmatpush3.msk.msra.mxu1 %vm720_vm0, %v338_v47 }
 0x22a   : > { %2444 = vst.msk [vmem:[#allocation2 + $0xb8] sm:$0xff] %vm580_vm2, %v2412_v6  ;;  %v2737_v50 = vadd.f32 %v9417_v20, %v2472_v3  ;;  %v2471_v16 = vld [vmem:[#allocation2 + $0x90] sm:$0xff]  ;;  %v2679_v21 = vpop.f32.mrb[89].mxu1 }
 0x22b   : > { %2443 = vst.msk [vmem:[#allocation2 + $0xb0] sm:$0xff] %vm580_vm2, %v2411_v54  ;;  %v2736_v17 = vadd.f32 %v2649_v43, %v2471_v16  ;;  %v9376_v63 = vpop.f32.mrb[88].mxu0 }
 0x22c   : > { %2769 = vst.msk [vmem:[#allocation2 + $0x98] sm:$0xff] %vm580_vm2, %v2737_v50  ;;  %v2414_v33 = vadd.f32 %v9376_v63, %v2150_v19  ;;  %v2350_v42 = vpop.f32.mrb[89].mxu0  ;;  %v2785_v50 = vld [vmem:[#allocation2 + $0x18] sm:$0xff]  ;;  %v2784_v63 = vld [vmem:[#allocation2 + $0x10] sm:$0xff] }
 0x22d   : > { %2768 = vst.msk [vmem:[#allocation2 + $0x90] sm:$0xff] %vm580_vm2, %v2736_v17  ;;  %v2413_v61 = vadd.f32 %v2350_v42, %v2149_v59  ;;  %v2474_v10 = vld [vmem:[#allocation2 + $0xa8] sm:$0xff]  ;;  %v9429_v38 = vpop.f32.mrb[90].mxu1 }
 0x22e   : > { %2446 = vst.msk [vmem:[#allocation2 + $0xc8] sm:$0xff] %vm580_vm2, %v2414_v33  ;;  %v2739_v39 = vadd.f32 %v9420_v18, %v2474_v10  ;;  %v2473_v8 = vld [vmem:[#allocation2 + $0xa0] sm:$0xff]  ;;  %v2689_v57 = vpop.f32.mrb[91].mxu1 }
 0x22f   : > { %2445 = vst.msk [vmem:[#allocation2 + $0xc0] sm:$0xff] %vm580_vm2, %v2413_v61  ;;  %v2738_v31 = vadd.f32 %v2659_v5, %v2473_v8  ;;  %v9379_v27 = vpop.f32.mrb[90].mxu0 }
 0x230   : > { %2771 = vst.msk [vmem:[#allocation2 + $0xa8] sm:$0xff] %vm580_vm2, %v2739_v39  ;;  %v2416_v58 = vadd.f32 %v9379_v27, %v2152_v37  ;;  %v2360_v49 = vpop.f32.mrb[91].mxu0  ;;  %v2787_v39 = vld [vmem:[#allocation2 + $0x28] sm:$0xff]  ;;  %v2786_v27 = vld [vmem:[#allocation2 + $0x20] sm:$0xff] }
 0x231   : > { %2770 = vst.msk [vmem:[#allocation2 + $0xa0] sm:$0xff] %vm580_vm2, %v2738_v31  ;;  %v2415_v13 = vadd.f32 %v2360_v49, %v2151_v40  ;;  %v2476_v12 = vld [vmem:[#allocation2 + $0xb8] sm:$0xff]  ;;  %v9432_v41 = vpop.f32.mrb[92].mxu1 }
 0x232   : > { %2448 = vst.msk [vmem:[#allocation2 + $0xd8] sm:$0xff] %vm580_vm2, %v2416_v58  ;;  %v2741_v28 = vadd.f32 %v9423_v23, %v2476_v12  ;;  %v2475_v36 = vld [vmem:[#allocation2 + $0xb0] sm:$0xff]  ;;  %v2699_v20 = vpop.f32.mrb[93].mxu1 }
 0x233   : > { %2447 = vst.msk [vmem:[#allocation2 + $0xd0] sm:$0xff] %vm580_vm2, %v2415_v13  ;;  %v2740_v22 = vadd.f32 %v2669_v24, %v2475_v36  ;;  %v9382_v32 = vpop.f32.mrb[92].mxu0  ;;  %v2789_v36 = vld [vmem:[#allocation2 + $0x38] sm:$0xff] }
 0x234   : > { %2773 = vst.msk [vmem:[#allocation2 + $0xb8] sm:$0xff] %vm580_vm2, %v2741_v28  ;;  %v2418_v34 = vadd.f32 %v9382_v32, %v2154_v9  ;;  %v2370_v15 = vpop.f32.mrb[93].mxu0 }
 0x235   : > { %2772 = vst.msk [vmem:[#allocation2 + $0xb0] sm:$0xff] %vm580_vm2, %v2740_v22  ;;  %v2417_v1 = vadd.f32 %v2370_v15, %v2153_v45  ;;  %v2478_v56 = vld [vmem:[#allocation2 + $0xc8] sm:$0xff]  ;;  %v9435_v26 = vpop.f32.mrb[94].mxu1 }
 0x236   : > { %2450 = vst.msk [vmem:[#allocation2 + $0xe8] sm:$0xff] %vm580_vm2, %v2418_v34  ;;  %v2743_v0 = vadd.f32 %v9426_v30, %v2478_v56  ;;  %v2477_v43 = vld [vmem:[#allocation2 + $0xc0] sm:$0xff]  ;;  %v2709_v18 = vpop.f32.mrb[95].mxu1 }
 0x237   : > { %2449 = vst.msk [vmem:[#allocation2 + $0xe0] sm:$0xff] %vm580_vm2, %v2417_v1  ;;  %v2742_v11 = vadd.f32 %v2679_v21, %v2477_v43  ;;  %v9385_v7 = vpop.f32.mrb[94].mxu0  ;;  %v2791_v43 = vld [vmem:[#allocation2 + $0x48] sm:$0xff] }
 0x238   : > { %2775 = vst.msk [vmem:[#allocation2 + $0xc8] sm:$0xff] %vm580_vm2, %v2743_v0  ;;  %v2420_v14 = vadd.f32 %v9385_v7, %v2156_v51  ;;  %v2380_v52 = vpop.f32.mrb[95].mxu0 }
 0x239   : > { %2774 = vst.msk [vmem:[#allocation2 + $0xc0] sm:$0xff] %vm580_vm2, %v2742_v11  ;;  %v2419_v60 = vadd.f32 %v2380_v52, %v2155_v48  ;;  %v2480_v53 = vld [vmem:[#allocation2 + $0xd8] sm:$0xff]  ;;  %v9490_v55 = vpop.f32.mrb[96].mxu1 }
 0x23a   : > { %2452 = vst.msk [vmem:[#allocation2 + $0xf8] sm:$0xff] %vm580_vm2, %v2420_v14  ;;  %v2745_v5 = vadd.f32 %v9429_v38, %v2480_v53  ;;  %v2479_v2 = vld [vmem:[#allocation2 + $0xd0] sm:$0xff]  ;;  %v3207_v6 = vpop.f32.mrb[97].mxu1 }
 0x23b   : > { %2451 = vst.msk [vmem:[#allocation2 + $0xf0] sm:$0xff] %vm580_vm2, %v2419_v60  ;;  %v2744_v29 = vadd.f32 %v2689_v57, %v2479_v2  ;;  %v9440_v46 = vpop.f32.mrb[96].mxu0  ;;  %v339_v57 = vld [vmem:[#allocation9 + $0x4] sm:$0xf] }
 0x23c   : > { %2777 = vst.msk [vmem:[#allocation2 + $0xd8] sm:$0xff] %vm580_vm2, %v2745_v5  ;;  %v3043_v44 = vadd.f32 %v9440_v46, %v2783_v25  ;;  %v2883_v23 = vpop.f32.mrb[97].mxu0  ;;  %9636 = vmatprep.subr.msk.mxu0 %vm720_vm0, %v339_v57  ;;  %v2793_v5 = vld [vmem:[#allocation2 + $0x58] sm:$0xff]  ;;  %v2792_v46 = vld [vmem:[#allocation2 + $0x50] sm:$0xff] }
 0x23d   : > { %2776 = vst.msk [vmem:[#allocation2 + $0xd0] sm:$0xff] %vm580_vm2, %v2744_v29  ;;  %v3042_v62 = vadd.f32 %v2883_v23, %v2782_v4  ;;  %v2482_v35 = vld [vmem:[#allocation2 + $0xe8] sm:$0xff]  ;;  %v9493_v17 = vpop.f32.mrb[98].mxu1  ;;  %9637 = vmatpush3.msk.msra.mxu0 %vm720_vm0, %v339_v57 }
 0x23e   : > { %3075 = vst.msk [vmem:[#allocation2 + $0x8] sm:$0xff] %vm580_vm2, %v3043_v44  ;;  %v2747_v24 = vadd.f32 %v9432_v41, %v2482_v35  ;;  %v2481_v54 = vld [vmem:[#allocation2 + $0xe0] sm:$0xff]  ;;  %v3217_v33 = vpop.f32.mrb[99].mxu1  ;;  %v2788_v41 = vld [vmem:[#allocation2 + $0x30] sm:$0xff]  ;;  %v2799_v57 = vld [vmem:[#allocation2 + $0x88] sm:$0xff] }
 0x23f   : > { %3074 = vst.msk [vmem:[#allocation2] sm:$0xff] %vm580_vm2, %v3042_v62  ;;  %v2746_v3 = vadd.f32 %v2699_v20, %v2481_v54  ;;  %v9443_v16 = vpop.f32.mrb[98].mxu0 }
 0x240   : > { %2779 = vst.msk [vmem:[#allocation2 + $0xe8] sm:$0xff] %vm580_vm2, %v2747_v24  ;;  %v3045_v19 = vadd.f32 %v9443_v16, %v2785_v50  ;;  %v2893_v30 = vpop.f32.mrb[99].mxu0  ;;  %v2795_v24 = vld [vmem:[#allocation2 + $0x68] sm:$0xff]  ;;  %v2794_v16 = vld [vmem:[#allocation2 + $0x60] sm:$0xff] }
 0x241   : > { %2778 = vst.msk [vmem:[#allocation2 + $0xe0] sm:$0xff] %vm580_vm2, %v2746_v3  ;;  %v3044_v59 = vadd.f32 %v2893_v30, %v2784_v63  ;;  %v2484_v42 = vld [vmem:[#allocation2 + $0xf8] sm:$0xff]  ;;  %v9496_v31 = vpop.f32.mrb[100].mxu1 }
 0x242   : > { %3077 = vst.msk [vmem:[#allocation2 + $0x18] sm:$0xff] %vm580_vm2, %v3045_v19  ;;  %v2749_v21 = vadd.f32 %v9435_v26, %v2484_v42  ;;  %v2483_v61 = vld [vmem:[#allocation2 + $0xf0] sm:$0xff]  ;;  %v3227_v58 = vpop.f32.mrb[101].mxu1  ;;  %v2790_v26 = vld [vmem:[#allocation2 + $0x40] sm:$0xff] }
 0x243   : > { %3076 = vst.msk [vmem:[#allocation2 + $0x10] sm:$0xff] %vm580_vm2, %v3044_v59  ;;  %v2748_v10 = vadd.f32 %v2709_v18, %v2483_v61  ;;  %v9446_v8 = vpop.f32.mrb[100].mxu0 }
 0x244   : > { %2781 = vst.msk [vmem:[#allocation2 + $0xf8] sm:$0xff] %vm580_vm2, %v2749_v21  ;;  %v3047_v37 = vadd.f32 %v9446_v8, %v2787_v39  ;;  %v2903_v38 = vpop.f32.mrb[101].mxu0  ;;  %v2797_v21 = vld [vmem:[#allocation2 + $0x78] sm:$0xff]  ;;  %v2796_v8 = vld [vmem:[#allocation2 + $0x70] sm:$0xff] }
 0x245   : > { %2780 = vst.msk [vmem:[#allocation2 + $0xf0] sm:$0xff] %vm580_vm2, %v2748_v10  ;;  %v3046_v40 = vadd.f32 %v2903_v38, %v2786_v27  ;;  %v3107_v49 = vld [vmem:[#allocation2 + $0x8] sm:$0xff]  ;;  %v9499_v9 = vpop.f32.mrb[102].mxu1 }
 0x246   : > { %3079 = vst.msk [vmem:[#allocation2 + $0x28] sm:$0xff] %vm580_vm2, %v3047_v37  ;;  %v3367_v13 = vadd.f32 %v9490_v55, %v3107_v49  ;;  %v3106_v12 = vld [vmem:[#allocation2] sm:$0xff]  ;;  %v3237_v45 = vpop.f32.mrb[103].mxu1 }
 0x247   : > { %3078 = vst.msk [vmem:[#allocation2 + $0x20] sm:$0xff] %vm580_vm2, %v3046_v40  ;;  %v3366_v28 = vadd.f32 %v3207_v6, %v3106_v12  ;;  %v9449_v22 = vpop.f32.mrb[102].mxu0 }
 0x248   : > { %3399 = vst.msk [vmem:[#allocation2 + $0x8] sm:$0xff] %vm580_vm2, %v3367_v13  ;;  %v3049_v32 = vadd.f32 %v9449_v22, %v2789_v36  ;;  %v2913_v34 = vpop.f32.mrb[103].mxu0  ;;  %v2798_v36 = vld [vmem:[#allocation2 + $0x80] sm:$0xff] }
 0x249   : > { %3398 = vst.msk [vmem:[#allocation2] sm:$0xff] %vm580_vm2, %v3366_v28  ;;  %v3048_v15 = vadd.f32 %v2913_v34, %v2788_v41  ;;  %v3109_v20 = vld [vmem:[#allocation2 + $0x18] sm:$0xff]  ;;  %v9502_v51 = vpop.f32.mrb[104].mxu1 }
 0x24a   : > { %3081 = vst.msk [vmem:[#allocation2 + $0x38] sm:$0xff] %vm580_vm2, %v3049_v32  ;;  %v3369_v1 = vadd.f32 %v9493_v17, %v3109_v20  ;;  %v3108_v56 = vld [vmem:[#allocation2 + $0x10] sm:$0xff]  ;;  %v3247_v48 = vpop.f32.mrb[105].mxu1  ;;  %v2801_v20 = vld [vmem:[#allocation2 + $0x98] sm:$0xff] }
 0x24b   : > { %3080 = vst.msk [vmem:[#allocation2 + $0x30] sm:$0xff] %vm580_vm2, %v3048_v15  ;;  %v3368_v0 = vadd.f32 %v3217_v33, %v3108_v56  ;;  %v9452_v11 = vpop.f32.mrb[104].mxu0 }
 0x24c   : > { %3401 = vst.msk [vmem:[#allocation2 + $0x18] sm:$0xff] %vm580_vm2, %v3369_v1  ;;  %v3051_v7 = vadd.f32 %v9452_v11, %v2791_v43  ;;  %v2923_v14 = vpop.f32.mrb[105].mxu0  ;;  %v2800_v43 = vld [vmem:[#allocation2 + $0x90] sm:$0xff] }
 0x24d   : > { %3400 = vst.msk [vmem:[#allocation2 + $0x10] sm:$0xff] %vm580_vm2, %v3368_v0  ;;  %v3050_v52 = vadd.f32 %v2923_v14, %v2790_v26  ;;  %v3111_v18 = vld [vmem:[#allocation2 + $0x28] sm:$0xff]  ;;  %v9505_v29 = vpop.f32.mrb[106].mxu1 }
 0x24e   : > { %3083 = vst.msk [vmem:[#allocation2 + $0x48] sm:$0xff] %vm580_vm2, %v3051_v7  ;;  %v3371_v60 = vadd.f32 %v9496_v31, %v3111_v18  ;;  %v3110_v53 = vld [vmem:[#allocation2 + $0x20] sm:$0xff]  ;;  %v3257_v44 = vpop.f32.mrb[107].mxu1  ;;  %v2803_v18 = vld [vmem:[#allocation2 + $0xa8] sm:$0xff] }
 0x24f   : > { %3082 = vst.msk [vmem:[#allocation2 + $0x40] sm:$0xff] %vm580_vm2, %v3050_v52  ;;  %v3370_v47 = vadd.f32 %v3227_v58, %v3110_v53  ;;  %v9455_v2 = vpop.f32.mrb[106].mxu0 }
 0x250   : > { %3403 = vst.msk [vmem:[#allocation2 + $0x28] sm:$0xff] %vm580_vm2, %v3371_v60  ;;  %v3053_v25 = vadd.f32 %v9455_v2, %v2793_v5  ;;  %v2933_v55 = vpop.f32.mrb[107].mxu0  ;;  %v2802_v5 = vld [vmem:[#allocation2 + $0xa0] sm:$0xff] }
 0x251   : > { %3402 = vst.msk [vmem:[#allocation2 + $0x20] sm:$0xff] %vm580_vm2, %v3370_v47  ;;  %v3052_v4 = vadd.f32 %v2933_v55, %v2792_v46  ;;  %v3113_v23 = vld [vmem:[#allocation2 + $0x38] sm:$0xff]  ;;  %v9508_v3 = vpop.f32.mrb[108].mxu1 }
 0x252   : > { %3085 = vst.msk [vmem:[#allocation2 + $0x58] sm:$0xff] %vm580_vm2, %v3053_v25  ;;  %v3373_v6 = vadd.f32 %v9499_v9, %v3113_v23  ;;  %v3112_v62 = vld [vmem:[#allocation2 + $0x30] sm:$0xff]  ;;  %v3267_v19 = vpop.f32.mrb[109].mxu1  ;;  %v2805_v23 = vld [vmem:[#allocation2 + $0xb8] sm:$0xff] }
 0x253   : > { %3084 = vst.msk [vmem:[#allocation2 + $0x50] sm:$0xff] %vm580_vm2, %v3052_v4  ;;  %v3372_v35 = vadd.f32 %v3237_v45, %v3112_v62  ;;  %v9458_v54 = vpop.f32.mrb[108].mxu0 }
 0x254   : > { %3405 = vst.msk [vmem:[#allocation2 + $0x38] sm:$0xff] %vm580_vm2, %v3373_v6  ;;  %v3055_v50 = vadd.f32 %v9458_v54, %v2795_v24  ;;  %v2943_v17 = vpop.f32.mrb[109].mxu0  ;;  %v2804_v24 = vld [vmem:[#allocation2 + $0xb0] sm:$0xff] }
 0x255   : > { %3404 = vst.msk [vmem:[#allocation2 + $0x30] sm:$0xff] %vm580_vm2, %v3372_v35  ;;  %v3054_v63 = vadd.f32 %v2943_v17, %v2794_v16  ;;  %v3115_v30 = vld [vmem:[#allocation2 + $0x48] sm:$0xff]  ;;  %v9511_v10 = vpop.f32.mrb[110].mxu1 }
 0x256   : > { %3087 = vst.msk [vmem:[#allocation2 + $0x68] sm:$0xff] %vm580_vm2, %v3055_v50  ;;  %v3375_v33 = vadd.f32 %v9502_v51, %v3115_v30  ;;  %v3114_v59 = vld [vmem:[#allocation2 + $0x40] sm:$0xff]  ;;  %v3277_v37 = vpop.f32.mrb[111].mxu1  ;;  %v2807_v30 = vld [vmem:[#allocation2 + $0xc8] sm:$0xff] }
 0x257   : > { %3086 = vst.msk [vmem:[#allocation2 + $0x60] sm:$0xff] %vm580_vm2, %v3054_v63  ;;  %v3374_v42 = vadd.f32 %v3247_v48, %v3114_v59  ;;  %v9461_v61 = vpop.f32.mrb[110].mxu0 }
 0x258   : > { %3407 = vst.msk [vmem:[#allocation2 + $0x48] sm:$0xff] %vm580_vm2, %v3375_v33  ;;  %v3057_v39 = vadd.f32 %v9461_v61, %v2797_v21  ;;  %v2953_v31 = vpop.f32.mrb[111].mxu0  ;;  %v2806_v21 = vld [vmem:[#allocation2 + $0xc0] sm:$0xff] }
 0x259   : > { %3406 = vst.msk [vmem:[#allocation2 + $0x40] sm:$0xff] %vm580_vm2, %v3374_v42  ;;  %v3056_v27 = vadd.f32 %v2953_v31, %v2796_v8  ;;  %v3117_v38 = vld [vmem:[#allocation2 + $0x58] sm:$0xff]  ;;  %v9514_v12 = vpop.f32.mrb[112].mxu1 }
 0x25a   : > { %3089 = vst.msk [vmem:[#allocation2 + $0x78] sm:$0xff] %vm580_vm2, %v3057_v39  ;;  %v3377_v58 = vadd.f32 %v9505_v29, %v3117_v38  ;;  %v3116_v40 = vld [vmem:[#allocation2 + $0x50] sm:$0xff]  ;;  %v3287_v9 = vpop.f32.mrb[113].mxu1 }
 0x25b   : > { %3088 = vst.msk [vmem:[#allocation2 + $0x70] sm:$0xff] %vm580_vm2, %v3056_v27  ;;  %v3376_v49 = vadd.f32 %v3257_v44, %v3116_v40  ;;  %v9464_v13 = vpop.f32.mrb[112].mxu0  ;;  %v12023_v27 = vld [vmem:[#allocation9 + $0x8] sm:$0xf] }
 0x25c   : > { %3409 = vst.msk [vmem:[#allocation2 + $0x58] sm:$0xff] %vm580_vm2, %v3377_v58  ;;  %v3059_v28 = vadd.f32 %v9464_v13, %v2799_v57  ;;  %v2963_v22 = vpop.f32.mrb[113].mxu0  ;;  %v2809_v58 = vld [vmem:[#allocation2 + $0xd8] sm:$0xff]  ;;  %9686 = vmatprep.subr.msk.mxu1 %vm720_vm0, %v12023_v27  ;;  %v2808_v13 = vld [vmem:[#allocation2 + $0xd0] sm:$0xff] }
 0x25d   : > { %3408 = vst.msk [vmem:[#allocation2 + $0x50] sm:$0xff] %vm580_vm2, %v3376_v49  ;;  %v3058_v32 = vadd.f32 %v2963_v22, %v2798_v36  ;;  %v3119_v41 = vld [vmem:[#allocation2 + $0x68] sm:$0xff]  ;;  %v9517_v56 = vpop.f32.mrb[114].mxu1 }
 0x25e   : > { %3091 = vst.msk [vmem:[#allocation2 + $0x88] sm:$0xff] %vm580_vm2, %v3059_v28  ;;  %v3379_v34 = vadd.f32 %v9508_v3, %v3119_v41  ;;  %v3118_v45 = vld [vmem:[#allocation2 + $0x60] sm:$0xff]  ;;  %v3297_v51 = vpop.f32.mrb[115].mxu1 }
 0x25f   : > { %3090 = vst.msk [vmem:[#allocation2 + $0x80] sm:$0xff] %vm580_vm2, %v3058_v32  ;;  %v3378_v15 = vadd.f32 %v3267_v19, %v3118_v45  ;;  %v9467_v1 = vpop.f32.mrb[114].mxu0 }
 0x260   : > { %3411 = vst.msk [vmem:[#allocation2 + $0x68] sm:$0xff] %vm580_vm2, %v3379_v34  ;;  %v3061_v0 = vadd.f32 %v9467_v1, %v2801_v20  ;;  %v2973_v11 = vpop.f32.mrb[115].mxu0  ;;  %v2811_v34 = vld [vmem:[#allocation2 + $0xe8] sm:$0xff]  ;;  %v2810_v1 = vld [vmem:[#allocation2 + $0xe0] sm:$0xff] }
 0x261   : > { %3410 = vst.msk [vmem:[#allocation2 + $0x60] sm:$0xff] %vm580_vm2, %v3378_v15  ;;  %v3060_v7 = vadd.f32 %v2973_v11, %v2800_v43  ;;  %v3121_v26 = vld [vmem:[#allocation2 + $0x78] sm:$0xff]  ;;  %v9520_v53 = vpop.f32.mrb[116].mxu1 }
 0x262   : > { %3093 = vst.msk [vmem:[#allocation2 + $0x98] sm:$0xff] %vm580_vm2, %v3061_v0  ;;  %v3381_v14 = vadd.f32 %v9511_v10, %v3121_v26  ;;  %v3120_v48 = vld [vmem:[#allocation2 + $0x70] sm:$0xff]  ;;  %v3307_v29 = vpop.f32.mrb[117].mxu1 }
 0x263   : > { %3092 = vst.msk [vmem:[#allocation2 + $0x90] sm:$0xff] %vm580_vm2, %v3060_v7  ;;  %v3380_v52 = vadd.f32 %v3277_v37, %v3120_v48  ;;  %v9470_v60 = vpop.f32.mrb[116].mxu0 }
 0x264   : > { %3413 = vst.msk [vmem:[#allocation2 + $0x78] sm:$0xff] %vm580_vm2, %v3381_v14  ;;  %v3063_v47 = vadd.f32 %v9470_v60, %v2803_v18  ;;  %v2983_v2 = vpop.f32.mrb[117].mxu0  ;;  %v2813_v14 = vld [vmem:[#allocation2 + $0xf8] sm:$0xff]  ;;  %v2812_v60 = vld [vmem:[#allocation2 + $0xf0] sm:$0xff] }
 0x265   : > { %3412 = vst.msk [vmem:[#allocation2 + $0x70] sm:$0xff] %vm580_vm2, %v3380_v52  ;;  %v3062_v25 = vadd.f32 %v2983_v2, %v2802_v5  ;;  %v3123_v46 = vld [vmem:[#allocation2 + $0x88] sm:$0xff]  ;;  %v9523_v62 = vpop.f32.mrb[118].mxu1 }
 0x266   : > { %3095 = vst.msk [vmem:[#allocation2 + $0xa8] sm:$0xff] %vm580_vm2, %v3063_v47  ;;  %v3383_v55 = vadd.f32 %v9514_v12, %v3123_v46  ;;  %v3122_v44 = vld [vmem:[#allocation2 + $0x80] sm:$0xff]  ;;  %v3317_v3 = vpop.f32.mrb[119].mxu1 }
 0x267   : > { %3094 = vst.msk [vmem:[#allocation2 + $0xa0] sm:$0xff] %vm580_vm2, %v3062_v25  ;;  %v3382_v4 = vadd.f32 %v3287_v9, %v3122_v44  ;;  %v9473_v6 = vpop.f32.mrb[118].mxu0 }
 0x268   : > { %3415 = vst.msk [vmem:[#allocation2 + $0x88] sm:$0xff] %vm580_vm2, %v3383_v55  ;;  %v3065_v35 = vadd.f32 %v9473_v6, %v2805_v23  ;;  %v2993_v54 = vpop.f32.mrb[119].mxu0  ;;  %v3431_v55 = vld [vmem:[#allocation2 + $0x8] sm:$0xff]  ;;  %v3430_v23 = vld [vmem:[#allocation2] sm:$0xff] }
 0x269   : > { %3414 = vst.msk [vmem:[#allocation2 + $0x80] sm:$0xff] %vm580_vm2, %v3382_v4  ;;  %v3064_v50 = vadd.f32 %v2993_v54, %v2804_v24  ;;  %v3125_v16 = vld [vmem:[#allocation2 + $0x98] sm:$0xff]  ;;  %v9526_v59 = vpop.f32.mrb[120].mxu1 }
 0x26a   : > { %3097 = vst.msk [vmem:[#allocation2 + $0xb8] sm:$0xff] %vm580_vm2, %v3065_v35  ;;  %v3385_v17 = vadd.f32 %v9517_v56, %v3125_v16  ;;  %v3124_v19 = vld [vmem:[#allocation2 + $0x90] sm:$0xff]  ;;  %v3327_v10 = vpop.f32.mrb[121].mxu1 }
 0x26b   : > { %3096 = vst.msk [vmem:[#allocation2 + $0xb0] sm:$0xff] %vm580_vm2, %v3064_v50  ;;  %v3384_v63 = vadd.f32 %v3297_v51, %v3124_v19  ;;  %v9476_v33 = vpop.f32.mrb[120].mxu0  ;;  %v3433_v50 = vld [vmem:[#allocation2 + $0x18] sm:$0xff]  ;;  %v3432_v19 = vld [vmem:[#allocation2 + $0x10] sm:$0xff] }
 0x26c   : > { %3417 = vst.msk [vmem:[#allocation2 + $0x98] sm:$0xff] %vm580_vm2, %v3385_v17  ;;  %v3067_v42 = vadd.f32 %v9476_v33, %v2807_v30  ;;  %v3003_v61 = vpop.f32.mrb[121].mxu0 }
 0x26d   : > { %3416 = vst.msk [vmem:[#allocation2 + $0x90] sm:$0xff] %vm580_vm2, %v3384_v63  ;;  %v3066_v39 = vadd.f32 %v3003_v61, %v2806_v21  ;;  %v3127_v8 = vld [vmem:[#allocation2 + $0xa8] sm:$0xff]  ;;  %v9529_v49 = vpop.f32.mrb[122].mxu1 }
 0x26e   : > { %3099 = vst.msk [vmem:[#allocation2 + $0xc8] sm:$0xff] %vm580_vm2, %v3067_v42  ;;  %v3387_v31 = vadd.f32 %v9520_v53, %v3127_v8  ;;  %v3126_v37 = vld [vmem:[#allocation2 + $0xa0] sm:$0xff]  ;;  %v3337_v28 = vpop.f32.mrb[123].mxu1  ;;  %v3435_v61 = vld [vmem:[#allocation2 + $0x28] sm:$0xff] }
 0x26f   : > { %3098 = vst.msk [vmem:[#allocation2 + $0xc0] sm:$0xff] %vm580_vm2, %v3066_v39  ;;  %v3386_v38 = vadd.f32 %v3307_v29, %v3126_v37  ;;  %v9479_v40 = vpop.f32.mrb[122].mxu0  ;;  %v3434_v8 = vld [vmem:[#allocation2 + $0x20] sm:$0xff] }
 0x270   : > { %3419 = vst.msk [vmem:[#allocation2 + $0xa8] sm:$0xff] %vm580_vm2, %v3387_v31  ;;  %v3069_v57 = vadd.f32 %v9479_v40, %v2809_v58  ;;  %v3013_v12 = vpop.f32.mrb[123].mxu0 }
 0x271   : > { %3418 = vst.msk [vmem:[#allocation2 + $0xa0] sm:$0xff] %vm580_vm2, %v3386_v38  ;;  %v3068_v36 = vadd.f32 %v3013_v12, %v2808_v13  ;;  %v3129_v22 = vld [vmem:[#allocation2 + $0xb8] sm:$0xff]  ;;  %v9532_v15 = vpop.f32.mrb[124].mxu1 }
 0x272   : > { %3101 = vst.msk [vmem:[#allocation2 + $0xd8] sm:$0xff] %vm580_vm2, %v3069_v57  ;;  %v3389_v9 = vadd.f32 %v9523_v62, %v3129_v22  ;;  %v3128_v32 = vld [vmem:[#allocation2 + $0xb0] sm:$0xff]  ;;  %v3347_v0 = vpop.f32.mrb[125].mxu1 }
 0x273   : > { %3100 = vst.msk [vmem:[#allocation2 + $0xd0] sm:$0xff] %vm580_vm2, %v3068_v36  ;;  %v3388_v41 = vadd.f32 %v3317_v3, %v3128_v32  ;;  %v9482_v45 = vpop.f32.mrb[124].mxu0  ;;  %v3436_v22 = vld [vmem:[#allocation2 + $0x30] sm:$0xff] }
 0x274   : > { %3421 = vst.msk [vmem:[#allocation2 + $0xb8] sm:$0xff] %vm580_vm2, %v3389_v9  ;;  %v3071_v20 = vadd.f32 %v9482_v45, %v2811_v34  ;;  %v3023_v56 = vpop.f32.mrb[125].mxu0 }
 0x275   : > { %3420 = vst.msk [vmem:[#allocation2 + $0xb0] sm:$0xff] %vm580_vm2, %v3388_v41  ;;  %v3070_v43 = vadd.f32 %v3023_v56, %v2810_v1  ;;  %v3131_v11 = vld [vmem:[#allocation2 + $0xc8] sm:$0xff]  ;;  %v9535_v52 = vpop.f32.mrb[126].mxu1 }
 0x276   : > { %3103 = vst.msk [vmem:[#allocation2 + $0xe8] sm:$0xff] %vm580_vm2, %v3071_v20  ;;  %v3391_v51 = vadd.f32 %v9526_v59, %v3131_v11  ;;  %v3130_v7 = vld [vmem:[#allocation2 + $0xc0] sm:$0xff]  ;;  %v3357_v47 = vpop.f32.mrb[127].mxu1  ;;  %v3439_v1 = vld [vmem:[#allocation2 + $0x48] sm:$0xff] }
 0x277   : > { %3102 = vst.msk [vmem:[#allocation2 + $0xe0] sm:$0xff] %vm580_vm2, %v3070_v43  ;;  %v3390_v26 = vadd.f32 %v3327_v10, %v3130_v7  ;;  %v9485_v48 = vpop.f32.mrb[126].mxu0  ;;  %v3438_v7 = vld [vmem:[#allocation2 + $0x40] sm:$0xff] }
 0x278   : > { %3423 = vst.msk [vmem:[#allocation2 + $0xc8] sm:$0xff] %vm580_vm2, %v3391_v51  ;;  %v3073_v18 = vadd.f32 %v9485_v48, %v2813_v14  ;;  %v3033_v53 = vpop.f32.mrb[127].mxu0 }
 0x279   : > { %3422 = vst.msk [vmem:[#allocation2 + $0xc0] sm:$0xff] %vm580_vm2, %v3390_v26  ;;  %v3072_v5 = vadd.f32 %v3033_v53, %v2812_v60  ;;  %v3133_v2 = vld [vmem:[#allocation2 + $0xd8] sm:$0xff] }
 0x27a   : > { %3105 = vst.msk [vmem:[#allocation2 + $0xf8] sm:$0xff] %vm580_vm2, %v3073_v18  ;;  %v3393_v29 = vadd.f32 %v9529_v49, %v3133_v2  ;;  %v3132_v25 = vld [vmem:[#allocation2 + $0xd0] sm:$0xff]  ;;  %v3437_v49 = vld [vmem:[#allocation2 + $0x38] sm:$0xff] }
 0x27b   : > { %3104 = vst.msk [vmem:[#allocation2 + $0xf0] sm:$0xff] %vm580_vm2, %v3072_v5  ;;  %v3392_v46 = vadd.f32 %v3337_v28, %v3132_v25  ;;  %v9540_v44 = vpop.f32.mrb[128].mxu0 }
 0x27c   : > { %3425 = vst.msk [vmem:[#allocation2 + $0xd8] sm:$0xff] %vm580_vm2, %v3393_v29  ;;  %v3691_v4 = vadd.f32 %v9540_v44, %v3431_v55  ;;  %v3531_v6 = vpop.f32.mrb[129].mxu0  ;;  %v3441_v29 = vld [vmem:[#allocation2 + $0x58] sm:$0xff] }
 0x27d   : > { %3424 = vst.msk [vmem:[#allocation2 + $0xd0] sm:$0xff] %vm580_vm2, %v3392_v46  ;;  %v3690_v62 = vadd.f32 %v3531_v6, %v3430_v23  ;;  %v3135_v35 = vld [vmem:[#allocation2 + $0xe8] sm:$0xff]  ;;  %v3440_v6 = vld [vmem:[#allocation2 + $0x50] sm:$0xff] }
 0x27e   : > { %3723 = vst.msk [vmem:[#allocation2 + $0x8] sm:$0xff] %vm580_vm2, %v3691_v4  ;;  %v3395_v24 = vadd.f32 %v9532_v15, %v3135_v35  ;;  %v3134_v54 = vld [vmem:[#allocation2 + $0xe0] sm:$0xff] }
 0x27f   : > { %3722 = vst.msk [vmem:[#allocation2] sm:$0xff] %vm580_vm2, %v3690_v62  ;;  %v3394_v3 = vadd.f32 %v3347_v0, %v3134_v54  ;;  %v9543_v16 = vpop.f32.mrb[130].mxu0 }
 0x280   : > { %3427 = vst.msk [vmem:[#allocation2 + $0xe8] sm:$0xff] %vm580_vm2, %v3395_v24  ;;  %v3693_v17 = vadd.f32 %v9543_v16, %v3433_v50  ;;  %v3541_v63 = vpop.f32.mrb[131].mxu0 }
 0x281   : > { %3426 = vst.msk [vmem:[#allocation2 + $0xe0] sm:$0xff] %vm580_vm2, %v3394_v3  ;;  %v3692_v30 = vadd.f32 %v3541_v63, %v3432_v19  ;;  %v3137_v33 = vld [vmem:[#allocation2 + $0xf8] sm:$0xff] }
 0x282   : > { %3725 = vst.msk [vmem:[#allocation2 + $0x18] sm:$0xff] %vm580_vm2, %v3693_v17  ;;  %v3397_v59 = vadd.f32 %v9535_v52, %v3137_v33  ;;  %v3136_v42 = vld [vmem:[#allocation2 + $0xf0] sm:$0xff]  ;;  %v3443_v33 = vld [vmem:[#allocation2 + $0x68] sm:$0xff] }
 0x283   : > { %3724 = vst.msk [vmem:[#allocation2 + $0x10] sm:$0xff] %vm580_vm2, %v3692_v30  ;;  %v3396_v21 = vadd.f32 %v3357_v47, %v3136_v42  ;;  %v9546_v10 = vpop.f32.mrb[132].mxu0 }
 0x284   : > { %3429 = vst.msk [vmem:[#allocation2 + $0xf8] sm:$0xff] %vm580_vm2, %v3397_v59  ;;  %v3695_v39 = vadd.f32 %v9546_v10, %v3435_v61  ;;  %v3551_v31 = vpop.f32.mrb[133].mxu0 }
 0x285   : > { %3428 = vst.msk [vmem:[#allocation2 + $0xf0] sm:$0xff] %vm580_vm2, %v3396_v21  ;;  %v3694_v37 = vadd.f32 %v3551_v31, %v3434_v8  ;;  %v12050_v38 = vld [vmem:[#allocation2 + $0x8] sm:$0xff] }
 0x286   : > { %3727 = vst.msk [vmem:[#allocation2 + $0x28] sm:$0xff] %vm580_vm2, %v3695_v39  ;;  %v12053_v58 = vld [vmem:[#allocation2] sm:$0xff]  ;;  %v3857_v40 = vmul.f32 %v12050_v38, %v12050_v38  ;;  %v3787_v12 = vsel %vm580_vm2, %v12050_v38, 0.0 }
 0x287   : > { %3726 = vst.msk [vmem:[#allocation2 + $0x20] sm:$0xff] %vm580_vm2, %v3694_v37  ;;  %v9549_v57 = vpop.f32.mrb[134].mxu0  ;;  %v3786_v13 = vsel %vm580_vm2, %v12053_v58, 0.0  ;;  %v3856_v28 = vmul.f32 %v12053_v58, %v12053_v58  ;;  %v3442_v39 = vld [vmem:[#allocation2 + $0x60] sm:$0xff] }
 0x288   : > { %v3697_v36 = vadd.f32 %v9549_v57, %v3437_v49  ;;  %v3561_v9 = vpop.f32.mrb[135].mxu0  ;;  %v3889_v45 = vsel %vm580_vm2, %v3857_v40, 0.0  ;;  %v3788_v20 = vadd.f32 %v3787_v12, %v3786_v13 }
 0x289   : > { %v3696_v32 = vadd.f32 %v3561_v9, %v3436_v22  ;;  %v12064_v41 = vld [vmem:[#allocation2 + $0x18] sm:$0xff]  ;;  %v3888_v34 = vsel %vm580_vm2, %v3856_v28, 0.0 }
 0x28a   : > { %3729 = vst.msk [vmem:[#allocation2 + $0x38] sm:$0xff] %vm580_vm2, %v3697_v36  ;;  %v12069_v15 = vld [vmem:[#allocation2 + $0x10] sm:$0xff]  ;;  %v3859_v11 = vmul.f32 %v12064_v41, %v12064_v41  ;;  %v3890_v48 = vadd.f32 %v3889_v45, %v3888_v34  ;;  %v3791_v60 = vsel %vm580_vm2, %v12064_v41, 0.0 }
 0x28b   : > { %3728 = vst.msk [vmem:[#allocation2 + $0x30] sm:$0xff] %vm580_vm2, %v3696_v32  ;;  %v9552_v56 = vpop.f32.mrb[136].mxu0  ;;  %v3789_v0 = vsel %vm580_vm2, %v12069_v15, 0.0  ;;  %v3858_v43 = vmul.f32 %v12069_v15, %v12069_v15  ;;  %v3445_v32 = vld [vmem:[#allocation2 + $0x78] sm:$0xff] }
 0x28c   : > { %v3699_v51 = vadd.f32 %v9552_v56, %v3439_v1  ;;  %v3571_v26 = vpop.f32.mrb[137].mxu0  ;;  %v3790_v14 = vadd.f32 %v3789_v0, %v3788_v20  ;;  %v3893_v4 = vsel %vm580_vm2, %v3859_v11, 0.0  ;;  %v3444_v56 = vld [vmem:[#allocation2 + $0x70] sm:$0xff] }
 0x28d   : > { %v12078_v52 = vld [vmem:[#allocation2 + $0x28] sm:$0xff]  ;;  %v3698_v18 = vadd.f32 %v3571_v26, %v3438_v7  ;;  %v3891_v53 = vsel %vm580_vm2, %v3858_v43, 0.0 }
 0x28e   : > { %3731 = vst.msk [vmem:[#allocation2 + $0x48] sm:$0xff] %vm580_vm2, %v3699_v51  ;;  %v12084_v47 = vld [vmem:[#allocation2 + $0x20] sm:$0xff]  ;;  %v3792_v5 = vadd.f32 %v3791_v60, %v3790_v14  ;;  %v3892_v2 = vadd.f32 %v3891_v53, %v3890_v48  ;;  %v3861_v44 = vmul.f32 %v12078_v52, %v12078_v52  ;;  %v3795_v50 = vsel %vm580_vm2, %v12078_v52, 0.0 }
 0x28f   : > { %3730 = vst.msk [vmem:[#allocation2 + $0x40] sm:$0xff] %vm580_vm2, %v3698_v18  ;;  %v9555_v25 = vpop.f32.mrb[138].mxu0  ;;  %v3793_v46 = vsel %vm580_vm2, %v12084_v47, 0.0  ;;  %v3860_v55 = vmul.f32 %v12084_v47, %v12084_v47 }
 0x290   : > { %v3701_v23 = vadd.f32 %v9555_v25, %v3441_v29  ;;  %v3581_v62 = vpop.f32.mrb[139].mxu0  ;;  %v3794_v35 = vadd.f32 %v3793_v46, %v3792_v5  ;;  %v3894_v24 = vadd.f32 %v3893_v4, %v3892_v2  ;;  %v3897_v61 = vsel %vm580_vm2, %v3861_v44, 0.0  ;;  %v3447_v25 = vld [vmem:[#allocation2 + $0x88] sm:$0xff]  ;;  %v3446_v44 = vld [vmem:[#allocation2 + $0x80] sm:$0xff] }
 0x291   : > { %v12094_v54 = vld [vmem:[#allocation2 + $0x38] sm:$0xff]  ;;  %v3700_v3 = vadd.f32 %v3581_v62, %v3440_v6  ;;  %v3895_v16 = vsel %vm580_vm2, %v3860_v55, 0.0 }
 0x292   : > { %v12099_v17 = vld [vmem:[#allocation2 + $0x30] sm:$0xff]  ;;  %3733 = vst.msk [vmem:[#allocation2 + $0x58] sm:$0xff] %vm580_vm2, %v3701_v23  ;;  %v3796_v19 = vadd.f32 %v3795_v50, %v3794_v35  ;;  %v3896_v63 = vadd.f32 %v3895_v16, %v3894_v24  ;;  %v3863_v30 = vmul.f32 %v12094_v54, %v12094_v54  ;;  %v3799_v57 = vsel %vm580_vm2, %v12094_v54, 0.0 }
 0x293   : > { %3732 = vst.msk [vmem:[#allocation2 + $0x50] sm:$0xff] %vm580_vm2, %v3700_v3  ;;  %v9558_v59 = vpop.f32.mrb[140].mxu0  ;;  %v3797_v42 = vsel %vm580_vm2, %v12099_v17, 0.0  ;;  %v3862_v21 = vmul.f32 %v12099_v17, %v12099_v17 }
 0x294   : > { %v3703_v10 = vadd.f32 %v9558_v59, %v3443_v33  ;;  %v3591_v8 = vpop.f32.mrb[141].mxu0  ;;  %v3798_v31 = vadd.f32 %v3797_v42, %v3796_v19  ;;  %v3898_v37 = vadd.f32 %v3897_v61, %v3896_v63  ;;  %v3901_v20 = vsel %vm580_vm2, %v3863_v30, 0.0  ;;  %v3449_v42 = vld [vmem:[#allocation2 + $0x98] sm:$0xff] }
 0x295   : > { %v12110_v40 = vld [vmem:[#allocation2 + $0x48] sm:$0xff]  ;;  %v3702_v49 = vadd.f32 %v3591_v8, %v3442_v39  ;;  %v3899_v13 = vsel %vm580_vm2, %v3862_v21, 0.0 }
 0x296   : > { %v12115_v12 = vld [vmem:[#allocation2 + $0x40] sm:$0xff]  ;;  %3735 = vst.msk [vmem:[#allocation2 + $0x68] sm:$0xff] %vm580_vm2, %v3703_v10  ;;  %v3800_v28 = vadd.f32 %v3799_v57, %v3798_v31  ;;  %v3900_v36 = vadd.f32 %v3899_v13, %v3898_v37  ;;  %v3865_v22 = vmul.f32 %v12110_v40, %v12110_v40  ;;  %v3803_v51 = vsel %vm580_vm2, %v12110_v40, 0.0  ;;  %v3448_v10 = vld [vmem:[#allocation2 + $0x90] sm:$0xff] }
 0x297   : > { %v3864_v9 = vmul.f32 %v12115_v12, %v12115_v12  ;;  %3734 = vst.msk [vmem:[#allocation2 + $0x60] sm:$0xff] %vm580_vm2, %v3702_v49  ;;  %v9561_v34 = vpop.f32.mrb[142].mxu0  ;;  %v3801_v45 = vsel %vm580_vm2, %v12115_v12, 0.0 }
 0x298   : > { %v3705_v1 = vadd.f32 %v9561_v34, %v3445_v32  ;;  %v3601_v0 = vpop.f32.mrb[143].mxu0  ;;  %v3802_v43 = vadd.f32 %v3801_v45, %v3800_v28  ;;  %v3902_v11 = vadd.f32 %v3901_v20, %v3900_v36  ;;  %v3905_v53 = vsel %vm580_vm2, %v3865_v22, 0.0  ;;  %v3451_v20 = vld [vmem:[#allocation2 + $0xa8] sm:$0xff] }
 0x299   : > { %v12128_v7 = vld [vmem:[#allocation2 + $0x58] sm:$0xff]  ;;  %v3704_v26 = vadd.f32 %v3601_v0, %v3444_v56  ;;  %v3903_v14 = vsel %vm580_vm2, %v3864_v9, 0.0  ;;  %v3450_v0 = vld [vmem:[#allocation2 + $0xa0] sm:$0xff] }
 0x29a   : > { %v12131_v48 = vld [vmem:[#allocation2 + $0x50] sm:$0xff]  ;;  %3737 = vst.msk [vmem:[#allocation2 + $0x78] sm:$0xff] %vm580_vm2, %v3705_v1  ;;  %v3804_v18 = vadd.f32 %v3803_v51, %v3802_v43  ;;  %v3904_v60 = vadd.f32 %v3903_v14, %v3902_v11  ;;  %v3867_v5 = vmul.f32 %v12128_v7, %v12128_v7  ;;  %v3807_v62 = vsel %vm580_vm2, %v12128_v7, 0.0 }
 0x29b   : > { %v3805_v2 = vsel %vm580_vm2, %v12131_v48, 0.0  ;;  %v3866_v29 = vmul.f32 %v12131_v48, %v12131_v48  ;;  %3736 = vst.msk [vmem:[#allocation2 + $0x70] sm:$0xff] %vm580_vm2, %v3704_v26  ;;  %v9564_v46 = vpop.f32.mrb[144].mxu0 }
 0x29c   : > { %v3707_v55 = vadd.f32 %v9564_v46, %v3447_v25  ;;  %v3611_v4 = vpop.f32.mrb[145].mxu0  ;;  %v3806_v23 = vadd.f32 %v3805_v2, %v3804_v18  ;;  %v3906_v6 = vadd.f32 %v3905_v53, %v3904_v60  ;;  %v3909_v63 = vsel %vm580_vm2, %v3867_v5, 0.0  ;;  %v12179_v53 = vld [vmem:[#allocation9 + $0xc] sm:$0xf] }
 0x29d   : > { %v3907_v35 = vsel %vm580_vm2, %v3866_v29, 0.0  ;;  %v12145_v24 = vld [vmem:[#allocation2 + $0x68] sm:$0xff]  ;;  %v3706_v3 = vadd.f32 %v3611_v4, %v3446_v44  ;;  %9736 = vmatprep.subr.msk.mxu0 %vm720_vm0, %v12179_v53  ;;  %v3453_v4 = vld [vmem:[#allocation2 + $0xb8] sm:$0xff] }
 0x29e   : > { %v12147_v50 = vld [vmem:[#allocation2 + $0x60] sm:$0xff]  ;;  %3739 = vst.msk [vmem:[#allocation2 + $0x88] sm:$0xff] %vm580_vm2, %v3707_v55  ;;  %v3808_v16 = vadd.f32 %v3807_v62, %v3806_v23  ;;  %v3908_v19 = vadd.f32 %v3907_v35, %v3906_v6  ;;  %v3869_v30 = vmul.f32 %v12145_v24, %v12145_v24  ;;  %v3811_v37 = vsel %vm580_vm2, %v12145_v24, 0.0  ;;  %v3452_v62 = vld [vmem:[#allocation2 + $0xb0] sm:$0xff] }
 0x29f   : > { %v3809_v33 = vsel %vm580_vm2, %v12147_v50, 0.0  ;;  %v3868_v59 = vmul.f32 %v12147_v50, %v12147_v50  ;;  %3738 = vst.msk [vmem:[#allocation2 + $0x80] sm:$0xff] %vm580_vm2, %v3706_v3  ;;  %v9567_v21 = vpop.f32.mrb[146].mxu0 }
 0x2a0   : > { %v3709_v61 = vadd.f32 %v9567_v21, %v3449_v42  ;;  %v3621_v39 = vpop.f32.mrb[147].mxu0  ;;  %v3810_v8 = vadd.f32 %v3809_v33, %v3808_v16  ;;  %v3910_v31 = vadd.f32 %v3909_v63, %v3908_v19  ;;  %v3913_v9 = vsel %vm580_vm2, %v3869_v30, 0.0 }
 0x2a1   : > { %v3911_v49 = vsel %vm580_vm2, %v3868_v59, 0.0  ;;  %v12161_v57 = vld [vmem:[#allocation2 + $0x78] sm:$0xff]  ;;  %v3708_v13 = vadd.f32 %v3621_v39, %v3448_v10 }
 0x2a2   : > { %v12163_v28 = vld [vmem:[#allocation2 + $0x70] sm:$0xff]  ;;  %3741 = vst.msk [vmem:[#allocation2 + $0x98] sm:$0xff] %vm580_vm2, %v3709_v61  ;;  %v3812_v36 = vadd.f32 %v3811_v37, %v3810_v8  ;;  %v3912_v22 = vadd.f32 %v3911_v49, %v3910_v31  ;;  %v3871_v32 = vmul.f32 %v12161_v57, %v12161_v57  ;;  %v3815_v26 = vsel %vm580_vm2, %v12161_v57, 0.0  ;;  %v3455_v31 = vld [vmem:[#allocation2 + $0xc8] sm:$0xff] }
 0x2a3   : > { %v3813_v34 = vsel %vm580_vm2, %v12163_v28, 0.0  ;;  %v3870_v45 = vmul.f32 %v12163_v28, %v12163_v28  ;;  %3740 = vst.msk [vmem:[#allocation2 + $0x90] sm:$0xff] %vm580_vm2, %v3708_v13  ;;  %v9570_v1 = vpop.f32.mrb[148].mxu0  ;;  %v3454_v13 = vld [vmem:[#allocation2 + $0xc0] sm:$0xff] }
 0x2a4   : > { %v3711_v56 = vadd.f32 %v9570_v1, %v3451_v20  ;;  %v3631_v43 = vpop.f32.mrb[149].mxu0  ;;  %v3814_v11 = vadd.f32 %v3813_v34, %v3812_v36  ;;  %v3914_v51 = vadd.f32 %v3913_v9, %v3912_v22  ;;  %v3917_v25 = vsel %vm580_vm2, %v3871_v32, 0.0 }
 0x2a5   : > { %v3915_v14 = vsel %vm580_vm2, %v3870_v45, 0.0  ;;  %v12177_v18 = vld [vmem:[#allocation2 + $0x88] sm:$0xff]  ;;  %v3710_v60 = vadd.f32 %v3631_v43, %v3450_v0 }
 0x2a6   : > { %v12181_v5 = vld [vmem:[#allocation2 + $0x80] sm:$0xff]  ;;  %3743 = vst.msk [vmem:[#allocation2 + $0xa8] sm:$0xff] %vm580_vm2, %v3711_v56  ;;  %v3816_v2 = vadd.f32 %v3815_v26, %v3814_v11  ;;  %v3916_v29 = vadd.f32 %v3915_v14, %v3914_v51  ;;  %v3873_v46 = vmul.f32 %v12177_v18, %v12177_v18  ;;  %v3819_v19 = vsel %vm580_vm2, %v12177_v18, 0.0  ;;  %v3457_v14 = vld [vmem:[#allocation2 + $0xd8] sm:$0xff] }
 0x2a7   : > { %v3817_v55 = vsel %vm580_vm2, %v12181_v5, 0.0  ;;  %v3872_v44 = vmul.f32 %v12181_v5, %v12181_v5  ;;  %3742 = vst.msk [vmem:[#allocation2 + $0xa0] sm:$0xff] %vm580_vm2, %v3710_v60  ;;  %v9573_v23 = vpop.f32.mrb[150].mxu0 }
 0x2a8   : > { %v3713_v6 = vadd.f32 %v9573_v23, %v3453_v4  ;;  %v3641_v35 = vpop.f32.mrb[151].mxu0  ;;  %v3818_v3 = vadd.f32 %v3817_v55, %v3816_v2  ;;  %v3918_v16 = vadd.f32 %v3917_v25, %v3916_v29  ;;  %v3921_v61 = vsel %vm580_vm2, %v3873_v46, 0.0  ;;  %v3456_v29 = vld [vmem:[#allocation2 + $0xd0] sm:$0xff] }
 0x2a9   : > { %v3919_v63 = vsel %vm580_vm2, %v3872_v44, 0.0  ;;  %v12197_v30 = vld [vmem:[#allocation2 + $0x98] sm:$0xff]  ;;  %v3712_v33 = vadd.f32 %v3641_v35, %v3452_v62 }
 0x2aa   : > { %v12199_v59 = vld [vmem:[#allocation2 + $0x90] sm:$0xff]  ;;  %3745 = vst.msk [vmem:[#allocation2 + $0xb8] sm:$0xff] %vm580_vm2, %v3713_v6  ;;  %v3820_v42 = vadd.f32 %v3819_v19, %v3818_v3  ;;  %v3920_v21 = vadd.f32 %v3919_v63, %v3918_v16  ;;  %v3875_v10 = vmul.f32 %v12197_v30, %v12197_v30  ;;  %v3823_v32 = vsel %vm580_vm2, %v12197_v30, 0.0 }
 0x2ab   : > { %v3821_v39 = vsel %vm580_vm2, %v12199_v59, 0.0  ;;  %v3874_v8 = vmul.f32 %v12199_v59, %v12199_v59  ;;  %3744 = vst.msk [vmem:[#allocation2 + $0xb0] sm:$0xff] %vm580_vm2, %v3712_v33  ;;  %v9576_v37 = vpop.f32.mrb[152].mxu0 }
 0x2ac   : > { %v3715_v49 = vadd.f32 %v9576_v37, %v3455_v31  ;;  %v3651_v36 = vpop.f32.mrb[153].mxu0  ;;  %v3822_v22 = vadd.f32 %v3821_v39, %v3820_v42  ;;  %v3922_v9 = vadd.f32 %v3921_v61, %v3920_v21  ;;  %v3925_v43 = vsel %vm580_vm2, %v3875_v10, 0.0  ;;  %v3459_v42 = vld [vmem:[#allocation2 + $0xe8] sm:$0xff]  ;;  %v3458_v10 = vld [vmem:[#allocation2 + $0xe0] sm:$0xff] }
 0x2ad   : > { %v3923_v34 = vsel %vm580_vm2, %v3874_v8, 0.0  ;;  %v12213_v45 = vld [vmem:[#allocation2 + $0xa8] sm:$0xff]  ;;  %v3714_v20 = vadd.f32 %v3651_v36, %v3454_v13 }
 0x2ae   : > { %v12215_v1 = vld [vmem:[#allocation2 + $0xa0] sm:$0xff]  ;;  %3747 = vst.msk [vmem:[#allocation2 + $0xc8] sm:$0xff] %vm580_vm2, %v3715_v49  ;;  %v3824_v56 = vadd.f32 %v3823_v32, %v3822_v22  ;;  %v3924_v0 = vadd.f32 %v3923_v34, %v3922_v9  ;;  %v3877_v11 = vmul.f32 %v12213_v45, %v12213_v45  ;;  %v3827_v44 = vsel %vm580_vm2, %v12213_v45, 0.0 }
 0x2af   : > { %v3825_v51 = vsel %vm580_vm2, %v12215_v1, 0.0  ;;  %v3876_v26 = vmul.f32 %v12215_v1, %v12215_v1  ;;  %3746 = vst.msk [vmem:[#allocation2 + $0xc0] sm:$0xff] %vm580_vm2, %v3714_v20  ;;  %v9579_v60 = vpop.f32.mrb[154].mxu0 }
 0x2b0   : > { %v3717_v2 = vadd.f32 %v9579_v60, %v3457_v14  ;;  %v3661_v25 = vpop.f32.mrb[155].mxu0  ;;  %v3826_v46 = vadd.f32 %v3825_v51, %v3824_v56  ;;  %v3926_v55 = vadd.f32 %v3925_v43, %v3924_v0  ;;  %v3929_v16 = vsel %vm580_vm2, %v3877_v11, 0.0  ;;  %v3461_v43 = vld [vmem:[#allocation2 + $0xf8] sm:$0xff] }
 0x2b1   : > { %v3927_v4 = vsel %vm580_vm2, %v3876_v26, 0.0  ;;  %v12229_v23 = vld [vmem:[#allocation2 + $0xb8] sm:$0xff]  ;;  %v3716_v6 = vadd.f32 %v3661_v25, %v3456_v29  ;;  %v3460_v26 = vld [vmem:[#allocation2 + $0xf0] sm:$0xff] }
 0x2b2   : > { %v12231_v62 = vld [vmem:[#allocation2 + $0xb0] sm:$0xff]  ;;  %3749 = vst.msk [vmem:[#allocation2 + $0xd8] sm:$0xff] %vm580_vm2, %v3717_v2  ;;  %v3828_v35 = vadd.f32 %v3827_v44, %v3826_v46  ;;  %v3928_v3 = vadd.f32 %v3927_v4, %v3926_v55  ;;  %v3879_v19 = vmul.f32 %v12229_v23, %v12229_v23  ;;  %v3831_v37 = vsel %vm580_vm2, %v12229_v23, 0.0 }
 0x2b3   : > { %v3829_v63 = vsel %vm580_vm2, %v12231_v62, 0.0  ;;  %v3878_v33 = vmul.f32 %v12231_v62, %v12231_v62  ;;  %3748 = vst.msk [vmem:[#allocation2 + $0xd0] sm:$0xff] %vm580_vm2, %v3716_v6  ;;  %v9582_v21 = vpop.f32.mrb[156].mxu0 }
 0x2b4   : > { %v3719_v61 = vadd.f32 %v9582_v21, %v3459_v42  ;;  %v3671_v39 = vpop.f32.mrb[157].mxu0  ;;  %v3830_v8 = vadd.f32 %v3829_v63, %v3828_v35  ;;  %v3930_v31 = vadd.f32 %v3929_v16, %v3928_v3  ;;  %v3933_v34 = vsel %vm580_vm2, %v3879_v19, 0.0 }
 0x2b5   : > { %v3931_v49 = vsel %vm580_vm2, %v3878_v33, 0.0  ;;  %v12245_v13 = vld [vmem:[#allocation2 + $0xc8] sm:$0xff]  ;;  %v3718_v36 = vadd.f32 %v3671_v39, %v3458_v10 }
 0x2b6   : > { %v12247_v22 = vld [vmem:[#allocation2 + $0xc0] sm:$0xff]  ;;  %3751 = vst.msk [vmem:[#allocation2 + $0xe8] sm:$0xff] %vm580_vm2, %v3719_v61  ;;  %v3832_v9 = vadd.f32 %v3831_v37, %v3830_v8  ;;  %v3932_v32 = vadd.f32 %v3931_v49, %v3930_v31  ;;  %v3881_v20 = vmul.f32 %v12245_v13, %v12245_v13  ;;  %v3835_v29 = vsel %vm580_vm2, %v12245_v13, 0.0 }
 0x2b7   : > { %v3833_v56 = vsel %vm580_vm2, %v12247_v22, 0.0  ;;  %v3880_v0 = vmul.f32 %v12247_v22, %v12247_v22  ;;  %3750 = vst.msk [vmem:[#allocation2 + $0xe0] sm:$0xff] %vm580_vm2, %v3718_v36  ;;  %v9585_v11 = vpop.f32.mrb[158].mxu0 }
 0x2b8   : > { %v3721_v51 = vadd.f32 %v9585_v11, %v3461_v43  ;;  %v3681_v14 = vpop.f32.mrb[159].mxu0  ;;  %v3834_v60 = vadd.f32 %v3833_v56, %v3832_v9  ;;  %v3934_v2 = vadd.f32 %v3933_v34, %v3932_v32  ;;  %v3937_v35 = vsel %vm580_vm2, %v3881_v20, 0.0 }
 0x2b9   : > { %v3935_v25 = vsel %vm580_vm2, %v3880_v0, 0.0  ;;  %v12261_v46 = vld [vmem:[#allocation2 + $0xd8] sm:$0xff]  ;;  %v3720_v55 = vadd.f32 %v3681_v14, %v3460_v26 }
 0x2ba   : > { %v12263_v44 = vld [vmem:[#allocation2 + $0xd0] sm:$0xff]  ;;  %3753 = vst.msk [vmem:[#allocation2 + $0xf8] sm:$0xff] %vm580_vm2, %v3721_v51  ;;  %v3836_v4 = vadd.f32 %v3835_v29, %v3834_v60  ;;  %v3936_v6 = vadd.f32 %v3935_v25, %v3934_v2  ;;  %v3883_v3 = vmul.f32 %v12261_v46, %v12261_v46  ;;  %v3839_v42 = vsel %vm580_vm2, %v12261_v46, 0.0 }
 0x2bb   : > { %v3837_v16 = vsel %vm580_vm2, %v12263_v44, 0.0  ;;  %v3882_v19 = vmul.f32 %v12263_v44, %v12263_v44  ;;  %3752 = vst.msk [vmem:[#allocation2 + $0xf0] sm:$0xff] %vm580_vm2, %v3720_v55 }
 0x2bc   : > { %v3838_v63 = vadd.f32 %v3837_v16, %v3836_v4  ;;  %v3938_v33 = vadd.f32 %v3937_v35, %v3936_v6  ;;  %v3941_v31 = vsel %vm580_vm2, %v3883_v3, 0.0 }
 0x2bd   : > { %v3939_v21 = vsel %vm580_vm2, %v3882_v19, 0.0  ;;  %v12277_v61 = vld [vmem:[#allocation2 + $0xe8] sm:$0xff] }
 0x2be   : > { %v12279_v10 = vld [vmem:[#allocation2 + $0xe0] sm:$0xff]  ;;  %v3840_v39 = vadd.f32 %v3839_v42, %v3838_v63  ;;  %v3940_v8 = vadd.f32 %v3939_v21, %v3938_v33  ;;  %v3885_v37 = vmul.f32 %v12277_v61, %v12277_v61  ;;  %v3843_v34 = vsel %vm580_vm2, %v12277_v61, 0.0 }
 0x2bf   : > { %v3841_v49 = vsel %vm580_vm2, %v12279_v10, 0.0  ;;  %v3884_v36 = vmul.f32 %v12279_v10, %v12279_v10 }
 0x2c0   : > { %v3842_v9 = vadd.f32 %v3841_v49, %v3840_v39  ;;  %v3942_v32 = vadd.f32 %v3941_v31, %v3940_v8  ;;  %v3945_v51 = vsel %vm580_vm2, %v3885_v37, 0.0 }
 0x2c1   : > { %v3943_v20 = vsel %vm580_vm2, %v3884_v36, 0.0  ;;  %v12291_v56 = vld [vmem:[#allocation2 + $0xf8] sm:$0xff] }
 0x2c2   : > { %v12293_v0 = vld [vmem:[#allocation2 + $0xf0] sm:$0xff]  ;;  %v3844_v43 = vadd.f32 %v3843_v34, %v3842_v9  ;;  %v3944_v11 = vadd.f32 %v3943_v20, %v3942_v32  ;;  %v3887_v26 = vmul.f32 %v12291_v56, %v12291_v56  ;;  %v3847_v25 = vsel %vm580_vm2, %v12291_v56, 0.0 }
 0x2c3   : > { %v3845_v14 = vsel %vm580_vm2, %v12293_v0, 0.0  ;;  %v3886_v60 = vmul.f32 %v12293_v0, %v12293_v0 }
 0x2c4   : > { %v3846_v2 = vadd.f32 %v3845_v14, %v3844_v43  ;;  %v3946_v29 = vadd.f32 %v3945_v51, %v3944_v11  ;;  %v3949_v35 = vsel %vm580_vm2, %v3887_v26, 0.0 }
 0x2c5   : > { %v3947_v55 = vsel %vm580_vm2, %v3886_v60, 0.0 }
 0x2c6   : > { %v3848_v4 = vadd.f32 %v3847_v25, %v3846_v2  ;;  %v3948_v6 = vadd.f32 %v3947_v55, %v3946_v29 }
 0x2c8   : > { %v3849_v3 = vrot.slane %v3848_v4, 4  ;;  %v3950_v16 = vadd.f32 %v3949_v35, %v3948_v6 }
 0x2ca   : > { %v3850_v19 = vadd.f32 %v3849_v3, %v3848_v4  ;;  %v3951_v63 = vrot.slane %v3950_v16, 4 }
 0x2cc   : > { %v3851_v33 = vrot.slane %v3850_v19, 2  ;;  %v3952_v42 = vadd.f32 %v3951_v63, %v3950_v16 }
 0x2ce   : > { %v3852_v21 = vadd.f32 %v3851_v33, %v3850_v19  ;;  %v3953_v39 = vrot.slane %v3952_v42, 2  ;;  %v12341_v19 = vld [vmem:[#allocation9 + $0x14] sm:$0xf] }
 0x2d0   : > { %v3853_v8 = vrot.slane %v3852_v21, 1  ;;  %v3954_v31 = vadd.f32 %v3953_v39, %v3952_v42 }
 0x2d2   : > { %v3854_v37 = vadd.f32 %v3853_v8, %v3852_v21  ;;  %v3955_v49 = vrot.slane %v3954_v31, 1 }
 0x2d4   : > { %v12306_v36 = vmul.f32 0.00390625, %v3854_v37  ;;  %v3956_v9 = vadd.f32 %v3955_v49, %v3954_v31  ;;  %v12369_v31 = vld [vmem:[#allocation9 + $0x10] sm:$0xf] }
 0x2d6   : > { %v3957_v32 = vmul.f32 0.00390625, %v3956_v9  ;;  %v3958_v34 = vmul.f32 %v12306_v36, %v12306_v36  ;;  %v3962_v11 = vsub.f32 %v12069_v15, %v12306_v36  ;;  %v3963_v51 = vsub.f32 %v12064_v41, %v12306_v36 }
 0x2d7   : > { %v3960_v26 = vsub.f32 %v12053_v58, %v12306_v36  ;;  %v3961_v14 = vsub.f32 %v12050_v38, %v12306_v36  ;;  %v3964_v15 = vsub.f32 %v12084_v47, %v12306_v36  ;;  %v3965_v33 = vsub.f32 %v12078_v52, %v12306_v36 }
 0x2d8   : > { %v3959_v20 = vsub.f32 %v3957_v32, %v3958_v34  ;;  %v3966_v42 = vsub.f32 %v12099_v17, %v12306_v36  ;;  %v3967_v49 = vsub.f32 %v12094_v54, %v12306_v36  ;;  %v3968_v9 = vsub.f32 %v12115_v12, %v12306_v36 }
 0x2da   : > { %v3992_v43 = vadd.f32 1e-05, %v3959_v20 }
 0x2dc   : > { %10129 = vrsqrt.f32 %v3992_v43 }
 0x2e6   : > { %v12318_v60 = vpop.eup %10129 }
 0x2e7   : > { %v3996_v2 = vmul.f32 %v12318_v60, %v3962_v11  ;;  %v3997_v29 = vmul.f32 %v12318_v60, %v3963_v51  ;;  %v3994_v25 = vmul.f32 %v12318_v60, %v3960_v26  ;;  %v3995_v55 = vmul.f32 %v12318_v60, %v3961_v14 }
 0x2e8   : > { %v3998_v6 = vmul.f32 %v12318_v60, %v3964_v15  ;;  %v3999_v17 = vmul.f32 %v12318_v60, %v3965_v33  ;;  %v4000_v8 = vmul.f32 %v12318_v60, %v3966_v42  ;;  %v4001_v34 = vmul.f32 %v12318_v60, %v3967_v49 }
 0x2e9   : > { %v12326_v41 = vmax.f32 %v3996_v2, 0.0  ;;  %v12328_v4 = vmax.f32 %v3997_v29, 0.0  ;;  %v12330_v58 = vmax.f32 %v3994_v25, 0.0  ;;  %v12332_v38 = vmax.f32 %v3995_v55, 0.0 }
 0x2ea   : > { %v12380_v37 = vmax.f32 %v3998_v6, 0.0  ;;  %v12401_v32 = vmax.f32 %v3999_v17, 0.0  ;;  %v12403_v54 = vmax.f32 %v4000_v8, 0.0  ;;  %v4002_v43 = vmul.f32 %v12318_v60, %v3968_v9 }
 0x2eb   : > { %9638 = vmatprep.mubr.msk.f32.mxu0 %vm580_vm2, %v12326_v41  ;;  %v14444_v35 = vrot.slane %v12326_v41, 1  ;;  %v4122_v3 = vrot.slane %v12326_v41, 7  ;;  %v14440_v16 = vrot.slane %v12328_v4, 7  ;;  %v14439_v47 = vrot.slane %v12330_v58, 1 }
 0x2ec   : > { %9639 = vmatmul.mubr.msk.f32.vlgmr.msra.gmra.mrb[160].mxu0 %vm580_vm2, %v12328_v4  ;;  %v4125_v63 = vrot.slane %v12330_v58, 7  ;;  %v14438_v52 = vrot.slane %v12332_v38, 7  ;;  %v14435_v12 = vrot.slane %v12380_v37, 1  ;;  %v4128_v20 = vrot.slane %v12380_v37, 7 }
 0x2ed   : > { %9641 = vmatprep.mubr.msk.f32.mxu0 %vm580_vm2, %v12330_v58  ;;  %v12355_v21 = vsel %vm411_vm1, %v14444_v35, %v4122_v3  ;;  %v12360_v39 = vsel %vm411_vm1, %v4122_v3, %v14440_v16  ;;  %9737 = vmatpush3.msk.msra.mxu0 %vm720_vm0, %v12179_v53  ;;  %v3969_v11 = vsub.f32 %v12110_v40, %v12306_v36  ;;  %v14434_v14 = vrot.slane %v12401_v32, 7 }
 0x2ee   : > { %14636 = vst [vmem:[#allocation17_spill] sm:$0xff] %v12355_v21  ;;  %14637 = vst [vmem:[#allocation18_spill] sm:$0xff] %v12360_v39  ;;  %9588 = vmatprep.mubr.msk.f32.mxu1 %vm580_vm2, %v12355_v21  ;;  %9836 = vmatprep.subr.msk.mxu0 %vm720_vm0, %v12341_v19  ;;  %v12378_v53 = vsel %vm411_vm1, %v14439_v47, %v4125_v63  ;;  %v3970_v26 = vsub.f32 %v12131_v48, %v12306_v36  ;;  %v14432_v2 = vrot.slane %v12403_v54, 1 }
 0x2ef   : > { %9589 = vmatmul.mubr.msk.f32.vlgmr.msra.gmra.mrb[128].mxu1 %vm580_vm2, %v12360_v39  ;;  %v4003_v51 = vmul.f32 %v12318_v60, %v3969_v11  ;;  %v12424_v29 = vmax.f32 %v4001_v34, 0.0  ;;  %v3971_v40 = vsub.f32 %v12128_v7, %v12306_v36  ;;  %v12433_v25 = vsel %vm411_vm1, %v14435_v12, %v4128_v20 }
 0x2f0   : > { %9687 = vmatpush3.msk.msra.mxu1 %vm720_vm0, %v12023_v27  ;;  %9591 = vmatprep.mubr.msk.f32.mxu1 %vm580_vm2, %v12378_v53  ;;  %v12399_v27 = vsel %vm411_vm1, %v4125_v63, %v14438_v52  ;;  %14638 = vst [vmem:[#allocation48_spill] sm:$0xff] %v12433_v25  ;;  %v4131_v48 = vrot.slane %v12403_v54, 7  ;;  %v12436_v55 = vmax.f32 %v4002_v43, 0.0  ;;  %v4004_v15 = vmul.f32 %v12318_v60, %v3970_v26 }
 0x2f1   : > { %9642 = vmatmul.mubr.msk.f32.gmra.mrb[162].mxu0 %vm580_vm2, %v12332_v38  ;;  %9786 = vmatprep.subr.msk.mxu1 %vm720_vm0, %v12369_v31  ;;  %v3972_v7 = vsub.f32 %v12147_v50, %v12306_v36  ;;  %v12445_v6 = vmax.f32 %v4003_v51, 0.0  ;;  %v4005_v3 = vmul.f32 %v12318_v60, %v3971_v40  ;;  %v12453_v63 = vsel %vm411_vm1, %v4128_v20, %v14434_v14 }
 0x2f2   : > { %9644 = vmatprep.mubr.msk.f32.mxu0 %vm580_vm2, %v12326_v41  ;;  %14639 = vst [vmem:[#allocation49_spill] sm:$0xff] %v12453_v63  ;;  %v14430_v33 = vrot.slane %v12424_v29, 7  ;;  %v3973_v50 = vsub.f32 %v12145_v24, %v12306_v36  ;;  %v12464_v17 = vsel %vm411_vm1, %v14432_v2, %v4131_v48  ;;  %v14427_v8 = vrot.slane %v12436_v55, 1 }
 0x2f3   : > { %9592 = vmatmul.mubr.msk.f32.gmra.mrb[130].mxu1 %vm580_vm2, %v12399_v27  ;;  %v4006_v42 = vmul.f32 %v12318_v60, %v3972_v7  ;;  %14640 = vst [vmem:[#allocation38_spill] sm:$0xff] %v12464_v17  ;;  %v4134_v49 = vrot.slane %v12436_v55, 7  ;;  %v12468_v9 = vmax.f32 %v4004_v15, 0.0  ;;  %v14428_v24 = vrot.slane %v12445_v6, 7 }
 0x2f4   : > { %9594 = vmatprep.mubr.msk.f32.mxu1 %vm580_vm2, %v12355_v21  ;;  %v12475_v34 = vmax.f32 %v4005_v3, 0.0  ;;  %v4007_v20 = vmul.f32 %v12318_v60, %v3973_v50  ;;  %v3974_v43 = vsub.f32 %v12163_v28, %v12306_v36  ;;  %v12485_v11 = vsel %vm411_vm1, %v4131_v48, %v14430_v33 }
 0x2f5   : > { %9645 = vmatmul.mubr.msk.f32.gmra.mrb[164].mxu0 %vm580_vm2, %v12328_v4  ;;  %14641 = vst [vmem:[#allocation41_spill] sm:$0xff] %v12485_v11  ;;  %v12487_v51 = vmax.f32 %v4006_v42, 0.0  ;;  %v3975_v26 = vsub.f32 %v12161_v57, %v12306_v36  ;;  %v3986_v40 = vsub.f32 %v12263_v44, %v12306_v36  ;;  %v12498_v28 = vsel %vm411_vm1, %v14427_v8, %v4134_v49 }
 0x2f6   : > { %9647 = vmatprep.mubr.msk.f32.mxu0 %vm580_vm2, %v12380_v37  ;;  %14642 = vst [vmem:[#allocation19_spill] sm:$0xff] %v12498_v28  ;;  %v14429_v15 = vrot.slane %v12468_v9, 1  ;;  %v4137_v48 = vrot.slane %v12468_v9, 7  ;;  %v4008_v7 = vmul.f32 %v12318_v60, %v3974_v43  ;;  %v3976_v57 = vsub.f32 %v12181_v5, %v12306_v36 }
 0x2f7   : > { %9595 = vmatmul.mubr.msk.f32.gmra.mrb[132].mxu1 %vm580_vm2, %v12360_v39  ;;  %v12508_v44 = vmul.f32 %v12318_v60, %v3986_v40  ;;  %v3987_v3 = vsub.f32 %v12261_v46, %v12306_v36  ;;  %v3988_v42 = vsub.f32 %v12279_v10, %v12306_v36  ;;  %v12519_v50 = vsel %vm411_vm1, %v4134_v49, %v14428_v24 }
 0x2f8   : > { %9597 = vmatprep.mubr.msk.f32.mxu1 %vm580_vm2, %v12433_v25  ;;  %14643 = vst [vmem:[#allocation20_spill] sm:$0xff] %v12519_v50  ;;  %v14431_v43 = vrot.slane %v12475_v34, 7  ;;  %v12522_v5 = vmax.f32 %v4007_v20, 0.0  ;;  %v3977_v40 = vsub.f32 %v12177_v18, %v12306_v36  ;;  %v14433_v46 = vrot.slane %v12487_v51, 1 }
 0x2f9   : > { %9648 = vmatmul.mubr.msk.f32.gmra.mrb[166].mxu0 %vm580_vm2, %v12401_v32  ;;  %v4009_v10 = vmul.f32 %v12318_v60, %v3975_v26  ;;  %v12531_v8 = vmul.f32 %v12318_v60, %v3987_v3  ;;  %v12534_v49 = vmul.f32 %v12318_v60, %v3988_v42  ;;  %v12541_v18 = vsel %vm411_vm1, %v14429_v15, %v4137_v48 }
 0x2fa   : > { %9650 = vmatprep.mubr.msk.f32.mxu0 %vm580_vm2, %v12403_v54  ;;  %14644 = vst [vmem:[#allocation21_spill] sm:$0xff] %v12541_v18  ;;  %v4140_v20 = vrot.slane %v12487_v51, 7  ;;  %v12544_v24 = vmax.f32 %v4008_v7, 0.0  ;;  %v4010_v26 = vmul.f32 %v12318_v60, %v3976_v57  ;;  %v3978_v3 = vsub.f32 %v12199_v59, %v12306_v36 }
 0x2fb   : > { %9598 = vmatmul.mubr.msk.f32.gmra.mrb[134].mxu1 %vm580_vm2, %v12453_v63  ;;  %v3989_v42 = vsub.f32 %v12277_v61, %v12306_v36  ;;  %v12558_v15 = vsel %vm411_vm1, %v4137_v48, %v14431_v43  ;;  %v4011_v7 = vmul.f32 %v12318_v60, %v3977_v40  ;;  %v14437_v57 = vrot.slane %v12522_v5, 7 }
 0x2fc   : > { %9600 = vmatprep.mubr.msk.f32.mxu1 %vm580_vm2, %v12464_v17  ;;  %14645 = vst [vmem:[#allocation22_spill] sm:$0xff] %v12558_v15  ;;  %v12564_v33 = vmax.f32 %v4009_v10, 0.0  ;;  %v4012_v59 = vmul.f32 %v12318_v60, %v3978_v3  ;;  %v12575_v48 = vsel %vm411_vm1, %v14433_v46, %v4140_v20  ;;  %v14436_v40 = vrot.slane %v12544_v24, 1 }
 0x2fd   : > { %9651 = vmatmul.mubr.msk.f32.gmra.mrb[168].mxu0 %vm580_vm2, %v12424_v29  ;;  %v12568_v61 = vmul.f32 %v12318_v60, %v3989_v42  ;;  %14646 = vst [vmem:[#allocation23_spill] sm:$0xff] %v12575_v48  ;;  %v4143_v43 = vrot.slane %v12544_v24, 7  ;;  %v12579_v2 = vmax.f32 %v4010_v26, 0.0  ;;  %v3979_v10 = vsub.f32 %v12197_v30, %v12306_v36 }
 0x2fe   : > { %9653 = vmatprep.mubr.msk.f32.mxu0 %vm580_vm2, %v12436_v55  ;;  %v12587_v3 = vmax.f32 %v4011_v7, 0.0  ;;  %v3980_v42 = vsub.f32 %v12215_v1, %v12306_v36  ;;  %v3981_v46 = vsub.f32 %v12213_v45, %v12306_v36  ;;  %v12598_v26 = vsel %vm411_vm1, %v4140_v20, %v14437_v57 }
 0x2ff   : > { %9601 = vmatmul.mubr.msk.f32.gmra.mrb[136].mxu1 %vm580_vm2, %v12485_v11  ;;  %14647 = vst [vmem:[#allocation24_spill] sm:$0xff] %v12598_v26  ;;  %v14441_v30 = vrot.slane %v12564_v33, 7  ;;  %v12601_v14 = vmax.f32 %v4012_v59, 0.0  ;;  %v4013_v7 = vmul.f32 %v12318_v60, %v3979_v10  ;;  %v12609_v45 = vsel %vm411_vm1, %v14436_v40, %v4143_v43 }
 0x300   : > { %9603 = vmatprep.mubr.msk.f32.mxu1 %vm580_vm2, %v12498_v28  ;;  %14648 = vst [vmem:[#allocation25_spill] sm:$0xff] %v12609_v45  ;;  %v14442_v1 = vrot.slane %v12579_v2, 1  ;;  %v4146_v12 = vrot.slane %v12579_v2, 7  ;;  %v4014_v20 = vmul.f32 %v12318_v60, %v3980_v42  ;;  %v14443_v59 = vrot.slane %v12587_v3, 7 }
 0x301   : > { %9654 = vmatmul.mubr.msk.f32.gmra.mrb[170].mxu0 %vm580_vm2, %v12445_v6  ;;  %v4015_v10 = vmul.f32 %v12318_v60, %v3981_v46  ;;  %v3982_v40 = vsub.f32 %v12231_v62, %v12306_v36  ;;  %v12627_v42 = vsel %vm411_vm1, %v4143_v43, %v14441_v30  ;;  %v14445_v57 = vrot.slane %v12601_v14, 1 }
 0x302   : > { %9656 = vmatprep.mubr.msk.f32.mxu0 %vm580_vm2, %v12468_v9  ;;  %14649 = vst [vmem:[#allocation26_spill] sm:$0xff] %v12627_v42  ;;  %v4149_v52 = vrot.slane %v12601_v14, 7  ;;  %v12631_v47 = vmax.f32 %v4013_v7, 0.0  ;;  %v12638_v62 = vsel %vm411_vm1, %v14442_v1, %v4146_v12  ;;  %v12640_v46 = vmax.f32 %v4014_v20, 0.0 }
 0x303   : > { %9604 = vmatmul.mubr.msk.f32.gmra.mrb[138].mxu1 %vm580_vm2, %v12519_v50  ;;  %14650 = vst [vmem:[#allocation27_spill] sm:$0xff] %v12638_v62  ;;  %v4016_v16 = vmul.f32 %v12318_v60, %v3982_v40  ;;  %v3990_v43 = vsub.f32 %v12293_v0, %v12306_v36  ;;  %v3983_v7 = vsub.f32 %v12229_v23, %v12306_v36  ;;  %v12658_v40 = vmax.f32 %v4015_v10, 0.0 }
 0x304   : > { %9606 = vmatprep.mubr.msk.f32.mxu1 %vm580_vm2, %v12541_v18  ;;  %v3991_v30 = vsub.f32 %v12291_v56, %v12306_v36  ;;  %v12656_v20 = vsel %vm411_vm1, %v4146_v12, %v14443_v59  ;;  %v3984_v0 = vsub.f32 %v12247_v22, %v12306_v36  ;;  %v12670_v23 = vsel %vm411_vm1, %v14445_v57, %v4149_v52 }
 0x305   : > { %9657 = vmatmul.mubr.msk.f32.gmra.mrb[172].mxu0 %vm580_vm2, %v12475_v34  ;;  %14651 = vst [vmem:[#allocation28_spill] sm:$0xff] %v12656_v20  ;;  %14652 = vst [vmem:[#allocation29_spill] sm:$0xff] %v12658_v40  ;;  %v12663_v1 = vmul.f32 %v12318_v60, %v3990_v43  ;;  %v14447_v56 = vrot.slane %v12631_v47, 7  ;;  %v4017_v12 = vmul.f32 %v12318_v60, %v3983_v7  ;;  %v14446_v22 = vrot.slane %v12640_v46, 1 }
 0x306   : > { %9659 = vmatprep.mubr.msk.f32.mxu0 %vm580_vm2, %v12487_v51  ;;  %14654 = vst [vmem:[#allocation31_spill] sm:$0xff] %v12670_v23  ;;  %v12675_v10 = vmul.f32 %v12318_v60, %v3991_v30  ;;  %v4152_v43 = vrot.slane %v12640_v46, 7  ;;  %v12681_v59 = vmax.f32 %v4016_v16, 0.0  ;;  %v4018_v35 = vmul.f32 %v12318_v60, %v3984_v0 }
 0x307   : > { %9607 = vmatmul.mubr.msk.f32.gmra.mrb[140].mxu1 %vm580_vm2, %v12558_v15  ;;  %14653 = vst [vmem:[#allocation30_spill] sm:$0xff] %v12663_v1  ;;  %v3985_v7 = vsub.f32 %v12245_v13, %v12306_v36  ;;  %v12695_v30 = vsel %vm411_vm1, %v4149_v52, %v14447_v56  ;;  %v14449_v16 = vrot.slane %v12658_v40, 7  ;;  %v12698_v0 = vmax.f32 %v4017_v12, 0.0 }
 0x308   : > { %9609 = vmatprep.mubr.msk.f32.mxu1 %vm580_vm2, %v12575_v48  ;;  %14655 = vst [vmem:[#allocation32_spill] sm:$0xff] %v12675_v10  ;;  %14656 = vst [vmem:[#allocation33_spill] sm:$0xff] %v12681_v59  ;;  %v12706_v13 = vsel %vm411_vm1, %v14446_v22, %v4152_v43  ;;  %v14448_v36 = vrot.slane %v12681_v59, 1  ;;  %v4155_v10 = vrot.slane %v12681_v59, 7  ;;  %v12710_v52 = vmax.f32 %v4018_v35, 0.0 }
 0x309   : > { %9660 = vmatmul.mubr.msk.f32.gmra.mrb[174].mxu0 %vm580_vm2, %v12522_v5  ;;  %14657 = vst [vmem:[#allocation34_spill] sm:$0xff] %v12695_v30  ;;  %14658 = vst [vmem:[#allocation35_spill] sm:$0xff] %v12698_v0  ;;  %v4019_v57 = vmul.f32 %v12318_v60, %v3985_v7  ;;  %v12721_v60 = vsel %vm411_vm1, %v4152_v43, %v14449_v16  ;;  %v14453_v12 = vrot.slane %v12698_v0, 7  ;;  %v12736_v1 = vmax.f32 %v12508_v44, 0.0 }
 0x30a   : > { %9662 = vmatprep.mubr.msk.f32.mxu0 %vm580_vm2, %v12544_v24  ;;  %14659 = vst [vmem:[#allocation36_spill] sm:$0xff] %v12706_v13  ;;  %14660 = vst [vmem:[#allocation37_spill] sm:$0xff] %v12710_v52  ;;  %v12731_v35 = vsel %vm411_vm1, %v14448_v36, %v4155_v10  ;;  %v14452_v22 = vrot.slane %v12710_v52, 1  ;;  %v4158_v56 = vrot.slane %v12710_v52, 7  ;;  %v12751_v36 = vmax.f32 %v12531_v8, 0.0 }
 0x30b   : > { %9610 = vmatmul.mubr.msk.f32.gmra.mrb[142].mxu1 %vm580_vm2, %v12598_v26  ;;  %14661 = vst [vmem:[#allocation39_spill] sm:$0xff] %v12721_v60  ;;  %v12724_v7 = vmax.f32 %v4019_v57, 0.0  ;;  %14663 = vst [vmem:[#allocation42_spill] sm:$0xff] %v12731_v35  ;;  %v12747_v57 = vsel %vm411_vm1, %v4155_v10, %v14453_v12  ;;  %v14458_v16 = vrot.slane %v12736_v1, 1  ;;  %v12763_v10 = vmax.f32 %v12534_v49, 0.0 }
 0x30c   : > { %9612 = vmatprep.mubr.msk.f32.mxu1 %vm580_vm2, %v12609_v45  ;;  %14664 = vst [vmem:[#allocation43_spill] sm:$0xff] %v12736_v1  ;;  %14665 = vst [vmem:[#allocation44_spill] sm:$0xff] %v12747_v57  ;;  %v12758_v44 = vsel %vm411_vm1, %v14452_v22, %v4158_v56  ;;  %v14461_v22 = vrot.slane %v12751_v36, 7  ;;  %v12778_v12 = vmax.f32 %v12568_v61, 0.0 }
 0x30d   : > { %9663 = vmatmul.mubr.msk.f32.gmra.mrb[176].mxu0 %vm580_vm2, %v12564_v33  ;;  %14662 = vst [vmem:[#allocation40_spill] sm:$0xff] %v12724_v7  ;;  %v14459_v43 = vrot.slane %v12724_v7, 7  ;;  %14666 = vst [vmem:[#allocation45_spill] sm:$0xff] %v12758_v44 }
 0x30e   : > { %9665 = vmatprep.mubr.msk.f32.mxu0 %vm580_vm2, %v12579_v2  ;;  %14667 = vst [vmem:[#allocation46_spill] sm:$0xff] %v12763_v10 }
 0x30f   : > { %9613 = vmatmul.mubr.msk.f32.gmra.mrb[144].mxu1 %vm580_vm2, %v12627_v42  ;;  %v12774_v8 = vsel %vm411_vm1, %v4158_v56, %v14459_v43  ;;  %v14466_v56 = vrot.slane %v12778_v12, 7  ;;  %v4202_v43 = vrot.slane %v12328_v4, 1 }
 0x310   : > { %9615 = vmatprep.mubr.msk.f32.mxu1 %vm580_vm2, %v12638_v62  ;;  %14668 = vst [vmem:[#allocation50_spill] sm:$0xff] %v12774_v8 }
 0x311   : > { %9666 = vmatmul.mubr.msk.f32.gmra.mrb[178].mxu0 %vm580_vm2, %v12587_v3 }
 0x312   : > { %9668 = vmatprep.mubr.msk.f32.mxu0 %vm580_vm2, %v12601_v14 }
 0x313   : > { %9616 = vmatmul.mubr.msk.f32.gmra.mrb[146].mxu1 %vm580_vm2, %v12656_v20 }
 0x314   : > { %9618 = vmatprep.mubr.msk.f32.mxu1 %vm580_vm2, %v12670_v23 }
 0x315   : > { %9669 = vmatmul.mubr.msk.f32.gmra.mrb[180].mxu0 %vm580_vm2, %v12631_v47 }
 0x316   : > { %9671 = vmatprep.mubr.msk.f32.mxu0 %vm580_vm2, %v12640_v46 }
 0x317   : > { %9619 = vmatmul.mubr.msk.f32.gmra.mrb[148].mxu1 %vm580_vm2, %v12695_v30 }
 0x318   : > { %9621 = vmatprep.mubr.msk.f32.mxu1 %vm580_vm2, %v12706_v13 }
 0x319   : > { %9672 = vmatmul.mubr.msk.f32.gmra.mrb[182].mxu0 %vm580_vm2, %v12658_v40 }
 0x31a   : > { %9674 = vmatprep.mubr.msk.f32.mxu0 %vm580_vm2, %v12681_v59  ;;  %v4161_v59 = vrot.slane %v12736_v1, 7 }
 0x31b   : > { %9622 = vmatmul.mubr.msk.f32.gmra.mrb[150].mxu1 %vm580_vm2, %v12721_v60 }
 0x31c   : > { %9624 = vmatprep.mubr.msk.f32.mxu1 %vm580_vm2, %v12731_v35  ;;  %v12785_v49 = vsel %vm411_vm1, %v14458_v16, %v4161_v59  ;;  %v12798_v61 = vsel %vm411_vm1, %v4161_v59, %v14461_v22 }
 0x31d   : > { %9675 = vmatmul.mubr.msk.f32.gmra.mrb[184].mxu0 %vm580_vm2, %v12698_v0  ;;  %14669 = vst [vmem:[#allocation51_spill] sm:$0xff] %v12785_v49  ;;  %14670 = vst [vmem:[#allocation52_spill] sm:$0xff] %v12798_v61 }
 0x31e   : > { %9677 = vmatprep.mubr.msk.f32.mxu0 %vm580_vm2, %v12710_v52  ;;  %v14460_v52 = vrot.slane %v12763_v10, 1 }
 0x31f   : > { %9625 = vmatmul.mubr.msk.f32.gmra.mrb[152].mxu1 %vm580_vm2, %v12747_v57 }
 0x320   : > { %9627 = vmatprep.mubr.msk.f32.mxu1 %vm580_vm2, %v12758_v44 }
 0x321   : > { %9678 = vmatmul.mubr.msk.f32.gmra.mrb[186].mxu0 %vm580_vm2, %v12724_v7  ;;  %v4164_v7 = vrot.slane %v12763_v10, 7 }
 0x322   : > { %9680 = vmatprep.mubr.msk.f32.mxu0 %vm580_vm2, %v12736_v1  ;;  %v12830_v1 = vld [vmem:[#allocation9 + $0x1c] sm:$0xf] }
 0x323   : > { %9628 = vmatmul.mubr.msk.f32.gmra.mrb[154].mxu1 %vm580_vm2, %v12774_v8  ;;  %v12806_v16 = vsel %vm411_vm1, %v14460_v52, %v4164_v7  ;;  %v12818_v59 = vsel %vm411_vm1, %v4164_v7, %v14466_v56  ;;  %v14673_v52 = vrot.slane %v12326_v41, 1  ;;  %v14675_v56 = vrot.slane %v12330_v58, 1 }
 0x324   : > { %9630 = vmatprep.mubr.msk.f32.mxu1 %vm580_vm2, %v12785_v49  ;;  %14671 = vst [vmem:[#allocation53_spill] sm:$0xff] %v12806_v16  ;;  %14672 = vst [vmem:[#allocation47_spill] sm:$0xff] %v12818_v59 }
 0x325   : > { %9681 = vmatmul.mubr.msk.f32.gmra.mrb[188].mxu0 %vm580_vm2, %v12751_v36  ;;  %v12825_v22 = vsel %vm492_vm3, %v14673_v52, %v4202_v43  ;;  %v12843_v52 = vld [vmem:[#allocation9 + $0x18] sm:$0xf] }
 0x326   : > { %9683 = vmatprep.mubr.msk.f32.mxu0 %vm580_vm2, %v12763_v10  ;;  %v4204_v10 = vrot.slane %v12332_v38, 1 }
 0x327   : > { %9631 = vmatmul.mubr.msk.f32.gmra.mrb[156].mxu1 %vm580_vm2, %v12798_v61 }
 0x328   : > { %9633 = vmatprep.mubr.msk.f32.mxu1 %vm580_vm2, %v12806_v16 }
 0x329   : > { %9684 = vmatmul.mubr.msk.f32.gmra.mrb[190].mxu0 %vm580_vm2, %v12778_v12 }
 0x32a   : > { %9738 = vmatprep.mubr.msk.f32.mxu0 %vm580_vm2, %v12378_v53  ;;  %v14674_v53 = vrot.slane %v12328_v4, 7 }
 0x32b   : > { %9634 = vmatmul.mubr.msk.f32.gmra.mrb[158].mxu1 %vm580_vm2, %v12818_v59 }
 0x32c   : > { %9688 = vmatprep.mubr.msk.f32.mxu1 %vm580_vm2, %v12825_v22  ;;  %v12839_v7 = vsel %vm492_vm3, %v4202_v43, %v14674_v53  ;;  %v4208_v53 = vrot.slane %v12424_v29, 1 }
 0x32d   : > { %9739 = vmatmul.mubr.msk.f32.vlgmr.msra.gmra.mrb[192].mxu0 %vm580_vm2, %v12399_v27  ;;  %v12850_v27 = vsel %vm492_vm3, %v14675_v56, %v4204_v10 }
 0x32e   : > { %9741 = vmatprep.mubr.msk.f32.mxu0 %vm580_vm2, %v12355_v21  ;;  %9837 = vmatpush3.msk.msra.mxu0 %vm720_vm0, %v12341_v19  ;;  %v14676_v19 = vrot.slane %v12332_v38, 7 }
 0x32f   : > { %9689 = vmatmul.mubr.msk.f32.vlgmr.msra.gmra.mrb[160].mxu1 %vm580_vm2, %v12839_v7  ;;  %9936 = vmatprep.subr.msk.mxu0 %vm720_vm0, %v12830_v1 }
 0x330   : > { %9787 = vmatpush3.msk.msra.mxu1 %vm720_vm0, %v12369_v31  ;;  %9691 = vmatprep.mubr.msk.f32.mxu1 %vm580_vm2, %v12850_v27  ;;  %v12867_v43 = vsel %vm492_vm3, %v4204_v10, %v14676_v19  ;;  %v4206_v31 = vrot.slane %v12401_v32, 1  ;;  %v14677_v10 = vrot.slane %v12380_v37, 1  ;;  %v14678_v19 = vrot.slane %v12401_v32, 7 }
 0x331   : > { %9742 = vmatmul.mubr.msk.f32.gmra.mrb[194].mxu0 %vm580_vm2, %v12360_v39  ;;  %9886 = vmatprep.subr.msk.mxu1 %vm720_vm0, %v12843_v52  ;;  %v4214_v39 = vrot.slane %v12522_v5, 1 }
 0x332   : > { %9744 = vmatprep.mubr.msk.f32.mxu0 %vm580_vm2, %v12433_v25  ;;  %v12883_v56 = vsel %vm492_vm3, %v14677_v10, %v4206_v31  ;;  %v14679_v10 = vrot.slane %v12403_v54, 1  ;;  %v4210_v25 = vrot.slane %v12445_v6, 1 }
 0x333   : > { %9692 = vmatmul.mubr.msk.f32.gmra.mrb[162].mxu1 %vm580_vm2, %v12867_v43 }
 0x334   : > { %9694 = vmatprep.mubr.msk.f32.mxu1 %vm580_vm2, %v12825_v22 }
 0x335   : > { %9745 = vmatmul.mubr.msk.f32.gmra.mrb[196].mxu0 %vm580_vm2, %v12453_v63  ;;  %v12902_v63 = vsel %vm492_vm3, %v14679_v10, %v4208_v53  ;;  %v14681_v10 = vrot.slane %v12436_v55, 1 }
 0x336   : > { %9747 = vmatprep.mubr.msk.f32.mxu0 %vm580_vm2, %v12464_v17  ;;  %v12895_v17 = vsel %vm492_vm3, %v4206_v31, %v14678_v19  ;;  %v14680_v31 = vrot.slane %v12424_v29, 7 }
 0x337   : > { %9695 = vmatmul.mubr.msk.f32.gmra.mrb[164].mxu1 %vm580_vm2, %v12839_v7 }
 0x338   : > { %9697 = vmatprep.mubr.msk.f32.mxu1 %vm580_vm2, %v12883_v56  ;;  %v12914_v19 = vsel %vm492_vm3, %v4208_v53, %v14680_v31  ;;  %v14682_v53 = vrot.slane %v12445_v6, 7 }
 0x339   : > { %9748 = vmatmul.mubr.msk.f32.gmra.mrb[198].mxu0 %vm580_vm2, %v12485_v11  ;;  %v4212_v11 = vrot.slane %v12475_v34, 1 }
 0x33a   : > { %9750 = vmatprep.mubr.msk.f32.mxu0 %vm580_vm2, %v12498_v28  ;;  %v12921_v28 = vsel %vm492_vm3, %v14681_v10, %v4210_v25  ;;  %v12933_v31 = vsel %vm492_vm3, %v4210_v25, %v14682_v53  ;;  %v14683_v10 = vrot.slane %v12468_v9, 1  ;;  %v14684_v25 = vrot.slane %v12475_v34, 7 }
 0x33b   : > { %9698 = vmatmul.mubr.msk.f32.gmra.mrb[166].mxu1 %vm580_vm2, %v12895_v17 }
 0x33c   : > { %9700 = vmatprep.mubr.msk.f32.mxu1 %vm580_vm2, %v12902_v63  ;;  %v12984_v53 = vsel %vm492_vm3, %v4212_v11, %v14684_v25 }
 0x33d   : > { %9751 = vmatmul.mubr.msk.f32.gmra.mrb[200].mxu0 %vm580_vm2, %v12519_v50  ;;  %v12940_v50 = vsel %vm492_vm3, %v14683_v10, %v4212_v11  ;;  %v14685_v10 = vrot.slane %v12487_v51, 1  ;;  %v14686_v11 = vrot.slane %v12522_v5, 7 }
 0x33e   : > { %9753 = vmatprep.mubr.msk.f32.mxu0 %vm580_vm2, %v12541_v18  ;;  %v8237_v18 = vld [vmem:[#allocation11] ss:$0 sm:$0xff] }
 0x33f   : > { %9701 = vmatmul.mubr.msk.f32.gmra.mrb[168].mxu1 %vm580_vm2, %v12914_v19  ;;  %4290 = vst.msk [vmem:[#allocation2 + $0x8] sm:$0xff] %vm580_vm2, %v8237_v18  ;;  %4289 = vst.msk [vmem:[#allocation2] sm:$0xff] %vm580_vm2, %v8237_v18  ;;  %v13003_v25 = vsel %vm492_vm3, %v4214_v39, %v14686_v11 }
 0x340   : > { %9703 = vmatprep.mubr.msk.f32.mxu1 %vm580_vm2, %v12921_v28  ;;  %4291 = vst.msk [vmem:[#allocation2 + $0x10] sm:$0xff] %vm580_vm2, %v8237_v18  ;;  %4292 = vst.msk [vmem:[#allocation2 + $0x18] sm:$0xff] %vm580_vm2, %v8237_v18 }
 0x341   : > { %9754 = vmatmul.mubr.msk.f32.gmra.mrb[202].mxu0 %vm580_vm2, %v12558_v15  ;;  %4293 = vst.msk [vmem:[#allocation2 + $0x20] sm:$0xff] %vm580_vm2, %v8237_v18  ;;  %4294 = vst.msk [vmem:[#allocation2 + $0x28] sm:$0xff] %vm580_vm2, %v8237_v18  ;;  %v14697_v15 = vld [vmem:[#allocation40_spill] sm:$0xff] }
 0x342   : > { %9756 = vmatprep.mubr.msk.f32.mxu0 %vm580_vm2, %v12575_v48  ;;  %4295 = vst.msk [vmem:[#allocation2 + $0x30] sm:$0xff] %vm580_vm2, %v8237_v18  ;;  %4296 = vst.msk [vmem:[#allocation2 + $0x38] sm:$0xff] %vm580_vm2, %v8237_v18  ;;  %v4216_v48 = vrot.slane %v12564_v33, 1  ;;  %v4226_v21 = vrot.slane %v14697_v15, 1 }
 0x343   : > { %9704 = vmatmul.mubr.msk.f32.gmra.mrb[170].mxu1 %vm580_vm2, %v12933_v31  ;;  %4297 = vst.msk [vmem:[#allocation2 + $0x40] sm:$0xff] %vm580_vm2, %v8237_v18  ;;  %4298 = vst.msk [vmem:[#allocation2 + $0x48] sm:$0xff] %vm580_vm2, %v8237_v18 }
 0x344   : > { %4299 = vst.msk [vmem:[#allocation2 + $0x50] sm:$0xff] %vm580_vm2, %v8237_v18  ;;  %4300 = vst.msk [vmem:[#allocation2 + $0x58] sm:$0xff] %vm580_vm2, %v8237_v18  ;;  %9706 = vmatprep.mubr.msk.f32.mxu1 %vm580_vm2, %v12940_v50 }
 0x345   : > { %4301 = vst.msk [vmem:[#allocation2 + $0x60] sm:$0xff] %vm580_vm2, %v8237_v18  ;;  %4302 = vst.msk [vmem:[#allocation2 + $0x68] sm:$0xff] %vm580_vm2, %v8237_v18  ;;  %9757 = vmatmul.mubr.msk.f32.gmra.mrb[204].mxu0 %vm580_vm2, %v12598_v26  ;;  %v4218_v26 = vrot.slane %v12587_v3, 1 }
 0x346   : > { %4303 = vst.msk [vmem:[#allocation2 + $0x70] sm:$0xff] %vm580_vm2, %v8237_v18  ;;  %4304 = vst.msk [vmem:[#allocation2 + $0x78] sm:$0xff] %vm580_vm2, %v8237_v18  ;;  %9759 = vmatprep.mubr.msk.f32.mxu0 %vm580_vm2, %v12609_v45 }
 0x347   : > { %4305 = vst.msk [vmem:[#allocation2 + $0x80] sm:$0xff] %vm580_vm2, %v8237_v18  ;;  %4306 = vst.msk [vmem:[#allocation2 + $0x88] sm:$0xff] %vm580_vm2, %v8237_v18  ;;  %9707 = vmatmul.mubr.msk.f32.gmra.mrb[172].mxu1 %vm580_vm2, %v12984_v53 }
 0x348   : > { %4307 = vst.msk [vmem:[#allocation2 + $0x90] sm:$0xff] %vm580_vm2, %v8237_v18  ;;  %4308 = vst.msk [vmem:[#allocation2 + $0x98] sm:$0xff] %vm580_vm2, %v8237_v18 }
 0x349   : > { %4309 = vst.msk [vmem:[#allocation2 + $0xa0] sm:$0xff] %vm580_vm2, %v8237_v18  ;;  %4310 = vst.msk [vmem:[#allocation2 + $0xa8] sm:$0xff] %vm580_vm2, %v8237_v18  ;;  %9760 = vmatmul.mubr.msk.f32.gmra.mrb[206].mxu0 %vm580_vm2, %v12627_v42  ;;  %v4220_v42 = vrot.slane %v12631_v47, 1 }
 0x34a   : > { %4311 = vst.msk [vmem:[#allocation2 + $0xb0] sm:$0xff] %vm580_vm2, %v8237_v18  ;;  %4312 = vst.msk [vmem:[#allocation2 + $0xb8] sm:$0xff] %vm580_vm2, %v8237_v18  ;;  %9762 = vmatprep.mubr.msk.f32.mxu0 %vm580_vm2, %v12638_v62 }
 0x34b   : > { %4313 = vst.msk [vmem:[#allocation2 + $0xc0] sm:$0xff] %vm580_vm2, %v8237_v18  ;;  %4314 = vst.msk [vmem:[#allocation2 + $0xc8] sm:$0xff] %vm580_vm2, %v8237_v18 }
 0x34c   : > { %4315 = vst.msk [vmem:[#allocation2 + $0xd0] sm:$0xff] %vm580_vm2, %v8237_v18  ;;  %4316 = vst.msk [vmem:[#allocation2 + $0xd8] sm:$0xff] %vm580_vm2, %v8237_v18 }
 0x34d   : > { %4317 = vst.msk [vmem:[#allocation2 + $0xe0] sm:$0xff] %vm580_vm2, %v8237_v18  ;;  %4318 = vst.msk [vmem:[#allocation2 + $0xe8] sm:$0xff] %vm580_vm2, %v8237_v18  ;;  %9763 = vmatmul.mubr.msk.f32.gmra.mrb[208].mxu0 %vm580_vm2, %v12656_v20  ;;  %v4222_v20 = vrot.slane %v12658_v40, 1 }
 0x34e   : > { %4319 = vst.msk [vmem:[#allocation2 + $0xf0] sm:$0xff] %vm580_vm2, %v8237_v18  ;;  %4320 = vst.msk [vmem:[#allocation2 + $0xf8] sm:$0xff] %vm580_vm2, %v8237_v18  ;;  %v12991_v18 = vsel %vm492_vm3, %v14685_v10, %v4214_v39  ;;  %v14687_v10 = vrot.slane %v12544_v24, 1  ;;  %9765 = vmatprep.mubr.msk.f32.mxu0 %vm580_vm2, %v12670_v23  ;;  %v14688_v39 = vrot.slane %v12564_v33, 7 }
 0x34f   : > { %9709 = vmatprep.mubr.msk.f32.mxu1 %vm580_vm2, %v12991_v18 }
 0x350   : > { %9710 = vmatmul.mubr.msk.f32.gmra.mrb[174].mxu1 %vm580_vm2, %v13003_v25  ;;  %v13010_v45 = vsel %vm492_vm3, %v14687_v10, %v4216_v48  ;;  %v13022_v11 = vsel %vm492_vm3, %v4216_v48, %v14688_v39  ;;  %v14689_v10 = vrot.slane %v12579_v2, 1  ;;  %v14690_v48 = vrot.slane %v12587_v3, 7 }
 0x351   : > { %9712 = vmatprep.mubr.msk.f32.mxu1 %vm580_vm2, %v13010_v45  ;;  %9766 = vmatmul.mubr.msk.f32.gmra.mrb[210].mxu0 %vm580_vm2, %v12695_v30  ;;  %v4224_v30 = vrot.slane %v12698_v0, 1 }
 0x352   : > { %v13029_v62 = vsel %vm492_vm3, %v14689_v10, %v4218_v26  ;;  %9768 = vmatprep.mubr.msk.f32.mxu0 %vm580_vm2, %v12706_v13  ;;  %v13041_v39 = vsel %vm492_vm3, %v4218_v26, %v14690_v48  ;;  %v14691_v10 = vrot.slane %v12601_v14, 1  ;;  %v14692_v26 = vrot.slane %v12631_v47, 7 }
 0x354   : > { %9713 = vmatmul.mubr.msk.f32.gmra.mrb[176].mxu1 %vm580_vm2, %v13022_v11  ;;  %v13048_v23 = vsel %vm492_vm3, %v14691_v10, %v4220_v42  ;;  %v13060_v48 = vsel %vm492_vm3, %v4220_v42, %v14692_v26  ;;  %v14693_v10 = vrot.slane %v12640_v46, 1  ;;  %v14694_v42 = vrot.slane %v12658_v40, 7 }
 0x355   : > { %9715 = vmatprep.mubr.msk.f32.mxu1 %vm580_vm2, %v13029_v62  ;;  %9769 = vmatmul.mubr.msk.f32.gmra.mrb[212].mxu0 %vm580_vm2, %v12721_v60 }
 0x356   : > { %9771 = vmatprep.mubr.msk.f32.mxu0 %vm580_vm2, %v12731_v35  ;;  %v13067_v13 = vsel %vm492_vm3, %v14693_v10, %v4222_v20  ;;  %v13079_v26 = vsel %vm492_vm3, %v4222_v20, %v14694_v42  ;;  %v14695_v10 = vld [vmem:[#allocation33_spill] sm:$0xff]  ;;  %v14699_v20 = vrot.slane %v12698_v0, 7 }
 0x357   : > { %v14696_v35 = vrot.slane %v14695_v10, 1 }
 0x358   : > { %9716 = vmatmul.mubr.msk.f32.gmra.mrb[178].mxu1 %vm580_vm2, %v13041_v39  ;;  %v13101_v42 = vsel %vm492_vm3, %v4224_v30, %v14699_v20 }
 0x359   : > { %9718 = vmatprep.mubr.msk.f32.mxu1 %vm580_vm2, %v13048_v23  ;;  %9772 = vmatmul.mubr.msk.f32.gmra.mrb[214].mxu0 %vm580_vm2, %v12747_v57  ;;  %v13086_v60 = vsel %vm492_vm3, %v14696_v35, %v4224_v30  ;;  %v14700_v35 = vld [vmem:[#allocation37_spill] sm:$0xff]  ;;  %v4230_v30 = vrot.slane %v12778_v12, 1 }
 0x35a   : > { %9774 = vmatprep.mubr.msk.f32.mxu0 %vm580_vm2, %v12758_v44  ;;  %v14698_v44 = vld [vmem:[#allocation30_spill] sm:$0xff]  ;;  %v14701_v10 = vrot.slane %v14700_v35, 1 }
 0x35b   : > { %v13094_v57 = vmax.f32 %v14698_v44, 0.0  ;;  %v14703_v44 = vld [vmem:[#allocation32_spill] sm:$0xff] }
 0x35c   : > { %9719 = vmatmul.mubr.msk.f32.gmra.mrb[180].mxu1 %vm580_vm2, %v13060_v48  ;;  %v13108_v40 = vsel %vm492_vm3, %v14701_v10, %v4226_v21  ;;  %v14704_v10 = vrot.slane %v14697_v15, 7 }
 0x35d   : > { %9721 = vmatprep.mubr.msk.f32.mxu1 %vm580_vm2, %v13067_v13  ;;  %9775 = vmatmul.mubr.msk.f32.gmra.mrb[216].mxu0 %vm580_vm2, %v12774_v8  ;;  %14702 = vst [vmem:[#allocation40_spill] sm:$0xff] %v13108_v40  ;;  %v4228_v8 = vrot.slane %v12751_v36, 1  ;;  %v4167_v20 = vrot.slane %v13094_v57, 7 }
 0x35e   : > { %9777 = vmatprep.mubr.msk.f32.mxu0 %vm580_vm2, %v12785_v49  ;;  %v13114_v49 = vmax.f32 %v14703_v44, 0.0  ;;  %v13125_v35 = vsel %vm492_vm3, %v4226_v21, %v14704_v10  ;;  %v14705_v44 = vld [vmem:[#allocation43_spill] sm:$0xff]  ;;  %v14707_v21 = vrot.slane %v13094_v57, 1 }
 0x35f   : > { %v14706_v0 = vrot.slane %v14705_v44, 1 }
 0x360   : > { %9722 = vmatmul.mubr.msk.f32.gmra.mrb[182].mxu1 %vm580_vm2, %v13079_v26  ;;  %v13143_v10 = vsel %vm411_vm1, %v14707_v21, %v4167_v20  ;;  %v14713_v21 = vrot.slane %v13114_v49, 7 }
 0x361   : > { %9724 = vmatprep.mubr.msk.f32.mxu1 %vm580_vm2, %v13086_v60  ;;  %9778 = vmatmul.mubr.msk.f32.gmra.mrb[218].mxu0 %vm580_vm2, %v12798_v61  ;;  %14708 = vst [vmem:[#allocation30_spill] sm:$0xff] %v13143_v10 }
 0x362   : > { %9780 = vmatprep.mubr.msk.f32.mxu0 %vm580_vm2, %v12806_v16  ;;  %v14710_v16 = vld [vmem:[#allocation46_spill] sm:$0xff] }
 0x363   : > { %v14711_v44 = vrot.slane %v14710_v16, 1 }
 0x364   : > { %9725 = vmatmul.mubr.msk.f32.gmra.mrb[184].mxu1 %vm580_vm2, %v13101_v42 }
 0x365   : > { %9727 = vmatprep.mubr.msk.f32.mxu1 %vm580_vm2, %v13108_v40  ;;  %v13132_v40 = vsel %vm492_vm3, %v14706_v0, %v4228_v8  ;;  %9781 = vmatmul.mubr.msk.f32.gmra.mrb[220].mxu0 %vm580_vm2, %v12818_v59  ;;  %v14709_v0 = vrot.slane %v12751_v36, 7  ;;  %v13157_v59 = vsel %vm492_vm3, %v14711_v44, %v4230_v30  ;;  %v14721_v44 = vrot.slane %v13094_v57, 1 }
 0x366   : > { %9783 = vmatprep.mubr.msk.f32.mxu0 %vm580_vm2, %v13143_v10  ;;  %14712 = vst [vmem:[#allocation32_spill] sm:$0xff] %v13157_v59  ;;  %v13164_v10 = vsel %vm411_vm1, %v4167_v20, %v14713_v21  ;;  %v4232_v20 = vrot.slane %v13114_v49, 1 }
 0x367   : > { %v13150_v61 = vsel %vm492_vm3, %v4228_v8, %v14709_v0  ;;  %v14714_v8 = vrot.slane %v12778_v12, 7 }
 0x368   : > { %9728 = vmatmul.mubr.msk.f32.gmra.mrb[186].mxu1 %vm580_vm2, %v13125_v35  ;;  %v13305_v21 = vsel %vm492_vm3, %v14721_v44, %v4232_v20  ;;  %v14723_v44 = vld [vmem:[#allocation17_spill] sm:$0xff] }
 0x369   : > { %9730 = vmatprep.mubr.msk.f32.mxu1 %vm580_vm2, %v13132_v40  ;;  %9784 = vmatmul.mubr.msk.f32.gmra.mrb[222].mxu0 %vm580_vm2, %v13164_v10  ;;  %v13173_v0 = vsel %vm492_vm3, %v4230_v30, %v14714_v8  ;;  %v14720_v30 = vld [vmem:[#allocation43_spill] sm:$0xff]  ;;  %v14722_v8 = vrot.slane %v13114_v49, 7 }
 0x36a   : > { %9838 = vmatprep.mubr.msk.f32.mxu0 %vm580_vm2, %v12850_v27  ;;  %v13185_v27 = vld [vmem:[#allocation9 + $0x20] sm:$0xf] }
 0x36c   : > { %9731 = vmatmul.mubr.msk.f32.gmra.mrb[188].mxu1 %vm580_vm2, %v13150_v61 }
 0x36d   : > { %9733 = vmatprep.mubr.msk.f32.mxu1 %vm580_vm2, %v13157_v59  ;;  %9839 = vmatmul.mubr.msk.f32.vlgmr.msra.gmra.mrb[224].mxu0 %vm580_vm2, %v12867_v43  ;;  %v14719_v43 = vld [vmem:[#allocation37_spill] sm:$0xff] }
 0x36e   : > { %9841 = vmatprep.mubr.msk.f32.mxu0 %vm580_vm2, %v12825_v22  ;;  %9937 = vmatpush3.msk.msra.mxu0 %vm720_vm0, %v12830_v1  ;;  %v14717_v1 = vld [vmem:[#allocation40_spill] sm:$0xff] }
 0x370   : > { %9734 = vmatmul.mubr.msk.f32.gmra.mrb[190].mxu1 %vm580_vm2, %v13173_v0 }
 0x371   : > { %9788 = vmatprep.mubr.msk.f32.mxu1 %vm580_vm2, %v12330_v58  ;;  %9842 = vmatmul.mubr.msk.f32.gmra.mrb[226].mxu0 %vm580_vm2, %v12839_v7  ;;  %v14715_v58 = vld [vmem:[#allocation29_spill] sm:$0xff] }
 0x372   : > { %9844 = vmatprep.mubr.msk.f32.mxu0 %vm580_vm2, %v12883_v56 }
 0x374   : > { %9789 = vmatmul.mubr.msk.f32.vlgmr.msra.gmra.mrb[192].mxu1 %vm580_vm2, %v12332_v38  ;;  %v14716_v38 = vld [vmem:[#allocation33_spill] sm:$0xff] }
 0x375   : > { %9887 = vmatpush3.msk.msra.mxu1 %vm720_vm0, %v12843_v52  ;;  %9791 = vmatprep.mubr.msk.f32.mxu1 %vm580_vm2, %v12326_v41  ;;  %v14718_v52 = vld [vmem:[#allocation35_spill] sm:$0xff] }
 0x376   : > { %9986 = vmatprep.subr.msk.mxu1 %vm720_vm0, %v13185_v27  ;;  %9845 = vmatmul.mubr.msk.f32.gmra.mrb[228].mxu0 %vm580_vm2, %v12895_v17 }
 0x377   : > { %9847 = vmatprep.mubr.msk.f32.mxu0 %vm580_vm2, %v12902_v63 }
 0x378   : > { %9792 = vmatmul.mubr.msk.f32.gmra.mrb[194].mxu1 %vm580_vm2, %v12328_v4 }
 0x379   : > { %9794 = vmatprep.mubr.msk.f32.mxu1 %vm580_vm2, %v12380_v37 }
 0x37a   : > { %9848 = vmatmul.mubr.msk.f32.gmra.mrb[230].mxu0 %vm580_vm2, %v12914_v19 }
 0x37b   : > { %9850 = vmatprep.mubr.msk.f32.mxu0 %vm580_vm2, %v12921_v28 }
 0x37c   : > { %9795 = vmatmul.mubr.msk.f32.gmra.mrb[196].mxu1 %vm580_vm2, %v12401_v32 }
 0x37d   : > { %9797 = vmatprep.mubr.msk.f32.mxu1 %vm580_vm2, %v12403_v54 }
 0x37e   : > { %9851 = vmatmul.mubr.msk.f32.gmra.mrb[232].mxu0 %vm580_vm2, %v12933_v31 }
 0x37f   : > { %9853 = vmatprep.mubr.msk.f32.mxu0 %vm580_vm2, %v12940_v50 }
 0x380   : > { %9798 = vmatmul.mubr.msk.f32.gmra.mrb[198].mxu1 %vm580_vm2, %v12424_v29 }
 0x381   : > { %9800 = vmatprep.mubr.msk.f32.mxu1 %vm580_vm2, %v12436_v55 }
 0x382   : > { %9854 = vmatmul.mubr.msk.f32.gmra.mrb[234].mxu0 %vm580_vm2, %v12984_v53 }
 0x383   : > { %9856 = vmatprep.mubr.msk.f32.mxu0 %vm580_vm2, %v12991_v18 }
 0x384   : > { %9801 = vmatmul.mubr.msk.f32.gmra.mrb[200].mxu1 %vm580_vm2, %v12445_v6 }
 0x385   : > { %9803 = vmatprep.mubr.msk.f32.mxu1 %vm580_vm2, %v12468_v9 }
 0x386   : > { %9857 = vmatmul.mubr.msk.f32.gmra.mrb[236].mxu0 %vm580_vm2, %v13003_v25 }
 0x387   : > { %9859 = vmatprep.mubr.msk.f32.mxu0 %vm580_vm2, %v13010_v45 }
 0x388   : > { %9804 = vmatmul.mubr.msk.f32.gmra.mrb[202].mxu1 %vm580_vm2, %v12475_v34 }
 0x389   : > { %9806 = vmatprep.mubr.msk.f32.mxu1 %vm580_vm2, %v12487_v51 }
 0x38a   : > { %9860 = vmatmul.mubr.msk.f32.gmra.mrb[238].mxu0 %vm580_vm2, %v13022_v11 }
 0x38b   : > { %9862 = vmatprep.mubr.msk.f32.mxu0 %vm580_vm2, %v13029_v62 }
 0x38c   : > { %9807 = vmatmul.mubr.msk.f32.gmra.mrb[204].mxu1 %vm580_vm2, %v12522_v5 }
 0x38d   : > { %9809 = vmatprep.mubr.msk.f32.mxu1 %vm580_vm2, %v12544_v24 }
 0x38e   : > { %9863 = vmatmul.mubr.msk.f32.gmra.mrb[240].mxu0 %vm580_vm2, %v13041_v39 }
 0x38f   : > { %9865 = vmatprep.mubr.msk.f32.mxu0 %vm580_vm2, %v13048_v23 }
 0x390   : > { %9810 = vmatmul.mubr.msk.f32.gmra.mrb[206].mxu1 %vm580_vm2, %v12564_v33 }
 0x391   : > { %9812 = vmatprep.mubr.msk.f32.mxu1 %vm580_vm2, %v12579_v2 }
 0x392   : > { %9866 = vmatmul.mubr.msk.f32.gmra.mrb[242].mxu0 %vm580_vm2, %v13060_v48 }
 0x393   : > { %9868 = vmatprep.mubr.msk.f32.mxu0 %vm580_vm2, %v13067_v13 }
 0x394   : > { %9813 = vmatmul.mubr.msk.f32.gmra.mrb[208].mxu1 %vm580_vm2, %v12587_v3 }
 0x395   : > { %9815 = vmatprep.mubr.msk.f32.mxu1 %vm580_vm2, %v12601_v14 }
 0x396   : > { %9869 = vmatmul.mubr.msk.f32.gmra.mrb[244].mxu0 %vm580_vm2, %v13079_v26 }
 0x397   : > { %9871 = vmatprep.mubr.msk.f32.mxu0 %vm580_vm2, %v13086_v60 }
 0x398   : > { %9816 = vmatmul.mubr.msk.f32.gmra.mrb[210].mxu1 %vm580_vm2, %v12631_v47 }
 0x399   : > { %9818 = vmatprep.mubr.msk.f32.mxu1 %vm580_vm2, %v12640_v46 }
 0x39a   : > { %9872 = vmatmul.mubr.msk.f32.gmra.mrb[246].mxu0 %vm580_vm2, %v13101_v42 }
 0x39b   : > { %9874 = vmatprep.mubr.msk.f32.mxu0 %vm580_vm2, %v14717_v1 }
 0x39c   : > { %9819 = vmatmul.mubr.msk.f32.gmra.mrb[212].mxu1 %vm580_vm2, %v14715_v58 }
 0x39d   : > { %9821 = vmatprep.mubr.msk.f32.mxu1 %vm580_vm2, %v14716_v38 }
 0x39e   : > { %9875 = vmatmul.mubr.msk.f32.gmra.mrb[248].mxu0 %vm580_vm2, %v13125_v35 }
 0x39f   : > { %9877 = vmatprep.mubr.msk.f32.mxu0 %vm580_vm2, %v13132_v40 }
 0x3a0   : > { %9822 = vmatmul.mubr.msk.f32.gmra.mrb[214].mxu1 %vm580_vm2, %v14718_v52 }
 0x3a1   : > { %9824 = vmatprep.mubr.msk.f32.mxu1 %vm580_vm2, %v14719_v43 }
 0x3a2   : > { %9878 = vmatmul.mubr.msk.f32.gmra.mrb[250].mxu0 %vm580_vm2, %v13150_v61 }
 0x3a3   : > { %9880 = vmatprep.mubr.msk.f32.mxu0 %vm580_vm2, %v13157_v59  ;;  %v13316_v59 = vsel %vm492_vm3, %v4232_v20, %v14722_v8  ;;  %v14724_v20 = vld [vmem:[#allocation18_spill] sm:$0xff]  ;;  %v14725_v8 = vld [vmem:[#allocation48_spill] sm:$0xff] }
 0x3a4   : > { %9825 = vmatmul.mubr.msk.f32.gmra.mrb[216].mxu1 %vm580_vm2, %v14697_v15 }
 0x3a5   : > { %9827 = vmatprep.mubr.msk.f32.mxu1 %vm580_vm2, %v14720_v30 }
 0x3a6   : > { %9881 = vmatmul.mubr.msk.f32.gmra.mrb[252].mxu0 %vm580_vm2, %v13173_v0 }
 0x3a7   : > { %9883 = vmatprep.mubr.msk.f32.mxu0 %vm580_vm2, %v13305_v21 }
 0x3a8   : > { %9828 = vmatmul.mubr.msk.f32.gmra.mrb[218].mxu1 %vm580_vm2, %v12751_v36 }
 0x3a9   : > { %9830 = vmatprep.mubr.msk.f32.mxu1 %vm580_vm2, %v14710_v16 }
 0x3aa   : > { %9884 = vmatmul.mubr.msk.f32.gmra.mrb[254].mxu0 %vm580_vm2, %v13316_v59 }
 0x3ab   : > { %9938 = vmatprep.mubr.msk.f32.mxu0 %vm580_vm2, %v12326_v41  ;;  %v14726_v41 = vld [vmem:[#allocation49_spill] sm:$0xff] }
 0x3ac   : > { %9831 = vmatmul.mubr.msk.f32.gmra.mrb[220].mxu1 %vm580_vm2, %v12778_v12 }
 0x3ad   : > { %9833 = vmatprep.mubr.msk.f32.mxu1 %vm580_vm2, %v13094_v57 }
 0x3ae   : > { %9939 = vmatmul.mubr.msk.f32.vlgmr.msra.gmra.mrb[0].mxu0 %vm580_vm2, %v12328_v4  ;;  %v14727_v4 = vld [vmem:[#allocation38_spill] sm:$0xff] }
 0x3af   : > { %9941 = vmatprep.mubr.msk.f32.mxu0 %vm580_vm2, %v12380_v37  ;;  %v14728_v37 = vld [vmem:[#allocation41_spill] sm:$0xff] }
 0x3b0   : > { %9834 = vmatmul.mubr.msk.f32.gmra.mrb[222].mxu1 %vm580_vm2, %v13114_v49 }
 0x3b1   : > { %9888 = vmatprep.mubr.msk.f32.mxu1 %vm580_vm2, %v14723_v44  ;;  %v14733_v44 = vld [vmem:[#allocation23_spill] sm:$0xff] }
 0x3b2   : > { %9942 = vmatmul.mubr.msk.f32.gmra.mrb[2].mxu0 %vm580_vm2, %v12401_v32  ;;  %v14730_v32 = vld [vmem:[#allocation20_spill] sm:$0xff] }
 0x3b3   : > { %9944 = vmatprep.mubr.msk.f32.mxu0 %vm580_vm2, %v12403_v54  ;;  %v14731_v54 = vld [vmem:[#allocation21_spill] sm:$0xff] }
 0x3b4   : > { %9889 = vmatmul.mubr.msk.f32.vlgmr.msra.gmra.mrb[224].mxu1 %vm580_vm2, %v14724_v20  ;;  %v4321_v20 = vld [vmem:[#allocation2] sm:$0xff] }
 0x3b5   : > { %9987 = vmatpush3.msk.msra.mxu1 %vm720_vm0, %v13185_v27  ;;  %9891 = vmatprep.mubr.msk.f32.mxu1 %vm580_vm2, %v14725_v8  ;;  %v14729_v27 = vld [vmem:[#allocation19_spill] sm:$0xff] }
 0x3b6   : > { %9945 = vmatmul.mubr.msk.f32.gmra.mrb[4].mxu0 %vm580_vm2, %v12424_v29 }
 0x3b7   : > { %9947 = vmatprep.mubr.msk.f32.mxu0 %vm580_vm2, %v12436_v55  ;;  %v14732_v55 = vld [vmem:[#allocation22_spill] sm:$0xff] }
 0x3b8   : > { %9892 = vmatmul.mubr.msk.f32.gmra.mrb[226].mxu1 %vm580_vm2, %v14726_v41 }
 0x3b9   : > { %9894 = vmatprep.mubr.msk.f32.mxu1 %vm580_vm2, %v14727_v4 }
 0x3ba   : > { %9948 = vmatmul.mubr.msk.f32.gmra.mrb[6].mxu0 %vm580_vm2, %v12445_v6 }
 0x3bb   : > { %9950 = vmatprep.mubr.msk.f32.mxu0 %vm580_vm2, %v12468_v9  ;;  %v4322_v9 = vld [vmem:[#allocation2 + $0x8] sm:$0xff] }
 0x3bc   : > { %9895 = vmatmul.mubr.msk.f32.gmra.mrb[228].mxu1 %vm580_vm2, %v14728_v37 }
 0x3bd   : > { %9897 = vmatprep.mubr.msk.f32.mxu1 %vm580_vm2, %v14729_v27  ;;  %v14735_v27 = vld [vmem:[#allocation25_spill] sm:$0xff] }
 0x3be   : > { %9951 = vmatmul.mubr.msk.f32.gmra.mrb[8].mxu0 %vm580_vm2, %v12475_v34 }
 0x3bf   : > { %9953 = vmatprep.mubr.msk.f32.mxu0 %vm580_vm2, %v12487_v51  ;;  %v9640_v29 = vpop.f32.mrb[160].mxu0  ;;  %v14734_v51 = vld [vmem:[#allocation24_spill] sm:$0xff] }
 0x3c0   : > { %9898 = vmatmul.mubr.msk.f32.gmra.mrb[230].mxu1 %vm580_vm2, %v14730_v32  ;;  %v4881_v6 = vpop.f32.mrb[161].mxu0  ;;  %v4324_v32 = vld [vmem:[#allocation2 + $0x18] sm:$0xff] }
 0x3c1   : > { %9900 = vmatprep.mubr.msk.f32.mxu1 %vm580_vm2, %v14731_v54 }
 0x3c2   : > { %9954 = vmatmul.mubr.msk.f32.gmra.mrb[10].mxu0 %vm580_vm2, %v12522_v5  ;;  %v9590_v34 = vpop.f32.mrb[128].mxu1  ;;  %v4323_v5 = vld [vmem:[#allocation2 + $0x10] sm:$0xff] }
 0x3c3   : > { %9956 = vmatprep.mubr.msk.f32.mxu0 %vm580_vm2, %v12544_v24  ;;  %v4657_v8 = vadd.f32 %v9590_v34, %v4322_v9  ;;  %v4497_v41 = vpop.f32.mrb[129].mxu1  ;;  %v14736_v9 = vld [vmem:[#allocation26_spill] sm:$0xff] }
 0x3c4   : > { %9901 = vmatmul.mubr.msk.f32.gmra.mrb[232].mxu1 %vm580_vm2, %v14732_v55  ;;  %v4656_v4 = vadd.f32 %v4497_v41, %v4321_v20  ;;  %v9643_v37 = vpop.f32.mrb[162].mxu0  ;;  %v14737_v41 = vld [vmem:[#allocation27_spill] sm:$0xff] }
 0x3c5   : > { %9903 = vmatprep.mubr.msk.f32.mxu1 %vm580_vm2, %v14733_v44  ;;  %4689 = vst.msk [vmem:[#allocation2 + $0x8] sm:$0xff] %vm580_vm2, %v4657_v8  ;;  %v4891_v54 = vpop.f32.mrb[163].mxu0  ;;  %v4326_v8 = vld [vmem:[#allocation2 + $0x28] sm:$0xff] }
 0x3c6   : > { %9957 = vmatmul.mubr.msk.f32.gmra.mrb[12].mxu0 %vm580_vm2, %v12564_v33  ;;  %4688 = vst.msk [vmem:[#allocation2] sm:$0xff] %vm580_vm2, %v4656_v4  ;;  %v9593_v24 = vpop.f32.mrb[130].mxu1 }
 0x3c7   : > { %9959 = vmatprep.mubr.msk.f32.mxu0 %vm580_vm2, %v12579_v2  ;;  %v4659_v55 = vadd.f32 %v9593_v24, %v4324_v32  ;;  %v4507_v44 = vpop.f32.mrb[131].mxu1  ;;  %v4325_v2 = vld [vmem:[#allocation2 + $0x20] sm:$0xff] }
 0x3c8   : > { %9904 = vmatmul.mubr.msk.f32.gmra.mrb[234].mxu1 %vm580_vm2, %v14734_v51  ;;  %v4658_v20 = vadd.f32 %v4507_v44, %v4323_v5  ;;  %v9646_v34 = vpop.f32.mrb[164].mxu0  ;;  %v14738_v32 = vld [vmem:[#allocation28_spill] sm:$0xff]  ;;  %v4328_v44 = vld [vmem:[#allocation2 + $0x38] sm:$0xff] }
 0x3c9   : > { %9906 = vmatprep.mubr.msk.f32.mxu1 %vm580_vm2, %v14735_v27  ;;  %4691 = vst.msk [vmem:[#allocation2 + $0x18] sm:$0xff] %vm580_vm2, %v4659_v55  ;;  %v13387_v33 = vpop.f32.mrb[165].mxu0  ;;  %v14739_v55 = vld [vmem:[#allocation31_spill] sm:$0xff] }
 0x3ca   : > { %9960 = vmatmul.mubr.msk.f32.gmra.mrb[14].mxu0 %vm580_vm2, %v12587_v3  ;;  %4690 = vst.msk [vmem:[#allocation2 + $0x10] sm:$0xff] %vm580_vm2, %v4658_v20  ;;  %v9596_v51 = vpop.f32.mrb[132].mxu1 }
 0x3cb   : > { %9962 = vmatprep.mubr.msk.f32.mxu0 %vm580_vm2, %v12601_v14  ;;  %v4661_v4 = vadd.f32 %v9596_v51, %v4326_v8  ;;  %v4517_v27 = vpop.f32.mrb[133].mxu1  ;;  %v4327_v14 = vld [vmem:[#allocation2 + $0x30] sm:$0xff] }
 0x3cc   : > { %9907 = vmatmul.mubr.msk.f32.gmra.mrb[236].mxu1 %vm580_vm2, %v14736_v9  ;;  %v4660_v5 = vadd.f32 %v4517_v27, %v4325_v2  ;;  %v13396_v24 = vpop.f32.mrb[166].mxu0  ;;  %v4721_v3 = vld [vmem:[#allocation2 + $0x8] sm:$0xff] }
 0x3cd   : > { %9909 = vmatprep.mubr.msk.f32.mxu1 %vm580_vm2, %v14737_v41  ;;  %4693 = vst.msk [vmem:[#allocation2 + $0x28] sm:$0xff] %vm580_vm2, %v4661_v4  ;;  %v13401_v9 = vpop.f32.mrb[167].mxu0  ;;  %v5041_v20 = vadd.f32 %v9640_v29, %v4721_v3  ;;  %v4720_v41 = vld [vmem:[#allocation2] sm:$0xff]  ;;  %v4330_v29 = vld [vmem:[#allocation2 + $0x48] sm:$0xff] }
 0x3ce   : > { %9963 = vmatmul.mubr.msk.f32.gmra.mrb[16].mxu0 %vm580_vm2, %v12631_v47  ;;  %4692 = vst.msk [vmem:[#allocation2 + $0x20] sm:$0xff] %vm580_vm2, %v4660_v5  ;;  %v9599_v8 = vpop.f32.mrb[134].mxu1  ;;  %v5040_v2 = vadd.f32 %v4881_v6, %v4720_v41  ;;  %v14741_v47 = vld [vmem:[#allocation36_spill] sm:$0xff] }
 0x3cf   : > { %9965 = vmatprep.mubr.msk.f32.mxu0 %vm580_vm2, %v12640_v46  ;;  %v4663_v51 = vadd.f32 %v9599_v8, %v4328_v44  ;;  %v4527_v27 = vpop.f32.mrb[135].mxu1  ;;  %5073 = vst.msk [vmem:[#allocation2 + $0x8] sm:$0xff] %vm580_vm2, %v5041_v20  ;;  %v4329_v6 = vld [vmem:[#allocation2 + $0x40] sm:$0xff] }
 0x3d0   : > { %9910 = vmatmul.mubr.msk.f32.gmra.mrb[238].mxu1 %vm580_vm2, %v14738_v32  ;;  %v14740_v32 = vld [vmem:[#allocation34_spill] sm:$0xff]  ;;  %v4662_v4 = vadd.f32 %v4527_v27, %v4327_v14  ;;  %5072 = vst.msk [vmem:[#allocation2] sm:$0xff] %vm580_vm2, %v5040_v2  ;;  %v14742_v2 = vld [vmem:[#allocation39_spill] sm:$0xff] }
 0x3d1   : > { %9912 = vmatprep.mubr.msk.f32.mxu1 %vm580_vm2, %v14739_v55  ;;  %v13411_v55 = vpop.f32.mrb[168].mxu0  ;;  %v4723_v5 = vld [vmem:[#allocation2 + $0x18] sm:$0xff]  ;;  %4695 = vst.msk [vmem:[#allocation2 + $0x38] sm:$0xff] %vm580_vm2, %v4663_v51  ;;  %v4722_v3 = vld [vmem:[#allocation2 + $0x10] sm:$0xff] }
 0x3d2   : > { %v13417_v46 = vpop.f32.mrb[169].mxu0  ;;  %9966 = vmatmul.mubr.msk.f32.gmra.mrb[18].mxu0 %vm580_vm2, %v14715_v58  ;;  %v5043_v44 = vadd.f32 %v9643_v37, %v4723_v5  ;;  %4694 = vst.msk [vmem:[#allocation2 + $0x30] sm:$0xff] %vm580_vm2, %v4662_v4  ;;  %v9602_v14 = vpop.f32.mrb[136].mxu1  ;;  %v5042_v20 = vadd.f32 %v4891_v54, %v4722_v3  ;;  %v14743_v58 = vld [vmem:[#allocation42_spill] sm:$0xff]  ;;  %v14744_v3 = vld [vmem:[#allocation44_spill] sm:$0xff] }
 0x3d3   : > { %9968 = vmatprep.mubr.msk.f32.mxu0 %vm580_vm2, %v14716_v38  ;;  %v4665_v41 = vadd.f32 %v9602_v14, %v4330_v29  ;;  %v4537_v8 = vpop.f32.mrb[137].mxu1  ;;  %v4332_v37 = vld [vmem:[#allocation2 + $0x58] sm:$0xff]  ;;  %v4331_v54 = vld [vmem:[#allocation2 + $0x50] sm:$0xff] }
 0x3d4   : > { %9913 = vmatmul.mubr.msk.f32.gmra.mrb[240].mxu1 %vm580_vm2, %v14740_v32  ;;  %5075 = vst.msk [vmem:[#allocation2 + $0x18] sm:$0xff] %vm580_vm2, %v5043_v44  ;;  %v4664_v51 = vadd.f32 %v4537_v8, %v4329_v6  ;;  %v13427_v27 = vpop.f32.mrb[170].mxu0  ;;  %5074 = vst.msk [vmem:[#allocation2 + $0x10] sm:$0xff] %vm580_vm2, %v5042_v20  ;;  %v4725_v32 = vld [vmem:[#allocation2 + $0x28] sm:$0xff] }
 0x3d5   : > { %9915 = vmatprep.mubr.msk.f32.mxu1 %vm580_vm2, %v14741_v47  ;;  %4697 = vst.msk [vmem:[#allocation2 + $0x48] sm:$0xff] %vm580_vm2, %v4665_v41  ;;  %v13433_v38 = vpop.f32.mrb[171].mxu0  ;;  %v5045_v4 = vadd.f32 %v9646_v34, %v4725_v32  ;;  %v4724_v47 = vld [vmem:[#allocation2 + $0x20] sm:$0xff]  ;;  %v14745_v34 = vld [vmem:[#allocation45_spill] sm:$0xff] }
 0x3d6   : > { %9969 = vmatmul.mubr.msk.f32.gmra.mrb[20].mxu0 %vm580_vm2, %v14718_v52  ;;  %4696 = vst.msk [vmem:[#allocation2 + $0x40] sm:$0xff] %vm580_vm2, %v4664_v51  ;;  %v9605_v29 = vpop.f32.mrb[138].mxu1  ;;  %v5044_v5 = vadd.f32 %v13387_v33, %v4724_v47  ;;  %v4334_v20 = vld [vmem:[#allocation2 + $0x68] sm:$0xff]  ;;  %v4333_v41 = vld [vmem:[#allocation2 + $0x60] sm:$0xff]  ;;  %v4336_v47 = vld [vmem:[#allocation2 + $0x78] sm:$0xff] }
 0x3d7   : > { %9971 = vmatprep.mubr.msk.f32.mxu0 %vm580_vm2, %v14719_v43  ;;  %v4667_v6 = vadd.f32 %v9605_v29, %v4332_v37  ;;  %v4547_v44 = vpop.f32.mrb[139].mxu1  ;;  %5077 = vst.msk [vmem:[#allocation2 + $0x28] sm:$0xff] %vm580_vm2, %v5045_v4  ;;  %v4335_v29 = vld [vmem:[#allocation2 + $0x70] sm:$0xff] }
 0x3d8   : > { %9916 = vmatmul.mubr.msk.f32.gmra.mrb[242].mxu1 %vm580_vm2, %v14742_v2  ;;  %v4666_v14 = vadd.f32 %v4547_v44, %v4331_v54  ;;  %v13444_v52 = vpop.f32.mrb[172].mxu0  ;;  %5076 = vst.msk [vmem:[#allocation2 + $0x20] sm:$0xff] %vm580_vm2, %v5044_v5  ;;  %v4727_v43 = vld [vmem:[#allocation2 + $0x38] sm:$0xff] }
 0x3d9   : > { %9918 = vmatprep.mubr.msk.f32.mxu1 %vm580_vm2, %v14743_v58  ;;  %4699 = vst.msk [vmem:[#allocation2 + $0x58] sm:$0xff] %vm580_vm2, %v4667_v6  ;;  %v13450_v33 = vpop.f32.mrb[173].mxu0  ;;  %v5047_v8 = vadd.f32 %v13396_v24, %v4727_v43  ;;  %v4726_v2 = vld [vmem:[#allocation2 + $0x30] sm:$0xff]  ;;  %v14747_v24 = vld [vmem:[#allocation51_spill] sm:$0xff] }
 0x3da   : > { %9972 = vmatmul.mubr.msk.f32.gmra.mrb[22].mxu0 %vm580_vm2, %v14697_v15  ;;  %4698 = vst.msk [vmem:[#allocation2 + $0x50] sm:$0xff] %vm580_vm2, %v4666_v14  ;;  %v9608_v51 = vpop.f32.mrb[140].mxu1  ;;  %v5046_v58 = vadd.f32 %v13401_v9, %v4726_v2  ;;  %v14746_v54 = vld [vmem:[#allocation50_spill] sm:$0xff]  ;;  %v4337_v2 = vld [vmem:[#allocation2 + $0x80] sm:$0xff] }
 0x3db   : > { %9974 = vmatprep.mubr.msk.f32.mxu0 %vm580_vm2, %v14720_v30  ;;  %v4669_v37 = vadd.f32 %v9608_v51, %v4334_v20  ;;  %v4557_v32 = vpop.f32.mrb[141].mxu1  ;;  %5079 = vst.msk [vmem:[#allocation2 + $0x38] sm:$0xff] %vm580_vm2, %v5047_v8  ;;  %v14748_v20 = vld [vmem:[#allocation52_spill] sm:$0xff] }
 0x3dc   : > { %9919 = vmatmul.mubr.msk.f32.gmra.mrb[244].mxu1 %vm580_vm2, %v14744_v3  ;;  %v4668_v15 = vadd.f32 %v4557_v32, %v4333_v41  ;;  %v13462_v4 = vpop.f32.mrb[174].mxu0  ;;  %5078 = vst.msk [vmem:[#allocation2 + $0x30] sm:$0xff] %vm580_vm2, %v5046_v58  ;;  %v4729_v30 = vld [vmem:[#allocation2 + $0x48] sm:$0xff] }
 0x3dd   : > { %9921 = vmatprep.mubr.msk.f32.mxu1 %vm580_vm2, %v14745_v34  ;;  %4701 = vst.msk [vmem:[#allocation2 + $0x68] sm:$0xff] %vm580_vm2, %v4669_v37  ;;  %v13468_v9 = vpop.f32.mrb[175].mxu0  ;;  %v5049_v5 = vadd.f32 %v13411_v55, %v4729_v30  ;;  %v4728_v6 = vld [vmem:[#allocation2 + $0x40] sm:$0xff]  ;;  %v14749_v55 = vld [vmem:[#allocation53_spill] sm:$0xff] }
 0x3de   : > { %9975 = vmatmul.mubr.msk.f32.gmra.mrb[24].mxu0 %vm580_vm2, %v12751_v36  ;;  %4700 = vst.msk [vmem:[#allocation2 + $0x60] sm:$0xff] %vm580_vm2, %v4668_v15  ;;  %v9611_v44 = vpop.f32.mrb[142].mxu1  ;;  %v5048_v3 = vadd.f32 %v13417_v46, %v4728_v6  ;;  %v4338_v41 = vld [vmem:[#allocation2 + $0x88] sm:$0xff] }
 0x3df   : > { %9977 = vmatprep.mubr.msk.f32.mxu0 %vm580_vm2, %v14710_v16  ;;  %v4671_v14 = vadd.f32 %v9611_v44, %v4336_v47  ;;  %v4567_v34 = vpop.f32.mrb[143].mxu1  ;;  %5081 = vst.msk [vmem:[#allocation2 + $0x48] sm:$0xff] %vm580_vm2, %v5049_v5  ;;  %v4339_v5 = vld [vmem:[#allocation2 + $0x90] sm:$0xff] }
 0x3e0   : > { %9922 = vmatmul.mubr.msk.f32.gmra.mrb[246].mxu1 %vm580_vm2, %v14746_v54  ;;  %v4670_v36 = vadd.f32 %v4567_v34, %v4335_v29  ;;  %v13480_v43 = vpop.f32.mrb[176].mxu0  ;;  %5080 = vst.msk [vmem:[#allocation2 + $0x40] sm:$0xff] %vm580_vm2, %v5048_v3  ;;  %v4731_v8 = vld [vmem:[#allocation2 + $0x58] sm:$0xff] }
 0x3e1   : > { %9924 = vmatprep.mubr.msk.f32.mxu1 %vm580_vm2, %v14747_v24  ;;  %4703 = vst.msk [vmem:[#allocation2 + $0x78] sm:$0xff] %vm580_vm2, %v4671_v14  ;;  %v13486_v46 = vpop.f32.mrb[177].mxu0  ;;  %v5051_v51 = vadd.f32 %v13427_v27, %v4731_v8  ;;  %v4730_v58 = vld [vmem:[#allocation2 + $0x50] sm:$0xff]  ;;  %v14750_v24 = vld [vmem:[#allocation47_spill] sm:$0xff] }
 0x3e2   : > { %9978 = vmatmul.mubr.msk.f32.gmra.mrb[26].mxu0 %vm580_vm2, %v12778_v12  ;;  %4702 = vst.msk [vmem:[#allocation2 + $0x70] sm:$0xff] %vm580_vm2, %v4670_v36  ;;  %v9614_v37 = vpop.f32.mrb[144].mxu1  ;;  %v5050_v32 = vadd.f32 %v13433_v38, %v4730_v58  ;;  %v14751_v27 = vld [vmem:[#allocation30_spill] sm:$0xff] }
 0x3e3   : > { %9980 = vmatprep.mubr.msk.f32.mxu0 %vm580_vm2, %v13094_v57  ;;  %v4673_v54 = vadd.f32 %v9614_v37, %v4338_v41  ;;  %v4577_v15 = vpop.f32.mrb[145].mxu1  ;;  %5083 = vst.msk [vmem:[#allocation2 + $0x58] sm:$0xff] %vm580_vm2, %v5051_v51  ;;  %v4340_v29 = vld [vmem:[#allocation2 + $0x98] sm:$0xff]  ;;  %v4341_v41 = vld [vmem:[#allocation2 + $0xa0] sm:$0xff] }
 0x3e4   : > { %9925 = vmatmul.mubr.msk.f32.gmra.mrb[248].mxu1 %vm580_vm2, %v14748_v20  ;;  %v4672_v47 = vadd.f32 %v4577_v15, %v4337_v2  ;;  %v13498_v30 = vpop.f32.mrb[178].mxu0  ;;  %5082 = vst.msk [vmem:[#allocation2 + $0x50] sm:$0xff] %vm580_vm2, %v5050_v32  ;;  %v4733_v57 = vld [vmem:[#allocation2 + $0x68] sm:$0xff] }
 0x3e5   : > { %9927 = vmatprep.mubr.msk.f32.mxu1 %vm580_vm2, %v14749_v55  ;;  %4705 = vst.msk [vmem:[#allocation2 + $0x88] sm:$0xff] %vm580_vm2, %v4673_v54  ;;  %v13504_v38 = vpop.f32.mrb[179].mxu0  ;;  %v5053_v6 = vadd.f32 %v13444_v52, %v4733_v57  ;;  %v4732_v44 = vld [vmem:[#allocation2 + $0x60] sm:$0xff]  ;;  %v4342_v52 = vld [vmem:[#allocation2 + $0xa8] sm:$0xff] }
 0x3e6   : > { %9981 = vmatmul.mubr.msk.f32.gmra.mrb[28].mxu0 %vm580_vm2, %v13114_v49  ;;  %4704 = vst.msk [vmem:[#allocation2 + $0x80] sm:$0xff] %vm580_vm2, %v4672_v47  ;;  %v9617_v3 = vpop.f32.mrb[146].mxu1  ;;  %v5052_v14 = vadd.f32 %v13450_v33, %v4732_v44 }
 0x3e7   : > { %9983 = vmatprep.mubr.msk.f32.mxu0 %vm580_vm2, %v14710_v16  ;;  %v4675_v34 = vadd.f32 %v9617_v3, %v4340_v29  ;;  %v4587_v20 = vpop.f32.mrb[147].mxu1  ;;  %5085 = vst.msk [vmem:[#allocation2 + $0x68] sm:$0xff] %vm580_vm2, %v5053_v6  ;;  %v4346_v6 = vld [vmem:[#allocation2 + $0xc8] sm:$0xff] }
 0x3e8   : > { %9928 = vmatmul.mubr.msk.f32.gmra.mrb[250].mxu1 %vm580_vm2, %v14750_v24  ;;  %v4674_v49 = vadd.f32 %v4587_v20, %v4339_v5  ;;  %v13516_v36 = vpop.f32.mrb[180].mxu0  ;;  %5084 = vst.msk [vmem:[#allocation2 + $0x60] sm:$0xff] %vm580_vm2, %v5052_v14  ;;  %v4735_v16 = vld [vmem:[#allocation2 + $0x78] sm:$0xff] }
 0x3e9   : > { %9930 = vmatprep.mubr.msk.f32.mxu1 %vm580_vm2, %v14751_v27  ;;  %4707 = vst.msk [vmem:[#allocation2 + $0x98] sm:$0xff] %vm580_vm2, %v4675_v34  ;;  %v4981_v33 = vpop.f32.mrb[181].mxu0  ;;  %v4734_v8 = vld [vmem:[#allocation2 + $0x70] sm:$0xff] }
 0x3ea   : > { %9984 = vmatmul.mubr.msk.f32.gmra.mrb[30].mxu0 %vm580_vm2, %v12778_v12  ;;  %4706 = vst.msk [vmem:[#allocation2 + $0x90] sm:$0xff] %vm580_vm2, %v4674_v49  ;;  %v9620_v2 = vpop.f32.mrb[148].mxu1  ;;  %v5054_v51 = vadd.f32 %v13468_v9, %v4734_v8  ;;  %v4344_v12 = vld [vmem:[#allocation2 + $0xb8] sm:$0xff]  ;;  %v4343_v9 = vld [vmem:[#allocation2 + $0xb0] sm:$0xff] }
 0x3eb   : > { %v4597_v58 = vpop.f32.mrb[149].mxu1 }
 0x3ec   : > { %9931 = vmatmul.mubr.msk.f32.gmra.mrb[252].mxu1 %vm580_vm2, %v13164_v10  ;;  %v5055_v10 = vadd.f32 %v13462_v4, %v4735_v16  ;;  %v4676_v37 = vadd.f32 %v4597_v58, %v4341_v41  ;;  %v9673_v32 = vpop.f32.mrb[182].mxu0  ;;  %5086 = vst.msk [vmem:[#allocation2 + $0x70] sm:$0xff] %vm580_vm2, %v5054_v51  ;;  %v4737_v4 = vld [vmem:[#allocation2 + $0x88] sm:$0xff]  ;;  %v4348_v16 = vld [vmem:[#allocation2 + $0xd8] sm:$0xff] }
 0x3ed   : > { %9933 = vmatprep.mubr.msk.f32.mxu1 %vm580_vm2, %v14749_v55  ;;  %v4677_v55 = vadd.f32 %v9620_v2, %v4342_v52  ;;  %v4991_v54 = vpop.f32.mrb[183].mxu0  ;;  %v5057_v15 = vadd.f32 %v13480_v43, %v4737_v4  ;;  %v4736_v47 = vld [vmem:[#allocation2 + $0x80] sm:$0xff] }
 0x3ee   : > { %5087 = vst.msk [vmem:[#allocation2 + $0x78] sm:$0xff] %vm580_vm2, %v5055_v10  ;;  %4708 = vst.msk [vmem:[#allocation2 + $0xa0] sm:$0xff] %vm580_vm2, %v4676_v37  ;;  %v5056_v27 = vadd.f32 %v13486_v46, %v4736_v47  ;;  %v4345_v46 = vld [vmem:[#allocation2 + $0xc0] sm:$0xff]  ;;  %v4350_v37 = vld [vmem:[#allocation2 + $0xe8] sm:$0xff] }
 0x3ef   : > { %4709 = vst.msk [vmem:[#allocation2 + $0xa8] sm:$0xff] %vm580_vm2, %v4677_v55  ;;  %5089 = vst.msk [vmem:[#allocation2 + $0x88] sm:$0xff] %vm580_vm2, %v5057_v15 }
 0x3f0   : > { %9934 = vmatmul.mubr.msk.f32.gmra.mrb[254].mxu1 %vm580_vm2, %v14750_v24  ;;  %v9623_v24 = vpop.f32.mrb[150].mxu1  ;;  %v9676_v5 = vpop.f32.mrb[184].mxu0  ;;  %5088 = vst.msk [vmem:[#allocation2 + $0x80] sm:$0xff] %vm580_vm2, %v5056_v27  ;;  %v4739_v43 = vld [vmem:[#allocation2 + $0x98] sm:$0xff] }
 0x3f1   : > { %9988 = vmatprep.mubr.msk.f32.mxu1 %vm580_vm2, %v12825_v22  ;;  %v4679_v29 = vadd.f32 %v9623_v24, %v4344_v12  ;;  %v4607_v57 = vpop.f32.mrb[151].mxu1  ;;  %v5001_v44 = vpop.f32.mrb[185].mxu0  ;;  %v5059_v3 = vadd.f32 %v13498_v30, %v4739_v43  ;;  %v4738_v14 = vld [vmem:[#allocation2 + $0x90] sm:$0xff] }
 0x3f2   : > { %v4678_v22 = vadd.f32 %v4607_v57, %v4343_v9  ;;  %v5058_v34 = vadd.f32 %v13504_v38, %v4738_v14  ;;  %v4347_v38 = vld [vmem:[#allocation2 + $0xd0] sm:$0xff] }
 0x3f3   : > { %4711 = vst.msk [vmem:[#allocation2 + $0xb8] sm:$0xff] %vm580_vm2, %v4679_v29  ;;  %5091 = vst.msk [vmem:[#allocation2 + $0x98] sm:$0xff] %vm580_vm2, %v5059_v3  ;;  %v4352_v29 = vld [vmem:[#allocation2 + $0xf8] sm:$0xff] }
 0x3f4   : > { %9989 = vmatmul.mubr.msk.f32.vlgmr.msra.gmra.mrb[0].mxu1 %vm580_vm2, %v12839_v7  ;;  %4710 = vst.msk [vmem:[#allocation2 + $0xb0] sm:$0xff] %vm580_vm2, %v4678_v22  ;;  %v9626_v7 = vpop.f32.mrb[152].mxu1  ;;  %v9679_v52 = vpop.f32.mrb[186].mxu0  ;;  %5090 = vst.msk [vmem:[#allocation2 + $0x90] sm:$0xff] %vm580_vm2, %v5058_v34 }
 0x3f5   : > { %9991 = vmatprep.mubr.msk.f32.mxu1 %vm580_vm2, %v12883_v56  ;;  %v4681_v20 = vadd.f32 %v9626_v7, %v4346_v6  ;;  %v4617_v49 = vpop.f32.mrb[153].mxu1  ;;  %v5011_v41 = vpop.f32.mrb[187].mxu0  ;;  %v4740_v8 = vld [vmem:[#allocation2 + $0xa0] sm:$0xff] }
 0x3f6   : > { %v4680_v56 = vadd.f32 %v4617_v49, %v4345_v46  ;;  %v4741_v30 = vld [vmem:[#allocation2 + $0xa8] sm:$0xff]  ;;  %v5060_v2 = vadd.f32 %v4981_v33, %v4740_v8  ;;  %v4349_v33 = vld [vmem:[#allocation2 + $0xe0] sm:$0xff] }
 0x3f7   : > { %4713 = vst.msk [vmem:[#allocation2 + $0xc8] sm:$0xff] %vm580_vm2, %v4681_v20  ;;  %v5061_v10 = vadd.f32 %v13516_v36, %v4741_v30  ;;  %v5105_v20 = vld [vmem:[#allocation2 + $0x8] sm:$0xff] }
 0x3f8   : > { %9992 = vmatmul.mubr.msk.f32.gmra.mrb[2].mxu1 %vm580_vm2, %v12895_v17  ;;  %4712 = vst.msk [vmem:[#allocation2 + $0xc0] sm:$0xff] %vm580_vm2, %v4680_v56  ;;  %v9629_v17 = vpop.f32.mrb[154].mxu1  ;;  %v9682_v58 = vpop.f32.mrb[188].mxu0  ;;  %5092 = vst.msk [vmem:[#allocation2 + $0xa0] sm:$0xff] %vm580_vm2, %v5060_v2 }
 0x3f9   : > { %9994 = vmatprep.mubr.msk.f32.mxu1 %vm580_vm2, %v12902_v63  ;;  %v4683_v51 = vadd.f32 %v9629_v17, %v4348_v16  ;;  %v4627_v55 = vpop.f32.mrb[155].mxu1  ;;  %5093 = vst.msk [vmem:[#allocation2 + $0xa8] sm:$0xff] %vm580_vm2, %v5061_v10  ;;  %v5021_v12 = vpop.f32.mrb[189].mxu0  ;;  %v5104_v16 = vld [vmem:[#allocation2] sm:$0xff]  ;;  %v5107_v17 = vld [vmem:[#allocation2 + $0x18] sm:$0xff] }
 0x3fa   : > { %v4682_v63 = vadd.f32 %v4627_v55, %v4347_v38  ;;  %v4743_v36 = vld [vmem:[#allocation2 + $0xb8] sm:$0xff]  ;;  %v5106_v55 = vld [vmem:[#allocation2 + $0x10] sm:$0xff] }
 0x3fb   : > { %4715 = vst.msk [vmem:[#allocation2 + $0xd8] sm:$0xff] %vm580_vm2, %v4683_v51  ;;  %v5063_v4 = vadd.f32 %v9673_v32, %v4743_v36  ;;  %v4742_v9 = vld [vmem:[#allocation2 + $0xb0] sm:$0xff] }
 0x3fc   : > { %9995 = vmatmul.mubr.msk.f32.gmra.mrb[4].mxu1 %vm580_vm2, %v12914_v19  ;;  %4714 = vst.msk [vmem:[#allocation2 + $0xd0] sm:$0xff] %vm580_vm2, %v4682_v63  ;;  %v9632_v19 = vpop.f32.mrb[156].mxu1  ;;  %v5062_v15 = vadd.f32 %v4991_v54, %v4742_v9  ;;  %v9685_v27 = vpop.f32.mrb[190].mxu0  ;;  %v4351_v54 = vld [vmem:[#allocation2 + $0xf0] sm:$0xff] }
 0x3fd   : > { %9997 = vmatprep.mubr.msk.f32.mxu1 %vm580_vm2, %v12921_v28  ;;  %v4685_v47 = vadd.f32 %v9632_v19, %v4350_v37  ;;  %v4637_v24 = vpop.f32.mrb[157].mxu1  ;;  %5095 = vst.msk [vmem:[#allocation2 + $0xb8] sm:$0xff] %vm580_vm2, %v5063_v4  ;;  %v5031_v57 = vpop.f32.mrb[191].mxu0  ;;  %v5109_v4 = vld [vmem:[#allocation2 + $0x28] sm:$0xff] }
 0x3fe   : > { %v4684_v28 = vadd.f32 %v4637_v24, %v4349_v33  ;;  %5094 = vst.msk [vmem:[#allocation2 + $0xb0] sm:$0xff] %vm580_vm2, %v5062_v15  ;;  %v4745_v32 = vld [vmem:[#allocation2 + $0xc8] sm:$0xff]  ;;  %v5108_v15 = vld [vmem:[#allocation2 + $0x20] sm:$0xff] }
 0x3ff   : > { %4717 = vst.msk [vmem:[#allocation2 + $0xe8] sm:$0xff] %vm580_vm2, %v4685_v47  ;;  %v5065_v22 = vadd.f32 %v9676_v5, %v4745_v32  ;;  %v4744_v6 = vld [vmem:[#allocation2 + $0xc0] sm:$0xff] }
 0x400   : > { %9998 = vmatmul.mubr.msk.f32.gmra.mrb[6].mxu1 %vm580_vm2, %v12933_v31  ;;  %4716 = vst.msk [vmem:[#allocation2 + $0xe0] sm:$0xff] %vm580_vm2, %v4684_v28  ;;  %v9635_v31 = vpop.f32.mrb[158].mxu1  ;;  %v5064_v43 = vadd.f32 %v5001_v44, %v4744_v6  ;;  %v9740_v14 = vpop.f32.mrb[192].mxu0  ;;  %v5110_v6 = vld [vmem:[#allocation2 + $0x30] sm:$0xff] }
 0x401   : > { %10000 = vmatprep.mubr.msk.f32.mxu1 %vm580_vm2, %v12940_v50  ;;  %v4687_v46 = vadd.f32 %v9635_v31, %v4352_v29  ;;  %v4647_v3 = vpop.f32.mrb[159].mxu1  ;;  %5097 = vst.msk [vmem:[#allocation2 + $0xc8] sm:$0xff] %vm580_vm2, %v5065_v22  ;;  %v5609_v7 = vpop.f32.mrb[193].mxu0 }
 0x402   : > { %v4686_v50 = vadd.f32 %v4647_v3, %v4351_v54  ;;  %5096 = vst.msk [vmem:[#allocation2 + $0xc0] sm:$0xff] %vm580_vm2, %v5064_v43  ;;  %v4747_v5 = vld [vmem:[#allocation2 + $0xd8] sm:$0xff]  ;;  %v9690_v49 = vpop.f32.mrb[160].mxu1 }
 0x403   : > { %4719 = vst.msk [vmem:[#allocation2 + $0xf8] sm:$0xff] %vm580_vm2, %v4687_v46  ;;  %v5067_v34 = vadd.f32 %v9679_v52, %v4747_v5  ;;  %v4746_v44 = vld [vmem:[#allocation2 + $0xd0] sm:$0xff]  ;;  %v5440_v56 = vadd.f32 %v9690_v49, %v5105_v20  ;;  %v5280_v30 = vpop.f32.mrb[161].mxu1  ;;  %v5113_v5 = vld [vmem:[#allocation2 + $0x48] sm:$0xff] }
 0x404   : > { %10001 = vmatmul.mubr.msk.f32.gmra.mrb[8].mxu1 %vm580_vm2, %v12984_v53  ;;  %4718 = vst.msk [vmem:[#allocation2 + $0xf0] sm:$0xff] %vm580_vm2, %v4686_v50  ;;  %v5066_v53 = vadd.f32 %v5011_v41, %v4746_v44  ;;  %v9743_v38 = vpop.f32.mrb[194].mxu0  ;;  %v5112_v44 = vld [vmem:[#allocation2 + $0x40] sm:$0xff] }
 0x405   : > { %10003 = vmatprep.mubr.msk.f32.mxu1 %vm580_vm2, %v12991_v18  ;;  %5099 = vst.msk [vmem:[#allocation2 + $0xd8] sm:$0xff] %vm580_vm2, %v5067_v34  ;;  %v5439_v18 = vadd.f32 %v5280_v30, %v5104_v16  ;;  %5472 = vst.msk [vmem:[#allocation2 + $0x8] sm:$0xff] %vm580_vm2, %v5440_v56  ;;  %v5619_v10 = vpop.f32.mrb[195].mxu0 }
 0x406   : > { %5098 = vst.msk [vmem:[#allocation2 + $0xd0] sm:$0xff] %vm580_vm2, %v5066_v53  ;;  %v4749_v52 = vld [vmem:[#allocation2 + $0xe8] sm:$0xff]  ;;  %v9693_v2 = vpop.f32.mrb[162].mxu1 }
 0x407   : > { %v5069_v41 = vadd.f32 %v9682_v58, %v4749_v52  ;;  %v4748_v8 = vld [vmem:[#allocation2 + $0xe0] sm:$0xff]  ;;  %5471 = vst.msk [vmem:[#allocation2] sm:$0xff] %vm580_vm2, %v5439_v18  ;;  %v5442_v51 = vadd.f32 %v9693_v2, %v5107_v17  ;;  %v5290_v63 = vpop.f32.mrb[163].mxu1  ;;  %v5115_v18 = vld [vmem:[#allocation2 + $0x58] sm:$0xff] }
 0x408   : > { %10004 = vmatmul.mubr.msk.f32.gmra.mrb[10].mxu1 %vm580_vm2, %v13003_v25  ;;  %v5068_v25 = vadd.f32 %v5021_v12, %v4748_v8  ;;  %v9746_v37 = vpop.f32.mrb[196].mxu0 }
 0x409   : > { %10006 = vmatprep.mubr.msk.f32.mxu1 %vm580_vm2, %v13010_v45  ;;  %5101 = vst.msk [vmem:[#allocation2 + $0xe8] sm:$0xff] %vm580_vm2, %v5069_v41  ;;  %v5441_v45 = vadd.f32 %v5290_v63, %v5106_v55  ;;  %5474 = vst.msk [vmem:[#allocation2 + $0x18] sm:$0xff] %vm580_vm2, %v5442_v51  ;;  %v5629_v36 = vpop.f32.mrb[197].mxu0  ;;  %v5117_v55 = vld [vmem:[#allocation2 + $0x68] sm:$0xff] }
 0x40a   : > { %5100 = vst.msk [vmem:[#allocation2 + $0xe0] sm:$0xff] %vm580_vm2, %v5068_v25  ;;  %v4751_v58 = vld [vmem:[#allocation2 + $0xf8] sm:$0xff]  ;;  %v9696_v9 = vpop.f32.mrb[164].mxu1 }
 0x40b   : > { %v5071_v12 = vadd.f32 %v9685_v27, %v4751_v58  ;;  %v4750_v33 = vld [vmem:[#allocation2 + $0xf0] sm:$0xff]  ;;  %5473 = vst.msk [vmem:[#allocation2 + $0x10] sm:$0xff] %vm580_vm2, %v5441_v45  ;;  %v5444_v19 = vadd.f32 %v9696_v9, %v5109_v4  ;;  %v5300_v47 = vpop.f32.mrb[165].mxu1 }
 0x40c   : > { %10007 = vmatmul.mubr.msk.f32.gmra.mrb[12].mxu1 %vm580_vm2, %v13022_v11  ;;  %v5070_v11 = vadd.f32 %v5031_v57, %v4750_v33  ;;  %v9749_v24 = vpop.f32.mrb[198].mxu0  ;;  %v5504_v28 = vld [vmem:[#allocation2 + $0x8] sm:$0xff]  ;;  %v5111_v57 = vld [vmem:[#allocation2 + $0x38] sm:$0xff] }
 0x40d   : > { %10009 = vmatprep.mubr.msk.f32.mxu1 %vm580_vm2, %v13029_v62  ;;  %5103 = vst.msk [vmem:[#allocation2 + $0xf8] sm:$0xff] %vm580_vm2, %v5071_v12  ;;  %v5443_v62 = vadd.f32 %v5300_v47, %v5108_v15  ;;  %5476 = vst.msk [vmem:[#allocation2 + $0x28] sm:$0xff] %vm580_vm2, %v5444_v19  ;;  %v5639_v27 = vpop.f32.mrb[199].mxu0  ;;  %v5769_v29 = vadd.f32 %v9740_v14, %v5504_v28  ;;  %v5118_v47 = vld [vmem:[#allocation2 + $0x70] sm:$0xff]  ;;  %v14752_v28 = vld [vmem:[#allocation32_spill] sm:$0xff] }
 0x40e   : > { %5102 = vst.msk [vmem:[#allocation2 + $0xf0] sm:$0xff] %vm580_vm2, %v5070_v11  ;;  %v5503_v32 = vld [vmem:[#allocation2] sm:$0xff]  ;;  %v9699_v54 = vpop.f32.mrb[166].mxu1  ;;  %v5119_v11 = vld [vmem:[#allocation2 + $0x78] sm:$0xff] }
 0x40f   : > { %5475 = vst.msk [vmem:[#allocation2 + $0x20] sm:$0xff] %vm580_vm2, %v5443_v62  ;;  %v5446_v22 = vadd.f32 %v9699_v54, %v5111_v57  ;;  %v5310_v31 = vpop.f32.mrb[167].mxu1  ;;  %5801 = vst.msk [vmem:[#allocation2 + $0x8] sm:$0xff] %vm580_vm2, %v5769_v29  ;;  %v5121_v54 = vld [vmem:[#allocation2 + $0x88] sm:$0xff] }
 0x410   : > { %10010 = vmatmul.mubr.msk.f32.gmra.mrb[14].mxu1 %vm580_vm2, %v13041_v39  ;;  %v5768_v39 = vadd.f32 %v5609_v7, %v5503_v32  ;;  %v9752_v43 = vpop.f32.mrb[200].mxu0  ;;  %v5506_v46 = vld [vmem:[#allocation2 + $0x18] sm:$0xff] }
 0x411   : > { %10012 = vmatprep.mubr.msk.f32.mxu1 %vm580_vm2, %v13048_v23  ;;  %v5445_v23 = vadd.f32 %v5310_v31, %v5110_v6  ;;  %5478 = vst.msk [vmem:[#allocation2 + $0x38] sm:$0xff] %vm580_vm2, %v5446_v22  ;;  %v5649_v3 = vpop.f32.mrb[201].mxu0  ;;  %v5771_v50 = vadd.f32 %v9743_v38, %v5506_v46  ;;  %v5120_v6 = vld [vmem:[#allocation2 + $0x80] sm:$0xff] }
 0x412   : > { %5800 = vst.msk [vmem:[#allocation2] sm:$0xff] %vm580_vm2, %v5768_v39  ;;  %v5505_v14 = vld [vmem:[#allocation2 + $0x10] sm:$0xff]  ;;  %v9702_v7 = vpop.f32.mrb[168].mxu1 }
 0x413   : > { %5477 = vst.msk [vmem:[#allocation2 + $0x30] sm:$0xff] %vm580_vm2, %v5445_v23  ;;  %v5448_v34 = vadd.f32 %v9702_v7, %v5113_v5  ;;  %v5320_v20 = vpop.f32.mrb[169].mxu1  ;;  %5803 = vst.msk [vmem:[#allocation2 + $0x18] sm:$0xff] %vm580_vm2, %v5771_v50  ;;  %v5123_v5 = vld [vmem:[#allocation2 + $0x98] sm:$0xff] }
 0x414   : > { %10013 = vmatmul.mubr.msk.f32.gmra.mrb[16].mxu1 %vm580_vm2, %v13060_v48  ;;  %v5770_v48 = vadd.f32 %v5619_v10, %v5505_v14  ;;  %v9755_v49 = vpop.f32.mrb[202].mxu0  ;;  %v5508_v53 = vld [vmem:[#allocation2 + $0x28] sm:$0xff]  ;;  %v5114_v10 = vld [vmem:[#allocation2 + $0x50] sm:$0xff] }
 0x415   : > { %10015 = vmatprep.mubr.msk.f32.mxu1 %vm580_vm2, %v13067_v13  ;;  %v5447_v13 = vadd.f32 %v5320_v20, %v5112_v44  ;;  %5480 = vst.msk [vmem:[#allocation2 + $0x48] sm:$0xff] %vm580_vm2, %v5448_v34  ;;  %v5659_v56 = vpop.f32.mrb[203].mxu0  ;;  %v5773_v16 = vadd.f32 %v9746_v37, %v5508_v53  ;;  %v5116_v37 = vld [vmem:[#allocation2 + $0x60] sm:$0xff]  ;;  %v5122_v44 = vld [vmem:[#allocation2 + $0x90] sm:$0xff] }
 0x416   : > { %5802 = vst.msk [vmem:[#allocation2 + $0x10] sm:$0xff] %vm580_vm2, %v5770_v48  ;;  %v5507_v30 = vld [vmem:[#allocation2 + $0x20] sm:$0xff]  ;;  %v9705_v38 = vpop.f32.mrb[170].mxu1 }
 0x417   : > { %5479 = vst.msk [vmem:[#allocation2 + $0x40] sm:$0xff] %vm580_vm2, %v5447_v13  ;;  %v5450_v52 = vadd.f32 %v9705_v38, %v5115_v18  ;;  %v5330_v41 = vpop.f32.mrb[171].mxu1  ;;  %5805 = vst.msk [vmem:[#allocation2 + $0x28] sm:$0xff] %vm580_vm2, %v5773_v16 }
 0x418   : > { %10016 = vmatmul.mubr.msk.f32.gmra.mrb[18].mxu1 %vm580_vm2, %v13079_v26  ;;  %v5772_v26 = vadd.f32 %v5629_v36, %v5507_v30  ;;  %v9758_v8 = vpop.f32.mrb[204].mxu0  ;;  %v5510_v17 = vld [vmem:[#allocation2 + $0x38] sm:$0xff]  ;;  %v5125_v30 = vld [vmem:[#allocation2 + $0xa8] sm:$0xff] }
 0x419   : > { %10018 = vmatprep.mubr.msk.f32.mxu1 %vm580_vm2, %v13086_v60  ;;  %v5449_v60 = vadd.f32 %v5330_v41, %v5114_v10  ;;  %5482 = vst.msk [vmem:[#allocation2 + $0x58] sm:$0xff] %vm580_vm2, %v5450_v52  ;;  %v5669_v2 = vpop.f32.mrb[205].mxu0  ;;  %v5775_v25 = vadd.f32 %v9749_v24, %v5510_v17 }
 0x41a   : > { %5804 = vst.msk [vmem:[#allocation2 + $0x20] sm:$0xff] %vm580_vm2, %v5772_v26  ;;  %v5509_v51 = vld [vmem:[#allocation2 + $0x30] sm:$0xff]  ;;  %v9708_v63 = vpop.f32.mrb[172].mxu1  ;;  %v5124_v26 = vld [vmem:[#allocation2 + $0xa0] sm:$0xff] }
 0x41b   : > { %5481 = vst.msk [vmem:[#allocation2 + $0x50] sm:$0xff] %vm580_vm2, %v5449_v60  ;;  %v5452_v45 = vadd.f32 %v9708_v63, %v5117_v55  ;;  %v5340_v58 = vpop.f32.mrb[173].mxu1  ;;  %5807 = vst.msk [vmem:[#allocation2 + $0x38] sm:$0xff] %vm580_vm2, %v5775_v25  ;;  %v5127_v25 = vld [vmem:[#allocation2 + $0xb8] sm:$0xff] }
 0x41c   : > { %10019 = vmatmul.mubr.msk.f32.gmra.mrb[20].mxu1 %vm580_vm2, %v13101_v42  ;;  %v5774_v42 = vadd.f32 %v5639_v27, %v5509_v51  ;;  %v9761_v36 = vpop.f32.mrb[206].mxu0  ;;  %v5512_v12 = vld [vmem:[#allocation2 + $0x48] sm:$0xff] }
 0x41d   : > { %10021 = vmatprep.mubr.msk.f32.mxu1 %vm580_vm2, %v14717_v1  ;;  %v5451_v1 = vadd.f32 %v5340_v58, %v5116_v37  ;;  %5484 = vst.msk [vmem:[#allocation2 + $0x68] sm:$0xff] %vm580_vm2, %v5452_v45  ;;  %v5679_v33 = vpop.f32.mrb[207].mxu0  ;;  %v5777_v4 = vadd.f32 %v9752_v43, %v5512_v12 }
 0x41e   : > { %5806 = vst.msk [vmem:[#allocation2 + $0x30] sm:$0xff] %vm580_vm2, %v5774_v42  ;;  %v5511_v9 = vld [vmem:[#allocation2 + $0x40] sm:$0xff]  ;;  %v5126_v42 = vld [vmem:[#allocation2 + $0xb0] sm:$0xff] }
 0x41f   : > { %5483 = vst.msk [vmem:[#allocation2 + $0x60] sm:$0xff] %vm580_vm2, %v5451_v1  ;;  %5809 = vst.msk [vmem:[#allocation2 + $0x48] sm:$0xff] %vm580_vm2, %v5777_v4 }
 0x420   : > { %10022 = vmatmul.mubr.msk.f32.gmra.mrb[22].mxu1 %vm580_vm2, %v13125_v35  ;;  %v5776_v35 = vadd.f32 %v5649_v3, %v5511_v9  ;;  %v9764_v24 = vpop.f32.mrb[208].mxu0  ;;  %v5514_v27 = vld [vmem:[#allocation2 + $0x58] sm:$0xff] }
 0x421   : > { %10024 = vmatprep.mubr.msk.f32.mxu1 %vm580_vm2, %v13132_v40  ;;  %v5689_v29 = vpop.f32.mrb[209].mxu0  ;;  %v5779_v32 = vadd.f32 %v9755_v49, %v5514_v27  ;;  %v5131_v27 = vld [vmem:[#allocation2 + $0xd8] sm:$0xff] }
 0x422   : > { %5808 = vst.msk [vmem:[#allocation2 + $0x40] sm:$0xff] %vm580_vm2, %v5776_v35  ;;  %v5513_v57 = vld [vmem:[#allocation2 + $0x50] sm:$0xff] }
 0x423   : > { %v9711_v19 = vpop.f32.mrb[174].mxu1  ;;  %5811 = vst.msk [vmem:[#allocation2 + $0x58] sm:$0xff] %vm580_vm2, %v5779_v32 }
 0x424   : > { %v5454_v15 = vadd.f32 %v9711_v19, %v5119_v11  ;;  %v5350_v62 = vpop.f32.mrb[175].mxu1  ;;  %10025 = vmatmul.mubr.msk.f32.gmra.mrb[24].mxu1 %vm580_vm2, %v13150_v61  ;;  %v5778_v61 = vadd.f32 %v5659_v56, %v5513_v57  ;;  %v9767_v43 = vpop.f32.mrb[210].mxu0  ;;  %v5516_v46 = vld [vmem:[#allocation2 + $0x68] sm:$0xff]  ;;  %v5128_v19 = vld [vmem:[#allocation2 + $0xc0] sm:$0xff] }
 0x425   : > { %v5453_v40 = vadd.f32 %v5350_v62, %v5118_v47  ;;  %10027 = vmatprep.mubr.msk.f32.mxu1 %vm580_vm2, %v14752_v28  ;;  %v5699_v3 = vpop.f32.mrb[211].mxu0  ;;  %v5781_v50 = vadd.f32 %v9758_v8, %v5516_v46  ;;  %v5133_v46 = vld [vmem:[#allocation2 + $0xe8] sm:$0xff] }
 0x426   : > { %5486 = vst.msk [vmem:[#allocation2 + $0x78] sm:$0xff] %vm580_vm2, %v5454_v15  ;;  %5810 = vst.msk [vmem:[#allocation2 + $0x50] sm:$0xff] %vm580_vm2, %v5778_v61  ;;  %v5515_v14 = vld [vmem:[#allocation2 + $0x60] sm:$0xff] }
 0x427   : > { %5485 = vst.msk [vmem:[#allocation2 + $0x70] sm:$0xff] %vm580_vm2, %v5453_v40  ;;  %v9714_v39 = vpop.f32.mrb[176].mxu1  ;;  %v5780_v48 = vadd.f32 %v5669_v2, %v5515_v14  ;;  %5813 = vst.msk [vmem:[#allocation2 + $0x68] sm:$0xff] %vm580_vm2, %v5781_v50 }
 0x428   : > { %v5456_v22 = vadd.f32 %v9714_v39, %v5121_v54  ;;  %v5360_v31 = vpop.f32.mrb[177].mxu1  ;;  %10028 = vmatmul.mubr.msk.f32.gmra.mrb[26].mxu1 %vm580_vm2, %v13173_v0  ;;  %v9770_v13 = vpop.f32.mrb[212].mxu0  ;;  %v5130_v54 = vld [vmem:[#allocation2 + $0xd0] sm:$0xff] }
 0x429   : > { %v5455_v23 = vadd.f32 %v5360_v31, %v5120_v6  ;;  %10030 = vmatprep.mubr.msk.f32.mxu1 %vm580_vm2, %v13305_v21  ;;  %5812 = vst.msk [vmem:[#allocation2 + $0x60] sm:$0xff] %vm580_vm2, %v5780_v48  ;;  %v5709_v53 = vpop.f32.mrb[213].mxu0 }
 0x42a   : > { %5488 = vst.msk [vmem:[#allocation2 + $0x88] sm:$0xff] %vm580_vm2, %v5456_v22 }
 0x42b   : > { %5487 = vst.msk [vmem:[#allocation2 + $0x80] sm:$0xff] %vm580_vm2, %v5455_v23  ;;  %v9717_v7 = vpop.f32.mrb[178].mxu1 }
 0x42c   : > { %v5458_v34 = vadd.f32 %v9717_v7, %v5123_v5  ;;  %v5370_v20 = vpop.f32.mrb[179].mxu1  ;;  %10031 = vmatmul.mubr.msk.f32.gmra.mrb[28].mxu1 %vm580_vm2, %v13316_v59  ;;  %v9773_v41 = vpop.f32.mrb[214].mxu0  ;;  %v5132_v5 = vld [vmem:[#allocation2 + $0xe0] sm:$0xff] }
 0x42d   : > { %v5457_v21 = vadd.f32 %v5370_v20, %v5122_v44  ;;  %10033 = vmatprep.mubr.msk.f32.mxu1 %vm580_vm2, %v14752_v28  ;;  %v5518_v49 = vld [vmem:[#allocation2 + $0x78] sm:$0xff]  ;;  %v5719_v8 = vpop.f32.mrb[215].mxu0 }
 0x42e   : > { %5490 = vst.msk [vmem:[#allocation2 + $0x98] sm:$0xff] %vm580_vm2, %v5458_v34  ;;  %v5783_v56 = vadd.f32 %v9761_v36, %v5518_v49  ;;  %v5517_v16 = vld [vmem:[#allocation2 + $0x70] sm:$0xff]  ;;  %v5135_v49 = vld [vmem:[#allocation2 + $0xf8] sm:$0xff] }
 0x42f   : > { %5489 = vst.msk [vmem:[#allocation2 + $0x90] sm:$0xff] %vm580_vm2, %v5457_v21  ;;  %v9720_v18 = vpop.f32.mrb[180].mxu1  ;;  %v5782_v59 = vadd.f32 %v5679_v33, %v5517_v16  ;;  %v5129_v33 = vld [vmem:[#allocation2 + $0xc8] sm:$0xff] }
 0x430   : > { %v5460_v38 = vadd.f32 %v9720_v18, %v5125_v30  ;;  %v5380_v52 = vpop.f32.mrb[181].mxu1  ;;  %10034 = vmatmul.mubr.msk.f32.gmra.mrb[30].mxu1 %vm580_vm2, %v13173_v0  ;;  %5815 = vst.msk [vmem:[#allocation2 + $0x78] sm:$0xff] %vm580_vm2, %v5783_v56  ;;  %v9776_v37 = vpop.f32.mrb[216].mxu0  ;;  %v5134_v30 = vld [vmem:[#allocation2 + $0xf0] sm:$0xff] }
 0x431   : > { %v5459_v10 = vadd.f32 %v5380_v52, %v5124_v26  ;;  %5814 = vst.msk [vmem:[#allocation2 + $0x70] sm:$0xff] %vm580_vm2, %v5782_v59  ;;  %v5520_v60 = vld [vmem:[#allocation2 + $0x88] sm:$0xff]  ;;  %v5729_v1 = vpop.f32.mrb[217].mxu0 }
 0x432   : > { %5492 = vst.msk [vmem:[#allocation2 + $0xa8] sm:$0xff] %vm580_vm2, %v5460_v38  ;;  %v5785_v17 = vadd.f32 %v9764_v24, %v5520_v60  ;;  %v5519_v2 = vld [vmem:[#allocation2 + $0x80] sm:$0xff]  ;;  %v5833_v60 = vld [vmem:[#allocation2 + $0x8] sm:$0xff] }
 0x433   : > { %5491 = vst.msk [vmem:[#allocation2 + $0xa0] sm:$0xff] %vm580_vm2, %v5459_v10  ;;  %v9723_v51 = vpop.f32.mrb[182].mxu1  ;;  %v5784_v55 = vadd.f32 %v5689_v29, %v5519_v2 }
 0x434   : > { %v5462_v63 = vadd.f32 %v9723_v51, %v5127_v25  ;;  %v5390_v0 = vpop.f32.mrb[183].mxu1  ;;  %5817 = vst.msk [vmem:[#allocation2 + $0x88] sm:$0xff] %vm580_vm2, %v5785_v17  ;;  %v9779_v47 = vpop.f32.mrb[218].mxu0  ;;  %v5832_v25 = vld [vmem:[#allocation2] sm:$0xff] }
 0x435   : > { %v5461_v45 = vadd.f32 %v5390_v0, %v5126_v42  ;;  %5816 = vst.msk [vmem:[#allocation2 + $0x80] sm:$0xff] %vm580_vm2, %v5784_v55  ;;  %v5522_v58 = vld [vmem:[#allocation2 + $0x98] sm:$0xff]  ;;  %v5739_v40 = vpop.f32.mrb[219].mxu0 }
 0x436   : > { %5494 = vst.msk [vmem:[#allocation2 + $0xb8] sm:$0xff] %vm580_vm2, %v5462_v63  ;;  %v5787_v36 = vadd.f32 %v9767_v43, %v5522_v58  ;;  %v5521_v12 = vld [vmem:[#allocation2 + $0x90] sm:$0xff]  ;;  %v5835_v58 = vld [vmem:[#allocation2 + $0x18] sm:$0xff] }
 0x437   : > { %5493 = vst.msk [vmem:[#allocation2 + $0xb0] sm:$0xff] %vm580_vm2, %v5461_v45  ;;  %v9726_v4 = vpop.f32.mrb[184].mxu1  ;;  %v5786_v9 = vadd.f32 %v5699_v3, %v5521_v12 }
 0x438   : > { %v5464_v11 = vadd.f32 %v9726_v4, %v5129_v33  ;;  %v5400_v35 = vpop.f32.mrb[185].mxu1  ;;  %5819 = vst.msk [vmem:[#allocation2 + $0x98] sm:$0xff] %vm580_vm2, %v5787_v36  ;;  %v9782_v22 = vpop.f32.mrb[220].mxu0  ;;  %v5834_v33 = vld [vmem:[#allocation2 + $0x10] sm:$0xff] }
 0x439   : > { %v5463_v15 = vadd.f32 %v5400_v35, %v5128_v19  ;;  %5818 = vst.msk [vmem:[#allocation2 + $0x90] sm:$0xff] %vm580_vm2, %v5786_v9  ;;  %v5524_v62 = vld [vmem:[#allocation2 + $0xa8] sm:$0xff]  ;;  %v5749_v31 = vpop.f32.mrb[221].mxu0 }
 0x43a   : > { %5496 = vst.msk [vmem:[#allocation2 + $0xc8] sm:$0xff] %vm580_vm2, %v5464_v11  ;;  %v5789_v24 = vadd.f32 %v9770_v13, %v5524_v62  ;;  %v5523_v28 = vld [vmem:[#allocation2 + $0xa0] sm:$0xff]  ;;  %v5837_v62 = vld [vmem:[#allocation2 + $0x28] sm:$0xff] }
 0x43b   : > { %5495 = vst.msk [vmem:[#allocation2 + $0xc0] sm:$0xff] %vm580_vm2, %v5463_v15  ;;  %v9729_v29 = vpop.f32.mrb[186].mxu1  ;;  %v5788_v32 = vadd.f32 %v5709_v53, %v5523_v28 }
 0x43c   : > { %v5466_v57 = vadd.f32 %v9729_v29, %v5131_v27  ;;  %v5410_v39 = vpop.f32.mrb[187].mxu1  ;;  %5821 = vst.msk [vmem:[#allocation2 + $0xa8] sm:$0xff] %vm580_vm2, %v5789_v24  ;;  %v9785_v34 = vpop.f32.mrb[222].mxu0  ;;  %v5836_v27 = vld [vmem:[#allocation2 + $0x20] sm:$0xff] }
 0x43d   : > { %v5465_v61 = vadd.f32 %v5410_v39, %v5130_v54  ;;  %5820 = vst.msk [vmem:[#allocation2 + $0xa0] sm:$0xff] %vm580_vm2, %v5788_v32  ;;  %v5526_v6 = vld [vmem:[#allocation2 + $0xb8] sm:$0xff]  ;;  %v5759_v20 = vpop.f32.mrb[223].mxu0 }
 0x43e   : > { %5498 = vst.msk [vmem:[#allocation2 + $0xd8] sm:$0xff] %vm580_vm2, %v5466_v57  ;;  %v5791_v23 = vadd.f32 %v9773_v41, %v5526_v6  ;;  %v5525_v43 = vld [vmem:[#allocation2 + $0xb0] sm:$0xff]  ;;  %v5839_v6 = vld [vmem:[#allocation2 + $0x38] sm:$0xff] }
 0x43f   : > { %5497 = vst.msk [vmem:[#allocation2 + $0xd0] sm:$0xff] %vm580_vm2, %v5465_v61  ;;  %v9732_v3 = vpop.f32.mrb[188].mxu1  ;;  %v5790_v50 = vadd.f32 %v5719_v8, %v5525_v43 }
 0x440   : > { %v5468_v14 = vadd.f32 %v9732_v3, %v5133_v46  ;;  %v5420_v7 = vpop.f32.mrb[189].mxu1  ;;  %5823 = vst.msk [vmem:[#allocation2 + $0xb8] sm:$0xff] %vm580_vm2, %v5791_v23  ;;  %v9840_v38 = vpop.f32.mrb[224].mxu0  ;;  %v5838_v46 = vld [vmem:[#allocation2 + $0x30] sm:$0xff] }
 0x441   : > { %v5467_v48 = vadd.f32 %v5420_v7, %v5132_v5  ;;  %5822 = vst.msk [vmem:[#allocation2 + $0xb0] sm:$0xff] %vm580_vm2, %v5790_v50  ;;  %v5528_v44 = vld [vmem:[#allocation2 + $0xc8] sm:$0xff]  ;;  %v6266_v52 = vpop.f32.mrb[225].mxu0 }
 0x442   : > { %5500 = vst.msk [vmem:[#allocation2 + $0xe8] sm:$0xff] %vm580_vm2, %v5468_v14  ;;  %v5793_v21 = vadd.f32 %v9776_v37, %v5528_v44  ;;  %v5527_v13 = vld [vmem:[#allocation2 + $0xc0] sm:$0xff]  ;;  %v5841_v44 = vld [vmem:[#allocation2 + $0x48] sm:$0xff] }
 0x443   : > { %5499 = vst.msk [vmem:[#allocation2 + $0xe0] sm:$0xff] %vm580_vm2, %v5467_v48  ;;  %v9735_v53 = vpop.f32.mrb[190].mxu1  ;;  %v5792_v56 = vadd.f32 %v5729_v1, %v5527_v13 }
 0x444   : > { %v5470_v16 = vadd.f32 %v9735_v53, %v5135_v49  ;;  %v5430_v18 = vpop.f32.mrb[191].mxu1  ;;  %5825 = vst.msk [vmem:[#allocation2 + $0xc8] sm:$0xff] %vm580_vm2, %v5793_v21  ;;  %v9843_v63 = vpop.f32.mrb[226].mxu0  ;;  %v5840_v49 = vld [vmem:[#allocation2 + $0x40] sm:$0xff] }
 0x445   : > { %v5469_v59 = vadd.f32 %v5430_v18, %v5134_v30  ;;  %5824 = vst.msk [vmem:[#allocation2 + $0xc0] sm:$0xff] %vm580_vm2, %v5792_v56  ;;  %v5530_v26 = vld [vmem:[#allocation2 + $0xd8] sm:$0xff]  ;;  %v6276_v0 = vpop.f32.mrb[227].mxu0 }
 0x446   : > { %5502 = vst.msk [vmem:[#allocation2 + $0xf8] sm:$0xff] %vm580_vm2, %v5470_v16  ;;  %v5795_v10 = vadd.f32 %v9779_v47, %v5530_v26  ;;  %v5529_v41 = vld [vmem:[#allocation2 + $0xd0] sm:$0xff]  ;;  %v5843_v26 = vld [vmem:[#allocation2 + $0x58] sm:$0xff] }
 0x447   : > { %5501 = vst.msk [vmem:[#allocation2 + $0xf0] sm:$0xff] %vm580_vm2, %v5469_v59  ;;  %v9790_v8 = vpop.f32.mrb[192].mxu1  ;;  %v5794_v17 = vadd.f32 %v5739_v40, %v5529_v41 }
 0x448   : > { %v6097_v2 = vadd.f32 %v9790_v8, %v5833_v60  ;;  %v5937_v51 = vpop.f32.mrb[193].mxu1  ;;  %5827 = vst.msk [vmem:[#allocation2 + $0xd8] sm:$0xff] %vm580_vm2, %v5795_v10  ;;  %v5842_v60 = vld [vmem:[#allocation2 + $0x50] sm:$0xff] }
 0x449   : > { %v6096_v55 = vadd.f32 %v5937_v51, %v5832_v25  ;;  %5826 = vst.msk [vmem:[#allocation2 + $0xd0] sm:$0xff] %vm580_vm2, %v5794_v17  ;;  %v5532_v42 = vld [vmem:[#allocation2 + $0xe8] sm:$0xff]  ;;  %v9846_v11 = vpop.f32.mrb[228].mxu0 }
 0x44a   : > { %6129 = vst.msk [vmem:[#allocation2 + $0x8] sm:$0xff] %vm580_vm2, %v6097_v2  ;;  %v5797_v45 = vadd.f32 %v9782_v22, %v5532_v42  ;;  %v5531_v37 = vld [vmem:[#allocation2 + $0xe0] sm:$0xff]  ;;  %v6286_v35 = vpop.f32.mrb[229].mxu0  ;;  %v5845_v42 = vld [vmem:[#allocation2 + $0x68] sm:$0xff] }
 0x44b   : > { %6128 = vst.msk [vmem:[#allocation2] sm:$0xff] %vm580_vm2, %v6096_v55  ;;  %v9793_v1 = vpop.f32.mrb[194].mxu1  ;;  %v5796_v36 = vadd.f32 %v5749_v31, %v5531_v37 }
 0x44c   : > { %v6099_v12 = vadd.f32 %v9793_v1, %v5835_v58  ;;  %v5947_v4 = vpop.f32.mrb[195].mxu1  ;;  %5829 = vst.msk [vmem:[#allocation2 + $0xe8] sm:$0xff] %vm580_vm2, %v5797_v45  ;;  %v5844_v58 = vld [vmem:[#allocation2 + $0x60] sm:$0xff] }
 0x44d   : > { %v6098_v9 = vadd.f32 %v5947_v4, %v5834_v33  ;;  %5828 = vst.msk [vmem:[#allocation2 + $0xe0] sm:$0xff] %vm580_vm2, %v5796_v36  ;;  %v5534_v19 = vld [vmem:[#allocation2 + $0xf8] sm:$0xff]  ;;  %v9849_v57 = vpop.f32.mrb[230].mxu0 }
 0x44e   : > { %6131 = vst.msk [vmem:[#allocation2 + $0x18] sm:$0xff] %vm580_vm2, %v6099_v12  ;;  %v5799_v15 = vadd.f32 %v9785_v34, %v5534_v19  ;;  %v5533_v47 = vld [vmem:[#allocation2 + $0xf0] sm:$0xff]  ;;  %v6296_v39 = vpop.f32.mrb[231].mxu0  ;;  %v5847_v19 = vld [vmem:[#allocation2 + $0x78] sm:$0xff] }
 0x44f   : > { %6130 = vst.msk [vmem:[#allocation2 + $0x10] sm:$0xff] %vm580_vm2, %v6098_v9  ;;  %v9796_v40 = vpop.f32.mrb[196].mxu1  ;;  %v5798_v24 = vadd.f32 %v5759_v20, %v5533_v47 }
 0x450   : > { %v6101_v28 = vadd.f32 %v9796_v40, %v5837_v62  ;;  %v5957_v29 = vpop.f32.mrb[197].mxu1  ;;  %5831 = vst.msk [vmem:[#allocation2 + $0xf8] sm:$0xff] %vm580_vm2, %v5799_v15  ;;  %v5846_v62 = vld [vmem:[#allocation2 + $0x70] sm:$0xff] }
 0x451   : > { %v6100_v32 = vadd.f32 %v5957_v29, %v5836_v27  ;;  %5830 = vst.msk [vmem:[#allocation2 + $0xf0] sm:$0xff] %vm580_vm2, %v5798_v24  ;;  %v6161_v54 = vld [vmem:[#allocation2 + $0x8] sm:$0xff]  ;;  %v9852_v14 = vpop.f32.mrb[232].mxu0 }
 0x452   : > { %6133 = vst.msk [vmem:[#allocation2 + $0x28] sm:$0xff] %vm580_vm2, %v6101_v28  ;;  %v6426_v61 = vadd.f32 %v9840_v38, %v6161_v54  ;;  %v6160_v22 = vld [vmem:[#allocation2] sm:$0xff]  ;;  %v6306_v7 = vpop.f32.mrb[233].mxu0  ;;  %v5849_v54 = vld [vmem:[#allocation2 + $0x88] sm:$0xff] }
 0x453   : > { %6132 = vst.msk [vmem:[#allocation2 + $0x20] sm:$0xff] %vm580_vm2, %v6100_v32  ;;  %v9799_v31 = vpop.f32.mrb[198].mxu1  ;;  %v6425_v23 = vadd.f32 %v6266_v52, %v6160_v22 }
 0x454   : > { %v6103_v43 = vadd.f32 %v9799_v31, %v5839_v6  ;;  %v5967_v3 = vpop.f32.mrb[199].mxu1  ;;  %6458 = vst.msk [vmem:[#allocation2 + $0x8] sm:$0xff] %vm580_vm2, %v6426_v61  ;;  %v5848_v6 = vld [vmem:[#allocation2 + $0x80] sm:$0xff] }
 0x455   : > { %v6102_v50 = vadd.f32 %v5967_v3, %v5838_v46  ;;  %6457 = vst.msk [vmem:[#allocation2] sm:$0xff] %vm580_vm2, %v6425_v23  ;;  %v6163_v5 = vld [vmem:[#allocation2 + $0x18] sm:$0xff]  ;;  %v9855_v16 = vpop.f32.mrb[234].mxu0 }
 0x456   : > { %6135 = vst.msk [vmem:[#allocation2 + $0x38] sm:$0xff] %vm580_vm2, %v6103_v43  ;;  %v6428_v48 = vadd.f32 %v9843_v63, %v6163_v5  ;;  %v6162_v34 = vld [vmem:[#allocation2 + $0x10] sm:$0xff]  ;;  %v6316_v18 = vpop.f32.mrb[235].mxu0  ;;  %v5851_v5 = vld [vmem:[#allocation2 + $0x98] sm:$0xff] }
 0x457   : > { %6134 = vst.msk [vmem:[#allocation2 + $0x30] sm:$0xff] %vm580_vm2, %v6102_v50  ;;  %v9802_v20 = vpop.f32.mrb[200].mxu1  ;;  %v6427_v21 = vadd.f32 %v6276_v0, %v6162_v34 }
 0x458   : > { %v6105_v13 = vadd.f32 %v9802_v20, %v5841_v44  ;;  %v5977_v53 = vpop.f32.mrb[201].mxu1  ;;  %6460 = vst.msk [vmem:[#allocation2 + $0x18] sm:$0xff] %vm580_vm2, %v6428_v48  ;;  %v5850_v44 = vld [vmem:[#allocation2 + $0x90] sm:$0xff] }
 0x459   : > { %v6104_v56 = vadd.f32 %v5977_v53, %v5840_v49  ;;  %6459 = vst.msk [vmem:[#allocation2 + $0x10] sm:$0xff] %vm580_vm2, %v6427_v21  ;;  %v6165_v30 = vld [vmem:[#allocation2 + $0x28] sm:$0xff]  ;;  %v9858_v2 = vpop.f32.mrb[236].mxu0 }
 0x45a   : > { %6137 = vst.msk [vmem:[#allocation2 + $0x48] sm:$0xff] %vm580_vm2, %v6105_v13  ;;  %v6430_v59 = vadd.f32 %v9846_v11, %v6165_v30  ;;  %v6164_v38 = vld [vmem:[#allocation2 + $0x20] sm:$0xff]  ;;  %v6326_v51 = vpop.f32.mrb[237].mxu0  ;;  %v5853_v30 = vld [vmem:[#allocation2 + $0xa8] sm:$0xff] }
 0x45b   : > { %6136 = vst.msk [vmem:[#allocation2 + $0x40] sm:$0xff] %vm580_vm2, %v6104_v56  ;;  %v9805_v52 = vpop.f32.mrb[202].mxu1  ;;  %v6429_v10 = vadd.f32 %v6286_v35, %v6164_v38 }
 0x45c   : > { %v6107_v41 = vadd.f32 %v9805_v52, %v5843_v26  ;;  %v5987_v8 = vpop.f32.mrb[203].mxu1  ;;  %6462 = vst.msk [vmem:[#allocation2 + $0x28] sm:$0xff] %vm580_vm2, %v6430_v59  ;;  %v5852_v26 = vld [vmem:[#allocation2 + $0xa0] sm:$0xff] }
 0x45d   : > { %v6106_v17 = vadd.f32 %v5987_v8, %v5842_v60  ;;  %6461 = vst.msk [vmem:[#allocation2 + $0x20] sm:$0xff] %vm580_vm2, %v6429_v10  ;;  %v6167_v25 = vld [vmem:[#allocation2 + $0x38] sm:$0xff]  ;;  %v9861_v12 = vpop.f32.mrb[238].mxu0 }
 0x45e   : > { %6139 = vst.msk [vmem:[#allocation2 + $0x58] sm:$0xff] %vm580_vm2, %v6107_v41  ;;  %v6432_v55 = vadd.f32 %v9849_v57, %v6167_v25  ;;  %v6166_v63 = vld [vmem:[#allocation2 + $0x30] sm:$0xff]  ;;  %v6336_v4 = vpop.f32.mrb[239].mxu0  ;;  %v5855_v25 = vld [vmem:[#allocation2 + $0xb8] sm:$0xff] }
 0x45f   : > { %6138 = vst.msk [vmem:[#allocation2 + $0x50] sm:$0xff] %vm580_vm2, %v6106_v17  ;;  %v9808_v0 = vpop.f32.mrb[204].mxu1  ;;  %v6431_v45 = vadd.f32 %v6296_v39, %v6166_v63 }
 0x460   : > { %v6109_v37 = vadd.f32 %v9808_v0, %v5845_v42  ;;  %v5997_v1 = vpop.f32.mrb[205].mxu1  ;;  %6464 = vst.msk [vmem:[#allocation2 + $0x38] sm:$0xff] %vm580_vm2, %v6432_v55  ;;  %v5854_v42 = vld [vmem:[#allocation2 + $0xb0] sm:$0xff] }
 0x461   : > { %v6108_v36 = vadd.f32 %v5997_v1, %v5844_v58  ;;  %6463 = vst.msk [vmem:[#allocation2 + $0x30] sm:$0xff] %vm580_vm2, %v6431_v45  ;;  %v6169_v33 = vld [vmem:[#allocation2 + $0x48] sm:$0xff]  ;;  %v9864_v28 = vpop.f32.mrb[240].mxu0 }
 0x462   : > { %6141 = vst.msk [vmem:[#allocation2 + $0x68] sm:$0xff] %vm580_vm2, %v6109_v37  ;;  %v6434_v9 = vadd.f32 %v9852_v14, %v6169_v33  ;;  %v6168_v11 = vld [vmem:[#allocation2 + $0x40] sm:$0xff]  ;;  %v6346_v29 = vpop.f32.mrb[241].mxu0  ;;  %v5857_v33 = vld [vmem:[#allocation2 + $0xc8] sm:$0xff] }
 0x463   : > { %6140 = vst.msk [vmem:[#allocation2 + $0x60] sm:$0xff] %vm580_vm2, %v6108_v36  ;;  %v9811_v35 = vpop.f32.mrb[206].mxu1  ;;  %v6433_v15 = vadd.f32 %v6306_v7, %v6168_v11 }
 0x464   : > { %v6111_v47 = vadd.f32 %v9811_v35, %v5847_v19  ;;  %v6007_v40 = vpop.f32.mrb[207].mxu1  ;;  %6466 = vst.msk [vmem:[#allocation2 + $0x48] sm:$0xff] %vm580_vm2, %v6434_v9  ;;  %v5856_v19 = vld [vmem:[#allocation2 + $0xc0] sm:$0xff] }
 0x465   : > { %v6110_v24 = vadd.f32 %v6007_v40, %v5846_v62  ;;  %6465 = vst.msk [vmem:[#allocation2 + $0x40] sm:$0xff] %vm580_vm2, %v6433_v15  ;;  %v6171_v27 = vld [vmem:[#allocation2 + $0x58] sm:$0xff]  ;;  %v9867_v43 = vpop.f32.mrb[242].mxu0 }
 0x466   : > { %6143 = vst.msk [vmem:[#allocation2 + $0x78] sm:$0xff] %vm580_vm2, %v6111_v47  ;;  %v6436_v32 = vadd.f32 %v9855_v16, %v6171_v27  ;;  %v6170_v57 = vld [vmem:[#allocation2 + $0x50] sm:$0xff]  ;;  %v6356_v3 = vpop.f32.mrb[243].mxu0  ;;  %v5859_v27 = vld [vmem:[#allocation2 + $0xd8] sm:$0xff] }
 0x467   : > { %6142 = vst.msk [vmem:[#allocation2 + $0x70] sm:$0xff] %vm580_vm2, %v6110_v24  ;;  %v9814_v39 = vpop.f32.mrb[208].mxu1  ;;  %v6435_v61 = vadd.f32 %v6316_v18, %v6170_v57 }
 0x468   : > { %v6113_v22 = vadd.f32 %v9814_v39, %v5849_v54  ;;  %v6017_v31 = vpop.f32.mrb[209].mxu1  ;;  %6468 = vst.msk [vmem:[#allocation2 + $0x58] sm:$0xff] %vm580_vm2, %v6436_v32  ;;  %v5858_v54 = vld [vmem:[#allocation2 + $0xd0] sm:$0xff] }
 0x469   : > { %v6112_v23 = vadd.f32 %v6017_v31, %v5848_v6  ;;  %6467 = vst.msk [vmem:[#allocation2 + $0x50] sm:$0xff] %vm580_vm2, %v6435_v61  ;;  %v6173_v46 = vld [vmem:[#allocation2 + $0x68] sm:$0xff]  ;;  %v9870_v13 = vpop.f32.mrb[244].mxu0 }
 0x46a   : > { %6145 = vst.msk [vmem:[#allocation2 + $0x88] sm:$0xff] %vm580_vm2, %v6113_v22  ;;  %v6438_v50 = vadd.f32 %v9858_v2, %v6173_v46  ;;  %v6172_v14 = vld [vmem:[#allocation2 + $0x60] sm:$0xff]  ;;  %v6366_v53 = vpop.f32.mrb[245].mxu0  ;;  %v5861_v46 = vld [vmem:[#allocation2 + $0xe8] sm:$0xff] }
 0x46b   : > { %6144 = vst.msk [vmem:[#allocation2 + $0x80] sm:$0xff] %vm580_vm2, %v6112_v23  ;;  %v9817_v7 = vpop.f32.mrb[210].mxu1  ;;  %v6437_v48 = vadd.f32 %v6326_v51, %v6172_v14 }
 0x46c   : > { %v6115_v34 = vadd.f32 %v9817_v7, %v5851_v5  ;;  %v6027_v20 = vpop.f32.mrb[211].mxu1  ;;  %6470 = vst.msk [vmem:[#allocation2 + $0x68] sm:$0xff] %vm580_vm2, %v6438_v50  ;;  %v5860_v5 = vld [vmem:[#allocation2 + $0xe0] sm:$0xff] }
 0x46d   : > { %v6114_v21 = vadd.f32 %v6027_v20, %v5850_v44  ;;  %6469 = vst.msk [vmem:[#allocation2 + $0x60] sm:$0xff] %vm580_vm2, %v6437_v48  ;;  %v6175_v49 = vld [vmem:[#allocation2 + $0x78] sm:$0xff]  ;;  %v9873_v41 = vpop.f32.mrb[246].mxu0 }
 0x46e   : > { %6147 = vst.msk [vmem:[#allocation2 + $0x98] sm:$0xff] %vm580_vm2, %v6115_v34  ;;  %v6440_v56 = vadd.f32 %v9861_v12, %v6175_v49  ;;  %v6174_v16 = vld [vmem:[#allocation2 + $0x70] sm:$0xff]  ;;  %v6376_v8 = vpop.f32.mrb[247].mxu0  ;;  %v5863_v49 = vld [vmem:[#allocation2 + $0xf8] sm:$0xff] }
 0x46f   : > { %6146 = vst.msk [vmem:[#allocation2 + $0x90] sm:$0xff] %vm580_vm2, %v6114_v21  ;;  %v9820_v18 = vpop.f32.mrb[212].mxu1  ;;  %v6439_v59 = vadd.f32 %v6336_v4, %v6174_v16 }
 0x470   : > { %v6117_v38 = vadd.f32 %v9820_v18, %v5853_v30  ;;  %v6037_v52 = vpop.f32.mrb[213].mxu1  ;;  %6472 = vst.msk [vmem:[#allocation2 + $0x78] sm:$0xff] %vm580_vm2, %v6440_v56  ;;  %v5862_v30 = vld [vmem:[#allocation2 + $0xf0] sm:$0xff] }
 0x471   : > { %v6116_v10 = vadd.f32 %v6037_v52, %v5852_v26  ;;  %6471 = vst.msk [vmem:[#allocation2 + $0x70] sm:$0xff] %vm580_vm2, %v6439_v59  ;;  %v6177_v60 = vld [vmem:[#allocation2 + $0x88] sm:$0xff]  ;;  %v9876_v37 = vpop.f32.mrb[248].mxu0 }
 0x472   : > { %6149 = vst.msk [vmem:[#allocation2 + $0xa8] sm:$0xff] %vm580_vm2, %v6117_v38  ;;  %v6442_v17 = vadd.f32 %v9864_v28, %v6177_v60  ;;  %v6176_v2 = vld [vmem:[#allocation2 + $0x80] sm:$0xff]  ;;  %v6386_v1 = vpop.f32.mrb[249].mxu0  ;;  %v6490_v60 = vld [vmem:[#allocation2 + $0x8] sm:$0xff] }
 0x473   : > { %6148 = vst.msk [vmem:[#allocation2 + $0xa0] sm:$0xff] %vm580_vm2, %v6116_v10  ;;  %v9823_v51 = vpop.f32.mrb[214].mxu1  ;;  %v6441_v55 = vadd.f32 %v6346_v29, %v6176_v2 }
 0x474   : > { %v6119_v63 = vadd.f32 %v9823_v51, %v5855_v25  ;;  %v6047_v0 = vpop.f32.mrb[215].mxu1  ;;  %6474 = vst.msk [vmem:[#allocation2 + $0x88] sm:$0xff] %vm580_vm2, %v6442_v17  ;;  %v6489_v25 = vld [vmem:[#allocation2] sm:$0xff] }
 0x475   : > { %v6118_v45 = vadd.f32 %v6047_v0, %v5854_v42  ;;  %6473 = vst.msk [vmem:[#allocation2 + $0x80] sm:$0xff] %vm580_vm2, %v6441_v55  ;;  %v6179_v58 = vld [vmem:[#allocation2 + $0x98] sm:$0xff]  ;;  %v9879_v47 = vpop.f32.mrb[250].mxu0 }
 0x476   : > { %6151 = vst.msk [vmem:[#allocation2 + $0xb8] sm:$0xff] %vm580_vm2, %v6119_v63  ;;  %v6444_v36 = vadd.f32 %v9867_v43, %v6179_v58  ;;  %v6178_v12 = vld [vmem:[#allocation2 + $0x90] sm:$0xff]  ;;  %v6396_v40 = vpop.f32.mrb[251].mxu0  ;;  %v6492_v58 = vld [vmem:[#allocation2 + $0x18] sm:$0xff] }
 0x477   : > { %6150 = vst.msk [vmem:[#allocation2 + $0xb0] sm:$0xff] %vm580_vm2, %v6118_v45  ;;  %v9826_v4 = vpop.f32.mrb[216].mxu1  ;;  %v6443_v9 = vadd.f32 %v6356_v3, %v6178_v12 }
 0x478   : > { %v6121_v11 = vadd.f32 %v9826_v4, %v5857_v33  ;;  %v6057_v35 = vpop.f32.mrb[217].mxu1  ;;  %6476 = vst.msk [vmem:[#allocation2 + $0x98] sm:$0xff] %vm580_vm2, %v6444_v36  ;;  %v6491_v33 = vld [vmem:[#allocation2 + $0x10] sm:$0xff] }
 0x479   : > { %v6120_v15 = vadd.f32 %v6057_v35, %v5856_v19  ;;  %6475 = vst.msk [vmem:[#allocation2 + $0x90] sm:$0xff] %vm580_vm2, %v6443_v9  ;;  %v6181_v62 = vld [vmem:[#allocation2 + $0xa8] sm:$0xff]  ;;  %v9882_v22 = vpop.f32.mrb[252].mxu0 }
 0x47a   : > { %6153 = vst.msk [vmem:[#allocation2 + $0xc8] sm:$0xff] %vm580_vm2, %v6121_v11  ;;  %v6446_v24 = vadd.f32 %v9870_v13, %v6181_v62  ;;  %v6180_v28 = vld [vmem:[#allocation2 + $0xa0] sm:$0xff]  ;;  %v6406_v31 = vpop.f32.mrb[253].mxu0  ;;  %v6494_v62 = vld [vmem:[#allocation2 + $0x28] sm:$0xff] }
 0x47b   : > { %6152 = vst.msk [vmem:[#allocation2 + $0xc0] sm:$0xff] %vm580_vm2, %v6120_v15  ;;  %v9829_v29 = vpop.f32.mrb[218].mxu1  ;;  %v6445_v32 = vadd.f32 %v6366_v53, %v6180_v28 }
 0x47c   : > { %v6123_v57 = vadd.f32 %v9829_v29, %v5859_v27  ;;  %v6067_v39 = vpop.f32.mrb[219].mxu1  ;;  %6478 = vst.msk [vmem:[#allocation2 + $0xa8] sm:$0xff] %vm580_vm2, %v6446_v24  ;;  %v6493_v27 = vld [vmem:[#allocation2 + $0x20] sm:$0xff] }
 0x47d   : > { %v6122_v61 = vadd.f32 %v6067_v39, %v5858_v54  ;;  %6477 = vst.msk [vmem:[#allocation2 + $0xa0] sm:$0xff] %vm580_vm2, %v6445_v32  ;;  %v6183_v6 = vld [vmem:[#allocation2 + $0xb8] sm:$0xff]  ;;  %v9885_v34 = vpop.f32.mrb[254].mxu0 }
 0x47e   : > { %6155 = vst.msk [vmem:[#allocation2 + $0xd8] sm:$0xff] %vm580_vm2, %v6123_v57  ;;  %v6448_v23 = vadd.f32 %v9873_v41, %v6183_v6  ;;  %v6182_v43 = vld [vmem:[#allocation2 + $0xb0] sm:$0xff]  ;;  %v6416_v20 = vpop.f32.mrb[255].mxu0  ;;  %v6496_v6 = vld [vmem:[#allocation2 + $0x38] sm:$0xff] }
 0x47f   : > { %6154 = vst.msk [vmem:[#allocation2 + $0xd0] sm:$0xff] %vm580_vm2, %v6122_v61  ;;  %v9832_v3 = vpop.f32.mrb[220].mxu1  ;;  %v6447_v50 = vadd.f32 %v6376_v8, %v6182_v43 }
 0x480   : > { %v6125_v14 = vadd.f32 %v9832_v3, %v5861_v46  ;;  %v6077_v7 = vpop.f32.mrb[221].mxu1  ;;  %6480 = vst.msk [vmem:[#allocation2 + $0xb8] sm:$0xff] %vm580_vm2, %v6448_v23  ;;  %v6495_v46 = vld [vmem:[#allocation2 + $0x30] sm:$0xff] }
 0x481   : > { %v6124_v48 = vadd.f32 %v6077_v7, %v5860_v5  ;;  %6479 = vst.msk [vmem:[#allocation2 + $0xb0] sm:$0xff] %vm580_vm2, %v6447_v50  ;;  %v6185_v44 = vld [vmem:[#allocation2 + $0xc8] sm:$0xff]  ;;  %v9940_v38 = vpop.f32.mrb[0].mxu0 }
 0x482   : > { %6157 = vst.msk [vmem:[#allocation2 + $0xe8] sm:$0xff] %vm580_vm2, %v6125_v14  ;;  %v6450_v21 = vadd.f32 %v9876_v37, %v6185_v44  ;;  %v6184_v13 = vld [vmem:[#allocation2 + $0xc0] sm:$0xff]  ;;  %v6914_v52 = vpop.f32.mrb[1].mxu0  ;;  %v6498_v44 = vld [vmem:[#allocation2 + $0x48] sm:$0xff] }
 0x483   : > { %6156 = vst.msk [vmem:[#allocation2 + $0xe0] sm:$0xff] %vm580_vm2, %v6124_v48  ;;  %v9835_v53 = vpop.f32.mrb[222].mxu1  ;;  %v6449_v56 = vadd.f32 %v6386_v1, %v6184_v13 }
 0x484   : > { %v6127_v16 = vadd.f32 %v9835_v53, %v5863_v49  ;;  %v6087_v18 = vpop.f32.mrb[223].mxu1  ;;  %6482 = vst.msk [vmem:[#allocation2 + $0xc8] sm:$0xff] %vm580_vm2, %v6450_v21  ;;  %v6497_v49 = vld [vmem:[#allocation2 + $0x40] sm:$0xff] }
 0x485   : > { %v6126_v59 = vadd.f32 %v6087_v18, %v5862_v30  ;;  %6481 = vst.msk [vmem:[#allocation2 + $0xc0] sm:$0xff] %vm580_vm2, %v6449_v56  ;;  %v6187_v26 = vld [vmem:[#allocation2 + $0xd8] sm:$0xff]  ;;  %v9943_v63 = vpop.f32.mrb[2].mxu0 }
 0x486   : > { %6159 = vst.msk [vmem:[#allocation2 + $0xf8] sm:$0xff] %vm580_vm2, %v6127_v16  ;;  %v6452_v10 = vadd.f32 %v9879_v47, %v6187_v26  ;;  %v6186_v41 = vld [vmem:[#allocation2 + $0xd0] sm:$0xff]  ;;  %v6924_v0 = vpop.f32.mrb[3].mxu0  ;;  %v6500_v26 = vld [vmem:[#allocation2 + $0x58] sm:$0xff] }
 0x487   : > { %6158 = vst.msk [vmem:[#allocation2 + $0xf0] sm:$0xff] %vm580_vm2, %v6126_v59  ;;  %v9890_v8 = vpop.f32.mrb[224].mxu1  ;;  %v6451_v17 = vadd.f32 %v6396_v40, %v6186_v41 }
 0x488   : > { %v6750_v2 = vadd.f32 %v9890_v8, %v6490_v60  ;;  %v6590_v51 = vpop.f32.mrb[225].mxu1  ;;  %6484 = vst.msk [vmem:[#allocation2 + $0xd8] sm:$0xff] %vm580_vm2, %v6452_v10  ;;  %v6499_v60 = vld [vmem:[#allocation2 + $0x50] sm:$0xff] }
 0x489   : > { %v6749_v55 = vadd.f32 %v6590_v51, %v6489_v25  ;;  %6483 = vst.msk [vmem:[#allocation2 + $0xd0] sm:$0xff] %vm580_vm2, %v6451_v17  ;;  %v6189_v42 = vld [vmem:[#allocation2 + $0xe8] sm:$0xff]  ;;  %v9946_v11 = vpop.f32.mrb[4].mxu0 }
 0x48a   : > { %6782 = vst.msk [vmem:[#allocation2 + $0x8] sm:$0xff] %vm580_vm2, %v6750_v2  ;;  %v6454_v45 = vadd.f32 %v9882_v22, %v6189_v42  ;;  %v6188_v37 = vld [vmem:[#allocation2 + $0xe0] sm:$0xff]  ;;  %v6934_v35 = vpop.f32.mrb[5].mxu0  ;;  %v6502_v42 = vld [vmem:[#allocation2 + $0x68] sm:$0xff] }
 0x48b   : > { %6781 = vst.msk [vmem:[#allocation2] sm:$0xff] %vm580_vm2, %v6749_v55  ;;  %v9893_v1 = vpop.f32.mrb[226].mxu1  ;;  %v6453_v36 = vadd.f32 %v6406_v31, %v6188_v37 }
 0x48c   : > { %v6752_v12 = vadd.f32 %v9893_v1, %v6492_v58  ;;  %v6600_v4 = vpop.f32.mrb[227].mxu1  ;;  %6486 = vst.msk [vmem:[#allocation2 + $0xe8] sm:$0xff] %vm580_vm2, %v6454_v45  ;;  %v6501_v58 = vld [vmem:[#allocation2 + $0x60] sm:$0xff] }
 0x48d   : > { %v6751_v9 = vadd.f32 %v6600_v4, %v6491_v33  ;;  %6485 = vst.msk [vmem:[#allocation2 + $0xe0] sm:$0xff] %vm580_vm2, %v6453_v36  ;;  %v6191_v19 = vld [vmem:[#allocation2 + $0xf8] sm:$0xff]  ;;  %v9949_v57 = vpop.f32.mrb[6].mxu0 }
 0x48e   : > { %6784 = vst.msk [vmem:[#allocation2 + $0x18] sm:$0xff] %vm580_vm2, %v6752_v12  ;;  %v6456_v15 = vadd.f32 %v9885_v34, %v6191_v19  ;;  %v6190_v47 = vld [vmem:[#allocation2 + $0xf0] sm:$0xff]  ;;  %v6944_v39 = vpop.f32.mrb[7].mxu0  ;;  %v6504_v19 = vld [vmem:[#allocation2 + $0x78] sm:$0xff] }
 0x48f   : > { %6783 = vst.msk [vmem:[#allocation2 + $0x10] sm:$0xff] %vm580_vm2, %v6751_v9  ;;  %v9896_v40 = vpop.f32.mrb[228].mxu1  ;;  %v6455_v24 = vadd.f32 %v6416_v20, %v6190_v47 }
 0x490   : > { %v6754_v28 = vadd.f32 %v9896_v40, %v6494_v62  ;;  %v6610_v29 = vpop.f32.mrb[229].mxu1  ;;  %6488 = vst.msk [vmem:[#allocation2 + $0xf8] sm:$0xff] %vm580_vm2, %v6456_v15  ;;  %v6503_v62 = vld [vmem:[#allocation2 + $0x70] sm:$0xff] }
 0x491   : > { %v6753_v32 = vadd.f32 %v6610_v29, %v6493_v27  ;;  %6487 = vst.msk [vmem:[#allocation2 + $0xf0] sm:$0xff] %vm580_vm2, %v6455_v24  ;;  %v6814_v54 = vld [vmem:[#allocation2 + $0x8] sm:$0xff]  ;;  %v9952_v14 = vpop.f32.mrb[8].mxu0 }
 0x492   : > { %6786 = vst.msk [vmem:[#allocation2 + $0x28] sm:$0xff] %vm580_vm2, %v6754_v28  ;;  %v7074_v61 = vadd.f32 %v9940_v38, %v6814_v54  ;;  %v6813_v22 = vld [vmem:[#allocation2] sm:$0xff]  ;;  %v6954_v7 = vpop.f32.mrb[9].mxu0  ;;  %v6506_v54 = vld [vmem:[#allocation2 + $0x88] sm:$0xff] }
 0x493   : > { %6785 = vst.msk [vmem:[#allocation2 + $0x20] sm:$0xff] %vm580_vm2, %v6753_v32  ;;  %v9899_v31 = vpop.f32.mrb[230].mxu1  ;;  %v7073_v23 = vadd.f32 %v6914_v52, %v6813_v22 }
 0x494   : > { %v6756_v43 = vadd.f32 %v9899_v31, %v6496_v6  ;;  %v6620_v3 = vpop.f32.mrb[231].mxu1  ;;  %7106 = vst.msk [vmem:[#allocation2 + $0x8] sm:$0xff] %vm580_vm2, %v7074_v61  ;;  %v6505_v6 = vld [vmem:[#allocation2 + $0x80] sm:$0xff] }
 0x495   : > { %v6755_v50 = vadd.f32 %v6620_v3, %v6495_v46  ;;  %7105 = vst.msk [vmem:[#allocation2] sm:$0xff] %vm580_vm2, %v7073_v23  ;;  %v6816_v5 = vld [vmem:[#allocation2 + $0x18] sm:$0xff]  ;;  %v9955_v16 = vpop.f32.mrb[10].mxu0 }
 0x496   : > { %6788 = vst.msk [vmem:[#allocation2 + $0x38] sm:$0xff] %vm580_vm2, %v6756_v43  ;;  %v7076_v48 = vadd.f32 %v9943_v63, %v6816_v5  ;;  %v6815_v34 = vld [vmem:[#allocation2 + $0x10] sm:$0xff]  ;;  %v6964_v18 = vpop.f32.mrb[11].mxu0  ;;  %v6508_v5 = vld [vmem:[#allocation2 + $0x98] sm:$0xff] }
 0x497   : > { %6787 = vst.msk [vmem:[#allocation2 + $0x30] sm:$0xff] %vm580_vm2, %v6755_v50  ;;  %v9902_v20 = vpop.f32.mrb[232].mxu1  ;;  %v7075_v21 = vadd.f32 %v6924_v0, %v6815_v34 }
 0x498   : > { %v6758_v13 = vadd.f32 %v9902_v20, %v6498_v44  ;;  %v6630_v53 = vpop.f32.mrb[233].mxu1  ;;  %7108 = vst.msk [vmem:[#allocation2 + $0x18] sm:$0xff] %vm580_vm2, %v7076_v48  ;;  %v6507_v44 = vld [vmem:[#allocation2 + $0x90] sm:$0xff] }
 0x499   : > { %v6757_v56 = vadd.f32 %v6630_v53, %v6497_v49  ;;  %7107 = vst.msk [vmem:[#allocation2 + $0x10] sm:$0xff] %vm580_vm2, %v7075_v21  ;;  %v6818_v30 = vld [vmem:[#allocation2 + $0x28] sm:$0xff]  ;;  %v9958_v2 = vpop.f32.mrb[12].mxu0 }
 0x49a   : > { %6790 = vst.msk [vmem:[#allocation2 + $0x48] sm:$0xff] %vm580_vm2, %v6758_v13  ;;  %v7078_v59 = vadd.f32 %v9946_v11, %v6818_v30  ;;  %v6817_v38 = vld [vmem:[#allocation2 + $0x20] sm:$0xff]  ;;  %v6974_v51 = vpop.f32.mrb[13].mxu0  ;;  %v6510_v30 = vld [vmem:[#allocation2 + $0xa8] sm:$0xff] }
 0x49b   : > { %6789 = vst.msk [vmem:[#allocation2 + $0x40] sm:$0xff] %vm580_vm2, %v6757_v56  ;;  %v9905_v52 = vpop.f32.mrb[234].mxu1  ;;  %v7077_v10 = vadd.f32 %v6934_v35, %v6817_v38 }
 0x49c   : > { %v6760_v41 = vadd.f32 %v9905_v52, %v6500_v26  ;;  %v6640_v8 = vpop.f32.mrb[235].mxu1  ;;  %7110 = vst.msk [vmem:[#allocation2 + $0x28] sm:$0xff] %vm580_vm2, %v7078_v59  ;;  %v6509_v26 = vld [vmem:[#allocation2 + $0xa0] sm:$0xff] }
 0x49d   : > { %v6759_v17 = vadd.f32 %v6640_v8, %v6499_v60  ;;  %7109 = vst.msk [vmem:[#allocation2 + $0x20] sm:$0xff] %vm580_vm2, %v7077_v10  ;;  %v6820_v25 = vld [vmem:[#allocation2 + $0x38] sm:$0xff]  ;;  %v9961_v12 = vpop.f32.mrb[14].mxu0 }
 0x49e   : > { %6792 = vst.msk [vmem:[#allocation2 + $0x58] sm:$0xff] %vm580_vm2, %v6760_v41  ;;  %v7080_v55 = vadd.f32 %v9949_v57, %v6820_v25  ;;  %v6819_v63 = vld [vmem:[#allocation2 + $0x30] sm:$0xff]  ;;  %v6984_v4 = vpop.f32.mrb[15].mxu0  ;;  %v6512_v25 = vld [vmem:[#allocation2 + $0xb8] sm:$0xff] }
 0x49f   : > { %6791 = vst.msk [vmem:[#allocation2 + $0x50] sm:$0xff] %vm580_vm2, %v6759_v17  ;;  %v9908_v0 = vpop.f32.mrb[236].mxu1  ;;  %v7079_v45 = vadd.f32 %v6944_v39, %v6819_v63 }
 0x4a0   : > { %v6762_v37 = vadd.f32 %v9908_v0, %v6502_v42  ;;  %v6650_v1 = vpop.f32.mrb[237].mxu1  ;;  %7112 = vst.msk [vmem:[#allocation2 + $0x38] sm:$0xff] %vm580_vm2, %v7080_v55  ;;  %v6511_v42 = vld [vmem:[#allocation2 + $0xb0] sm:$0xff] }
 0x4a1   : > { %v6761_v36 = vadd.f32 %v6650_v1, %v6501_v58  ;;  %7111 = vst.msk [vmem:[#allocation2 + $0x30] sm:$0xff] %vm580_vm2, %v7079_v45  ;;  %v6822_v33 = vld [vmem:[#allocation2 + $0x48] sm:$0xff]  ;;  %v9964_v28 = vpop.f32.mrb[16].mxu0 }
 0x4a2   : > { %6794 = vst.msk [vmem:[#allocation2 + $0x68] sm:$0xff] %vm580_vm2, %v6762_v37  ;;  %v7082_v9 = vadd.f32 %v9952_v14, %v6822_v33  ;;  %v6821_v11 = vld [vmem:[#allocation2 + $0x40] sm:$0xff]  ;;  %v6994_v29 = vpop.f32.mrb[17].mxu0  ;;  %v6514_v33 = vld [vmem:[#allocation2 + $0xc8] sm:$0xff] }
 0x4a3   : > { %6793 = vst.msk [vmem:[#allocation2 + $0x60] sm:$0xff] %vm580_vm2, %v6761_v36  ;;  %v9911_v35 = vpop.f32.mrb[238].mxu1  ;;  %v7081_v15 = vadd.f32 %v6954_v7, %v6821_v11 }
 0x4a4   : > { %v6764_v47 = vadd.f32 %v9911_v35, %v6504_v19  ;;  %v6660_v40 = vpop.f32.mrb[239].mxu1  ;;  %7114 = vst.msk [vmem:[#allocation2 + $0x48] sm:$0xff] %vm580_vm2, %v7082_v9  ;;  %v6513_v19 = vld [vmem:[#allocation2 + $0xc0] sm:$0xff] }
 0x4a5   : > { %v6763_v24 = vadd.f32 %v6660_v40, %v6503_v62  ;;  %7113 = vst.msk [vmem:[#allocation2 + $0x40] sm:$0xff] %vm580_vm2, %v7081_v15  ;;  %v6824_v27 = vld [vmem:[#allocation2 + $0x58] sm:$0xff]  ;;  %v9967_v43 = vpop.f32.mrb[18].mxu0 }
 0x4a6   : > { %6796 = vst.msk [vmem:[#allocation2 + $0x78] sm:$0xff] %vm580_vm2, %v6764_v47  ;;  %v7084_v32 = vadd.f32 %v9955_v16, %v6824_v27  ;;  %v6823_v57 = vld [vmem:[#allocation2 + $0x50] sm:$0xff]  ;;  %v7004_v3 = vpop.f32.mrb[19].mxu0  ;;  %v6516_v27 = vld [vmem:[#allocation2 + $0xd8] sm:$0xff] }
 0x4a7   : > { %6795 = vst.msk [vmem:[#allocation2 + $0x70] sm:$0xff] %vm580_vm2, %v6763_v24  ;;  %v9914_v39 = vpop.f32.mrb[240].mxu1  ;;  %v7083_v61 = vadd.f32 %v6964_v18, %v6823_v57 }
 0x4a8   : > { %v6766_v22 = vadd.f32 %v9914_v39, %v6506_v54  ;;  %v6670_v31 = vpop.f32.mrb[241].mxu1  ;;  %7116 = vst.msk [vmem:[#allocation2 + $0x58] sm:$0xff] %vm580_vm2, %v7084_v32  ;;  %v6515_v54 = vld [vmem:[#allocation2 + $0xd0] sm:$0xff] }
 0x4a9   : > { %v6765_v23 = vadd.f32 %v6670_v31, %v6505_v6  ;;  %7115 = vst.msk [vmem:[#allocation2 + $0x50] sm:$0xff] %vm580_vm2, %v7083_v61  ;;  %v6826_v46 = vld [vmem:[#allocation2 + $0x68] sm:$0xff]  ;;  %v9970_v13 = vpop.f32.mrb[20].mxu0 }
 0x4aa   : > { %6798 = vst.msk [vmem:[#allocation2 + $0x88] sm:$0xff] %vm580_vm2, %v6766_v22  ;;  %v7086_v50 = vadd.f32 %v9958_v2, %v6826_v46  ;;  %v6825_v14 = vld [vmem:[#allocation2 + $0x60] sm:$0xff]  ;;  %v7014_v53 = vpop.f32.mrb[21].mxu0  ;;  %v6518_v46 = vld [vmem:[#allocation2 + $0xe8] sm:$0xff] }
 0x4ab   : > { %6797 = vst.msk [vmem:[#allocation2 + $0x80] sm:$0xff] %vm580_vm2, %v6765_v23  ;;  %v9917_v7 = vpop.f32.mrb[242].mxu1  ;;  %v7085_v48 = vadd.f32 %v6974_v51, %v6825_v14 }
 0x4ac   : > { %v6768_v34 = vadd.f32 %v9917_v7, %v6508_v5  ;;  %v6680_v20 = vpop.f32.mrb[243].mxu1  ;;  %7118 = vst.msk [vmem:[#allocation2 + $0x68] sm:$0xff] %vm580_vm2, %v7086_v50  ;;  %v6517_v5 = vld [vmem:[#allocation2 + $0xe0] sm:$0xff] }
 0x4ad   : > { %v6767_v21 = vadd.f32 %v6680_v20, %v6507_v44  ;;  %7117 = vst.msk [vmem:[#allocation2 + $0x60] sm:$0xff] %vm580_vm2, %v7085_v48  ;;  %v6828_v49 = vld [vmem:[#allocation2 + $0x78] sm:$0xff]  ;;  %v9973_v41 = vpop.f32.mrb[22].mxu0 }
 0x4ae   : > { %6800 = vst.msk [vmem:[#allocation2 + $0x98] sm:$0xff] %vm580_vm2, %v6768_v34  ;;  %v7088_v56 = vadd.f32 %v9961_v12, %v6828_v49  ;;  %v6827_v16 = vld [vmem:[#allocation2 + $0x70] sm:$0xff]  ;;  %v7024_v8 = vpop.f32.mrb[23].mxu0  ;;  %v6520_v49 = vld [vmem:[#allocation2 + $0xf8] sm:$0xff] }
 0x4af   : > { %6799 = vst.msk [vmem:[#allocation2 + $0x90] sm:$0xff] %vm580_vm2, %v6767_v21  ;;  %v9920_v18 = vpop.f32.mrb[244].mxu1  ;;  %v7087_v59 = vadd.f32 %v6984_v4, %v6827_v16 }
 0x4b0   : > { %v6770_v38 = vadd.f32 %v9920_v18, %v6510_v30  ;;  %v6690_v52 = vpop.f32.mrb[245].mxu1  ;;  %7120 = vst.msk [vmem:[#allocation2 + $0x78] sm:$0xff] %vm580_vm2, %v7088_v56  ;;  %v6519_v30 = vld [vmem:[#allocation2 + $0xf0] sm:$0xff] }
 0x4b1   : > { %v6769_v10 = vadd.f32 %v6690_v52, %v6509_v26  ;;  %7119 = vst.msk [vmem:[#allocation2 + $0x70] sm:$0xff] %vm580_vm2, %v7087_v59  ;;  %v6830_v60 = vld [vmem:[#allocation2 + $0x88] sm:$0xff]  ;;  %v9976_v37 = vpop.f32.mrb[24].mxu0 }
 0x4b2   : > { %6802 = vst.msk [vmem:[#allocation2 + $0xa8] sm:$0xff] %vm580_vm2, %v6770_v38  ;;  %v7090_v17 = vadd.f32 %v9964_v28, %v6830_v60  ;;  %v6829_v2 = vld [vmem:[#allocation2 + $0x80] sm:$0xff]  ;;  %v7034_v1 = vpop.f32.mrb[25].mxu0 }
 0x4b3   : > { %6801 = vst.msk [vmem:[#allocation2 + $0xa0] sm:$0xff] %vm580_vm2, %v6769_v10  ;;  %v9923_v51 = vpop.f32.mrb[246].mxu1  ;;  %v7089_v55 = vadd.f32 %v6994_v29, %v6829_v2  ;;  %v7138_v10 = vld [vmem:[#allocation2 + $0x8] sm:$0xff] }
 0x4b4   : > { %v6772_v63 = vadd.f32 %v9923_v51, %v6512_v25  ;;  %v6700_v0 = vpop.f32.mrb[247].mxu1  ;;  %7122 = vst.msk [vmem:[#allocation2 + $0x88] sm:$0xff] %vm580_vm2, %v7090_v17  ;;  %v7137_v17 = vld [vmem:[#allocation2] sm:$0xff] }
 0x4b5   : > { %v6771_v45 = vadd.f32 %v6700_v0, %v6511_v42  ;;  %7121 = vst.msk [vmem:[#allocation2 + $0x80] sm:$0xff] %vm580_vm2, %v7089_v55  ;;  %v6832_v58 = vld [vmem:[#allocation2 + $0x98] sm:$0xff]  ;;  %v9979_v47 = vpop.f32.mrb[26].mxu0 }
 0x4b6   : > { %6804 = vst.msk [vmem:[#allocation2 + $0xb8] sm:$0xff] %vm580_vm2, %v6772_v63  ;;  %v7092_v36 = vadd.f32 %v9967_v43, %v6832_v58  ;;  %v6831_v12 = vld [vmem:[#allocation2 + $0x90] sm:$0xff]  ;;  %v7044_v40 = vpop.f32.mrb[27].mxu0  ;;  %v7140_v42 = vld [vmem:[#allocation2 + $0x18] sm:$0xff] }
 0x4b7   : > { %6803 = vst.msk [vmem:[#allocation2 + $0xb0] sm:$0xff] %vm580_vm2, %v6771_v45  ;;  %v9926_v4 = vpop.f32.mrb[248].mxu1  ;;  %v7091_v9 = vadd.f32 %v7004_v3, %v6831_v12  ;;  %v7139_v58 = vld [vmem:[#allocation2 + $0x10] sm:$0xff] }
 0x4b8   : > { %v6774_v11 = vadd.f32 %v9926_v4, %v6514_v33  ;;  %v6710_v35 = vpop.f32.mrb[249].mxu1  ;;  %7124 = vst.msk [vmem:[#allocation2 + $0x98] sm:$0xff] %vm580_vm2, %v7092_v36 }
 0x4b9   : > { %v6773_v15 = vadd.f32 %v6710_v35, %v6513_v19  ;;  %7123 = vst.msk [vmem:[#allocation2 + $0x90] sm:$0xff] %vm580_vm2, %v7091_v9  ;;  %v6834_v62 = vld [vmem:[#allocation2 + $0xa8] sm:$0xff]  ;;  %v9982_v22 = vpop.f32.mrb[28].mxu0 }
 0x4ba   : > { %6806 = vst.msk [vmem:[#allocation2 + $0xc8] sm:$0xff] %vm580_vm2, %v6774_v11  ;;  %v7094_v24 = vadd.f32 %v9970_v13, %v6834_v62  ;;  %v6833_v28 = vld [vmem:[#allocation2 + $0xa0] sm:$0xff]  ;;  %v7054_v31 = vpop.f32.mrb[29].mxu0  ;;  %v7142_v9 = vld [vmem:[#allocation2 + $0x28] sm:$0xff] }
 0x4bb   : > { %6805 = vst.msk [vmem:[#allocation2 + $0xc0] sm:$0xff] %vm580_vm2, %v6773_v15  ;;  %v9929_v29 = vpop.f32.mrb[250].mxu1  ;;  %v7093_v32 = vadd.f32 %v7014_v53, %v6833_v28  ;;  %v7141_v15 = vld [vmem:[#allocation2 + $0x20] sm:$0xff] }
 0x4bc   : > { %v6776_v57 = vadd.f32 %v9929_v29, %v6516_v27  ;;  %v6720_v39 = vpop.f32.mrb[251].mxu1  ;;  %7126 = vst.msk [vmem:[#allocation2 + $0xa8] sm:$0xff] %vm580_vm2, %v7094_v24 }
 0x4bd   : > { %v6775_v61 = vadd.f32 %v6720_v39, %v6515_v54  ;;  %7125 = vst.msk [vmem:[#allocation2 + $0xa0] sm:$0xff] %vm580_vm2, %v7093_v32  ;;  %v6836_v6 = vld [vmem:[#allocation2 + $0xb8] sm:$0xff]  ;;  %v9985_v34 = vpop.f32.mrb[30].mxu0 }
 0x4be   : > { %6808 = vst.msk [vmem:[#allocation2 + $0xd8] sm:$0xff] %vm580_vm2, %v6776_v57  ;;  %v7096_v23 = vadd.f32 %v9973_v41, %v6836_v6  ;;  %v6835_v43 = vld [vmem:[#allocation2 + $0xb0] sm:$0xff]  ;;  %v7064_v20 = vpop.f32.mrb[31].mxu0  ;;  %v7144_v57 = vld [vmem:[#allocation2 + $0x38] sm:$0xff] }
 0x4bf   : > { %6807 = vst.msk [vmem:[#allocation2 + $0xd0] sm:$0xff] %vm580_vm2, %v6775_v61  ;;  %v9932_v3 = vpop.f32.mrb[252].mxu1  ;;  %v7095_v50 = vadd.f32 %v7024_v8, %v6835_v43  ;;  %v7143_v61 = vld [vmem:[#allocation2 + $0x30] sm:$0xff] }
 0x4c0   : > { %v6778_v14 = vadd.f32 %v9932_v3, %v6518_v46  ;;  %v6730_v7 = vpop.f32.mrb[253].mxu1  ;;  %7128 = vst.msk [vmem:[#allocation2 + $0xb8] sm:$0xff] %vm580_vm2, %v7096_v23 }
 0x4c1   : > { %v6777_v48 = vadd.f32 %v6730_v7, %v6517_v5  ;;  %7127 = vst.msk [vmem:[#allocation2 + $0xb0] sm:$0xff] %vm580_vm2, %v7095_v50  ;;  %v6838_v44 = vld [vmem:[#allocation2 + $0xc8] sm:$0xff] }
 0x4c2   : > { %6810 = vst.msk [vmem:[#allocation2 + $0xe8] sm:$0xff] %vm580_vm2, %v6778_v14  ;;  %v7098_v21 = vadd.f32 %v9976_v37, %v6838_v44  ;;  %v6837_v13 = vld [vmem:[#allocation2 + $0xc0] sm:$0xff]  ;;  %v7146_v7 = vld [vmem:[#allocation2 + $0x48] sm:$0xff] }
 0x4c3   : > { %6809 = vst.msk [vmem:[#allocation2 + $0xe0] sm:$0xff] %vm580_vm2, %v6777_v48  ;;  %v9935_v53 = vpop.f32.mrb[254].mxu1  ;;  %v7097_v56 = vadd.f32 %v7034_v1, %v6837_v13 }
 0x4c4   : > { %v6780_v16 = vadd.f32 %v9935_v53, %v6520_v49  ;;  %v6740_v18 = vpop.f32.mrb[255].mxu1  ;;  %7130 = vst.msk [vmem:[#allocation2 + $0xc8] sm:$0xff] %vm580_vm2, %v7098_v21  ;;  %v7145_v21 = vld [vmem:[#allocation2 + $0x40] sm:$0xff] }
 0x4c5   : > { %v6779_v59 = vadd.f32 %v6740_v18, %v6519_v30  ;;  %7129 = vst.msk [vmem:[#allocation2 + $0xc0] sm:$0xff] %vm580_vm2, %v7097_v56  ;;  %v6840_v38 = vld [vmem:[#allocation2 + $0xd8] sm:$0xff] }
 0x4c6   : > { %6812 = vst.msk [vmem:[#allocation2 + $0xf8] sm:$0xff] %vm580_vm2, %v6780_v16  ;;  %v7100_v26 = vadd.f32 %v9979_v47, %v6840_v38  ;;  %v6839_v52 = vld [vmem:[#allocation2 + $0xd0] sm:$0xff] }
 0x4c7   : > { %6811 = vst.msk [vmem:[#allocation2 + $0xf0] sm:$0xff] %vm580_vm2, %v6779_v59  ;;  %v9990_v41 = vpop.f32.mrb[0].mxu1  ;;  %v7099_v60 = vadd.f32 %v7044_v40, %v6839_v52 }
 0x4c8   : > { %v7398_v8 = vadd.f32 %v9990_v41, %v7138_v10  ;;  %v7238_v2 = vpop.f32.mrb[1].mxu1  ;;  %7132 = vst.msk [vmem:[#allocation2 + $0xd8] sm:$0xff] %vm580_vm2, %v7100_v26  ;;  %v7148_v41 = vld [vmem:[#allocation2 + $0x58] sm:$0xff] }
 0x4c9   : > { %v7397_v25 = vadd.f32 %v7238_v2, %v7137_v17  ;;  %7131 = vst.msk [vmem:[#allocation2 + $0xd0] sm:$0xff] %vm580_vm2, %v7099_v60  ;;  %v6842_v51 = vld [vmem:[#allocation2 + $0xe8] sm:$0xff] }
 0x4ca   : > { %7430 = vst.msk [vmem:[#allocation2 + $0x8] sm:$0xff] %vm580_vm2, %v7398_v8  ;;  %v7102_v55 = vadd.f32 %v9982_v22, %v6842_v51  ;;  %v6841_v63 = vld [vmem:[#allocation2 + $0xe0] sm:$0xff] }
 0x4cb   : > { %7429 = vst.msk [vmem:[#allocation2] sm:$0xff] %vm580_vm2, %v7397_v25  ;;  %v9993_v0 = vpop.f32.mrb[2].mxu1  ;;  %v7101_v45 = vadd.f32 %v7054_v31, %v6841_v63  ;;  %v7147_v25 = vld [vmem:[#allocation2 + $0x50] sm:$0xff] }
 0x4cc   : > { %v7400_v37 = vadd.f32 %v9993_v0, %v7140_v42  ;;  %v7248_v1 = vpop.f32.mrb[3].mxu1  ;;  %7134 = vst.msk [vmem:[#allocation2 + $0xe8] sm:$0xff] %vm580_vm2, %v7102_v55 }
 0x4cd   : > { %v7399_v36 = vadd.f32 %v7248_v1, %v7139_v58  ;;  %7133 = vst.msk [vmem:[#allocation2 + $0xe0] sm:$0xff] %vm580_vm2, %v7101_v45  ;;  %v6844_v12 = vld [vmem:[#allocation2 + $0xf8] sm:$0xff] }
 0x4ce   : > { %7432 = vst.msk [vmem:[#allocation2 + $0x18] sm:$0xff] %vm580_vm2, %v7400_v37  ;;  %v7104_v33 = vadd.f32 %v9985_v34, %v6844_v12  ;;  %v6843_v4 = vld [vmem:[#allocation2 + $0xf0] sm:$0xff] }
 0x4cf   : > { %7431 = vst.msk [vmem:[#allocation2 + $0x10] sm:$0xff] %vm580_vm2, %v7399_v36  ;;  %v9996_v11 = vpop.f32.mrb[4].mxu1  ;;  %v7103_v19 = vadd.f32 %v7064_v20, %v6843_v4  ;;  %v7150_v4 = vld [vmem:[#allocation2 + $0x68] sm:$0xff] }
 0x4d0   : > { %v7402_v35 = vadd.f32 %v9996_v11, %v7142_v9  ;;  %v7258_v47 = vpop.f32.mrb[5].mxu1  ;;  %7136 = vst.msk [vmem:[#allocation2 + $0xf8] sm:$0xff] %vm580_vm2, %v7104_v33 }
 0x4d1   : > { %v13823_v62 = vld [vmem:[#allocation2 + $0x8] sm:$0xff]  ;;  %v7401_v40 = vadd.f32 %v7258_v47, %v7141_v15  ;;  %7135 = vst.msk [vmem:[#allocation2 + $0xf0] sm:$0xff] %vm580_vm2, %v7103_v19  ;;  %v7149_v15 = vld [vmem:[#allocation2 + $0x60] sm:$0xff] }
 0x4d2   : > { %v7564_v24 = vmul.f32 %v13823_v62, %v13823_v62  ;;  %v13828_v28 = vld [vmem:[#allocation2] sm:$0xff]  ;;  %7434 = vst.msk [vmem:[#allocation2 + $0x28] sm:$0xff] %vm580_vm2, %v7402_v35  ;;  %v7494_v27 = vsel %vm580_vm2, %v13823_v62, 0.0 }
 0x4d3   : > { %v7493_v29 = vsel %vm580_vm2, %v13828_v28, 0.0  ;;  %v7563_v32 = vmul.f32 %v13828_v28, %v13828_v28  ;;  %7433 = vst.msk [vmem:[#allocation2 + $0x20] sm:$0xff] %vm580_vm2, %v7401_v40  ;;  %v9999_v54 = vpop.f32.mrb[6].mxu1 }
 0x4d4   : > { %v7404_v39 = vadd.f32 %v9999_v54, %v7144_v57  ;;  %v7268_v22 = vpop.f32.mrb[7].mxu1  ;;  %v7596_v6 = vsel %vm580_vm2, %v7564_v24, 0.0  ;;  %v7495_v46 = vadd.f32 %v7494_v27, %v7493_v29 }
 0x4d5   : > { %v7595_v31 = vsel %vm580_vm2, %v7563_v32, 0.0  ;;  %v13840_v23 = vld [vmem:[#allocation2 + $0x18] sm:$0xff]  ;;  %v7403_v43 = vadd.f32 %v7268_v22, %v7143_v61 }
 0x4d6   : > { %v13842_v3 = vld [vmem:[#allocation2 + $0x10] sm:$0xff]  ;;  %7436 = vst.msk [vmem:[#allocation2 + $0x38] sm:$0xff] %vm580_vm2, %v7404_v39  ;;  %v7566_v50 = vmul.f32 %v13840_v23, %v13840_v23  ;;  %v7597_v34 = vadd.f32 %v7596_v6, %v7595_v31  ;;  %v7498_v49 = vsel %vm580_vm2, %v13840_v23, 0.0  ;;  %v7152_v31 = vld [vmem:[#allocation2 + $0x78] sm:$0xff] }
 0x4d7   : > { %v7496_v14 = vsel %vm580_vm2, %v13842_v3, 0.0  ;;  %v7565_v5 = vmul.f32 %v13842_v3, %v13842_v3  ;;  %7435 = vst.msk [vmem:[#allocation2 + $0x30] sm:$0xff] %vm580_vm2, %v7403_v43  ;;  %v10002_v48 = vpop.f32.mrb[8].mxu1 }
 0x4d8   : > { %v7497_v44 = vadd.f32 %v7496_v14, %v7495_v46  ;;  %v7406_v20 = vadd.f32 %v10002_v48, %v7146_v7  ;;  %v7278_v13 = vpop.f32.mrb[9].mxu1  ;;  %v7600_v38 = vsel %vm580_vm2, %v7566_v50, 0.0 }
 0x4d9   : > { %v7598_v53 = vsel %vm580_vm2, %v7565_v5, 0.0  ;;  %v13855_v56 = vld [vmem:[#allocation2 + $0x28] sm:$0xff]  ;;  %v7405_v16 = vadd.f32 %v7278_v13, %v7145_v21  ;;  %v7151_v5 = vld [vmem:[#allocation2 + $0x70] sm:$0xff] }
 0x4da   : > { %v7599_v30 = vadd.f32 %v7598_v53, %v7597_v34  ;;  %v13857_v18 = vld [vmem:[#allocation2 + $0x20] sm:$0xff]  ;;  %v7499_v59 = vadd.f32 %v7498_v49, %v7497_v44  ;;  %7438 = vst.msk [vmem:[#allocation2 + $0x48] sm:$0xff] %vm580_vm2, %v7406_v20  ;;  %v7568_v26 = vmul.f32 %v13855_v56, %v13855_v56  ;;  %v7502_v55 = vsel %vm580_vm2, %v13855_v56, 0.0 }
 0x4db   : > { %v7500_v52 = vsel %vm580_vm2, %v13857_v18, 0.0  ;;  %v7567_v10 = vmul.f32 %v13857_v18, %v13857_v18  ;;  %7437 = vst.msk [vmem:[#allocation2 + $0x40] sm:$0xff] %vm580_vm2, %v7405_v16  ;;  %v10005_v60 = vpop.f32.mrb[10].mxu1 }
 0x4dc   : > { %v7501_v8 = vadd.f32 %v7500_v52, %v7499_v59  ;;  %v7601_v17 = vadd.f32 %v7600_v38, %v7599_v30  ;;  %v7408_v2 = vadd.f32 %v10005_v60, %v7148_v41  ;;  %v7288_v51 = vpop.f32.mrb[11].mxu1  ;;  %v7604_v1 = vsel %vm580_vm2, %v7568_v26, 0.0  ;;  %v7154_v38 = vld [vmem:[#allocation2 + $0x88] sm:$0xff]  ;;  %v7153_v60 = vld [vmem:[#allocation2 + $0x80] sm:$0xff] }
 0x4dd   : > { %v7602_v63 = vsel %vm580_vm2, %v7567_v10, 0.0  ;;  %v13871_v42 = vld [vmem:[#allocation2 + $0x38] sm:$0xff]  ;;  %v7407_v0 = vadd.f32 %v7288_v51, %v7147_v25 }
 0x4de   : > { %v7603_v45 = vadd.f32 %v7602_v63, %v7601_v17  ;;  %v13873_v37 = vld [vmem:[#allocation2 + $0x30] sm:$0xff]  ;;  %v7503_v58 = vadd.f32 %v7502_v55, %v7501_v8  ;;  %7440 = vst.msk [vmem:[#allocation2 + $0x58] sm:$0xff] %vm580_vm2, %v7408_v2  ;;  %v7570_v36 = vmul.f32 %v13871_v42, %v13871_v42  ;;  %v7506_v40 = vsel %vm580_vm2, %v13871_v42, 0.0 }
 0x4df   : > { %v7504_v12 = vsel %vm580_vm2, %v13873_v37, 0.0  ;;  %v7569_v33 = vmul.f32 %v13873_v37, %v13873_v37  ;;  %7439 = vst.msk [vmem:[#allocation2 + $0x50] sm:$0xff] %vm580_vm2, %v7407_v0  ;;  %v10008_v9 = vpop.f32.mrb[12].mxu1 }
 0x4e0   : > { %v7505_v11 = vadd.f32 %v7504_v12, %v7503_v58  ;;  %v7605_v19 = vadd.f32 %v7604_v1, %v7603_v45  ;;  %v7410_v35 = vadd.f32 %v10008_v9, %v7150_v4  ;;  %v7298_v47 = vpop.f32.mrb[13].mxu1  ;;  %v7608_v39 = vsel %vm580_vm2, %v7570_v36, 0.0  ;;  %v7156_v12 = vld [vmem:[#allocation2 + $0x98] sm:$0xff] }
 0x4e1   : > { %v7606_v24 = vsel %vm580_vm2, %v7569_v33, 0.0  ;;  %v13887_v27 = vld [vmem:[#allocation2 + $0x48] sm:$0xff]  ;;  %v7409_v29 = vadd.f32 %v7298_v47, %v7149_v15 }
 0x4e2   : > { %v7607_v32 = vadd.f32 %v7606_v24, %v7605_v19  ;;  %v13889_v57 = vld [vmem:[#allocation2 + $0x40] sm:$0xff]  ;;  %v7507_v54 = vadd.f32 %v7506_v40, %v7505_v11  ;;  %7442 = vst.msk [vmem:[#allocation2 + $0x68] sm:$0xff] %vm580_vm2, %v7410_v35  ;;  %v7572_v61 = vmul.f32 %v13887_v27, %v13887_v27  ;;  %v7510_v48 = vsel %vm580_vm2, %v13887_v27, 0.0  ;;  %v7155_v19 = vld [vmem:[#allocation2 + $0x90] sm:$0xff] }
 0x4e3   : > { %v7508_v22 = vsel %vm580_vm2, %v13889_v57, 0.0  ;;  %v7571_v6 = vmul.f32 %v13889_v57, %v13889_v57  ;;  %7441 = vst.msk [vmem:[#allocation2 + $0x60] sm:$0xff] %vm580_vm2, %v7409_v29  ;;  %v10011_v43 = vpop.f32.mrb[14].mxu1 }
 0x4e4   : > { %v7509_v46 = vadd.f32 %v7508_v22, %v7507_v54  ;;  %v7609_v50 = vadd.f32 %v7608_v39, %v7607_v32  ;;  %v7412_v14 = vadd.f32 %v10011_v43, %v7152_v31  ;;  %v7308_v7 = vpop.f32.mrb[15].mxu1  ;;  %v7612_v53 = vsel %vm580_vm2, %v7572_v61, 0.0  ;;  %v7158_v31 = vld [vmem:[#allocation2 + $0xa8] sm:$0xff] }
 0x4e5   : > { %v7610_v34 = vsel %vm580_vm2, %v7571_v6, 0.0  ;;  %v13903_v44 = vld [vmem:[#allocation2 + $0x58] sm:$0xff]  ;;  %v7411_v20 = vadd.f32 %v7308_v7, %v7151_v5  ;;  %v7157_v5 = vld [vmem:[#allocation2 + $0xa0] sm:$0xff] }
 0x4e6   : > { %v7611_v21 = vadd.f32 %v7610_v34, %v7609_v50  ;;  %v13905_v13 = vld [vmem:[#allocation2 + $0x50] sm:$0xff]  ;;  %v7511_v49 = vadd.f32 %v7510_v48, %v7509_v46  ;;  %7444 = vst.msk [vmem:[#allocation2 + $0x78] sm:$0xff] %vm580_vm2, %v7412_v14  ;;  %v7574_v16 = vmul.f32 %v13903_v44, %v13903_v44  ;;  %v7514_v17 = vsel %vm580_vm2, %v13903_v44, 0.0 }
 0x4e7   : > { %v7512_v30 = vsel %vm580_vm2, %v13905_v13, 0.0  ;;  %v7573_v59 = vmul.f32 %v13905_v13, %v13905_v13  ;;  %7443 = vst.msk [vmem:[#allocation2 + $0x70] sm:$0xff] %vm580_vm2, %v7411_v20  ;;  %v10014_v26 = vpop.f32.mrb[16].mxu1 }
 0x4e8   : > { %v7513_v52 = vadd.f32 %v7512_v30, %v7511_v49  ;;  %v7613_v10 = vadd.f32 %v7612_v53, %v7611_v21  ;;  %v7414_v41 = vadd.f32 %v10014_v26, %v7154_v38  ;;  %v7318_v8 = vpop.f32.mrb[17].mxu1  ;;  %v7616_v45 = vsel %vm580_vm2, %v7574_v16, 0.0 }
 0x4e9   : > { %v7614_v2 = vsel %vm580_vm2, %v7573_v59, 0.0  ;;  %v13919_v25 = vld [vmem:[#allocation2 + $0x68] sm:$0xff]  ;;  %v7413_v51 = vadd.f32 %v7318_v8, %v7153_v60 }
 0x4ea   : > { %v7615_v55 = vadd.f32 %v7614_v2, %v7613_v10  ;;  %v13921_v63 = vld [vmem:[#allocation2 + $0x60] sm:$0xff]  ;;  %v7515_v0 = vadd.f32 %v7514_v17, %v7513_v52  ;;  %7446 = vst.msk [vmem:[#allocation2 + $0x88] sm:$0xff] %vm580_vm2, %v7414_v41  ;;  %v7576_v58 = vmul.f32 %v13919_v25, %v13919_v25  ;;  %v7518_v15 = vsel %vm580_vm2, %v13919_v25, 0.0  ;;  %v7160_v52 = vld [vmem:[#allocation2 + $0xb8] sm:$0xff]  ;;  %v7159_v17 = vld [vmem:[#allocation2 + $0xb0] sm:$0xff] }
 0x4eb   : > { %v7516_v1 = vsel %vm580_vm2, %v13921_v63, 0.0  ;;  %v7575_v36 = vmul.f32 %v13921_v63, %v13921_v63  ;;  %7445 = vst.msk [vmem:[#allocation2 + $0x80] sm:$0xff] %vm580_vm2, %v7413_v51  ;;  %v10017_v33 = vpop.f32.mrb[18].mxu1 }
 0x4ec   : > { %v7517_v4 = vadd.f32 %v7516_v1, %v7515_v0  ;;  %v7617_v9 = vadd.f32 %v7616_v45, %v7615_v55  ;;  %v7416_v11 = vadd.f32 %v10017_v33, %v7156_v12  ;;  %v7328_v35 = vpop.f32.mrb[19].mxu1  ;;  %v7620_v39 = vsel %vm580_vm2, %v7576_v58, 0.0 }
 0x4ed   : > { %v7618_v47 = vsel %vm580_vm2, %v7575_v36, 0.0  ;;  %v13935_v40 = vld [vmem:[#allocation2 + $0x78] sm:$0xff]  ;;  %v7415_v24 = vadd.f32 %v7328_v35, %v7155_v19 }
 0x4ee   : > { %v7619_v29 = vadd.f32 %v7618_v47, %v7617_v9  ;;  %v13937_v32 = vld [vmem:[#allocation2 + $0x70] sm:$0xff]  ;;  %v7519_v54 = vadd.f32 %v7518_v15, %v7517_v4  ;;  %7448 = vst.msk [vmem:[#allocation2 + $0x98] sm:$0xff] %vm580_vm2, %v7416_v11  ;;  %v7578_v61 = vmul.f32 %v13935_v40, %v13935_v40  ;;  %v7522_v48 = vsel %vm580_vm2, %v13935_v40, 0.0  ;;  %v7162_v11 = vld [vmem:[#allocation2 + $0xc8] sm:$0xff] }
 0x4ef   : > { %v7520_v22 = vsel %vm580_vm2, %v13937_v32, 0.0  ;;  %v7577_v6 = vmul.f32 %v13937_v32, %v13937_v32  ;;  %7447 = vst.msk [vmem:[#allocation2 + $0x90] sm:$0xff] %vm580_vm2, %v7415_v24  ;;  %v10020_v43 = vpop.f32.mrb[20].mxu1  ;;  %v7161_v24 = vld [vmem:[#allocation2 + $0xc0] sm:$0xff] }
 0x4f0   : > { %v7521_v46 = vadd.f32 %v7520_v22, %v7519_v54  ;;  %v7621_v50 = vadd.f32 %v7620_v39, %v7619_v29  ;;  %v7418_v14 = vadd.f32 %v10020_v43, %v7158_v31  ;;  %v7338_v7 = vpop.f32.mrb[21].mxu1  ;;  %v7624_v30 = vsel %vm580_vm2, %v7578_v61, 0.0 }
 0x4f1   : > { %v7622_v34 = vsel %vm580_vm2, %v7577_v6, 0.0  ;;  %v13951_v20 = vld [vmem:[#allocation2 + $0x88] sm:$0xff]  ;;  %v7417_v21 = vadd.f32 %v7338_v7, %v7157_v5  ;;  %v7164_v7 = vld [vmem:[#allocation2 + $0xd8] sm:$0xff] }
 0x4f2   : > { %v7623_v49 = vadd.f32 %v7622_v34, %v7621_v50  ;;  %v13953_v53 = vld [vmem:[#allocation2 + $0x80] sm:$0xff]  ;;  %v7523_v16 = vadd.f32 %v7522_v48, %v7521_v46  ;;  %7450 = vst.msk [vmem:[#allocation2 + $0xa8] sm:$0xff] %vm580_vm2, %v7418_v14  ;;  %v7580_v59 = vmul.f32 %v13951_v20, %v13951_v20  ;;  %v7526_v51 = vsel %vm580_vm2, %v13951_v20, 0.0 }
 0x4f3   : > { %v7524_v38 = vsel %vm580_vm2, %v13953_v53, 0.0  ;;  %v7579_v26 = vmul.f32 %v13953_v53, %v13953_v53  ;;  %7449 = vst.msk [vmem:[#allocation2 + $0xa0] sm:$0xff] %vm580_vm2, %v7417_v21  ;;  %v10023_v10 = vpop.f32.mrb[22].mxu1 }
 0x4f4   : > { %v7525_v41 = vadd.f32 %v7524_v38, %v7523_v16  ;;  %v7625_v60 = vadd.f32 %v7624_v30, %v7623_v49  ;;  %v7420_v8 = vadd.f32 %v10023_v10, %v7160_v52  ;;  %v7348_v2 = vpop.f32.mrb[23].mxu1  ;;  %v7628_v12 = vsel %vm580_vm2, %v7580_v59, 0.0  ;;  %v7163_v16 = vld [vmem:[#allocation2 + $0xd0] sm:$0xff] }
 0x4f5   : > { %v7626_v55 = vsel %vm580_vm2, %v7579_v26, 0.0  ;;  %v13967_v0 = vld [vmem:[#allocation2 + $0x98] sm:$0xff]  ;;  %v7419_v45 = vadd.f32 %v7348_v2, %v7159_v17 }
 0x4f6   : > { %v7627_v58 = vadd.f32 %v7626_v55, %v7625_v60  ;;  %v13969_v1 = vld [vmem:[#allocation2 + $0x90] sm:$0xff]  ;;  %v7527_v36 = vadd.f32 %v7526_v51, %v7525_v41  ;;  %7452 = vst.msk [vmem:[#allocation2 + $0xb8] sm:$0xff] %vm580_vm2, %v7420_v8  ;;  %v7582_v33 = vmul.f32 %v13967_v0, %v13967_v0  ;;  %v7530_v54 = vsel %vm580_vm2, %v13967_v0, 0.0  ;;  %v7166_v55 = vld [vmem:[#allocation2 + $0xe8] sm:$0xff] }
 0x4f7   : > { %v7528_v4 = vsel %vm580_vm2, %v13969_v1, 0.0  ;;  %v7581_v9 = vmul.f32 %v13969_v1, %v13969_v1  ;;  %7451 = vst.msk [vmem:[#allocation2 + $0xb0] sm:$0xff] %vm580_vm2, %v7419_v45  ;;  %v10026_v19 = vpop.f32.mrb[24].mxu1 }
 0x4f8   : > { %v7529_v35 = vadd.f32 %v7528_v4, %v7527_v36  ;;  %v7629_v15 = vadd.f32 %v7628_v12, %v7627_v58  ;;  %v7422_v47 = vadd.f32 %v10026_v19, %v7162_v11  ;;  %v7358_v29 = vpop.f32.mrb[25].mxu1  ;;  %v7632_v46 = vsel %vm580_vm2, %v7582_v33, 0.0  ;;  %v7165_v33 = vld [vmem:[#allocation2 + $0xe0] sm:$0xff] }
 0x4f9   : > { %v7630_v39 = vsel %vm580_vm2, %v7581_v9, 0.0  ;;  %v13983_v61 = vld [vmem:[#allocation2 + $0xa8] sm:$0xff]  ;;  %v7421_v22 = vadd.f32 %v7358_v29, %v7161_v24 }
 0x4fa   : > { %v7631_v6 = vadd.f32 %v7630_v39, %v7629_v15  ;;  %v13985_v31 = vld [vmem:[#allocation2 + $0xa0] sm:$0xff]  ;;  %v7531_v43 = vadd.f32 %v7530_v54, %v7529_v35  ;;  %7454 = vst.msk [vmem:[#allocation2 + $0xc8] sm:$0xff] %vm580_vm2, %v7422_v47  ;;  %v7584_v50 = vmul.f32 %v13983_v61, %v13983_v61  ;;  %v7534_v59 = vsel %vm580_vm2, %v13983_v61, 0.0 }
 0x4fb   : > { %v7532_v14 = vsel %vm580_vm2, %v13985_v31, 0.0  ;;  %v7583_v5 = vmul.f32 %v13985_v31, %v13985_v31  ;;  %7453 = vst.msk [vmem:[#allocation2 + $0xc0] sm:$0xff] %vm580_vm2, %v7421_v22  ;;  %v10029_v48 = vpop.f32.mrb[26].mxu1 }
 0x4fc   : > { %v7533_v34 = vadd.f32 %v7532_v14, %v7531_v43  ;;  %v7633_v21 = vadd.f32 %v7632_v46, %v7631_v6  ;;  %v7424_v49 = vadd.f32 %v10029_v48, %v7164_v7  ;;  %v7368_v30 = vpop.f32.mrb[27].mxu1  ;;  %v7636_v8 = vsel %vm580_vm2, %v7584_v50, 0.0  ;;  %v7168_v6 = vld [vmem:[#allocation2 + $0xf8] sm:$0xff] }
 0x4fd   : > { %v7634_v38 = vsel %vm580_vm2, %v7583_v5, 0.0  ;;  %v13999_v26 = vld [vmem:[#allocation2 + $0xb8] sm:$0xff]  ;;  %v7423_v52 = vadd.f32 %v7368_v30, %v7163_v16  ;;  %v7167_v5 = vld [vmem:[#allocation2 + $0xf0] sm:$0xff] }
 0x4fe   : > { %v7635_v10 = vadd.f32 %v7634_v38, %v7633_v21  ;;  %v14001_v41 = vld [vmem:[#allocation2 + $0xb0] sm:$0xff]  ;;  %v7535_v60 = vadd.f32 %v7534_v59, %v7533_v34  ;;  %7456 = vst.msk [vmem:[#allocation2 + $0xd8] sm:$0xff] %vm580_vm2, %v7424_v49  ;;  %v7586_v17 = vmul.f32 %v13999_v26, %v13999_v26  ;;  %v7538_v9 = vsel %vm580_vm2, %v13999_v26, 0.0 }
 0x4ff   : > { %v7536_v2 = vsel %vm580_vm2, %v14001_v41, 0.0  ;;  %v7585_v51 = vmul.f32 %v14001_v41, %v14001_v41  ;;  %7455 = vst.msk [vmem:[#allocation2 + $0xd0] sm:$0xff] %vm580_vm2, %v7423_v52  ;;  %v10032_v45 = vpop.f32.mrb[28].mxu1 }
 0x500   : > { %v7537_v58 = vadd.f32 %v7536_v2, %v7535_v60  ;;  %v7637_v36 = vadd.f32 %v7636_v8, %v7635_v10  ;;  %v7426_v12 = vadd.f32 %v10032_v45, %v7166_v55  ;;  %v7378_v4 = vpop.f32.mrb[29].mxu1  ;;  %v7640_v29 = vsel %vm580_vm2, %v7586_v17, 0.0 }
 0x501   : > { %v7638_v11 = vsel %vm580_vm2, %v7585_v51, 0.0  ;;  %v14015_v19 = vld [vmem:[#allocation2 + $0xc8] sm:$0xff]  ;;  %v7425_v35 = vadd.f32 %v7378_v4, %v7165_v33 }
 0x502   : > { %v7639_v15 = vadd.f32 %v7638_v11, %v7637_v36  ;;  %v14017_v47 = vld [vmem:[#allocation2 + $0xc0] sm:$0xff]  ;;  %v7539_v24 = vadd.f32 %v7538_v9, %v7537_v58  ;;  %7458 = vst.msk [vmem:[#allocation2 + $0xe8] sm:$0xff] %vm580_vm2, %v7426_v12  ;;  %v7588_v54 = vmul.f32 %v14015_v19, %v14015_v19  ;;  %v7542_v48 = vsel %vm580_vm2, %v14015_v19, 0.0 }
 0x503   : > { %v7540_v39 = vsel %vm580_vm2, %v14017_v47, 0.0  ;;  %v7587_v22 = vmul.f32 %v14017_v47, %v14017_v47  ;;  %7457 = vst.msk [vmem:[#allocation2 + $0xe0] sm:$0xff] %vm580_vm2, %v7425_v35  ;;  %v10035_v43 = vpop.f32.mrb[30].mxu1 }
 0x504   : > { %v7541_v46 = vadd.f32 %v7540_v39, %v7539_v24  ;;  %v7641_v50 = vadd.f32 %v7640_v29, %v7639_v15  ;;  %v7428_v14 = vadd.f32 %v10035_v43, %v7168_v6  ;;  %v7388_v7 = vpop.f32.mrb[31].mxu1  ;;  %v7644_v38 = vsel %vm580_vm2, %v7588_v54, 0.0 }
 0x505   : > { %v7642_v34 = vsel %vm580_vm2, %v7587_v22, 0.0  ;;  %v14031_v21 = vld [vmem:[#allocation2 + $0xd8] sm:$0xff]  ;;  %v7427_v49 = vadd.f32 %v7388_v7, %v7167_v5 }
 0x506   : > { %v7643_v16 = vadd.f32 %v7642_v34, %v7641_v50  ;;  %v14033_v30 = vld [vmem:[#allocation2 + $0xd0] sm:$0xff]  ;;  %v7543_v59 = vadd.f32 %v7542_v48, %v7541_v46  ;;  %7460 = vst.msk [vmem:[#allocation2 + $0xf8] sm:$0xff] %vm580_vm2, %v7428_v14  ;;  %v7590_v52 = vmul.f32 %v14031_v21, %v14031_v21  ;;  %v7546_v2 = vsel %vm580_vm2, %v14031_v21, 0.0 }
 0x507   : > { %v7544_v10 = vsel %vm580_vm2, %v14033_v30, 0.0  ;;  %v7589_v60 = vmul.f32 %v14033_v30, %v14033_v30  ;;  %7459 = vst.msk [vmem:[#allocation2 + $0xf0] sm:$0xff] %vm580_vm2, %v7427_v49 }
 0x508   : > { %v7545_v8 = vadd.f32 %v7544_v10, %v7543_v59  ;;  %v7645_v17 = vadd.f32 %v7644_v38, %v7643_v16  ;;  %v7648_v12 = vsel %vm580_vm2, %v7590_v52, 0.0 }
 0x509   : > { %v7646_v51 = vsel %vm580_vm2, %v7589_v60, 0.0  ;;  %v14047_v55 = vld [vmem:[#allocation2 + $0xe8] sm:$0xff] }
 0x50a   : > { %v7647_v45 = vadd.f32 %v7646_v51, %v7645_v17  ;;  %v14049_v58 = vld [vmem:[#allocation2 + $0xe0] sm:$0xff]  ;;  %v7547_v36 = vadd.f32 %v7546_v2, %v7545_v8  ;;  %v7592_v33 = vmul.f32 %v14047_v55, %v14047_v55  ;;  %v7550_v15 = vsel %vm580_vm2, %v14047_v55, 0.0 }
 0x50b   : > { %v7548_v4 = vsel %vm580_vm2, %v14049_v58, 0.0  ;;  %v7591_v9 = vmul.f32 %v14049_v58, %v14049_v58 }
 0x50c   : > { %v7549_v11 = vadd.f32 %v7548_v4, %v7547_v36  ;;  %v7649_v35 = vadd.f32 %v7648_v12, %v7647_v45  ;;  %v7652_v6 = vsel %vm580_vm2, %v7592_v33, 0.0 }
 0x50d   : > { %v7650_v24 = vsel %vm580_vm2, %v7591_v9, 0.0  ;;  %v14061_v29 = vld [vmem:[#allocation2 + $0xf8] sm:$0xff] }
 0x50e   : > { %v7651_v54 = vadd.f32 %v7650_v24, %v7649_v35  ;;  %v14063_v39 = vld [vmem:[#allocation2 + $0xf0] sm:$0xff]  ;;  %v7551_v22 = vadd.f32 %v7550_v15, %v7549_v11  ;;  %v7594_v43 = vmul.f32 %v14061_v29, %v14061_v29  ;;  %v7554_v7 = vsel %vm580_vm2, %v14061_v29, 0.0 }
 0x50f   : > { %v7552_v46 = vsel %vm580_vm2, %v14063_v39, 0.0  ;;  %v7593_v50 = vmul.f32 %v14063_v39, %v14063_v39 }
 0x510   : > { %v7553_v14 = vadd.f32 %v7552_v46, %v7551_v22  ;;  %v7653_v5 = vadd.f32 %v7652_v6, %v7651_v54  ;;  %v7656_v16 = vsel %vm580_vm2, %v7594_v43, 0.0 }
 0x511   : > { %v7654_v48 = vsel %vm580_vm2, %v7593_v50, 0.0 }
 0x512   : > { %v7555_v34 = vadd.f32 %v7554_v7, %v7553_v14  ;;  %v7655_v49 = vadd.f32 %v7654_v48, %v7653_v5 }
 0x514   : > { %v7556_v59 = vrot.slane %v7555_v34, 4  ;;  %v7657_v38 = vadd.f32 %v7656_v16, %v7655_v49  ;;  %v10133_v16 = vld [vmem:[%s10642_s17 + $0xf0] sm:$0xff] }
 0x516   : > { %v7557_v52 = vadd.f32 %v7556_v59, %v7555_v34  ;;  %v7658_v10 = vrot.slane %v7657_v38, 4 }
 0x518   : > { %v7558_v60 = vrot.slane %v7557_v52, 2  ;;  %v7659_v8 = vadd.f32 %v7658_v10, %v7657_v38 }
 0x51a   : > { %v7559_v17 = vadd.f32 %v7558_v60, %v7557_v52  ;;  %v7660_v2 = vrot.slane %v7659_v8, 2 }
 0x51c   : > { %v7560_v51 = vrot.slane %v7559_v17, 1  ;;  %v7661_v45 = vadd.f32 %v7660_v2, %v7659_v8 }
 0x51e   : > { %v7561_v36 = vadd.f32 %v7560_v51, %v7559_v17  ;;  %v7662_v12 = vrot.slane %v7661_v45, 1 }
 0x520   : > { %v14076_v33 = vmul.f32 0.00390625, %v7561_v36  ;;  %v7663_v4 = vadd.f32 %v7662_v12, %v7661_v45 }
 0x522   : > { %v7664_v9 = vmul.f32 0.00390625, %v7663_v4  ;;  %v7665_v11 = vmul.f32 %v14076_v33, %v14076_v33  ;;  %v7697_v24 = vsub.f32 %v14063_v39, %v14076_v33  ;;  %v7667_v54 = vsub.f32 %v13828_v28, %v14076_v33 }
 0x523   : > { %v7668_v22 = vsub.f32 %v13823_v62, %v14076_v33  ;;  %v7669_v6 = vsub.f32 %v13842_v3, %v14076_v33  ;;  %v7670_v43 = vsub.f32 %v13840_v23, %v14076_v33  ;;  %v7671_v46 = vsub.f32 %v13857_v18, %v14076_v33 }
 0x524   : > { %v7666_v35 = vsub.f32 %v7664_v9, %v7665_v11  ;;  %v7672_v50 = vsub.f32 %v13855_v56, %v14076_v33  ;;  %v7673_v39 = vsub.f32 %v13873_v37, %v14076_v33  ;;  %v7674_v28 = vsub.f32 %v13871_v42, %v14076_v33 }
 0x525   : > { %v7675_v62 = vsub.f32 %v13889_v57, %v14076_v33  ;;  %v7676_v3 = vsub.f32 %v13887_v27, %v14076_v33  ;;  %v7677_v23 = vsub.f32 %v13905_v13, %v14076_v33  ;;  %v7678_v18 = vsub.f32 %v13903_v44, %v14076_v33 }
 0x526   : > { %v7699_v15 = vadd.f32 1e-05, %v7666_v35  ;;  %v7679_v56 = vsub.f32 %v13921_v63, %v14076_v33  ;;  %v7680_v37 = vsub.f32 %v13919_v25, %v14076_v33  ;;  %v7681_v42 = vsub.f32 %v13937_v32, %v14076_v33 }
 0x527   : > { %v7682_v57 = vsub.f32 %v13935_v40, %v14076_v33  ;;  %v7683_v27 = vsub.f32 %v13953_v53, %v14076_v33  ;;  %v7684_v13 = vsub.f32 %v13951_v20, %v14076_v33  ;;  %v7685_v44 = vsub.f32 %v13969_v1, %v14076_v33 }
 0x528   : > { %10131 = vrsqrt.f32 %v7699_v15  ;;  %v7686_v63 = vsub.f32 %v13967_v0, %v14076_v33  ;;  %v7687_v25 = vsub.f32 %v13985_v31, %v14076_v33  ;;  %v7688_v32 = vsub.f32 %v13983_v61, %v14076_v33 }
 0x529   : > { %v7689_v40 = vsub.f32 %v14001_v41, %v14076_v33  ;;  %v7690_v53 = vsub.f32 %v13999_v26, %v14076_v33  ;;  %v7691_v20 = vsub.f32 %v14017_v47, %v14076_v33  ;;  %v7692_v1 = vsub.f32 %v14015_v19, %v14076_v33 }
 0x52a   : > { %v7693_v0 = vsub.f32 %v14033_v30, %v14076_v33  ;;  %v7694_v61 = vsub.f32 %v14031_v21, %v14076_v33  ;;  %v7695_v41 = vsub.f32 %v14049_v58, %v14076_v33  ;;  %v7696_v26 = vsub.f32 %v14047_v55, %v14076_v33 }
 0x52b   : > { %v7698_v47 = vsub.f32 %v14061_v29, %v14076_v33 }
 0x532   : > { %v10132_v31 = vpop.eup %10131 }
 0x533   : > { %v7731_v14 = vmul.f32 %v10132_v31, %v7697_v24  ;;  %v7701_v5 = vmul.f32 %v10132_v31, %v7667_v54  ;;  %v7702_v19 = vmul.f32 %v10132_v31, %v7668_v22  ;;  %v7703_v7 = vmul.f32 %v10132_v31, %v7669_v6  ;;  %v10134_v6 = vld [vmem:[%s10642_s17] sm:$0xff] }
 0x534   : > { %v7704_v48 = vmul.f32 %v10132_v31, %v7670_v43  ;;  %v7705_v30 = vmul.f32 %v10132_v31, %v7671_v46  ;;  %v7706_v34 = vmul.f32 %v10132_v31, %v7672_v50  ;;  %v7707_v49 = vmul.f32 %v10132_v31, %v7673_v39  ;;  %v10135_v46 = vld [vmem:[%s10642_s17 + $0x8] sm:$0xff]  ;;  %v10136_v39 = vld [vmem:[%s10642_s17 + $0x10] sm:$0xff] }
 0x535   : > { %v7763_v21 = vadd.f32 %v10133_v16, %v7731_v14  ;;  %v7708_v59 = vmul.f32 %v10132_v31, %v7674_v28  ;;  %v7709_v38 = vmul.f32 %v10132_v31, %v7675_v62  ;;  %v7710_v58 = vmul.f32 %v10132_v31, %v7676_v3  ;;  %v10137_v62 = vld [vmem:[%s10642_s17 + $0x18] sm:$0xff] }
 0x536   : > { %v7711_v52 = vmul.f32 %v10132_v31, %v7677_v23  ;;  %v7712_v10 = vmul.f32 %v10132_v31, %v7678_v18  ;;  %v7713_v55 = vmul.f32 %v10132_v31, %v7679_v56  ;;  %v7714_v60 = vmul.f32 %v10132_v31, %v7680_v37  ;;  %v10138_v23 = vld [vmem:[%s10642_s17 + $0x20] sm:$0xff]  ;;  %v10139_v56 = vld [vmem:[%s10642_s17 + $0x28] sm:$0xff]  ;;  %v10149_v14 = vld [vmem:[%s10642_s17 + $0x78] sm:$0xff] }
 0x537   : > { %7795 = vst.msk [vmem:[%s14147_s24 + $0xf0] sm:$0xff] %vm580_vm2, %v7763_v21  ;;  %v7715_v29 = vmul.f32 %v10132_v31, %v7681_v42  ;;  %v7716_v8 = vmul.f32 %v10132_v31, %v7682_v57  ;;  %v7717_v17 = vmul.f32 %v10132_v31, %v7683_v27  ;;  %v7718_v2 = vmul.f32 %v10132_v31, %v7684_v13  ;;  %v10140_v42 = vld [vmem:[%s10642_s17 + $0x30] sm:$0xff]  ;;  %v10141_v27 = vld [vmem:[%s10642_s17 + $0x38] sm:$0xff] }
 0x538   : > { %v7719_v51 = vmul.f32 %v10132_v31, %v7685_v44  ;;  %v14151_v45 = vmul.f32 %v10132_v31, %v7686_v63  ;;  %v14153_v36 = vmul.f32 %v10132_v31, %v7687_v25  ;;  %v14155_v12 = vmul.f32 %v10132_v31, %v7688_v32  ;;  %v10142_v44 = vld [vmem:[%s10642_s17 + $0x40] sm:$0xff]  ;;  %v10143_v25 = vld [vmem:[%s10642_s17 + $0x48] sm:$0xff]  ;;  %v10153_v16 = vld [vmem:[%s10642_s17 + $0x98] sm:$0xff] }
 0x539   : > { %v14157_v33 = vmul.f32 %v10132_v31, %v7689_v40  ;;  %v14159_v4 = vmul.f32 %v10132_v31, %v7690_v53  ;;  %v14161_v9 = vmul.f32 %v10132_v31, %v7691_v20  ;;  %v14163_v11 = vmul.f32 %v10132_v31, %v7692_v1  ;;  %v10144_v40 = vld [vmem:[%s10642_s17 + $0x50] sm:$0xff]  ;;  %v10145_v20 = vld [vmem:[%s10642_s17 + $0x58] sm:$0xff] }
 0x53a   : > { %v14165_v35 = vmul.f32 %v10132_v31, %v7693_v0  ;;  %v14167_v15 = vmul.f32 %v10132_v31, %v7694_v61  ;;  %v14169_v24 = vmul.f32 %v10132_v31, %v7695_v41  ;;  %v14171_v54 = vmul.f32 %v10132_v31, %v7696_v26  ;;  %v10146_v0 = vld [vmem:[%s10642_s17 + $0x60] sm:$0xff]  ;;  %v10147_v61 = vld [vmem:[%s10642_s17 + $0x68] sm:$0xff]  ;;  %v10148_v26 = vld [vmem:[%s10642_s17 + $0x70] sm:$0xff] }
 0x53b   : > { %v14173_v22 = vmul.f32 %v10132_v31, %v7698_v47  ;;  %v7733_v43 = vadd.f32 %v10134_v6, %v7701_v5  ;;  %v7734_v50 = vadd.f32 %v10135_v46, %v7702_v19  ;;  %v7735_v28 = vadd.f32 %v10136_v39, %v7703_v7  ;;  %v10150_v19 = vld [vmem:[%s10642_s17 + $0x80] sm:$0xff]  ;;  %v10164_v6 = vld [vmem:[%s10642_s17 + $0xf8] sm:$0xff] }
 0x53c   : > { %v7736_v3 = vadd.f32 %v10137_v62, %v7704_v48  ;;  %v7737_v18 = vadd.f32 %v10138_v23, %v7705_v30  ;;  %v7738_v37 = vadd.f32 %v10139_v56, %v7706_v34  ;;  %v7739_v57 = vadd.f32 %v10140_v42, %v7707_v49  ;;  %v10151_v48 = vld [vmem:[%s10642_s17 + $0x88] sm:$0xff]  ;;  %v10152_v34 = vld [vmem:[%s10642_s17 + $0x90] sm:$0xff] }
 0x53d   : > { %v7740_v13 = vadd.f32 %v10141_v27, %v7708_v59  ;;  %v7741_v63 = vadd.f32 %v10142_v44, %v7709_v38  ;;  %v7742_v32 = vadd.f32 %v10143_v25, %v7710_v58  ;;  %v7743_v53 = vadd.f32 %v10144_v40, %v7711_v52  ;;  %7765 = vst.msk [vmem:[%s14147_s24] sm:$0xff] %vm580_vm2, %v7733_v43  ;;  %v10154_v59 = vld [vmem:[%s10642_s17 + $0xa0] sm:$0xff]  ;;  %v10155_v58 = vld [vmem:[%s10642_s17 + $0xa8] sm:$0xff] }
 0x53e   : > { %7766 = vst.msk [vmem:[%s14147_s24 + $0x8] sm:$0xff] %vm580_vm2, %v7734_v50  ;;  %7767 = vst.msk [vmem:[%s14147_s24 + $0x10] sm:$0xff] %vm580_vm2, %v7735_v28  ;;  %v7744_v1 = vadd.f32 %v10145_v20, %v7712_v10  ;;  %v7745_v31 = vadd.f32 %v10146_v0, %v7713_v55  ;;  %v7746_v41 = vadd.f32 %v10147_v61, %v7714_v60  ;;  %v10156_v10 = vld [vmem:[%s10642_s17 + $0xb0] sm:$0xff]  ;;  %v10157_v60 = vld [vmem:[%s10642_s17 + $0xb8] sm:$0xff] }
 0x53f   : > { %v7747_v47 = vadd.f32 %v10148_v26, %v7715_v29  ;;  %7768 = vst.msk [vmem:[%s14147_s24 + $0x18] sm:$0xff] %vm580_vm2, %v7736_v3  ;;  %7769 = vst.msk [vmem:[%s14147_s24 + $0x20] sm:$0xff] %vm580_vm2, %v7737_v18  ;;  %v7748_v5 = vadd.f32 %v10149_v14, %v7716_v8  ;;  %v7749_v7 = vadd.f32 %v10150_v19, %v7717_v17  ;;  %v10158_v8 = vld [vmem:[%s10642_s17 + $0xc0] sm:$0xff] }
 0x540   : > { %7770 = vst.msk [vmem:[%s14147_s24 + $0x28] sm:$0xff] %vm580_vm2, %v7738_v37  ;;  %7771 = vst.msk [vmem:[%s14147_s24 + $0x30] sm:$0xff] %vm580_vm2, %v7739_v57  ;;  %v7750_v30 = vadd.f32 %v10151_v48, %v7718_v2  ;;  %v7751_v49 = vadd.f32 %v10152_v34, %v7719_v51  ;;  %v7752_v21 = vadd.f32 %v10153_v16, %v14151_v45  ;;  %v10159_v2 = vld [vmem:[%s10642_s17 + $0xc8] sm:$0xff]  ;;  %v10160_v45 = vld [vmem:[%s10642_s17 + $0xd0] sm:$0xff] }
 0x541   : > { %7772 = vst.msk [vmem:[%s14147_s24 + $0x38] sm:$0xff] %vm580_vm2, %v7740_v13  ;;  %7773 = vst.msk [vmem:[%s14147_s24 + $0x40] sm:$0xff] %vm580_vm2, %v7741_v63  ;;  %v7753_v38 = vadd.f32 %v10154_v59, %v14153_v36  ;;  %v7754_v52 = vadd.f32 %v10155_v58, %v14155_v12  ;;  %v7755_v55 = vadd.f32 %v10156_v10, %v14157_v33  ;;  %v10161_v12 = vld [vmem:[%s10642_s17 + $0xd8] sm:$0xff] }
 0x542   : > { %7774 = vst.msk [vmem:[%s14147_s24 + $0x48] sm:$0xff] %vm580_vm2, %v7742_v32  ;;  %7775 = vst.msk [vmem:[%s14147_s24 + $0x50] sm:$0xff] %vm580_vm2, %v7743_v53  ;;  %v7756_v29 = vadd.f32 %v10157_v60, %v14159_v4  ;;  %v7757_v17 = vadd.f32 %v10158_v8, %v14161_v9  ;;  %v7758_v51 = vadd.f32 %v10159_v2, %v14163_v11  ;;  %v10162_v4 = vld [vmem:[%s10642_s17 + $0xe0] sm:$0xff]  ;;  %v10163_v11 = vld [vmem:[%s10642_s17 + $0xe8] sm:$0xff] }
 0x543   : > { %7776 = vst.msk [vmem:[%s14147_s24 + $0x58] sm:$0xff] %vm580_vm2, %v7744_v1  ;;  %7777 = vst.msk [vmem:[%s14147_s24 + $0x60] sm:$0xff] %vm580_vm2, %v7745_v31  ;;  %v7759_v36 = vadd.f32 %v10160_v45, %v14165_v35  ;;  %v7760_v33 = vadd.f32 %v10161_v12, %v14167_v15  ;;  %v7761_v9 = vadd.f32 %v10162_v4, %v14169_v24 }
 0x544   : > { %7778 = vst.msk [vmem:[%s14147_s24 + $0x68] sm:$0xff] %vm580_vm2, %v7746_v41  ;;  %7779 = vst.msk [vmem:[%s14147_s24 + $0x70] sm:$0xff] %vm580_vm2, %v7747_v47  ;;  %v7762_v35 = vadd.f32 %v10163_v11, %v14171_v54  ;;  %v7764_v43 = vadd.f32 %v10164_v6, %v14173_v22 }
 0x545   : > { %7780 = vst.msk [vmem:[%s14147_s24 + $0x78] sm:$0xff] %vm580_vm2, %v7748_v5  ;;  %7781 = vst.msk [vmem:[%s14147_s24 + $0x80] sm:$0xff] %vm580_vm2, %v7749_v7 }
 0x546   : > { %7782 = vst.msk [vmem:[%s14147_s24 + $0x88] sm:$0xff] %vm580_vm2, %v7750_v30  ;;  %7783 = vst.msk [vmem:[%s14147_s24 + $0x90] sm:$0xff] %vm580_vm2, %v7751_v49 }
 0x547   : > { %7784 = vst.msk [vmem:[%s14147_s24 + $0x98] sm:$0xff] %vm580_vm2, %v7752_v21  ;;  %7785 = vst.msk [vmem:[%s14147_s24 + $0xa0] sm:$0xff] %vm580_vm2, %v7753_v38 }
 0x548   : > { %7786 = vst.msk [vmem:[%s14147_s24 + $0xa8] sm:$0xff] %vm580_vm2, %v7754_v52  ;;  %7787 = vst.msk [vmem:[%s14147_s24 + $0xb0] sm:$0xff] %vm580_vm2, %v7755_v55 }
 0x549   : > { %7788 = vst.msk [vmem:[%s14147_s24 + $0xb8] sm:$0xff] %vm580_vm2, %v7756_v29  ;;  %7789 = vst.msk [vmem:[%s14147_s24 + $0xc0] sm:$0xff] %vm580_vm2, %v7757_v17 }
 0x54a   : > { %7790 = vst.msk [vmem:[%s14147_s24 + $0xc8] sm:$0xff] %vm580_vm2, %v7758_v51  ;;  %7791 = vst.msk [vmem:[%s14147_s24 + $0xd0] sm:$0xff] %vm580_vm2, %v7759_v36 }
 0x54b   : > { %7792 = vst.msk [vmem:[%s14147_s24 + $0xd8] sm:$0xff] %vm580_vm2, %v7760_v33  ;;  %7793 = vst.msk [vmem:[%s14147_s24 + $0xe0] sm:$0xff] %vm580_vm2, %v7761_v9 }
 0x54c   : > { %7794 = vst.msk [vmem:[%s14147_s24 + $0xe8] sm:$0xff] %vm580_vm2, %v7762_v35  ;;  %7796 = vst.msk [vmem:[%s14147_s24 + $0xf8] sm:$0xff] %vm580_vm2, %v7764_v43 }
 0x54d   : > { %10320 = shalt.err (!%p10317_p13)
}
 0x54e   : > { %s10321_s16 = scalar_lea.hbm %s14255_s15, 4096  ;;  %s10325_s7 = scalar_lea.hbm %s14340_s5, 8192 }
 0x54f   : > { %p10322_p9 = scmp.ne.s32.totalorder %s14255_s15, %s10321_s16  ;;  %p10326_p6 = scmp.lt.u32.totalorder %s14255_s15, %s14340_s5 }
 0x550   : > { %p10327_p4 = scmp.lt.u32.totalorder %s10325_s7, %s10321_s16  ;;  %p10329_p3 = scmp.lt.u32.totalorder %s10321_s16, %s14255_s15 }
 0x551   : > { %p10323_p0 = pnand %p10322_p9, %p10584_p10 }
 0x552   : > { %p10328_p8 = por %p10327_p4, %p10326_p6 }
 0x553   : > { %p10324_p11 = pneg %p10323_p0 }
 0x554   : > { %p10330_p5 = por %p10329_p3, %p10328_p8 }
 0x556   : > { %p10331_p7 = pnand %p10330_p5, %p10324_p11 }
 0x558   : > { %10334 = shalt.err (!%p10331_p7)
}
 0x559   : > { %s10393_s26 = smov 128   ;;  %s10394_s13 = smov 8  }
 0x55a   : > { %10054 = dma.vmem_to_hbm [thread:$0]  (%p10584_p10), %s14259_s11, 4096, %s14255_s15, %s7798_s22, %s10393_s26, %s10393_s26, %s10394_s13  }
 0x55b PF: > { %s7826_s8 = sand.u32 1, %s10369_s18   ;;  %p14753_p12 = scmp.ne.s32.totalorder %s14507_s25, 0 }
 0x55c   : > { %p14754_p2 = scmp.ge.s32.totalorder %s10381_s21, 2  ;;  %s7827_s30 = scalar_lea.sflag [#allocation5], %s7826_s8 }
 0x55e   : > { %p10074_p1 = pnand %p14754_p2, %p14753_p12 }
 0x560   : > { %10364 = dma.done.wait (!%p10074_p1), %s7827_s30, 4096  }
 0x561   : > { %10366 = vsyncadd (!%p10074_p1), %s7827_s30, 4294963200  ;;  %p20_p13 = scmp.ge.s32.totalorder %s10574_s14, 4   ;;  %s14755_s18 = smov %s10373_s19 }
 0x562   : > { %s14756_s19 = smov %s10377_s20  ;;  %s14757_s20 = smov %s10590_s28 }
 0x563   : > { %s14758_s21 = smov %s10574_s14  ;;  %22 = sbr.rel (!%p20_p13) target bundleno = 7 (0x7), region = 101 }
 0x56a   :  { %7832 = vsyncpa [#allocation4], 1 }
 0x56b   :  { %7834 = vsyncpa [#allocation4 + $0x1], 1 }
 0x56c   :  { %7835 = vsyncpa [#allocation7], 1 }
 0x56d   :  { %7836 = vsyncpa [#allocation10], 1 }
 0x56e   :  { %7837 = vsyncpa [#allocation5], 1 }
 0x56f   :  { %7839 = vsyncpa [#allocation5 + $0x1], 1 }

</bundles_post_ra>
